<compile_context>
chip_gen: v7x
topology: tpu7x:2x2x1
jax: 0.10.0
libtpu: 0.0.40
codegen_flags: <defaults>
</compile_context>

<pallas_src>
import functools

import jax
import jax.numpy as jnp
import numpy as np
from jax.experimental import pallas as pl
from jax.experimental.pallas import tpu as pltpu


def _round_up(x, m):
    return ((x + m - 1) // m) * m


# ----------------------------------------------------------------------------
# Kernel: per batch-tile, run all layers.  Weights/shifts are full-array
# blocks with constant index_maps (VMEM-resident across the whole grid).
# ----------------------------------------------------------------------------
def _mlp_kernel(n_fc, x_ref, *refs):
    # refs = (w0, shift0, ..., w_{n-1}, shift_{n-1}, clf_w, clf_b, out)
    out_ref = refs[-1]
    h = x_ref[...]                                   # bf16 [TB, D_pad]
    idx = 0
    for _ in range(n_fc):
        w = refs[idx][...]                           # bf16 [in_pad, out_pad]
        sh = refs[idx + 1][...]                      # f32  [1, out_pad]
        idx += 2
        acc = jnp.dot(h, w, preferred_element_type=jnp.float32)   # MXU, f32 acc
        h = jnp.maximum(acc + sh, 0.0).astype(jnp.bfloat16)       # BN shift + ReLU
    clf_w = refs[idx][...]                           # bf16 [feat_pad, nc_pad]
    clf_b = refs[idx + 1][...]                       # f32  [1, nc_pad]
    out_ref[...] = jnp.dot(h, clf_w, preferred_element_type=jnp.float32) + clf_b


# ----------------------------------------------------------------------------
# Tile-size heuristic (review item 1/2/7/8):
#   * >=2048 rows -> TB=1024 (grid >= 2, feeds both v7x TCs, amortizes the
#     ~0.35us per-step overhead to <10%)
#   * >=512  rows -> TB=512 ; >=256 -> 256 ; >=128 -> 128 (128/256-aligned)
#   * tiny batches -> multiple of 16 (bf16 native sublane tile), never 8.
# ----------------------------------------------------------------------------
def _pick_tb(batch):
    if batch >= 2048:
        return 1024
    if batch >= 512:
        return 512
    if batch >= 256:
        return 256
    if batch >= 128:
        return 128
    return max(16, _round_up(batch, 16))


def _build_specs(tb, d_pad, nc_pad, fc_params, clf_w, clf_b, single_buffer_weights):
    def resident(shape):
        # Constant block index across the grid -> a single buffer suffices.
        if single_buffer_weights:
            return pl.BlockSpec(shape, lambda b: (0, 0),
                                pipeline_mode=pl.Buffered(1))
        return pl.BlockSpec(shape, lambda b: (0, 0))

    in_specs = [pl.BlockSpec((tb, d_pad), lambda b: (b, 0))]
    for w, sh in fc_params:
        in_specs.append(resident(w.shape))
        in_specs.append(resident(sh.shape))
    in_specs.append(resident(clf_w.shape))
    in_specs.append(resident(clf_b.shape))
    out_spec = pl.BlockSpec((tb, nc_pad), lambda b: (b, 0))   # lane-dense store
    return in_specs, out_spec


def _vmem_budget(tb, d_pad, nc_pad, fc_params, clf_w, clf_b, single_buffer_weights):
    weight_bytes = sum(int(a.size) * a.dtype.itemsize
                       for pair in fc_params for a in pair)
    weight_bytes += int(clf_w.size) * clf_w.dtype.itemsize
    weight_bytes += int(clf_b.size) * clf_b.dtype.itemsize
    buf_factor = 1 if single_buffer_weights else 2
    io_bytes = 2 * tb * d_pad * 2 + 2 * tb * nc_pad * 4       # double-buffered x / out
    max_pad = max([d_pad] + [w.shape[1] for w, _ in fc_params])
    scratch_bytes = tb * max_pad * (4 + 2) * 2                # f32 acc + bf16 act, ~2 live
    est = buf_factor * weight_bytes + io_bytes + scratch_bytes + 4 * 2**20
    return int(min(100 * 2**20, max(32 * 2**20, est)))


# ----------------------------------------------------------------------------
# Wrapper: flatten, single bf16 pad (batch to TB multiple, feature to the
# weight's lane-padded width), grid over batch, slice padding off at the end.
# ----------------------------------------------------------------------------
def mlp_forward(x, fc_params, clf_w, clf_b, num_classes, *, tb=None):
    batch = x.shape[0]
    # matches torch .view(B, -1); cast to bf16 BEFORE padding (half the bytes,
    # no f32 pad roundtrip in HBM).
    x_bf = x.reshape(batch, -1).astype(jnp.bfloat16)
    d = x_bf.shape[1]
    d_pad = fc_params[0][0].shape[0]

    if tb is None:
        tb = _pick_tb(batch)
    b_pad = _round_up(batch, tb)
    if b_pad != batch or d_pad != d:
        x_bf = jnp.pad(x_bf, ((0, b_pad - batch), (0, d_pad - d)))

    nc_pad = clf_w.shape[1]
    grid = (b_pad // tb,)

    inputs = [x_bf]
    for w, sh in fc_params:
        inputs.extend([w, sh])
    inputs.extend([clf_w, clf_b])

    flops = 2 * b_pad * (sum(w.shape[0] * w.shape[1] for w, _ in fc_params)
                         + clf_w.shape[0] * clf_w.shape[1])
    bytes_accessed = (sum(int(a.size) * a.dtype.itemsize for a in inputs)
                      + b_pad * nc_pad * 4)

    out = None
    # First attempt uses single-buffered (pl.Buffered(1)) resident weights;
    # if the toolchain rejects pipeline_mode, retry with default buffering.
    for single_buffer_weights in (True, False):
        try:
            in_specs, out_spec = _build_specs(
                tb, d_pad, nc_pad, fc_params, clf_w, clf_b, single_buffer_weights)
            vmem_limit = _vmem_budget(
                tb, d_pad, nc_pad, fc_params, clf_w, clf_b, single_buffer_weights)
            fn = pl.pallas_call(
                functools.partial(_mlp_kernel, len(fc_params)),
                out_shape=jax.ShapeDtypeStruct((b_pad, nc_pad), jnp.float32),
                grid=grid,
                in_specs=in_specs,
                out_specs=out_spec,
                compiler_params=pltpu.CompilerParams(
                    dimension_semantics=("parallel",),
                    vmem_limit_bytes=vmem_limit,
                ),
                cost_estimate=pl.CostEstimate(
                    flops=int(flops), transcendentals=0,
                    bytes_accessed=int(bytes_accessed)),
            )
            out = fn(*inputs)
            break
        except Exception:  # noqa: BLE001 — fall back to default double-buffering
            if not single_buffer_weights:
                raise

    return out[:batch, :num_classes]


# ----------------------------------------------------------------------------
# Deterministic parameter construction (shapes follow MLP.__init__):
#   hid_dims = [480, 360, 240, 120] with relief dim prepended; BN folded into
#   the preceding Linear (scale into weight columns, shift kept separate),
#   everything zero-padded to lane multiples and weights cast to bf16.
# ----------------------------------------------------------------------------
def init_params(key, input_size, num_classes, base_hidden_dim=120, num_layers=4):
    hid_dims = [base_hidden_dim * i for i in range(num_layers, 0, -1)]
    relief_dim = round((input_size + hid_dims[0]) / 2)
    hid_dims.insert(0, relief_dim)
    in_dims = [input_size] + hid_dims[:-1]

    in_pads = [_round_up(d, 128) for d in in_dims]
    out_pads = [_round_up(d, 128) for d in hid_dims]

    eps = 1e-5
    fc_params = []
    for li, (ind, oud) in enumerate(zip(in_dims, hid_dims)):
        key, kw, kg, kb, km, kv = jax.random.split(key, 6)
        bound = 1.0 / np.sqrt(ind)
        # torch Linear weight is (out, in); store transposed (in, out).
        w = jax.random.uniform(kw, (ind, oud), jnp.float32, -bound, bound)
        gamma = jax.random.uniform(kg, (oud,), jnp.float32, 0.5, 1.5)
        beta = jax.random.uniform(kb, (oud,), jnp.float32, -0.1, 0.1)
        r_mean = jax.random.uniform(km, (oud,), jnp.float32, -0.1, 0.1)
        r_var = jax.random.uniform(kv, (oud,), jnp.float32, 0.5, 1.5)
        scale = gamma / jnp.sqrt(r_var + eps)
        shift = beta - r_mean * scale
        w_folded = w * scale[None, :]                      # fold BN scale into W
        ip, op = in_pads[li], out_pads[li]
        w_pad = jnp.zeros((ip, op), jnp.float32).at[:ind, :oud].set(w_folded)
        sh_pad = jnp.zeros((1, op), jnp.float32).at[0, :oud].set(shift)
        fc_params.append((w_pad.astype(jnp.bfloat16), sh_pad))

    key, kw, kb = jax.random.split(key, 3)
    feat = hid_dims[-1]
    feat_pad = out_pads[-1]
    nc_pad = _round_up(num_classes, 128)
    bound = 1.0 / np.sqrt(feat)
    clf_w = jax.random.uniform(kw, (feat, num_classes), jnp.float32, -bound, bound)
    clf_b = jax.random.uniform(kb, (num_classes,), jnp.float32, -bound, bound)
    clf_w_pad = jnp.zeros((feat_pad, nc_pad), jnp.float32).at[:feat, :num_classes].set(clf_w)
    clf_b_pad = jnp.zeros((1, nc_pad), jnp.float32).at[0, :num_classes].set(clf_b)
    return fc_params, clf_w_pad.astype(jnp.bfloat16), clf_b_pad


# Pure-JAX reference with the identical (padded / folded / bf16) math path.
def ref_forward(x, fc_params, clf_w, clf_b, num_classes):
    batch = x.shape[0]
    h = x.reshape(batch, -1).astype(jnp.bfloat16)
    d_pad = fc_params[0][0].shape[0]
    if d_pad != h.shape[1]:
        h = jnp.pad(h, ((0, 0), (0, d_pad - h.shape[1])))
    for w, sh in fc_params:
        acc = jnp.dot(h, w, preferred_element_type=jnp.float32)
        h = jnp.maximum(acc + sh, 0.0).astype(jnp.bfloat16)
    out = jnp.dot(h, clf_w, preferred_element_type=jnp.float32) + clf_b
    return out[:, :num_classes]


if __name__ == "__main__":
    key = jax.random.PRNGKey(0)
    k_x, k_p = jax.random.split(key)

    batch, chans, spatial = 2, 4, 16
    num_classes = 10
    x = jax.random.normal(k_x, (batch, chans, spatial, spatial), jnp.float32)
    input_size = chans * spatial * spatial  # 1024 after flatten

    fc_params, clf_w, clf_b = init_params(k_p, input_size, num_classes)

    logits = mlp_forward(x, fc_params, clf_w, clf_b, num_classes)
    logits = jax.block_until_ready(logits)

    expected = ref_forward(x, fc_params, clf_w, clf_b, num_classes)
    np.testing.assert_allclose(np.asarray(logits), np.asarray(expected),
                               rtol=2e-2, atol=2e-2)
    print("KERNEL_OK")
</pallas_src>

<mosaic_0001>
module attributes {stable_mosaic.version = 11 : i64} {
  func.func @_mlp_kernel(%arg0: i32, %arg1: memref<16x1024xbf16, #tpu.memory_space<vmem>>, %arg2: memref<1024x768xbf16, #tpu.memory_space<vmem>>, %arg3: memref<1x768xf32, #tpu.memory_space<vmem>>, %arg4: memref<768x512xbf16, #tpu.memory_space<vmem>>, %arg5: memref<1x512xf32, #tpu.memory_space<vmem>>, %arg6: memref<512x384xbf16, #tpu.memory_space<vmem>>, %arg7: memref<1x384xf32, #tpu.memory_space<vmem>>, %arg8: memref<384x256xbf16, #tpu.memory_space<vmem>>, %arg9: memref<1x256xf32, #tpu.memory_space<vmem>>, %arg10: memref<256x128xbf16, #tpu.memory_space<vmem>>, %arg11: memref<1x128xf32, #tpu.memory_space<vmem>>, %arg12: memref<128x128xbf16, #tpu.memory_space<vmem>>, %arg13: memref<1x128xf32, #tpu.memory_space<vmem>>, %arg14: memref<16x128xf32, #tpu.memory_space<vmem>>) attributes {dimension_semantics = [#tpu.dimension_semantics<parallel>], iteration_bounds = array<i64: 1>, scalar_prefetch = 0 : i64, scratch_operands = 0 : i64, tpu.core_type = #tpu.core_type<tc>, window_params = [{transform_indices = @transform_0, window_bounds = array<i64: 16, 1024>}, {pipeline_mode = #tpu.pipeline_mode<synchronous>, transform_indices = @transform_1, window_bounds = array<i64: 1024, 768>}, {pipeline_mode = #tpu.pipeline_mode<synchronous>, transform_indices = @transform_2, window_bounds = array<i64: 1, 768>}, {pipeline_mode = #tpu.pipeline_mode<synchronous>, transform_indices = @transform_3, window_bounds = array<i64: 768, 512>}, {pipeline_mode = #tpu.pipeline_mode<synchronous>, transform_indices = @transform_4, window_bounds = array<i64: 1, 512>}, {pipeline_mode = #tpu.pipeline_mode<synchronous>, transform_indices = @transform_5, window_bounds = array<i64: 512, 384>}, {pipeline_mode = #tpu.pipeline_mode<synchronous>, transform_indices = @transform_6, window_bounds = array<i64: 1, 384>}, {pipeline_mode = #tpu.pipeline_mode<synchronous>, transform_indices = @transform_7, window_bounds = array<i64: 384, 256>}, {pipeline_mode = #tpu.pipeline_mode<synchronous>, transform_indices = @transform_8, window_bounds = array<i64: 1, 256>}, {pipeline_mode = #tpu.pipeline_mode<synchronous>, transform_indices = @transform_9, window_bounds = array<i64: 256, 128>}, {pipeline_mode = #tpu.pipeline_mode<synchronous>, transform_indices = @transform_10, window_bounds = array<i64: 1, 128>}, {pipeline_mode = #tpu.pipeline_mode<synchronous>, transform_indices = @transform_11, window_bounds = array<i64: 128, 128>}, {pipeline_mode = #tpu.pipeline_mode<synchronous>, transform_indices = @transform_12, window_bounds = array<i64: 1, 128>}, {transform_indices = @transform_13, window_bounds = array<i64: 16, 128>}]} {
    %c0 = arith.constant 0 : index
    %c0_0 = arith.constant 0 : index
    %0 = vector.load %arg1[%c0, %c0_0] : memref<16x1024xbf16, #tpu.memory_space<vmem>>, vector<16x1024xbf16>
    %c0_1 = arith.constant 0 : index
    %c0_2 = arith.constant 0 : index
    %1 = vector.load %arg2[%c0_1, %c0_2] : memref<1024x768xbf16, #tpu.memory_space<vmem>>, vector<1024x768xbf16>
    %c0_3 = arith.constant 0 : index
    %c0_4 = arith.constant 0 : index
    %2 = vector.load %arg3[%c0_3, %c0_4] : memref<1x768xf32, #tpu.memory_space<vmem>>, vector<1x768xf32>
    %cst = arith.constant dense<0.000000e+00> : vector<16x768xf32>
    %3 = tpu.matmul %0, %1, %cst {dimension_numbers = #tpu.dot_dimension_numbers<[1], [0], [0], [1], [0, 0, 1, 1], [], []>} : vector<16x1024xbf16>, vector<1024x768xbf16>, vector<16x768xf32> -> vector<16x768xf32>
    %4 = vector.broadcast %2 : vector<1x768xf32> to vector<16x768xf32>
    %5 = arith.addf %3, %4 : vector<16x768xf32>
    %cst_5 = arith.constant 0.000000e+00 : f32
    %6 = vector.broadcast %cst_5 : f32 to vector<16x768xf32>
    %7 = arith.maximumf %5, %6 : vector<16x768xf32>
    %8 = arith.truncf %7 : vector<16x768xf32> to vector<16x768xbf16>
    %c0_6 = arith.constant 0 : index
    %c0_7 = arith.constant 0 : index
    %9 = vector.load %arg4[%c0_6, %c0_7] : memref<768x512xbf16, #tpu.memory_space<vmem>>, vector<768x512xbf16>
    %c0_8 = arith.constant 0 : index
    %c0_9 = arith.constant 0 : index
    %10 = vector.load %arg5[%c0_8, %c0_9] : memref<1x512xf32, #tpu.memory_space<vmem>>, vector<1x512xf32>
    %cst_10 = arith.constant dense<0.000000e+00> : vector<16x512xf32>
    %11 = tpu.matmul %8, %9, %cst_10 {dimension_numbers = #tpu.dot_dimension_numbers<[1], [0], [0], [1], [0, 0, 1, 1], [], []>} : vector<16x768xbf16>, vector<768x512xbf16>, vector<16x512xf32> -> vector<16x512xf32>
    %12 = vector.broadcast %10 : vector<1x512xf32> to vector<16x512xf32>
    %13 = arith.addf %11, %12 : vector<16x512xf32>
    %cst_11 = arith.constant 0.000000e+00 : f32
    %14 = vector.broadcast %cst_11 : f32 to vector<16x512xf32>
    %15 = arith.maximumf %13, %14 : vector<16x512xf32>
    %16 = arith.truncf %15 : vector<16x512xf32> to vector<16x512xbf16>
    %c0_12 = arith.constant 0 : index
    %c0_13 = arith.constant 0 : index
    %17 = vector.load %arg6[%c0_12, %c0_13] : memref<512x384xbf16, #tpu.memory_space<vmem>>, vector<512x384xbf16>
    %c0_14 = arith.constant 0 : index
    %c0_15 = arith.constant 0 : index
    %18 = vector.load %arg7[%c0_14, %c0_15] : memref<1x384xf32, #tpu.memory_space<vmem>>, vector<1x384xf32>
    %cst_16 = arith.constant dense<0.000000e+00> : vector<16x384xf32>
    %19 = tpu.matmul %16, %17, %cst_16 {dimension_numbers = #tpu.dot_dimension_numbers<[1], [0], [0], [1], [0, 0, 1, 1], [], []>} : vector<16x512xbf16>, vector<512x384xbf16>, vector<16x384xf32> -> vector<16x384xf32>
    %20 = vector.broadcast %18 : vector<1x384xf32> to vector<16x384xf32>
    %21 = arith.addf %19, %20 : vector<16x384xf32>
    %cst_17 = arith.constant 0.000000e+00 : f32
    %22 = vector.broadcast %cst_17 : f32 to vector<16x384xf32>
    %23 = arith.maximumf %21, %22 : vector<16x384xf32>
    %24 = arith.truncf %23 : vector<16x384xf32> to vector<16x384xbf16>
    %c0_18 = arith.constant 0 : index
    %c0_19 = arith.constant 0 : index
    %25 = vector.load %arg8[%c0_18, %c0_19] : memref<384x256xbf16, #tpu.memory_space<vmem>>, vector<384x256xbf16>
    %c0_20 = arith.constant 0 : index
    %c0_21 = arith.constant 0 : index
    %26 = vector.load %arg9[%c0_20, %c0_21] : memref<1x256xf32, #tpu.memory_space<vmem>>, vector<1x256xf32>
    %cst_22 = arith.constant dense<0.000000e+00> : vector<16x256xf32>
    %27 = tpu.matmul %24, %25, %cst_22 {dimension_numbers = #tpu.dot_dimension_numbers<[1], [0], [0], [1], [0, 0, 1, 1], [], []>} : vector<16x384xbf16>, vector<384x256xbf16>, vector<16x256xf32> -> vector<16x256xf32>
    %28 = vector.broadcast %26 : vector<1x256xf32> to vector<16x256xf32>
    %29 = arith.addf %27, %28 : vector<16x256xf32>
    %cst_23 = arith.constant 0.000000e+00 : f32
    %30 = vector.broadcast %cst_23 : f32 to vector<16x256xf32>
    %31 = arith.maximumf %29, %30 : vector<16x256xf32>
    %32 = arith.truncf %31 : vector<16x256xf32> to vector<16x256xbf16>
    %c0_24 = arith.constant 0 : index
    %c0_25 = arith.constant 0 : index
    %33 = vector.load %arg10[%c0_24, %c0_25] : memref<256x128xbf16, #tpu.memory_space<vmem>>, vector<256x128xbf16>
    %c0_26 = arith.constant 0 : index
    %c0_27 = arith.constant 0 : index
    %34 = vector.load %arg11[%c0_26, %c0_27] : memref<1x128xf32, #tpu.memory_space<vmem>>, vector<1x128xf32>
    %cst_28 = arith.constant dense<0.000000e+00> : vector<16x128xf32>
    %35 = tpu.matmul %32, %33, %cst_28 {dimension_numbers = #tpu.dot_dimension_numbers<[1], [0], [0], [1], [0, 0, 1, 1], [], []>} : vector<16x256xbf16>, vector<256x128xbf16>, vector<16x128xf32> -> vector<16x128xf32>
    %36 = vector.broadcast %34 : vector<1x128xf32> to vector<16x128xf32>
    %37 = arith.addf %35, %36 : vector<16x128xf32>
    %cst_29 = arith.constant 0.000000e+00 : f32
    %38 = vector.broadcast %cst_29 : f32 to vector<16x128xf32>
    %39 = arith.maximumf %37, %38 : vector<16x128xf32>
    %40 = arith.truncf %39 : vector<16x128xf32> to vector<16x128xbf16>
    %c0_30 = arith.constant 0 : index
    %c0_31 = arith.constant 0 : index
    %41 = vector.load %arg12[%c0_30, %c0_31] : memref<128x128xbf16, #tpu.memory_space<vmem>>, vector<128x128xbf16>
    %c0_32 = arith.constant 0 : index
    %c0_33 = arith.constant 0 : index
    %42 = vector.load %arg13[%c0_32, %c0_33] : memref<1x128xf32, #tpu.memory_space<vmem>>, vector<1x128xf32>
    %cst_34 = arith.constant dense<0.000000e+00> : vector<16x128xf32>
    %43 = tpu.matmul %40, %41, %cst_34 {dimension_numbers = #tpu.dot_dimension_numbers<[1], [0], [0], [1], [0, 0, 1, 1], [], []>} : vector<16x128xbf16>, vector<128x128xbf16>, vector<16x128xf32> -> vector<16x128xf32>
    %44 = vector.broadcast %42 : vector<1x128xf32> to vector<16x128xf32>
    %45 = arith.addf %43, %44 : vector<16x128xf32>
    %c0_35 = arith.constant 0 : index
    %c0_36 = arith.constant 0 : index
    %46 = vector.load %arg14[%c0_35, %c0_36] : memref<16x128xf32, #tpu.memory_space<vmem>>, vector<16x128xf32>
    tpu.vector_store %arg14[%c0_35, %c0_36], %45 {strides = array<i32>} : memref<16x128xf32, #tpu.memory_space<vmem>>, vector<16x128xf32>,
    return
  }
  func.func @transform_0(%arg0: i32) -> (i32, i32) {
    %c0_i32 = arith.constant 0 : i32
    %c0_i32_0 = arith.constant 0 : i32
    return %arg0, %c0_i32 : i32, i32
  }
  func.func @transform_1(%arg0: i32) -> (i32, i32) {
    %c0_i32 = arith.constant 0 : i32
    %c0_i32_0 = arith.constant 0 : i32
    %c0_i32_1 = arith.constant 0 : i32
    return %c0_i32, %c0_i32_0 : i32, i32
  }
  func.func @transform_2(%arg0: i32) -> (i32, i32) {
    %c0_i32 = arith.constant 0 : i32
    %c0_i32_0 = arith.constant 0 : i32
    %c0_i32_1 = arith.constant 0 : i32
    return %c0_i32, %c0_i32_0 : i32, i32
  }
  func.func @transform_3(%arg0: i32) -> (i32, i32) {
    %c0_i32 = arith.constant 0 : i32
    %c0_i32_0 = arith.constant 0 : i32
    %c0_i32_1 = arith.constant 0 : i32
    return %c0_i32, %c0_i32_0 : i32, i32
  }
  func.func @transform_4(%arg0: i32) -> (i32, i32) {
    %c0_i32 = arith.constant 0 : i32
    %c0_i32_0 = arith.constant 0 : i32
    %c0_i32_1 = arith.constant 0 : i32
    return %c0_i32, %c0_i32_0 : i32, i32
  }
  func.func @transform_5(%arg0: i32) -> (i32, i32) {
    %c0_i32 = arith.constant 0 : i32
    %c0_i32_0 = arith.constant 0 : i32
    %c0_i32_1 = arith.constant 0 : i32
    return %c0_i32, %c0_i32_0 : i32, i32
  }
  func.func @transform_6(%arg0: i32) -> (i32, i32) {
    %c0_i32 = arith.constant 0 : i32
    %c0_i32_0 = arith.constant 0 : i32
    %c0_i32_1 = arith.constant 0 : i32
    return %c0_i32, %c0_i32_0 : i32, i32
  }
  func.func @transform_7(%arg0: i32) -> (i32, i32) {
    %c0_i32 = arith.constant 0 : i32
    %c0_i32_0 = arith.constant 0 : i32
    %c0_i32_1 = arith.constant 0 : i32
    return %c0_i32, %c0_i32_0 : i32, i32
  }
  func.func @transform_8(%arg0: i32) -> (i32, i32) {
    %c0_i32 = arith.constant 0 : i32
    %c0_i32_0 = arith.constant 0 : i32
    %c0_i32_1 = arith.constant 0 : i32
    return %c0_i32, %c0_i32_0 : i32, i32
  }
  func.func @transform_9(%arg0: i32) -> (i32, i32) {
    %c0_i32 = arith.constant 0 : i32
    %c0_i32_0 = arith.constant 0 : i32
    %c0_i32_1 = arith.constant 0 : i32
    return %c0_i32, %c0_i32_0 : i32, i32
  }
  func.func @transform_10(%arg0: i32) -> (i32, i32) {
    %c0_i32 = arith.constant 0 : i32
    %c0_i32_0 = arith.constant 0 : i32
    %c0_i32_1 = arith.constant 0 : i32
    return %c0_i32, %c0_i32_0 : i32, i32
  }
  func.func @transform_11(%arg0: i32) -> (i32, i32) {
    %c0_i32 = arith.constant 0 : i32
    %c0_i32_0 = arith.constant 0 : i32
    %c0_i32_1 = arith.constant 0 : i32
    return %c0_i32, %c0_i32_0 : i32, i32
  }
  func.func @transform_12(%arg0: i32) -> (i32, i32) {
    %c0_i32 = arith.constant 0 : i32
    %c0_i32_0 = arith.constant 0 : i32
    %c0_i32_1 = arith.constant 0 : i32
    return %c0_i32, %c0_i32_0 : i32, i32
  }
  func.func @transform_13(%arg0: i32) -> (i32, i32) {
    %c0_i32 = arith.constant 0 : i32
    %c0_i32_0 = arith.constant 0 : i32
    return %arg0, %c0_i32 : i32, i32
  }
}

module attributes {stable_mosaic.version = 11 : i64} {
  func.func @_mlp_kernel(%arg0: i32, %arg1: memref<16x1024xbf16, #tpu.memory_space<vmem>>, %arg2: memref<1024x768xbf16, #tpu.memory_space<vmem>>, %arg3: memref<1x768xf32, #tpu.memory_space<vmem>>, %arg4: memref<768x512xbf16, #tpu.memory_space<vmem>>, %arg5: memref<1x512xf32, #tpu.memory_space<vmem>>, %arg6: memref<512x384xbf16, #tpu.memory_space<vmem>>, %arg7: memref<1x384xf32, #tpu.memory_space<vmem>>, %arg8: memref<384x256xbf16, #tpu.memory_space<vmem>>, %arg9: memref<1x256xf32, #tpu.memory_space<vmem>>, %arg10: memref<256x128xbf16, #tpu.memory_space<vmem>>, %arg11: memref<1x128xf32, #tpu.memory_space<vmem>>, %arg12: memref<128x128xbf16, #tpu.memory_space<vmem>>, %arg13: memref<1x128xf32, #tpu.memory_space<vmem>>, %arg14: memref<16x128xf32, #tpu.memory_space<vmem>>) attributes {dimension_semantics = [#tpu.dimension_semantics<parallel>], iteration_bounds = array<i64: 1>, scalar_prefetch = 0 : i64, scratch_operands = 0 : i64, tpu.core_type = #tpu.core_type<tc>, window_params = [{transform_indices = @transform_0, window_bounds = array<i64: 16, 1024>}, {pipeline_mode = #tpu.pipeline_mode<synchronous>, transform_indices = @transform_1, window_bounds = array<i64: 1024, 768>}, {pipeline_mode = #tpu.pipeline_mode<synchronous>, transform_indices = @transform_2, window_bounds = array<i64: 1, 768>}, {pipeline_mode = #tpu.pipeline_mode<synchronous>, transform_indices = @transform_3, window_bounds = array<i64: 768, 512>}, {pipeline_mode = #tpu.pipeline_mode<synchronous>, transform_indices = @transform_4, window_bounds = array<i64: 1, 512>}, {pipeline_mode = #tpu.pipeline_mode<synchronous>, transform_indices = @transform_5, window_bounds = array<i64: 512, 384>}, {pipeline_mode = #tpu.pipeline_mode<synchronous>, transform_indices = @transform_6, window_bounds = array<i64: 1, 384>}, {pipeline_mode = #tpu.pipeline_mode<synchronous>, transform_indices = @transform_7, window_bounds = array<i64: 384, 256>}, {pipeline_mode = #tpu.pipeline_mode<synchronous>, transform_indices = @transform_8, window_bounds = array<i64: 1, 256>}, {pipeline_mode = #tpu.pipeline_mode<synchronous>, transform_indices = @transform_9, window_bounds = array<i64: 256, 128>}, {pipeline_mode = #tpu.pipeline_mode<synchronous>, transform_indices = @transform_10, window_bounds = array<i64: 1, 128>}, {pipeline_mode = #tpu.pipeline_mode<synchronous>, transform_indices = @transform_11, window_bounds = array<i64: 128, 128>}, {pipeline_mode = #tpu.pipeline_mode<synchronous>, transform_indices = @transform_12, window_bounds = array<i64: 1, 128>}, {transform_indices = @transform_13, window_bounds = array<i64: 16, 128>}]} {
    %c0 = arith.constant 0 : index
    %c0_0 = arith.constant 0 : index
    %0 = vector.load %arg1[%c0, %c0_0] : memref<16x1024xbf16, #tpu.memory_space<vmem>>, vector<16x1024xbf16>
    %c0_1 = arith.constant 0 : index
    %c0_2 = arith.constant 0 : index
    %1 = vector.load %arg2[%c0_1, %c0_2] : memref<1024x768xbf16, #tpu.memory_space<vmem>>, vector<1024x768xbf16>
    %c0_3 = arith.constant 0 : index
    %c0_4 = arith.constant 0 : index
    %2 = vector.load %arg3[%c0_3, %c0_4] : memref<1x768xf32, #tpu.memory_space<vmem>>, vector<1x768xf32>
    %cst = arith.constant dense<0.000000e+00> : vector<16x768xf32>
    %3 = tpu.matmul %0, %1, %cst {dimension_numbers = #tpu.dot_dimension_numbers<[1], [0], [0], [1], [0, 0, 1, 1], [], []>} : vector<16x1024xbf16>, vector<1024x768xbf16>, vector<16x768xf32> -> vector<16x768xf32>
    %4 = vector.broadcast %2 : vector<1x768xf32> to vector<16x768xf32>
    %5 = arith.addf %3, %4 : vector<16x768xf32>
    %cst_5 = arith.constant 0.000000e+00 : f32
    %6 = vector.broadcast %cst_5 : f32 to vector<16x768xf32>
    %7 = arith.maximumf %5, %6 : vector<16x768xf32>
    %8 = arith.truncf %7 : vector<16x768xf32> to vector<16x768xbf16>
    %c0_6 = arith.constant 0 : index
    %c0_7 = arith.constant 0 : index
    %9 = vector.load %arg4[%c0_6, %c0_7] : memref<768x512xbf16, #tpu.memory_space<vmem>>, vector<768x512xbf16>
    %c0_8 = arith.constant 0 : index
    %c0_9 = arith.constant 0 : index
    %10 = vector.load %arg5[%c0_8, %c0_9] : memref<1x512xf32, #tpu.memory_space<vmem>>, vector<1x512xf32>
    %cst_10 = arith.constant dense<0.000000e+00> : vector<16x512xf32>
    %11 = tpu.matmul %8, %9, %cst_10 {dimension_numbers = #tpu.dot_dimension_numbers<[1], [0], [0], [1], [0, 0, 1, 1], [], []>} : vector<16x768xbf16>, vector<768x512xbf16>, vector<16x512xf32> -> vector<16x512xf32>
    %12 = vector.broadcast %10 : vector<1x512xf32> to vector<16x512xf32>
    %13 = arith.addf %11, %12 : vector<16x512xf32>
    %cst_11 = arith.constant 0.000000e+00 : f32
    %14 = vector.broadcast %cst_11 : f32 to vector<16x512xf32>
    %15 = arith.maximumf %13, %14 : vector<16x512xf32>
    %16 = arith.truncf %15 : vector<16x512xf32> to vector<16x512xbf16>
    %c0_12 = arith.constant 0 : index
    %c0_13 = arith.constant 0 : index
    %17 = vector.load %arg6[%c0_12, %c0_13] : memref<512x384xbf16, #tpu.memory_space<vmem>>, vector<512x384xbf16>
    %c0_14 = arith.constant 0 : index
    %c0_15 = arith.constant 0 : index
    %18 = vector.load %arg7[%c0_14, %c0_15] : memref<1x384xf32, #tpu.memory_space<vmem>>, vector<1x384xf32>
    %cst_16 = arith.constant dense<0.000000e+00> : vector<16x384xf32>
    %19 = tpu.matmul %16, %17, %cst_16 {dimension_numbers = #tpu.dot_dimension_numbers<[1], [0], [0], [1], [0, 0, 1, 1], [], []>} : vector<16x512xbf16>, vector<512x384xbf16>, vector<16x384xf32> -> vector<16x384xf32>
    %20 = vector.broadcast %18 : vector<1x384xf32> to vector<16x384xf32>
    %21 = arith.addf %19, %20 : vector<16x384xf32>
    %cst_17 = arith.constant 0.000000e+00 : f32
    %22 = vector.broadcast %cst_17 : f32 to vector<16x384xf32>
    %23 = arith.maximumf %21, %22 : vector<16x384xf32>
    %24 = arith.truncf %23 : vector<16x384xf32> to vector<16x384xbf16>
    %c0_18 = arith.constant 0 : index
    %c0_19 = arith.constant 0 : index
    %25 = vector.load %arg8[%c0_18, %c0_19] : memref<384x256xbf16, #tpu.memory_space<vmem>>, vector<384x256xbf16>
    %c0_20 = arith.constant 0 : index
    %c0_21 = arith.constant 0 : index
    %26 = vector.load %arg9[%c0_20, %c0_21] : memref<1x256xf32, #tpu.memory_space<vmem>>, vector<1x256xf32>
    %cst_22 = arith.constant dense<0.000000e+00> : vector<16x256xf32>
    %27 = tpu.matmul %24, %25, %cst_22 {dimension_numbers = #tpu.dot_dimension_numbers<[1], [0], [0], [1], [0, 0, 1, 1], [], []>} : vector<16x384xbf16>, vector<384x256xbf16>, vector<16x256xf32> -> vector<16x256xf32>
    %28 = vector.broadcast %26 : vector<1x256xf32> to vector<16x256xf32>
    %29 = arith.addf %27, %28 : vector<16x256xf32>
    %cst_23 = arith.constant 0.000000e+00 : f32
    %30 = vector.broadcast %cst_23 : f32 to vector<16x256xf32>
    %31 = arith.maximumf %29, %30 : vector<16x256xf32>
    %32 = arith.truncf %31 : vector<16x256xf32> to vector<16x256xbf16>
    %c0_24 = arith.constant 0 : index
    %c0_25 = arith.constant 0 : index
    %33 = vector.load %arg10[%c0_24, %c0_25] : memref<256x128xbf16, #tpu.memory_space<vmem>>, vector<256x128xbf16>
    %c0_26 = arith.constant 0 : index
    %c0_27 = arith.constant 0 : index
    %34 = vector.load %arg11[%c0_26, %c0_27] : memref<1x128xf32, #tpu.memory_space<vmem>>, vector<1x128xf32>
    %cst_28 = arith.constant dense<0.000000e+00> : vector<16x128xf32>
    %35 = tpu.matmul %32, %33, %cst_28 {dimension_numbers = #tpu.dot_dimension_numbers<[1], [0], [0], [1], [0, 0, 1, 1], [], []>} : vector<16x256xbf16>, vector<256x128xbf16>, vector<16x128xf32> -> vector<16x128xf32>
    %36 = vector.broadcast %34 : vector<1x128xf32> to vector<16x128xf32>
    %37 = arith.addf %35, %36 : vector<16x128xf32>
    %cst_29 = arith.constant 0.000000e+00 : f32
    %38 = vector.broadcast %cst_29 : f32 to vector<16x128xf32>
    %39 = arith.maximumf %37, %38 : vector<16x128xf32>
    %40 = arith.truncf %39 : vector<16x128xf32> to vector<16x128xbf16>
    %c0_30 = arith.constant 0 : index
    %c0_31 = arith.constant 0 : index
    %41 = vector.load %arg12[%c0_30, %c0_31] : memref<128x128xbf16, #tpu.memory_space<vmem>>, vector<128x128xbf16>
    %c0_32 = arith.constant 0 : index
    %c0_33 = arith.constant 0 : index
    %42 = vector.load %arg13[%c0_32, %c0_33] : memref<1x128xf32, #tpu.memory_space<vmem>>, vector<1x128xf32>
    %cst_34 = arith.constant dense<0.000000e+00> : vector<16x128xf32>
    %43 = tpu.matmul %40, %41, %cst_34 {dimension_numbers = #tpu.dot_dimension_numbers<[1], [0], [0], [1], [0, 0, 1, 1], [], []>} : vector<16x128xbf16>, vector<128x128xbf16>, vector<16x128xf32> -> vector<16x128xf32>
    %44 = vector.broadcast %42 : vector<1x128xf32> to vector<16x128xf32>
    %45 = arith.addf %43, %44 : vector<16x128xf32>
    %c0_35 = arith.constant 0 : index
    %c0_36 = arith.constant 0 : index
    %46 = vector.load %arg14[%c0_35, %c0_36] : memref<16x128xf32, #tpu.memory_space<vmem>>, vector<16x128xf32>
    tpu.vector_store %arg14[%c0_35, %c0_36], %45 {strides = array<i32>} : memref<16x128xf32, #tpu.memory_space<vmem>>, vector<16x128xf32>,
    return
  }
  func.func @transform_0(%arg0: i32) -> (i32, i32) {
    %c0_i32 = arith.constant 0 : i32
    %c0_i32_0 = arith.constant 0 : i32
    return %arg0, %c0_i32 : i32, i32
  }
  func.func @transform_1(%arg0: i32) -> (i32, i32) {
    %c0_i32 = arith.constant 0 : i32
    %c0_i32_0 = arith.constant 0 : i32
    %c0_i32_1 = arith.constant 0 : i32
    return %c0_i32, %c0_i32_0 : i32, i32
  }
  func.func @transform_2(%arg0: i32) -> (i32, i32) {
    %c0_i32 = arith.constant 0 : i32
    %c0_i32_0 = arith.constant 0 : i32
    %c0_i32_1 = arith.constant 0 : i32
    return %c0_i32, %c0_i32_0 : i32, i32
  }
  func.func @transform_3(%arg0: i32) -> (i32, i32) {
    %c0_i32 = arith.constant 0 : i32
    %c0_i32_0 = arith.constant 0 : i32
    %c0_i32_1 = arith.constant 0 : i32
    return %c0_i32, %c0_i32_0 : i32, i32
  }
  func.func @transform_4(%arg0: i32) -> (i32, i32) {
    %c0_i32 = arith.constant 0 : i32
    %c0_i32_0 = arith.constant 0 : i32
    %c0_i32_1 = arith.constant 0 : i32
    return %c0_i32, %c0_i32_0 : i32, i32
  }
  func.func @transform_5(%arg0: i32) -> (i32, i32) {
    %c0_i32 = arith.constant 0 : i32
    %c0_i32_0 = arith.constant 0 : i32
    %c0_i32_1 = arith.constant 0 : i32
    return %c0_i32, %c0_i32_0 : i32, i32
  }
  func.func @transform_6(%arg0: i32) -> (i32, i32) {
    %c0_i32 = arith.constant 0 : i32
    %c0_i32_0 = arith.constant 0 : i32
    %c0_i32_1 = arith.constant 0 : i32
    return %c0_i32, %c0_i32_0 : i32, i32
  }
  func.func @transform_7(%arg0: i32) -> (i32, i32) {
    %c0_i32 = arith.constant 0 : i32
    %c0_i32_0 = arith.constant 0 : i32
    %c0_i32_1 = arith.constant 0 : i32
    return %c0_i32, %c0_i32_0 : i32, i32
  }
  func.func @transform_8(%arg0: i32) -> (i32, i32) {
    %c0_i32 = arith.constant 0 : i32
    %c0_i32_0 = arith.constant 0 : i32
    %c0_i32_1 = arith.constant 0 : i32
    return %c0_i32, %c0_i32_0 : i32, i32
  }
  func.func @transform_9(%arg0: i32) -> (i32, i32) {
    %c0_i32 = arith.constant 0 : i32
    %c0_i32_0 = arith.constant 0 : i32
    %c0_i32_1 = arith.constant 0 : i32
    return %c0_i32, %c0_i32_0 : i32, i32
  }
  func.func @transform_10(%arg0: i32) -> (i32, i32) {
    %c0_i32 = arith.constant 0 : i32
    %c0_i32_0 = arith.constant 0 : i32
    %c0_i32_1 = arith.constant 0 : i32
    return %c0_i32, %c0_i32_0 : i32, i32
  }
  func.func @transform_11(%arg0: i32) -> (i32, i32) {
    %c0_i32 = arith.constant 0 : i32
    %c0_i32_0 = arith.constant 0 : i32
    %c0_i32_1 = arith.constant 0 : i32
    return %c0_i32, %c0_i32_0 : i32, i32
  }
  func.func @transform_12(%arg0: i32) -> (i32, i32) {
    %c0_i32 = arith.constant 0 : i32
    %c0_i32_0 = arith.constant 0 : i32
    %c0_i32_1 = arith.constant 0 : i32
    return %c0_i32, %c0_i32_0 : i32, i32
  }
  func.func @transform_13(%arg0: i32) -> (i32, i32) {
    %c0_i32 = arith.constant 0 : i32
    %c0_i32_0 = arith.constant 0 : i32
    return %arg0, %c0_i32 : i32, i32
  }
}

</mosaic_0001>

<bundles_post_ra>
// kernel: tpu_custom_call.1
= control target key start
LH: loop header
LB: loop body
LE: loop exit
PB: predicated region body
PF: predicated region fallthrough
CT: control target
= control target key end

     0   :  { %18 = vsyncpa [#allocation3], 0  ;;  %s8904_s0 = inlined_call_operand.hbm [shape: bf16[16,1024], index: 0, kind: input, shape index: {}]   ;;  %s8905_s1 = inlined_call_operand.hbm [shape: bf16[1024,768], index: 1, kind: input, shape index: {}]   ;;  %s8906_s2 = inlined_call_operand.hbm [shape: f32[1,768], index: 2, kind: input, shape index: {}]   ;;  %s8907_s3 = inlined_call_operand.hbm [shape: bf16[768,512], index: 3, kind: input, shape index: {}]   ;;  %s8908_s4 = inlined_call_operand.hbm [shape: f32[1,512], index: 4, kind: input, shape index: {}]   ;;  %s8909_s5 = inlined_call_operand.hbm [shape: bf16[512,384], index: 5, kind: input, shape index: {}]   ;;  %s8910_s6 = inlined_call_operand.hbm [shape: f32[1,384], index: 6, kind: input, shape index: {}]   ;;  %s8911_s7 = inlined_call_operand.hbm [shape: bf16[384,256], index: 7, kind: input, shape index: {}]   ;;  %s8912_s8 = inlined_call_operand.hbm [shape: f32[1,256], index: 8, kind: input, shape index: {}]   ;;  %s8913_s9 = inlined_call_operand.hbm [shape: bf16[256,128], index: 9, kind: input, shape index: {}]   ;;  %s8914_s10 = inlined_call_operand.hbm [shape: f32[1,128], index: 10, kind: input, shape index: {}]   ;;  %s8915_s11 = inlined_call_operand.hbm [shape: bf16[128,128], index: 11, kind: input, shape index: {}]   ;;  %s8916_s12 = inlined_call_operand.hbm [shape: f32[1,128], index: 12, kind: input, shape index: {}]   ;;  %s8917_s13 = inlined_call_operand.hbm [shape: f32[16,128], index: 13, kind: output, shape index: {}]  }
   0x1   :  { %19 = vsyncpa [#allocation6], 0 }
   0x2   :  { %20 = vsyncpa [#allocation9], 0 }
   0x3   :  { %21 = vsyncpa [#allocation12], 0 }
   0x4   :  { %22 = vsyncpa [#allocation15], 0 }
   0x5   :  { %23 = vsyncpa [#allocation18], 0 }
   0x6   :  { %24 = vsyncpa [#allocation21], 0 }
   0x7   :  { %25 = vsyncpa [#allocation4], 0  ;;  %s8492_s25 = smov [#allocation5]   ;;  %s8168_s29 = scalar_lea.hbm %s8905_s1, 49152 }
   0x8   :  { %s43_s26 = sshll.u32 %s8492_s25, 4  ;;  %p8169_p0 = scmp.ne.s32.totalorder %s8905_s1, %s8168_s29  ;;  %s44_s26 = int_to_ptr.vmem [resolvable:$true] %s43_s26 }
   0x9   :  { %p8172_p1 = scmp.lt.u32.totalorder %s8168_s29, %s8905_s1 }
   0xb   :  { %p8174_p2 = pnand %p8172_p1, %p8169_p0 }
   0xd   :  { %8177 = shalt.err (!%p8174_p2)
}
   0xe   :  { %s8178_s17 = scalar_lea.vmem %s44_s26, 49152  ;;  %p8183_p4 = scmp.lt.s32.totalorder %s44_s26, %s44_s26 }
   0xf   :  { %p8179_p3 = scmp.ne.s32.totalorder %s44_s26, %s8178_s17  ;;  %p8184_p5 = scmp.lt.s32.totalorder %s8178_s17, %s8178_s17 }
  0x11   :  { %p8185_p6 = por %p8184_p5, %p8183_p4 }
  0x13   :  { %p8186_p7 = pnand %p8185_p6, %p8179_p3 }
  0x15   :  { %8189 = shalt.err (!%p8186_p7)
}
  0x16   :  { %s8493_s18 = smov 384   ;;  %s8494_s19 = smov 24  }
  0x17   :  { %49 = dma.hbm_to_vmem [thread:$0]  %s8905_s1, 49152, %s44_s26, [#allocation6], %s8493_s18, %s8493_s18, %s8494_s19  }
  0x18   :  { %s8495_s22 = smov [#allocation8]   ;;  %s8190_s27 = scalar_lea.hbm %s8907_s3, 24576 }
  0x19   :  { %s65_s23 = sshll.u32 %s8495_s22, 4  ;;  %p8191_p8 = scmp.ne.s32.totalorder %s8907_s3, %s8190_s27  ;;  %s66_s23 = int_to_ptr.vmem [resolvable:$true] %s65_s23 }
  0x1a   :  { %p8194_p9 = scmp.lt.u32.totalorder %s8190_s27, %s8907_s3 }
  0x1c   :  { %p8196_p10 = pnand %p8194_p9, %p8191_p8 }
  0x1e   :  { %8199 = shalt.err (!%p8196_p10)
}
  0x1f   :  { %s8200_s15 = scalar_lea.vmem %s66_s23, 24576  ;;  %p8205_p12 = scmp.lt.s32.totalorder %s66_s23, %s66_s23 }
  0x20   :  { %p8201_p11 = scmp.ne.s32.totalorder %s66_s23, %s8200_s15  ;;  %p8206_p13 = scmp.lt.s32.totalorder %s8200_s15, %s8200_s15 }
  0x22   :  { %p8207_p0 = por %p8206_p13, %p8205_p12 }
  0x24   :  { %p8208_p1 = pnand %p8207_p0, %p8201_p11 }
  0x26   :  { %8211 = shalt.err (!%p8208_p1)
}
  0x27   :  { %s8496_s1 = smov 256   ;;  %s8497_s26 = smov 16  }
  0x28   :  { %71 = dma.hbm_to_vmem [thread:$0]  %s8907_s3, 24576, %s66_s23, [#allocation9], %s8496_s1, %s8496_s1, %s8497_s26  }
  0x29   :  { %s8498_s18 = smov [#allocation11]   ;;  %s8212_s22 = scalar_lea.hbm %s8909_s5, 12288 }
  0x2a   :  { %s87_s19 = sshll.u32 %s8498_s18, 4  ;;  %p8213_p2 = scmp.ne.s32.totalorder %s8909_s5, %s8212_s22  ;;  %s88_s19 = int_to_ptr.vmem [resolvable:$true] %s87_s19 }
  0x2b   :  { %p8216_p3 = scmp.lt.u32.totalorder %s8212_s22, %s8909_s5 }
  0x2d   :  { %p8218_p4 = pnand %p8216_p3, %p8213_p2 }
  0x2f   :  { %8221 = shalt.err (!%p8218_p4)
}
  0x30   :  { %s8222_s29 = scalar_lea.vmem %s88_s19, 12288  ;;  %p8227_p6 = scmp.lt.s32.totalorder %s88_s19, %s88_s19 }
  0x31   :  { %p8223_p5 = scmp.ne.s32.totalorder %s88_s19, %s8222_s29  ;;  %p8228_p7 = scmp.lt.s32.totalorder %s8222_s29, %s8222_s29 }
  0x33   :  { %p8229_p8 = por %p8228_p7, %p8227_p6 }
  0x35   :  { %p8230_p9 = pnand %p8229_p8, %p8223_p5 }
  0x37   :  { %8233 = shalt.err (!%p8230_p9)
}
  0x38   :  { %s8499_s3 = smov 192   ;;  %s8500_s23 = smov 12  }
  0x39   :  { %93 = dma.hbm_to_vmem [thread:$0]  %s8909_s5, 12288, %s88_s19, [#allocation12], %s8499_s3, %s8499_s3, %s8500_s23  }
  0x3a   :  { %s8501_s15 = smov [#allocation14]   ;;  %s8234_s17 = scalar_lea.hbm %s8911_s7, 6144 }
  0x3b   :  { %s109_s1 = sshll.u32 %s8501_s15, 4  ;;  %p8235_p10 = scmp.ne.s32.totalorder %s8911_s7, %s8234_s17  ;;  %s110_s1 = int_to_ptr.vmem [resolvable:$true] %s109_s1 }
  0x3c   :  { %p8238_p11 = scmp.lt.u32.totalorder %s8234_s17, %s8911_s7 }
  0x3e   :  { %p8240_p12 = pnand %p8238_p11, %p8235_p10 }
  0x40   :  { %8243 = shalt.err (!%p8240_p12)
}
  0x41   :  { %s8244_s24 = scalar_lea.vmem %s110_s1, 6144  ;;  %p8249_p0 = scmp.lt.s32.totalorder %s110_s1, %s110_s1 }
  0x42   :  { %p8245_p13 = scmp.ne.s32.totalorder %s110_s1, %s8244_s24  ;;  %p8250_p1 = scmp.lt.s32.totalorder %s8244_s24, %s8244_s24 }
  0x44   :  { %p8251_p2 = por %p8250_p1, %p8249_p0 }
  0x46   :  { %p8252_p3 = pnand %p8251_p2, %p8245_p13 }
  0x48   :  { %8255 = shalt.err (!%p8252_p3)
}
  0x49   :  { %s8502_s5 = smov 128   ;;  %s8503_s19 = smov 8  }
  0x4a   :  { %115 = dma.hbm_to_vmem [thread:$0]  %s8911_s7, 6144, %s110_s1, [#allocation15], %s8502_s5, %s8502_s5, %s8503_s19  }
  0x4b   :  { %s8504_s28 = smov [#allocation17]   ;;  %s8256_s30 = scalar_lea.hbm %s8913_s9, 2048 }
  0x4c   :  { %s131_s29 = sshll.u32 %s8504_s28, 4  ;;  %p8257_p4 = scmp.ne.s32.totalorder %s8913_s9, %s8256_s30  ;;  %s132_s29 = int_to_ptr.vmem [resolvable:$true] %s131_s29 }
  0x4d   :  { %p8260_p5 = scmp.lt.u32.totalorder %s8256_s30, %s8913_s9 }
  0x4f   :  { %p8262_p6 = pnand %p8260_p5, %p8257_p4 }
  0x51   :  { %8265 = shalt.err (!%p8262_p6)
}
  0x52   :  { %s8266_s17 = scalar_lea.vmem %s132_s29, 2048  ;;  %p8271_p8 = scmp.lt.s32.totalorder %s132_s29, %s132_s29 }
  0x53   :  { %p8267_p7 = scmp.ne.s32.totalorder %s132_s29, %s8266_s17  ;;  %p8272_p9 = scmp.lt.s32.totalorder %s8266_s17, %s8266_s17 }
  0x55   :  { %p8273_p10 = por %p8272_p9, %p8271_p8 }
  0x57   :  { %p8274_p11 = pnand %p8273_p10, %p8267_p7 }
  0x59   :  { %8277 = shalt.err (!%p8274_p11)
}
  0x5a   :  { %s8505_s7 = smov 64   ;;  %s8506_s1 = smov 4  }
  0x5b   :  { %137 = dma.hbm_to_vmem [thread:$0]  %s8913_s9, 2048, %s132_s29, [#allocation18], %s8505_s7, %s8505_s7, %s8506_s1  }
  0x5c   :  { %s8507_s21 = smov [#allocation20]   ;;  %s8508_s24 = smov [#allocation2]  }
  0x5d   :  { %s153_s22 = sshll.u32 %s8507_s21, 4  ;;  %s31_s25 = sshll.u32 %s8508_s24, 4  ;;  %s154_s22 = int_to_ptr.vmem [resolvable:$true] %s153_s22  ;;  %s32_s25 = int_to_ptr.vmem [resolvable:$true] %s31_s25 }
  0x5e   :  { %s8278_s3 = scalar_lea.hbm %s8915_s11, 1024 }
  0x5f   :  { %p8279_p12 = scmp.ne.s32.totalorder %s8915_s11, %s8278_s3  ;;  %p8282_p13 = scmp.lt.u32.totalorder %s8278_s3, %s8915_s11 }
  0x61   :  { %p8284_p0 = pnand %p8282_p13, %p8279_p12 }
  0x63   :  { %8287 = shalt.err (!%p8284_p0)
}
  0x64   :  { %s8288_s9 = scalar_lea.vmem %s154_s22, 1024  ;;  %p8293_p2 = scmp.lt.s32.totalorder %s154_s22, %s154_s22 }
  0x65   :  { %p8289_p1 = scmp.ne.s32.totalorder %s154_s22, %s8288_s9  ;;  %p8294_p3 = scmp.lt.s32.totalorder %s8288_s9, %s8288_s9 }
  0x67   :  { %p8295_p4 = por %p8294_p3, %p8293_p2 }
  0x69   :  { %p8296_p5 = pnand %p8295_p4, %p8289_p1 }
  0x6b   :  { %8299 = shalt.err (!%p8296_p5)
}
  0x6c   :  { %159 = dma.hbm_to_vmem [thread:$0]  %s8915_s11, 1024, %s154_s22, [#allocation21], %s8505_s7, %s8505_s7, %s8506_s1  }
  0x6d   :  { %s8300_s18 = scalar_lea.hbm %s8904_s0, 1024 }
  0x6e   :  { %p8301_p6 = scmp.ne.s32.totalorder %s8904_s0, %s8300_s18  ;;  %p8304_p7 = scmp.lt.u32.totalorder %s8300_s18, %s8904_s0 }
  0x70   :  { %p8306_p8 = pnand %p8304_p7, %p8301_p6 }
  0x72   :  { %8309 = shalt.err (!%p8306_p8)
}
  0x73   :  { %s8310_s28 = scalar_lea.vmem %s32_s25, 1024  ;;  %p8315_p10 = scmp.lt.s32.totalorder %s32_s25, %s32_s25 }
  0x74   :  { %p8311_p9 = scmp.ne.s32.totalorder %s32_s25, %s8310_s28  ;;  %p8316_p11 = scmp.lt.s32.totalorder %s8310_s28, %s8310_s28 }
  0x76   :  { %p8317_p12 = por %p8316_p11, %p8315_p10 }
  0x78   :  { %p8318_p13 = pnand %p8317_p12, %p8311_p9 }
  0x7a   :  { %8321 = shalt.err (!%p8318_p13)
}
  0x7b   :  { %s8509_s11 = smov 512   ;;  %s8510_s7 = smov 32  }
  0x7c   :  { %37 = dma.hbm_to_vmem [thread:$0]  %s8904_s0, 1024, %s32_s25, [#allocation3], %s8509_s11, %s8509_s11, %s8510_s7  }
  0x7d   :  { %s8511_s3 = smov [#allocation7]   ;;  %s8512_s30 = smov [#allocation10]  }
  0x7e   :  { %s56_s23 = sshll.u32 %s8511_s3, 4  ;;  %s78_s14 = sshll.u32 %s8512_s30, 4  ;;  %s57_s23 = int_to_ptr.vmem [resolvable:$true] %s56_s23  ;;  %s79_s14 = int_to_ptr.vmem [resolvable:$true] %s78_s14 }
  0x7f   :  { %s8322_s29 = scalar_lea.hbm %s8906_s2, 96 }
  0x80   :  { %p8323_p0 = scmp.ne.s32.totalorder %s8906_s2, %s8322_s29  ;;  %p8326_p1 = scmp.lt.u32.totalorder %s8322_s29, %s8906_s2 }
  0x82   :  { %p8328_p2 = pnand %p8326_p1, %p8323_p0 }
  0x84   :  { %8331 = shalt.err (!%p8328_p2)
}
  0x85   :  { %s8332_s0 = scalar_lea.vmem %s57_s23, 96  ;;  %p8337_p4 = scmp.lt.s32.totalorder %s57_s23, %s57_s23 }
  0x86   :  { %p8333_p3 = scmp.ne.s32.totalorder %s57_s23, %s8332_s0  ;;  %p8338_p5 = scmp.lt.s32.totalorder %s8332_s0, %s8332_s0 }
  0x88   :  { %p8339_p6 = por %p8338_p5, %p8337_p4 }
  0x8a   :  { %p8340_p7 = pnand %p8339_p6, %p8333_p3 }
  0x8c   :  { %8343 = shalt.err (!%p8340_p7)
}
  0x8d   :  { %59 = dma.hbm_to_vmem [thread:$0]  %s8906_s2, 96, %s57_s23, [#allocation6]  }
  0x8e   :  { %s8344_s27 = scalar_lea.hbm %s8908_s4, 64 }
  0x8f   :  { %p8345_p8 = scmp.ne.s32.totalorder %s8908_s4, %s8344_s27  ;;  %p8348_p9 = scmp.lt.u32.totalorder %s8344_s27, %s8908_s4 }
  0x91   :  { %p8350_p10 = pnand %p8348_p9, %p8345_p8 }
  0x93   :  { %8353 = shalt.err (!%p8350_p10)
}
  0x94   :  { %s8354_s22 = scalar_lea.vmem %s79_s14, 64  ;;  %p8359_p12 = scmp.lt.s32.totalorder %s79_s14, %s79_s14 }
  0x95   :  { %p8355_p11 = scmp.ne.s32.totalorder %s79_s14, %s8354_s22  ;;  %p8360_p13 = scmp.lt.s32.totalorder %s8354_s22, %s8354_s22 }
  0x97   :  { %p8361_p0 = por %p8360_p13, %p8359_p12 }
  0x99   :  { %p8362_p1 = pnand %p8361_p0, %p8355_p11 }
  0x9b   :  { %8365 = shalt.err (!%p8362_p1)
}
  0x9c   :  { %81 = dma.hbm_to_vmem [thread:$0]  %s8908_s4, 64, %s79_s14, [#allocation9]  }
  0x9d   :  { %s8513_s23 = smov [#allocation13]   ;;  %s8514_s15 = smov [#allocation16]  }
  0x9e   :  { %s100_s30 = sshll.u32 %s8513_s23, 4  ;;  %s122_s9 = sshll.u32 %s8514_s15, 4  ;;  %s101_s30 = int_to_ptr.vmem [resolvable:$true] %s100_s30  ;;  %s123_s9 = int_to_ptr.vmem [resolvable:$true] %s122_s9 }
  0x9f   :  { %s8366_s16 = scalar_lea.hbm %s8910_s6, 48 }
  0xa0   :  { %p8367_p2 = scmp.ne.s32.totalorder %s8910_s6, %s8366_s16  ;;  %p8370_p3 = scmp.lt.u32.totalorder %s8366_s16, %s8910_s6 }
  0xa2   :  { %p8372_p4 = pnand %p8370_p3, %p8367_p2 }
  0xa4   :  { %8375 = shalt.err (!%p8372_p4)
}
  0xa5   :  { %s8376_s4 = scalar_lea.vmem %s101_s30, 48  ;;  %s8380_s14 = scalar_lea.vmem %s101_s30, 64 }
  0xa6   :  { %p8377_p5 = scmp.ne.s32.totalorder %s101_s30, %s8376_s4  ;;  %p8381_p6 = scmp.lt.s32.totalorder %s101_s30, %s101_s30 }
  0xa7   :  { %p8382_p7 = scmp.lt.s32.totalorder %s8380_s14, %s8376_s4 }
  0xa9   :  { %p8383_p8 = por %p8382_p7, %p8381_p6 }
  0xab   :  { %p8384_p9 = pnand %p8383_p8, %p8377_p5 }
  0xad   :  { %8387 = shalt.err (!%p8384_p9)
}
  0xae   :  { %103 = dma.hbm_to_vmem [thread:$0]  %s8910_s6, 48, %s101_s30, [#allocation12]  }
  0xaf   :  { %s8388_s28 = scalar_lea.hbm %s8912_s8, 32 }
  0xb0   :  { %p8389_p10 = scmp.ne.s32.totalorder %s8912_s8, %s8388_s28  ;;  %p8392_p11 = scmp.lt.u32.totalorder %s8388_s28, %s8912_s8 }
  0xb2   :  { %p8394_p12 = pnand %p8392_p11, %p8389_p10 }
  0xb4   :  { %8397 = shalt.err (!%p8394_p12)
}
  0xb5   :  { %s8398_s2 = scalar_lea.vmem %s123_s9, 32  ;;  %p8403_p0 = scmp.lt.s32.totalorder %s123_s9, %s123_s9 }
  0xb6   :  { %p8399_p13 = scmp.ne.s32.totalorder %s123_s9, %s8398_s2  ;;  %p8404_p1 = scmp.lt.s32.totalorder %s8398_s2, %s8398_s2 }
  0xb8   :  { %p8405_p2 = por %p8404_p1, %p8403_p0 }
  0xba   :  { %p8406_p3 = pnand %p8405_p2, %p8399_p13 }
  0xbc   :  { %8409 = shalt.err (!%p8406_p3)
}
  0xbd   :  { %125 = dma.hbm_to_vmem [thread:$0]  %s8912_s8, 32, %s123_s9, [#allocation15]  }
  0xbe   :  { %s8515_s23 = smov [#allocation19]   ;;  %s8516_s15 = smov [#allocation22]  }
  0xbf   :  { %s144_s30 = sshll.u32 %s8515_s23, 4  ;;  %s166_s29 = sshll.u32 %s8516_s15, 4  ;;  %s145_s30 = int_to_ptr.vmem [resolvable:$true] %s144_s30  ;;  %s167_s29 = int_to_ptr.vmem [resolvable:$true] %s166_s29 }
  0xc0   :  { %s8410_s17 = scalar_lea.hbm %s8914_s10, 16 }
  0xc1   :  { %p8411_p4 = scmp.ne.s32.totalorder %s8914_s10, %s8410_s17  ;;  %p8414_p5 = scmp.lt.u32.totalorder %s8410_s17, %s8914_s10 }
  0xc3   :  { %p8416_p6 = pnand %p8414_p5, %p8411_p4 }
  0xc5   :  { %8419 = shalt.err (!%p8416_p6)
}
  0xc6   :  { %s8420_s8 = scalar_lea.vmem %s145_s30, 16  ;;  %s8424_s9 = scalar_lea.vmem %s145_s30, 32 }
  0xc7   :  { %p8421_p7 = scmp.ne.s32.totalorder %s145_s30, %s8420_s8  ;;  %p8425_p8 = scmp.lt.s32.totalorder %s145_s30, %s145_s30 }
  0xc8   :  { %p8426_p9 = scmp.lt.s32.totalorder %s8424_s9, %s8420_s8 }
  0xca   :  { %p8427_p10 = por %p8426_p9, %p8425_p8 }
  0xcc   :  { %p8428_p11 = pnand %p8427_p10, %p8421_p7 }
  0xce   :  { %8431 = shalt.err (!%p8428_p11)
}
  0xcf   :  { %147 = dma.hbm_to_vmem [thread:$0]  %s8914_s10, 16, %s145_s30, [#allocation18]  }
  0xd0   :  { %s8432_s27 = scalar_lea.hbm %s8916_s12, 16 }
  0xd1   :  { %p8433_p12 = scmp.ne.s32.totalorder %s8916_s12, %s8432_s27  ;;  %p8436_p13 = scmp.lt.u32.totalorder %s8432_s27, %s8916_s12 }
  0xd3   :  { %p8438_p0 = pnand %p8436_p13, %p8433_p12 }
  0xd5   :  { %8441 = shalt.err (!%p8438_p0)
}
  0xd6   :  { %s8442_s22 = scalar_lea.vmem %s167_s29, 16  ;;  %s8446_s2 = scalar_lea.vmem %s167_s29, 32 }
  0xd7   :  { %p8443_p1 = scmp.ne.s32.totalorder %s167_s29, %s8442_s22  ;;  %p8447_p2 = scmp.lt.s32.totalorder %s167_s29, %s167_s29 }
  0xd8   :  { %p8448_p3 = scmp.lt.s32.totalorder %s8446_s2, %s8442_s22 }
  0xda   :  { %p8449_p4 = por %p8448_p3, %p8447_p2 }
  0xdc   :  { %p8450_p5 = pnand %p8449_p4, %p8443_p1 }
  0xde   :  { %8453 = shalt.err (!%p8450_p5)
}
  0xdf   :  { %169 = dma.hbm_to_vmem [thread:$0]  %s8916_s12, 16, %s167_s29, [#allocation21]  }
  0xe0   :  { %8476 = dma.done.wait [#allocation3], 1024  }
  0xe1   :  { %8477 = vsyncadd [#allocation3], 4294966272 }
  0xe2   :  { %8478 = dma.done.wait [#allocation6], 49248  }
  0xe3   :  { %8479 = vsyncadd [#allocation6], 4294918048 }
  0xe4   :  { %8480 = dma.done.wait [#allocation9], 24640  }
  0xe5   :  { %8481 = vsyncadd [#allocation9], 4294942656 }
  0xe6   :  { %8482 = dma.done.wait [#allocation12], 12336  }
  0xe7   :  { %8483 = vsyncadd [#allocation12], 4294954960 }
  0xe8   :  { %8484 = dma.done.wait [#allocation15], 6176  }
  0xe9   :  { %8485 = vsyncadd [#allocation15], 4294961120 }
  0xea   :  { %8486 = dma.done.wait [#allocation18], 2064  }
  0xeb   :  { %8487 = vsyncadd [#allocation18], 4294965232 }
  0xec   :  { %8488 = dma.done.wait [#allocation21], 1040  }
  0xed   :  { %8489 = vsyncadd [#allocation21], 4294966256  ;;  %v7080_v0 = vld [vmem:[#allocation5 + $0x4] ss:$24 sps:$4 sm:$0xff]   ;;  %v7084_v2 = vld [vmem:[#allocation5] ss:$24 sps:$4 sm:$0xff]  }
  0xee   :  { %v7082_v1 = vld [vmem:[#allocation5 + $0xc] ss:$24 sps:$4 sm:$0xff]   ;;  %2594 = vmatprep.subr.bf16.mxu0 %v7080_v0  ;;  %v7085_v3 = vld [vmem:[#allocation5 + $0x8] ss:$24 sps:$4 sm:$0xff]   ;;  %v7088_v5 = vld [vmem:[#allocation5 + $0x3c] ss:$24 sps:$4 sm:$0xff]  }
  0xef   :  { %2766 = vmatprep.subr.bf16.mxu1 %v7082_v1  ;;  %v7086_v4 = vld [vmem:[#allocation5 + $0x34] ss:$24 sps:$4 sm:$0xff]   ;;  %2595 = vmatpush1.bf16.msra.mxu0 %v7084_v2  ;;  %v7090_v6 = vld [vmem:[#allocation5 + $0x30] ss:$24 sps:$4 sm:$0xff]   ;;  %v7092_v8 = vld [vmem:[#allocation5 + $0x64] ss:$24 sps:$4 sm:$0xff]  }
  0xf0   :  { %2767 = vmatpush1.bf16.msra.mxu1 %v7085_v3  ;;  %2596 = vmatprep.subr.bf16.mxu0 %v7086_v4  ;;  %v7091_v7 = vld [vmem:[#allocation5 + $0x38] ss:$24 sps:$4 sm:$0xff]   ;;  %v7094_v9 = vld [vmem:[#allocation5 + $0x6c] ss:$24 sps:$4 sm:$0xff]   ;;  %v7097_v11 = vld [vmem:[#allocation5 + $0x68] ss:$24 sps:$4 sm:$0xff]  }
  0xf1   :  { %2768 = vmatprep.subr.bf16.mxu1 %v7088_v5  ;;  %v7096_v10 = vld [vmem:[#allocation5 + $0x60] ss:$24 sps:$4 sm:$0xff]   ;;  %v7098_v12 = vld [vmem:[#allocation5 + $0x94] ss:$24 sps:$4 sm:$0xff]   ;;  %v7102_v14 = vld [vmem:[#allocation5 + $0x90] ss:$24 sps:$4 sm:$0xff]  }
  0xf2   :  { %v7100_v13 = vld [vmem:[#allocation5 + $0x9c] ss:$24 sps:$4 sm:$0xff]   ;;  %v7103_v15 = vld [vmem:[#allocation5 + $0x98] ss:$24 sps:$4 sm:$0xff]   ;;  %v7106_v17 = vld [vmem:[#allocation5 + $0xcc] ss:$24 sps:$4 sm:$0xff]  }
  0xf3   :  { %2597 = vmatpush1.bf16.msra.mxu0 %v7090_v6  ;;  %v7104_v16 = vld [vmem:[#allocation5 + $0xc4] ss:$24 sps:$4 sm:$0xff]   ;;  %v7108_v18 = vld [vmem:[#allocation5 + $0xc0] ss:$24 sps:$4 sm:$0xff]   ;;  %v7110_v20 = vld [vmem:[#allocation5 + $0xf4] ss:$24 sps:$4 sm:$0xff]  }
  0xf4   :  { %2769 = vmatpush1.bf16.msra.mxu1 %v7091_v7  ;;  %2598 = vmatprep.subr.bf16.mxu0 %v7092_v8  ;;  %v7109_v19 = vld [vmem:[#allocation5 + $0xc8] ss:$24 sps:$4 sm:$0xff]   ;;  %v7112_v21 = vld [vmem:[#allocation5 + $0xfc] ss:$24 sps:$4 sm:$0xff]   ;;  %v7115_v23 = vld [vmem:[#allocation5 + $0xf8] ss:$24 sps:$4 sm:$0xff]  }
  0xf5   :  { %2770 = vmatprep.subr.bf16.mxu1 %v7094_v9  ;;  %v7114_v22 = vld [vmem:[#allocation5 + $0xf0] ss:$24 sps:$4 sm:$0xff]   ;;  %v7116_v24 = vld [vmem:[#allocation5 + $0x124] ss:$24 sps:$4 sm:$0xff]   ;;  %v7120_v26 = vld [vmem:[#allocation5 + $0x120] ss:$24 sps:$4 sm:$0xff]  }
  0xf6   :  { %v7118_v25 = vld [vmem:[#allocation5 + $0x12c] ss:$24 sps:$4 sm:$0xff]   ;;  %v7121_v27 = vld [vmem:[#allocation5 + $0x128] ss:$24 sps:$4 sm:$0xff]   ;;  %v7124_v29 = vld [vmem:[#allocation5 + $0x15c] ss:$24 sps:$4 sm:$0xff]  }
  0xf7   :  { %2599 = vmatpush1.bf16.msra.mxu0 %v7096_v10  ;;  %v7122_v28 = vld [vmem:[#allocation5 + $0x154] ss:$24 sps:$4 sm:$0xff]   ;;  %v7126_v30 = vld [vmem:[#allocation5 + $0x150] ss:$24 sps:$4 sm:$0xff]   ;;  %v7128_v32 = vld [vmem:[#allocation5 + $0x184] ss:$24 sps:$4 sm:$0xff]  }
  0xf8   :  { %2771 = vmatpush1.bf16.msra.mxu1 %v7097_v11  ;;  %2600 = vmatprep.subr.bf16.mxu0 %v7098_v12  ;;  %v7127_v31 = vld [vmem:[#allocation5 + $0x158] ss:$24 sps:$4 sm:$0xff]   ;;  %v7130_v33 = vld [vmem:[#allocation5 + $0x18c] ss:$24 sps:$4 sm:$0xff]   ;;  %v7133_v35 = vld [vmem:[#allocation5 + $0x188] ss:$24 sps:$4 sm:$0xff]  }
  0xf9   :  { %2772 = vmatprep.subr.bf16.mxu1 %v7100_v13  ;;  %v7132_v34 = vld [vmem:[#allocation5 + $0x180] ss:$24 sps:$4 sm:$0xff]   ;;  %v7134_v36 = vld [vmem:[#allocation5 + $0x1b4] ss:$24 sps:$4 sm:$0xff]   ;;  %v7138_v38 = vld [vmem:[#allocation5 + $0x1b0] ss:$24 sps:$4 sm:$0xff]  }
  0xfa   :  { %v7136_v37 = vld [vmem:[#allocation5 + $0x1bc] ss:$24 sps:$4 sm:$0xff]   ;;  %v7139_v39 = vld [vmem:[#allocation5 + $0x1b8] ss:$24 sps:$4 sm:$0xff]   ;;  %v7142_v41 = vld [vmem:[#allocation5 + $0x1ec] ss:$24 sps:$4 sm:$0xff]  }
  0xfb   :  { %2601 = vmatpush1.bf16.msra.mxu0 %v7102_v14  ;;  %v7140_v40 = vld [vmem:[#allocation5 + $0x1e4] ss:$24 sps:$4 sm:$0xff]   ;;  %v7144_v42 = vld [vmem:[#allocation5 + $0x1e0] ss:$24 sps:$4 sm:$0xff]   ;;  %v7146_v44 = vld [vmem:[#allocation5 + $0x214] ss:$24 sps:$4 sm:$0xff]  }
  0xfc   :  { %2773 = vmatpush1.bf16.msra.mxu1 %v7103_v15  ;;  %2602 = vmatprep.subr.bf16.mxu0 %v7104_v16  ;;  %v7145_v43 = vld [vmem:[#allocation5 + $0x1e8] ss:$24 sps:$4 sm:$0xff]   ;;  %v7148_v45 = vld [vmem:[#allocation5 + $0x21c] ss:$24 sps:$4 sm:$0xff]   ;;  %v7151_v49 = vld [vmem:[#allocation5 + $0x218] ss:$24 sps:$4 sm:$0xff]  }
  0xfd   :  { %2774 = vmatprep.subr.bf16.mxu1 %v7106_v17  ;;  %v210_v46 = vld [vmem:[#allocation2] sm:$0xff]  ;;  %v7150_v48 = vld [vmem:[#allocation5 + $0x210] ss:$24 sps:$4 sm:$0xff]   ;;  %v7158_v55 = vld [vmem:[#allocation5 + $0x274] ss:$24 sps:$4 sm:$0xff]   ;;  %vm8519_vm0 = vmmov 0  }
  0xfe   :  { %v214_v47 = vld [vmem:[#allocation2 + $0x20] sm:$0xff]  ;;  %v7160_v56 = vld [vmem:[#allocation5 + $0x27c] ss:$24 sps:$4 sm:$0xff]   ;;  %v7162_v57 = vld [vmem:[#allocation5 + $0x270] ss:$24 sps:$4 sm:$0xff]   ;;  %s8520_s12 = smov [#allocation23]  }
  0xff   :  { %2603 = vmatpush1.bf16.msra.mxu0 %v7108_v18  ;;  %v8750_v50 = vcombine.high %v210_v46, %v214_v47  ;;  %v7152_v51 = vld [vmem:[#allocation5 + $0x244] ss:$24 sps:$4 sm:$0xff]   ;;  %v7156_v53 = vld [vmem:[#allocation5 + $0x240] ss:$24 sps:$4 sm:$0xff]   ;;  %v7170_v63 = vld [vmem:[#allocation5 + $0x2d4] ss:$24 sps:$4 sm:$0xff]   ;;  %v8754_v5 = vcombine.low %v210_v46, %v214_v47 }
 0x100   :  { %2775 = vmatpush1.bf16.msra.mxu1 %v7109_v19  ;;  %2604 = vmatprep.subr.bf16.mxu0 %v7110_v20  ;;  %v7154_v52 = vld [vmem:[#allocation5 + $0x24c] ss:$24 sps:$4 sm:$0xff]   ;;  %v7157_v54 = vld [vmem:[#allocation5 + $0x248] ss:$24 sps:$4 sm:$0xff]   ;;  %v7163_v58 = vld [vmem:[#allocation5 + $0x278] ss:$24 sps:$4 sm:$0xff]  }
 0x101   :  { %2776 = vmatprep.subr.bf16.mxu1 %v7112_v21  ;;  %2626 = vmatprep.mubr.bf16.mxu0 %v8750_v50  ;;  %v7164_v59 = vld [vmem:[#allocation5 + $0x2a4] ss:$24 sps:$4 sm:$0xff]   ;;  %v7168_v61 = vld [vmem:[#allocation5 + $0x2a0] ss:$24 sps:$4 sm:$0xff]   ;;  %v7174_v1 = vld [vmem:[#allocation5 + $0x2d0] ss:$24 sps:$4 sm:$0xff]  }
 0x102   :  { %2798 = vmatprep.mubr.bf16.mxu1 %v8750_v50  ;;  %v7166_v60 = vld [vmem:[#allocation5 + $0x2ac] ss:$24 sps:$4 sm:$0xff]   ;;  %v7169_v62 = vld [vmem:[#allocation5 + $0x2a8] ss:$24 sps:$4 sm:$0xff]   ;;  %v7172_v0 = vld [vmem:[#allocation5 + $0x2dc] ss:$24 sps:$4 sm:$0xff]  }
 0x103   :  { %2605 = vmatpush1.bf16.msra.mxu0 %v7114_v22  ;;  %v7175_v2 = vld [vmem:[#allocation5 + $0x2d8] ss:$24 sps:$4 sm:$0xff]   ;;  %v7178_v3 = vld [vmem:[#allocation5 + $0x304] ss:$24 sps:$4 sm:$0xff]   ;;  %v7179_v7 = vld [vmem:[#allocation5 + $0x308] ss:$24 sps:$4 sm:$0xff]  }
 0x104   :  { %2777 = vmatpush1.bf16.msra.mxu1 %v7115_v23  ;;  %2606 = vmatprep.subr.bf16.mxu0 %v7116_v24  ;;  %v7181_v4 = vld [vmem:[#allocation5 + $0x30c] ss:$24 sps:$4 sm:$0xff]   ;;  %v7176_v6 = vld [vmem:[#allocation5 + $0x300] ss:$24 sps:$4 sm:$0xff]   ;;  %v7187_v9 = vld [vmem:[#allocation5 + $0x33c] ss:$24 sps:$4 sm:$0xff]  }
 0x105   :  { %2778 = vmatprep.subr.bf16.mxu1 %v7118_v25  ;;  %v7184_v8 = vld [vmem:[#allocation5 + $0x334] ss:$24 sps:$4 sm:$0xff]   ;;  %v7182_v10 = vld [vmem:[#allocation5 + $0x330] ss:$24 sps:$4 sm:$0xff]   ;;  %v7190_v12 = vld [vmem:[#allocation5 + $0x364] ss:$24 sps:$4 sm:$0xff]  }
 0x106   :  { %v7185_v11 = vld [vmem:[#allocation5 + $0x338] ss:$24 sps:$4 sm:$0xff]   ;;  %v7193_v13 = vld [vmem:[#allocation5 + $0x36c] ss:$24 sps:$4 sm:$0xff]   ;;  %v7191_v15 = vld [vmem:[#allocation5 + $0x368] ss:$24 sps:$4 sm:$0xff]  }
 0x107   :  { %2607 = vmatpush1.bf16.msra.mxu0 %v7120_v26  ;;  %v7188_v14 = vld [vmem:[#allocation5 + $0x360] ss:$24 sps:$4 sm:$0xff]   ;;  %v7196_v16 = vld [vmem:[#allocation5 + $0x394] ss:$24 sps:$4 sm:$0xff]   ;;  %v7194_v18 = vld [vmem:[#allocation5 + $0x390] ss:$24 sps:$4 sm:$0xff]  }
 0x108   :  { %2779 = vmatpush1.bf16.msra.mxu1 %v7121_v27  ;;  %2608 = vmatprep.subr.bf16.mxu0 %v7122_v28  ;;  %v7199_v17 = vld [vmem:[#allocation5 + $0x39c] ss:$24 sps:$4 sm:$0xff]   ;;  %v7197_v19 = vld [vmem:[#allocation5 + $0x398] ss:$24 sps:$4 sm:$0xff]   ;;  %v7205_v21 = vld [vmem:[#allocation5 + $0x3cc] ss:$24 sps:$4 sm:$0xff]  }
 0x109   :  { %2780 = vmatprep.subr.bf16.mxu1 %v7124_v29  ;;  %v7202_v20 = vld [vmem:[#allocation5 + $0x3c4] ss:$24 sps:$4 sm:$0xff]   ;;  %v7200_v22 = vld [vmem:[#allocation5 + $0x3c0] ss:$24 sps:$4 sm:$0xff]   ;;  %v7208_v24 = vld [vmem:[#allocation5 + $0x3f4] ss:$24 sps:$4 sm:$0xff]  }
 0x10a   :  { %v7203_v23 = vld [vmem:[#allocation5 + $0x3c8] ss:$24 sps:$4 sm:$0xff]   ;;  %v7211_v25 = vld [vmem:[#allocation5 + $0x3fc] ss:$24 sps:$4 sm:$0xff]   ;;  %v7209_v27 = vld [vmem:[#allocation5 + $0x3f8] ss:$24 sps:$4 sm:$0xff]  }
 0x10b   :  { %2609 = vmatpush1.bf16.msra.mxu0 %v7126_v30  ;;  %v7206_v26 = vld [vmem:[#allocation5 + $0x3f0] ss:$24 sps:$4 sm:$0xff]   ;;  %v7214_v28 = vld [vmem:[#allocation5 + $0x424] ss:$24 sps:$4 sm:$0xff]   ;;  %s6096_s3 = sshll.u32 %s8520_s12, 4  ;;  %s6097_s3 = int_to_ptr.vmem [resolvable:$true] %s6096_s3 }
 0x10c   :  { %2781 = vmatpush1.bf16.msra.mxu1 %v7127_v31  ;;  %2610 = vmatprep.subr.bf16.mxu0 %v7128_v32  ;;  %v7217_v29 = vld [vmem:[#allocation5 + $0x42c] ss:$24 sps:$4 sm:$0xff]   ;;  %v7212_v32 = vld [vmem:[#allocation5 + $0x420] ss:$24 sps:$4 sm:$0xff]   ;;  %s8454_s23 = scalar_lea.vmem %s6097_s3, 256  ;;  %p8459_p7 = scmp.lt.s32.totalorder %s6097_s3, %s6097_s3 }
 0x10d   :  { %2782 = vmatprep.subr.bf16.mxu1 %v7130_v33  ;;  %v8758_v30 = vld [vmem:[#allocation2 + $0x8] sm:$0xff]  ;;  %v7233_v46 = vld [vmem:[#allocation5 + $0x4b8] ss:$24 sps:$4 sm:$0xff]   ;;  %v7238_v47 = vld [vmem:[#allocation5 + $0x4e4] ss:$24 sps:$4 sm:$0xff]   ;;  %p8455_p6 = scmp.ne.s32.totalorder %s6097_s3, %s8454_s23  ;;  %p8460_p8 = scmp.lt.s32.totalorder %s8454_s23, %s8454_s23 }
 0x10e   :  { %v8760_v31 = vld [vmem:[#allocation2 + $0x28] sm:$0xff] }
 0x10f   :  { %2611 = vmatpush1.bf16.msra.mxu0 %v7132_v34  ;;  %v7215_v33 = vld [vmem:[#allocation5 + $0x428] ss:$24 sps:$4 sm:$0xff]   ;;  %v8764_v34 = vcombine.high %v8758_v30, %v8760_v31  ;;  %p8461_p9 = por %p8460_p8, %p8459_p7 }
 0x110   :  { %2783 = vmatpush1.bf16.msra.mxu1 %v7133_v35  ;;  %2612 = vmatprep.subr.bf16.mxu0 %v7134_v36  ;;  %v7220_v35 = vld [vmem:[#allocation5 + $0x454] ss:$24 sps:$4 sm:$0xff]  }
 0x111   :  { %2784 = vmatprep.subr.bf16.mxu1 %v7136_v37  ;;  %v7223_v36 = vld [vmem:[#allocation5 + $0x45c] ss:$24 sps:$4 sm:$0xff]   ;;  %v7218_v37 = vld [vmem:[#allocation5 + $0x450] ss:$24 sps:$4 sm:$0xff]   ;;  %p8462_p10 = pnand %p8461_p9, %p8455_p6 }
 0x113   :  { %2613 = vmatpush1.bf16.msra.mxu0 %v7138_v38  ;;  %v7221_v38 = vld [vmem:[#allocation5 + $0x458] ss:$24 sps:$4 sm:$0xff]  }
 0x114   :  { %2785 = vmatpush1.bf16.msra.mxu1 %v7139_v39  ;;  %2614 = vmatprep.subr.bf16.mxu0 %v7140_v40  ;;  %v7226_v39 = vld [vmem:[#allocation5 + $0x484] ss:$24 sps:$4 sm:$0xff]  }
 0x115   :  { %2786 = vmatprep.subr.bf16.mxu1 %v7142_v41  ;;  %v7229_v40 = vld [vmem:[#allocation5 + $0x48c] ss:$24 sps:$4 sm:$0xff]   ;;  %v7224_v41 = vld [vmem:[#allocation5 + $0x480] ss:$24 sps:$4 sm:$0xff]  }
 0x117   :  { %2615 = vmatpush1.bf16.msra.mxu0 %v7144_v42  ;;  %v7227_v42 = vld [vmem:[#allocation5 + $0x488] ss:$24 sps:$4 sm:$0xff]  }
 0x118   :  { %2787 = vmatpush1.bf16.msra.mxu1 %v7145_v43  ;;  %2616 = vmatprep.subr.bf16.mxu0 %v7146_v44  ;;  %v7232_v43 = vld [vmem:[#allocation5 + $0x4b4] ss:$24 sps:$4 sm:$0xff]  }
 0x119   :  { %2788 = vmatprep.subr.bf16.mxu1 %v7148_v45  ;;  %v7235_v44 = vld [vmem:[#allocation5 + $0x4bc] ss:$24 sps:$4 sm:$0xff]   ;;  %v7230_v45 = vld [vmem:[#allocation5 + $0x4b0] ss:$24 sps:$4 sm:$0xff]  }
 0x11b   :  { %2617 = vmatpush1.bf16.msra.mxu0 %v7150_v48  ;;  %v7241_v48 = vld [vmem:[#allocation5 + $0x4ec] ss:$24 sps:$4 sm:$0xff]  }
 0x11c   :  { %2789 = vmatpush1.bf16.msra.mxu1 %v7151_v49  ;;  %2618 = vmatprep.subr.bf16.mxu0 %v7152_v51  ;;  %v7236_v49 = vld [vmem:[#allocation5 + $0x4e0] ss:$24 sps:$4 sm:$0xff]  }
 0x11d   :  { %2790 = vmatprep.subr.bf16.mxu1 %v7154_v52  ;;  %v7239_v51 = vld [vmem:[#allocation5 + $0x4e8] ss:$24 sps:$4 sm:$0xff]   ;;  %v7244_v52 = vld [vmem:[#allocation5 + $0x514] ss:$24 sps:$4 sm:$0xff]  }
 0x11f   :  { %2619 = vmatpush1.bf16.msra.mxu0 %v7156_v53  ;;  %v7247_v53 = vld [vmem:[#allocation5 + $0x51c] ss:$24 sps:$4 sm:$0xff]  }
 0x120   :  { %2791 = vmatpush1.bf16.msra.mxu1 %v7157_v54  ;;  %2620 = vmatprep.subr.bf16.mxu0 %v7158_v55  ;;  %v7242_v54 = vld [vmem:[#allocation5 + $0x510] ss:$24 sps:$4 sm:$0xff]  }
 0x121   :  { %2792 = vmatprep.subr.bf16.mxu1 %v7160_v56  ;;  %v7245_v55 = vld [vmem:[#allocation5 + $0x518] ss:$24 sps:$4 sm:$0xff]   ;;  %v7250_v56 = vld [vmem:[#allocation5 + $0x544] ss:$24 sps:$4 sm:$0xff]  }
 0x123   :  { %2621 = vmatpush1.bf16.msra.mxu0 %v7162_v57  ;;  %v7253_v57 = vld [vmem:[#allocation5 + $0x54c] ss:$24 sps:$4 sm:$0xff]  }
 0x124   :  { %2793 = vmatpush1.bf16.msra.mxu1 %v7163_v58  ;;  %2622 = vmatprep.subr.bf16.mxu0 %v7164_v59  ;;  %v7248_v58 = vld [vmem:[#allocation5 + $0x540] ss:$24 sps:$4 sm:$0xff]  }
 0x125   :  { %2794 = vmatprep.subr.bf16.mxu1 %v7166_v60  ;;  %v7251_v59 = vld [vmem:[#allocation5 + $0x548] ss:$24 sps:$4 sm:$0xff]   ;;  %v7256_v60 = vld [vmem:[#allocation5 + $0x574] ss:$24 sps:$4 sm:$0xff]  }
 0x127   :  { %2623 = vmatpush1.bf16.msra.mxu0 %v7168_v61  ;;  %v7259_v61 = vld [vmem:[#allocation5 + $0x57c] ss:$24 sps:$4 sm:$0xff]  }
 0x128   :  { %2795 = vmatpush1.bf16.msra.mxu1 %v7169_v62  ;;  %2624 = vmatprep.subr.bf16.mxu0 %v7170_v63  ;;  %v7254_v62 = vld [vmem:[#allocation5 + $0x570] ss:$24 sps:$4 sm:$0xff]  }
 0x129   :  { %2796 = vmatprep.subr.bf16.mxu1 %v7172_v0  ;;  %v7257_v63 = vld [vmem:[#allocation5 + $0x578] ss:$24 sps:$4 sm:$0xff]   ;;  %v7262_v0 = vld [vmem:[#allocation5 + $0x5a4] ss:$24 sps:$4 sm:$0xff]  }
 0x12b   :  { %2625 = vmatpush1.bf16.msra.mxu0 %v7174_v1  ;;  %v7265_v1 = vld [vmem:[#allocation5 + $0x5ac] ss:$24 sps:$4 sm:$0xff]  }
 0x12c   :  { %2797 = vmatpush1.bf16.msra.mxu1 %v7175_v2  ;;  %2637 = vmatprep.subr.bf16.mxu0 %v7178_v3  ;;  %v7260_v2 = vld [vmem:[#allocation5 + $0x5a0] ss:$24 sps:$4 sm:$0xff]  }
 0x12d   :  { %2809 = vmatprep.subr.bf16.mxu1 %v7181_v4  ;;  %v7263_v3 = vld [vmem:[#allocation5 + $0x5a8] ss:$24 sps:$4 sm:$0xff]   ;;  %v7268_v4 = vld [vmem:[#allocation5 + $0x5d4] ss:$24 sps:$4 sm:$0xff]  }
 0x12e   :  { %2627 = vmatmul.mubr.bf16.vlgmr.msra.gmra.mrb[0].mxu0 %v8754_v5 }
 0x12f   :  { %2799 = vmatmul.mubr.bf16.vlgmr.msra.gmra.mrb[0].mxu1 %v8754_v5  ;;  %2638 = vmatpush1.bf16.msra.mxu0 %v7176_v6  ;;  %v7271_v6 = vld [vmem:[#allocation5 + $0x5dc] ss:$24 sps:$4 sm:$0xff]  }
 0x130   :  { %2810 = vmatpush1.bf16.msra.mxu1 %v7179_v7  ;;  %2639 = vmatprep.subr.bf16.mxu0 %v7184_v8  ;;  %v7266_v7 = vld [vmem:[#allocation5 + $0x5d0] ss:$24 sps:$4 sm:$0xff]  }
 0x131   :  { %2811 = vmatprep.subr.bf16.mxu1 %v7187_v9  ;;  %2669 = vmatprep.mubr.bf16.mxu0 %v8764_v34  ;;  %v7269_v8 = vld [vmem:[#allocation5 + $0x5d8] ss:$24 sps:$4 sm:$0xff]   ;;  %v7274_v9 = vld [vmem:[#allocation5 + $0x604] ss:$24 sps:$4 sm:$0xff]  }
 0x132   :  { %2841 = vmatprep.mubr.bf16.mxu1 %v8764_v34 }
 0x133   :  { %2640 = vmatpush1.bf16.msra.mxu0 %v7182_v10  ;;  %v7277_v10 = vld [vmem:[#allocation5 + $0x60c] ss:$24 sps:$4 sm:$0xff]  }
 0x134   :  { %2812 = vmatpush1.bf16.msra.mxu1 %v7185_v11  ;;  %2641 = vmatprep.subr.bf16.mxu0 %v7190_v12  ;;  %v8770_v11 = vcombine.low %v8758_v30, %v8760_v31  ;;  %v7272_v12 = vld [vmem:[#allocation5 + $0x600] ss:$24 sps:$4 sm:$0xff]   ;;  %v7301_v30 = vld [vmem:[#allocation5 + $0x6cc] ss:$24 sps:$4 sm:$0xff]  }
 0x135   :  { %2813 = vmatprep.subr.bf16.mxu1 %v7193_v13  ;;  %v7275_v13 = vld [vmem:[#allocation5 + $0x608] ss:$24 sps:$4 sm:$0xff]  }
 0x136   :  { %v7296_v31 = vld [vmem:[#allocation5 + $0x6c0] ss:$24 sps:$4 sm:$0xff]  }
 0x137   :  { %2642 = vmatpush1.bf16.msra.mxu0 %v7188_v14  ;;  %v7280_v14 = vld [vmem:[#allocation5 + $0x634] ss:$24 sps:$4 sm:$0xff]  }
 0x138   :  { %2814 = vmatpush1.bf16.msra.mxu1 %v7191_v15  ;;  %2643 = vmatprep.subr.bf16.mxu0 %v7196_v16  ;;  %v7283_v15 = vld [vmem:[#allocation5 + $0x63c] ss:$24 sps:$4 sm:$0xff]  }
 0x139   :  { %2815 = vmatprep.subr.bf16.mxu1 %v7199_v17  ;;  %v8772_v16 = vld [vmem:[#allocation2 + $0x10] sm:$0xff] }
 0x13a   :  { %v8774_v17 = vld [vmem:[#allocation2 + $0x30] sm:$0xff] }
 0x13b   :  { %2644 = vmatpush1.bf16.msra.mxu0 %v7194_v18  ;;  %v8778_v18 = vcombine.high %v8772_v16, %v8774_v17 }
 0x13c   :  { %2816 = vmatpush1.bf16.msra.mxu1 %v7197_v19  ;;  %2645 = vmatprep.subr.bf16.mxu0 %v7202_v20  ;;  %v7278_v19 = vld [vmem:[#allocation5 + $0x630] ss:$24 sps:$4 sm:$0xff]  }
 0x13d   :  { %2817 = vmatprep.subr.bf16.mxu1 %v7205_v21  ;;  %v7281_v20 = vld [vmem:[#allocation5 + $0x638] ss:$24 sps:$4 sm:$0xff]   ;;  %v7286_v21 = vld [vmem:[#allocation5 + $0x664] ss:$24 sps:$4 sm:$0xff]  }
 0x13f   :  { %2646 = vmatpush1.bf16.msra.mxu0 %v7200_v22  ;;  %v7289_v22 = vld [vmem:[#allocation5 + $0x66c] ss:$24 sps:$4 sm:$0xff]  }
 0x140   :  { %2818 = vmatpush1.bf16.msra.mxu1 %v7203_v23  ;;  %2647 = vmatprep.subr.bf16.mxu0 %v7208_v24  ;;  %v7284_v23 = vld [vmem:[#allocation5 + $0x660] ss:$24 sps:$4 sm:$0xff]  }
 0x141   :  { %2819 = vmatprep.subr.bf16.mxu1 %v7211_v25  ;;  %v7287_v24 = vld [vmem:[#allocation5 + $0x668] ss:$24 sps:$4 sm:$0xff]   ;;  %v7292_v25 = vld [vmem:[#allocation5 + $0x694] ss:$24 sps:$4 sm:$0xff]  }
 0x143   :  { %2648 = vmatpush1.bf16.msra.mxu0 %v7206_v26  ;;  %v7295_v26 = vld [vmem:[#allocation5 + $0x69c] ss:$24 sps:$4 sm:$0xff]  }
 0x144   :  { %2820 = vmatpush1.bf16.msra.mxu1 %v7209_v27  ;;  %2649 = vmatprep.subr.bf16.mxu0 %v7214_v28  ;;  %v7290_v27 = vld [vmem:[#allocation5 + $0x690] ss:$24 sps:$4 sm:$0xff]  }
 0x145   :  { %2821 = vmatprep.subr.bf16.mxu1 %v7217_v29  ;;  %v7293_v28 = vld [vmem:[#allocation5 + $0x698] ss:$24 sps:$4 sm:$0xff]   ;;  %v7298_v29 = vld [vmem:[#allocation5 + $0x6c4] ss:$24 sps:$4 sm:$0xff]  }
 0x147   :  { %2650 = vmatpush1.bf16.msra.mxu0 %v7212_v32  ;;  %v7299_v32 = vld [vmem:[#allocation5 + $0x6c8] ss:$24 sps:$4 sm:$0xff]  }
 0x148   :  { %2822 = vmatpush1.bf16.msra.mxu1 %v7215_v33  ;;  %2651 = vmatprep.subr.bf16.mxu0 %v7220_v35  ;;  %v7304_v33 = vld [vmem:[#allocation5 + $0x6f4] ss:$24 sps:$4 sm:$0xff]  }
 0x149   :  { %2823 = vmatprep.subr.bf16.mxu1 %v7223_v36  ;;  %v7307_v35 = vld [vmem:[#allocation5 + $0x6fc] ss:$24 sps:$4 sm:$0xff]   ;;  %v7302_v36 = vld [vmem:[#allocation5 + $0x6f0] ss:$24 sps:$4 sm:$0xff]  }
 0x14b   :  { %2652 = vmatpush1.bf16.msra.mxu0 %v7218_v37  ;;  %v7305_v37 = vld [vmem:[#allocation5 + $0x6f8] ss:$24 sps:$4 sm:$0xff]  }
 0x14c   :  { %2824 = vmatpush1.bf16.msra.mxu1 %v7221_v38  ;;  %2653 = vmatprep.subr.bf16.mxu0 %v7226_v39  ;;  %v7310_v38 = vld [vmem:[#allocation5 + $0x724] ss:$24 sps:$4 sm:$0xff]  }
 0x14d   :  { %2825 = vmatprep.subr.bf16.mxu1 %v7229_v40  ;;  %v7313_v39 = vld [vmem:[#allocation5 + $0x72c] ss:$24 sps:$4 sm:$0xff]   ;;  %v7308_v40 = vld [vmem:[#allocation5 + $0x720] ss:$24 sps:$4 sm:$0xff]  }
 0x14f   :  { %2654 = vmatpush1.bf16.msra.mxu0 %v7224_v41  ;;  %v7311_v41 = vld [vmem:[#allocation5 + $0x728] ss:$24 sps:$4 sm:$0xff]  }
 0x150   :  { %2826 = vmatpush1.bf16.msra.mxu1 %v7227_v42  ;;  %2655 = vmatprep.subr.bf16.mxu0 %v7232_v43  ;;  %v7316_v42 = vld [vmem:[#allocation5 + $0x754] ss:$24 sps:$4 sm:$0xff]  }
 0x151   :  { %2827 = vmatprep.subr.bf16.mxu1 %v7235_v44  ;;  %v7319_v43 = vld [vmem:[#allocation5 + $0x75c] ss:$24 sps:$4 sm:$0xff]   ;;  %v7314_v44 = vld [vmem:[#allocation5 + $0x750] ss:$24 sps:$4 sm:$0xff]  }
 0x153   :  { %2656 = vmatpush1.bf16.msra.mxu0 %v7230_v45  ;;  %v7317_v45 = vld [vmem:[#allocation5 + $0x758] ss:$24 sps:$4 sm:$0xff]  }
 0x154   :  { %2828 = vmatpush1.bf16.msra.mxu1 %v7233_v46  ;;  %2657 = vmatprep.subr.bf16.mxu0 %v7238_v47  ;;  %v7322_v46 = vld [vmem:[#allocation5 + $0x784] ss:$24 sps:$4 sm:$0xff]  }
 0x155   :  { %2829 = vmatprep.subr.bf16.mxu1 %v7241_v48  ;;  %v7325_v47 = vld [vmem:[#allocation5 + $0x78c] ss:$24 sps:$4 sm:$0xff]   ;;  %v7320_v48 = vld [vmem:[#allocation5 + $0x780] ss:$24 sps:$4 sm:$0xff]  }
 0x157   :  { %2658 = vmatpush1.bf16.msra.mxu0 %v7236_v49  ;;  %v7323_v49 = vld [vmem:[#allocation5 + $0x788] ss:$24 sps:$4 sm:$0xff]  }
 0x158   :  { %2830 = vmatpush1.bf16.msra.mxu1 %v7239_v51  ;;  %2659 = vmatprep.subr.bf16.mxu0 %v7244_v52  ;;  %v7328_v51 = vld [vmem:[#allocation5 + $0x7b4] ss:$24 sps:$4 sm:$0xff]  }
 0x159   :  { %2831 = vmatprep.subr.bf16.mxu1 %v7247_v53  ;;  %v7331_v52 = vld [vmem:[#allocation5 + $0x7bc] ss:$24 sps:$4 sm:$0xff]   ;;  %v7326_v53 = vld [vmem:[#allocation5 + $0x7b0] ss:$24 sps:$4 sm:$0xff]  }
 0x15b   :  { %2660 = vmatpush1.bf16.msra.mxu0 %v7242_v54  ;;  %v7329_v54 = vld [vmem:[#allocation5 + $0x7b8] ss:$24 sps:$4 sm:$0xff]  }
 0x15c   :  { %2832 = vmatpush1.bf16.msra.mxu1 %v7245_v55  ;;  %2661 = vmatprep.subr.bf16.mxu0 %v7250_v56  ;;  %v7334_v55 = vld [vmem:[#allocation5 + $0x7e4] ss:$24 sps:$4 sm:$0xff]  }
 0x15d   :  { %2833 = vmatprep.subr.bf16.mxu1 %v7253_v57  ;;  %v7337_v56 = vld [vmem:[#allocation5 + $0x7ec] ss:$24 sps:$4 sm:$0xff]   ;;  %v7332_v57 = vld [vmem:[#allocation5 + $0x7e0] ss:$24 sps:$4 sm:$0xff]  }
 0x15f   :  { %2662 = vmatpush1.bf16.msra.mxu0 %v7248_v58  ;;  %v7335_v58 = vld [vmem:[#allocation5 + $0x7e8] ss:$24 sps:$4 sm:$0xff]  }
 0x160   :  { %2834 = vmatpush1.bf16.msra.mxu1 %v7251_v59  ;;  %2663 = vmatprep.subr.bf16.mxu0 %v7256_v60  ;;  %v7340_v59 = vld [vmem:[#allocation5 + $0x814] ss:$24 sps:$4 sm:$0xff]  }
 0x161   :  { %2835 = vmatprep.subr.bf16.mxu1 %v7259_v61  ;;  %v7343_v60 = vld [vmem:[#allocation5 + $0x81c] ss:$24 sps:$4 sm:$0xff]   ;;  %v7338_v61 = vld [vmem:[#allocation5 + $0x810] ss:$24 sps:$4 sm:$0xff]  }
 0x163   :  { %2664 = vmatpush1.bf16.msra.mxu0 %v7254_v62  ;;  %v7341_v62 = vld [vmem:[#allocation5 + $0x818] ss:$24 sps:$4 sm:$0xff]  }
 0x164   :  { %2836 = vmatpush1.bf16.msra.mxu1 %v7257_v63  ;;  %2665 = vmatprep.subr.bf16.mxu0 %v7262_v0  ;;  %v7346_v63 = vld [vmem:[#allocation5 + $0x844] ss:$24 sps:$4 sm:$0xff]  }
 0x165   :  { %2837 = vmatprep.subr.bf16.mxu1 %v7265_v1  ;;  %v7349_v0 = vld [vmem:[#allocation5 + $0x84c] ss:$24 sps:$4 sm:$0xff]   ;;  %v7344_v1 = vld [vmem:[#allocation5 + $0x840] ss:$24 sps:$4 sm:$0xff]  }
 0x167   :  { %2666 = vmatpush1.bf16.msra.mxu0 %v7260_v2  ;;  %v7347_v2 = vld [vmem:[#allocation5 + $0x848] ss:$24 sps:$4 sm:$0xff]  }
 0x168   :  { %2838 = vmatpush1.bf16.msra.mxu1 %v7263_v3  ;;  %2667 = vmatprep.subr.bf16.mxu0 %v7268_v4  ;;  %v7352_v3 = vld [vmem:[#allocation5 + $0x874] ss:$24 sps:$4 sm:$0xff]  }
 0x169   :  { %2839 = vmatprep.subr.bf16.mxu1 %v7271_v6  ;;  %v7355_v4 = vld [vmem:[#allocation5 + $0x87c] ss:$24 sps:$4 sm:$0xff]   ;;  %v7350_v6 = vld [vmem:[#allocation5 + $0x870] ss:$24 sps:$4 sm:$0xff]  }
 0x16b   :  { %2668 = vmatpush1.bf16.msra.mxu0 %v7266_v7  ;;  %v7353_v7 = vld [vmem:[#allocation5 + $0x878] ss:$24 sps:$4 sm:$0xff]  }
 0x16c   :  { %2840 = vmatpush1.bf16.msra.mxu1 %v7269_v8  ;;  %2680 = vmatprep.subr.bf16.mxu0 %v7274_v9  ;;  %v7358_v8 = vld [vmem:[#allocation5 + $0x8a4] ss:$24 sps:$4 sm:$0xff]  }
 0x16d   :  { %2852 = vmatprep.subr.bf16.mxu1 %v7277_v10  ;;  %v7361_v9 = vld [vmem:[#allocation5 + $0x8ac] ss:$24 sps:$4 sm:$0xff]   ;;  %v7356_v10 = vld [vmem:[#allocation5 + $0x8a0] ss:$24 sps:$4 sm:$0xff]  }
 0x16e   :  { %2670 = vmatmul.mubr.bf16.vlgmr.msra.gmra.mrb[0].mxu0 %v8770_v11 }
 0x16f   :  { %2842 = vmatmul.mubr.bf16.vlgmr.msra.gmra.mrb[0].mxu1 %v8770_v11  ;;  %2681 = vmatpush1.bf16.msra.mxu0 %v7272_v12  ;;  %v7359_v12 = vld [vmem:[#allocation5 + $0x8a8] ss:$24 sps:$4 sm:$0xff]  }
 0x170   :  { %2853 = vmatpush1.bf16.msra.mxu1 %v7275_v13  ;;  %2682 = vmatprep.subr.bf16.mxu0 %v7280_v14  ;;  %v7364_v13 = vld [vmem:[#allocation5 + $0x8d4] ss:$24 sps:$4 sm:$0xff]  }
 0x171   :  { %2854 = vmatprep.subr.bf16.mxu1 %v7283_v15  ;;  %2712 = vmatprep.mubr.bf16.mxu0 %v8778_v18  ;;  %v7367_v14 = vld [vmem:[#allocation5 + $0x8dc] ss:$24 sps:$4 sm:$0xff]   ;;  %v7362_v15 = vld [vmem:[#allocation5 + $0x8d0] ss:$24 sps:$4 sm:$0xff]  }
 0x172   :  { %2884 = vmatprep.mubr.bf16.mxu1 %v8778_v18 }
 0x173   :  { %2683 = vmatpush1.bf16.msra.mxu0 %v7278_v19  ;;  %v7365_v19 = vld [vmem:[#allocation5 + $0x8d8] ss:$24 sps:$4 sm:$0xff]  }
 0x174   :  { %2855 = vmatpush1.bf16.msra.mxu1 %v7281_v20  ;;  %2684 = vmatprep.subr.bf16.mxu0 %v7286_v21  ;;  %v7370_v20 = vld [vmem:[#allocation5 + $0x904] ss:$24 sps:$4 sm:$0xff]  }
 0x175   :  { %2856 = vmatprep.subr.bf16.mxu1 %v7289_v22  ;;  %v7373_v21 = vld [vmem:[#allocation5 + $0x90c] ss:$24 sps:$4 sm:$0xff]   ;;  %v7368_v22 = vld [vmem:[#allocation5 + $0x900] ss:$24 sps:$4 sm:$0xff]  }
 0x177   :  { %2685 = vmatpush1.bf16.msra.mxu0 %v7284_v23  ;;  %v7371_v23 = vld [vmem:[#allocation5 + $0x908] ss:$24 sps:$4 sm:$0xff]  }
 0x178   :  { %2857 = vmatpush1.bf16.msra.mxu1 %v7287_v24  ;;  %2686 = vmatprep.subr.bf16.mxu0 %v7292_v25  ;;  %v8786_v24 = vcombine.low %v8772_v16, %v8774_v17  ;;  %v8788_v25 = vld [vmem:[#allocation2 + $0x18] sm:$0xff]  ;;  %v7374_v16 = vld [vmem:[#allocation5 + $0x930] ss:$24 sps:$4 sm:$0xff]  }
 0x179   :  { %2858 = vmatprep.subr.bf16.mxu1 %v7295_v26  ;;  %v8790_v26 = vld [vmem:[#allocation2 + $0x38] sm:$0xff] }
 0x17a   :  { %v7377_v17 = vld [vmem:[#allocation5 + $0x938] ss:$24 sps:$4 sm:$0xff]  }
 0x17b   :  { %2687 = vmatpush1.bf16.msra.mxu0 %v7290_v27  ;;  %v7376_v27 = vld [vmem:[#allocation5 + $0x934] ss:$24 sps:$4 sm:$0xff]  }
 0x17c   :  { %2859 = vmatpush1.bf16.msra.mxu1 %v7293_v28  ;;  %2688 = vmatprep.subr.bf16.mxu0 %v7298_v29  ;;  %v7379_v28 = vld [vmem:[#allocation5 + $0x93c] ss:$24 sps:$4 sm:$0xff]   ;;  %v8794_v29 = vcombine.high %v8788_v25, %v8790_v26 }
 0x17d   :  { %2860 = vmatprep.subr.bf16.mxu1 %v7301_v30  ;;  %v7382_v30 = vld [vmem:[#allocation5 + $0x964] ss:$24 sps:$4 sm:$0xff]  }
 0x17f   :  { %2689 = vmatpush1.bf16.msra.mxu0 %v7296_v31  ;;  %v7385_v31 = vld [vmem:[#allocation5 + $0x96c] ss:$24 sps:$4 sm:$0xff]  }
 0x180   :  { %2861 = vmatpush1.bf16.msra.mxu1 %v7299_v32  ;;  %2690 = vmatprep.subr.bf16.mxu0 %v7304_v33  ;;  %v7380_v32 = vld [vmem:[#allocation5 + $0x960] ss:$24 sps:$4 sm:$0xff]  }
 0x181   :  { %2862 = vmatprep.subr.bf16.mxu1 %v7307_v35  ;;  %v7383_v33 = vld [vmem:[#allocation5 + $0x968] ss:$24 sps:$4 sm:$0xff]   ;;  %v7388_v35 = vld [vmem:[#allocation5 + $0x994] ss:$24 sps:$4 sm:$0xff]  }
 0x183   :  { %2691 = vmatpush1.bf16.msra.mxu0 %v7302_v36  ;;  %v7391_v36 = vld [vmem:[#allocation5 + $0x99c] ss:$24 sps:$4 sm:$0xff]  }
 0x184   :  { %2863 = vmatpush1.bf16.msra.mxu1 %v7305_v37  ;;  %2692 = vmatprep.subr.bf16.mxu0 %v7310_v38  ;;  %v7386_v37 = vld [vmem:[#allocation5 + $0x990] ss:$24 sps:$4 sm:$0xff]  }
 0x185   :  { %2864 = vmatprep.subr.bf16.mxu1 %v7313_v39  ;;  %v7389_v38 = vld [vmem:[#allocation5 + $0x998] ss:$24 sps:$4 sm:$0xff]   ;;  %v7394_v39 = vld [vmem:[#allocation5 + $0x9c4] ss:$24 sps:$4 sm:$0xff]  }
 0x187   :  { %2693 = vmatpush1.bf16.msra.mxu0 %v7308_v40  ;;  %v7397_v40 = vld [vmem:[#allocation5 + $0x9cc] ss:$24 sps:$4 sm:$0xff]  }
 0x188   :  { %2865 = vmatpush1.bf16.msra.mxu1 %v7311_v41  ;;  %2694 = vmatprep.subr.bf16.mxu0 %v7316_v42  ;;  %v7392_v41 = vld [vmem:[#allocation5 + $0x9c0] ss:$24 sps:$4 sm:$0xff]  }
 0x189   :  { %2866 = vmatprep.subr.bf16.mxu1 %v7319_v43  ;;  %v7395_v42 = vld [vmem:[#allocation5 + $0x9c8] ss:$24 sps:$4 sm:$0xff]   ;;  %v7400_v43 = vld [vmem:[#allocation5 + $0x9f4] ss:$24 sps:$4 sm:$0xff]  }
 0x18b   :  { %2695 = vmatpush1.bf16.msra.mxu0 %v7314_v44  ;;  %v7403_v44 = vld [vmem:[#allocation5 + $0x9fc] ss:$24 sps:$4 sm:$0xff]  }
 0x18c   :  { %2867 = vmatpush1.bf16.msra.mxu1 %v7317_v45  ;;  %2696 = vmatprep.subr.bf16.mxu0 %v7322_v46  ;;  %v7398_v45 = vld [vmem:[#allocation5 + $0x9f0] ss:$24 sps:$4 sm:$0xff]  }
 0x18d   :  { %2868 = vmatprep.subr.bf16.mxu1 %v7325_v47  ;;  %v7401_v46 = vld [vmem:[#allocation5 + $0x9f8] ss:$24 sps:$4 sm:$0xff]   ;;  %v7406_v47 = vld [vmem:[#allocation5 + $0xa24] ss:$24 sps:$4 sm:$0xff]  }
 0x18f   :  { %2697 = vmatpush1.bf16.msra.mxu0 %v7320_v48  ;;  %v7409_v48 = vld [vmem:[#allocation5 + $0xa2c] ss:$24 sps:$4 sm:$0xff]  }
 0x190   :  { %2869 = vmatpush1.bf16.msra.mxu1 %v7323_v49  ;;  %2698 = vmatprep.subr.bf16.mxu0 %v7328_v51  ;;  %v7404_v49 = vld [vmem:[#allocation5 + $0xa20] ss:$24 sps:$4 sm:$0xff]  }
 0x191   :  { %2870 = vmatprep.subr.bf16.mxu1 %v7331_v52  ;;  %v7407_v51 = vld [vmem:[#allocation5 + $0xa28] ss:$24 sps:$4 sm:$0xff]   ;;  %v7412_v52 = vld [vmem:[#allocation5 + $0xa54] ss:$24 sps:$4 sm:$0xff]  }
 0x193   :  { %2699 = vmatpush1.bf16.msra.mxu0 %v7326_v53  ;;  %v7415_v53 = vld [vmem:[#allocation5 + $0xa5c] ss:$24 sps:$4 sm:$0xff]  }
 0x194   :  { %2871 = vmatpush1.bf16.msra.mxu1 %v7329_v54  ;;  %2700 = vmatprep.subr.bf16.mxu0 %v7334_v55  ;;  %v7410_v54 = vld [vmem:[#allocation5 + $0xa50] ss:$24 sps:$4 sm:$0xff]  }
 0x195   :  { %2872 = vmatprep.subr.bf16.mxu1 %v7337_v56  ;;  %v7413_v55 = vld [vmem:[#allocation5 + $0xa58] ss:$24 sps:$4 sm:$0xff]   ;;  %v7418_v56 = vld [vmem:[#allocation5 + $0xa84] ss:$24 sps:$4 sm:$0xff]  }
 0x197   :  { %2701 = vmatpush1.bf16.msra.mxu0 %v7332_v57  ;;  %v7421_v57 = vld [vmem:[#allocation5 + $0xa8c] ss:$24 sps:$4 sm:$0xff]  }
 0x198   :  { %2873 = vmatpush1.bf16.msra.mxu1 %v7335_v58  ;;  %2702 = vmatprep.subr.bf16.mxu0 %v7340_v59  ;;  %v7416_v58 = vld [vmem:[#allocation5 + $0xa80] ss:$24 sps:$4 sm:$0xff]  }
 0x199   :  { %2874 = vmatprep.subr.bf16.mxu1 %v7343_v60  ;;  %v7419_v59 = vld [vmem:[#allocation5 + $0xa88] ss:$24 sps:$4 sm:$0xff]   ;;  %v7424_v60 = vld [vmem:[#allocation5 + $0xab4] ss:$24 sps:$4 sm:$0xff]  }
 0x19b   :  { %2703 = vmatpush1.bf16.msra.mxu0 %v7338_v61  ;;  %v7427_v61 = vld [vmem:[#allocation5 + $0xabc] ss:$24 sps:$4 sm:$0xff]  }
 0x19c   :  { %2875 = vmatpush1.bf16.msra.mxu1 %v7341_v62  ;;  %2704 = vmatprep.subr.bf16.mxu0 %v7346_v63  ;;  %v7422_v62 = vld [vmem:[#allocation5 + $0xab0] ss:$24 sps:$4 sm:$0xff]  }
 0x19d   :  { %2876 = vmatprep.subr.bf16.mxu1 %v7349_v0  ;;  %v7425_v63 = vld [vmem:[#allocation5 + $0xab8] ss:$24 sps:$4 sm:$0xff]   ;;  %v7430_v0 = vld [vmem:[#allocation5 + $0xae4] ss:$24 sps:$4 sm:$0xff]  }
 0x19f   :  { %2705 = vmatpush1.bf16.msra.mxu0 %v7344_v1  ;;  %v7433_v1 = vld [vmem:[#allocation5 + $0xaec] ss:$24 sps:$4 sm:$0xff]  }
 0x1a0   :  { %2877 = vmatpush1.bf16.msra.mxu1 %v7347_v2  ;;  %2706 = vmatprep.subr.bf16.mxu0 %v7352_v3  ;;  %v7428_v2 = vld [vmem:[#allocation5 + $0xae0] ss:$24 sps:$4 sm:$0xff]  }
 0x1a1   :  { %2878 = vmatprep.subr.bf16.mxu1 %v7355_v4  ;;  %v7431_v3 = vld [vmem:[#allocation5 + $0xae8] ss:$24 sps:$4 sm:$0xff]   ;;  %v7436_v4 = vld [vmem:[#allocation5 + $0xb14] ss:$24 sps:$4 sm:$0xff]  }
 0x1a3   :  { %2707 = vmatpush1.bf16.msra.mxu0 %v7350_v6  ;;  %v7439_v6 = vld [vmem:[#allocation5 + $0xb1c] ss:$24 sps:$4 sm:$0xff]  }
 0x1a4   :  { %2879 = vmatpush1.bf16.msra.mxu1 %v7353_v7  ;;  %2708 = vmatprep.subr.bf16.mxu0 %v7358_v8  ;;  %v7434_v7 = vld [vmem:[#allocation5 + $0xb10] ss:$24 sps:$4 sm:$0xff]  }
 0x1a5   :  { %2880 = vmatprep.subr.bf16.mxu1 %v7361_v9  ;;  %v7437_v8 = vld [vmem:[#allocation5 + $0xb18] ss:$24 sps:$4 sm:$0xff]   ;;  %v7442_v9 = vld [vmem:[#allocation5 + $0xb44] ss:$24 sps:$4 sm:$0xff]  }
 0x1a7   :  { %2709 = vmatpush1.bf16.msra.mxu0 %v7356_v10  ;;  %v7445_v10 = vld [vmem:[#allocation5 + $0xb4c] ss:$24 sps:$4 sm:$0xff]  }
 0x1a8   :  { %2881 = vmatpush1.bf16.msra.mxu1 %v7359_v12  ;;  %2710 = vmatprep.subr.bf16.mxu0 %v7364_v13  ;;  %v7440_v12 = vld [vmem:[#allocation5 + $0xb40] ss:$24 sps:$4 sm:$0xff]  }
 0x1a9   :  { %2882 = vmatprep.subr.bf16.mxu1 %v7367_v14  ;;  %v7443_v13 = vld [vmem:[#allocation5 + $0xb48] ss:$24 sps:$4 sm:$0xff]   ;;  %v7448_v14 = vld [vmem:[#allocation5 + $0xb74] ss:$24 sps:$4 sm:$0xff]  }
 0x1ab   :  { %2711 = vmatpush1.bf16.msra.mxu0 %v7362_v15  ;;  %v7451_v15 = vld [vmem:[#allocation5 + $0xb7c] ss:$24 sps:$4 sm:$0xff]  }
 0x1ac   :  { %2883 = vmatpush1.bf16.msra.mxu1 %v7365_v19  ;;  %2723 = vmatprep.subr.bf16.mxu0 %v7370_v20  ;;  %v7446_v19 = vld [vmem:[#allocation5 + $0xb70] ss:$24 sps:$4 sm:$0xff]  }
 0x1ad   :  { %2895 = vmatprep.subr.bf16.mxu1 %v7373_v21  ;;  %v7449_v20 = vld [vmem:[#allocation5 + $0xb78] ss:$24 sps:$4 sm:$0xff]   ;;  %v7454_v21 = vld [vmem:[#allocation5 + $0xba4] ss:$24 sps:$4 sm:$0xff]  }
 0x1ae   :  { %2713 = vmatmul.mubr.bf16.vlgmr.msra.gmra.mrb[0].mxu0 %v8786_v24 }
 0x1af   :  { %2885 = vmatmul.mubr.bf16.vlgmr.msra.gmra.mrb[0].mxu1 %v8786_v24  ;;  %2724 = vmatpush1.bf16.msra.mxu0 %v7368_v22  ;;  %v7457_v22 = vld [vmem:[#allocation5 + $0xbac] ss:$24 sps:$4 sm:$0xff]  }
 0x1b0   :  { %2896 = vmatpush1.bf16.msra.mxu1 %v7371_v23  ;;  %2725 = vmatprep.subr.bf16.mxu0 %v7376_v27  ;;  %v7452_v23 = vld [vmem:[#allocation5 + $0xba0] ss:$24 sps:$4 sm:$0xff]  }
 0x1b1   :  { %2897 = vmatprep.subr.bf16.mxu1 %v7379_v28  ;;  %2755 = vmatprep.mubr.bf16.mxu0 %v8794_v29  ;;  %v7455_v27 = vld [vmem:[#allocation5 + $0xba8] ss:$24 sps:$4 sm:$0xff]   ;;  %v7460_v28 = vld [vmem:[#allocation5 + $0xbd4] ss:$24 sps:$4 sm:$0xff]  }
 0x1b2   :  { %2927 = vmatprep.mubr.bf16.mxu1 %v8794_v29 }
 0x1b3   :  { %2726 = vmatpush1.bf16.msra.mxu0 %v7374_v16  ;;  %v7463_v16 = vld [vmem:[#allocation5 + $0xbdc] ss:$24 sps:$4 sm:$0xff]  }
 0x1b4   :  { %2898 = vmatpush1.bf16.msra.mxu1 %v7377_v17  ;;  %2727 = vmatprep.subr.bf16.mxu0 %v7382_v30  ;;  %v7458_v17 = vld [vmem:[#allocation5 + $0xbd0] ss:$24 sps:$4 sm:$0xff]  }
 0x1b5   :  { %2899 = vmatprep.subr.bf16.mxu1 %v7385_v31  ;;  %v7461_v30 = vld [vmem:[#allocation5 + $0xbd8] ss:$24 sps:$4 sm:$0xff]   ;;  %v7466_v31 = vld [vmem:[#allocation5 + $0x14] ss:$24 sps:$4 sm:$0xff]  }
 0x1b7   :  { %2728 = vmatpush1.bf16.msra.mxu0 %v7380_v32  ;;  %v8802_v32 = vcombine.low %v8788_v25, %v8790_v26  ;;  %v7473_v25 = vld [vmem:[#allocation5 + $0xa0] ss:$24 sps:$4 sm:$0xff]   ;;  %v7478_v26 = vld [vmem:[#allocation5 + $0xd4] ss:$24 sps:$4 sm:$0xff]  }
 0x1b8   :  { %2900 = vmatpush1.bf16.msra.mxu1 %v7383_v33  ;;  %2729 = vmatprep.subr.bf16.mxu0 %v7388_v35  ;;  %v7464_v33 = vld [vmem:[#allocation5 + $0x10] ss:$24 sps:$4 sm:$0xff]   ;;  %v7469_v35 = vld [vmem:[#allocation5 + $0x44] ss:$24 sps:$4 sm:$0xff]  }
 0x1b9   :  { %2901 = vmatprep.subr.bf16.mxu1 %v7391_v36  ;;  %v7467_v36 = vld [vmem:[#allocation5 + $0x40] ss:$24 sps:$4 sm:$0xff]  }
 0x1bb   :  { %2730 = vmatpush1.bf16.msra.mxu0 %v7386_v37  ;;  %v7472_v37 = vld [vmem:[#allocation5 + $0x74] ss:$24 sps:$4 sm:$0xff]  }
 0x1bc   :  { %2902 = vmatpush1.bf16.msra.mxu1 %v7389_v38  ;;  %2731 = vmatprep.subr.bf16.mxu0 %v7394_v39  ;;  %v7470_v38 = vld [vmem:[#allocation5 + $0x70] ss:$24 sps:$4 sm:$0xff]   ;;  %v7475_v39 = vld [vmem:[#allocation5 + $0xa4] ss:$24 sps:$4 sm:$0xff]  }
 0x1bd   :  { %2903 = vmatprep.subr.bf16.mxu1 %v7397_v40  ;;  %v7476_v40 = vld [vmem:[#allocation5 + $0xd0] ss:$24 sps:$4 sm:$0xff]  }
 0x1bf   :  { %2732 = vmatpush1.bf16.msra.mxu0 %v7392_v41  ;;  %v7481_v41 = vld [vmem:[#allocation5 + $0x104] ss:$24 sps:$4 sm:$0xff]  }
 0x1c0   :  { %2904 = vmatpush1.bf16.msra.mxu1 %v7395_v42  ;;  %2733 = vmatprep.subr.bf16.mxu0 %v7400_v43  ;;  %v7479_v42 = vld [vmem:[#allocation5 + $0x100] ss:$24 sps:$4 sm:$0xff]   ;;  %v7484_v43 = vld [vmem:[#allocation5 + $0x134] ss:$24 sps:$4 sm:$0xff]  }
 0x1c1   :  { %2905 = vmatprep.subr.bf16.mxu1 %v7403_v44  ;;  %v7482_v44 = vld [vmem:[#allocation5 + $0x130] ss:$24 sps:$4 sm:$0xff]  }
 0x1c3   :  { %2734 = vmatpush1.bf16.msra.mxu0 %v7398_v45  ;;  %v7485_v45 = vld [vmem:[#allocation5 + $0x160] ss:$24 sps:$4 sm:$0xff]  }
 0x1c4   :  { %2906 = vmatpush1.bf16.msra.mxu1 %v7401_v46  ;;  %2735 = vmatprep.subr.bf16.mxu0 %v7406_v47  ;;  %v7490_v46 = vld [vmem:[#allocation5 + $0x194] ss:$24 sps:$4 sm:$0xff]  }
 0x1c5   :  { %2907 = vmatprep.subr.bf16.mxu1 %v7409_v48  ;;  %v7586_v47 = vld [vmem:[#allocation8 + $0x4] ss:$16 sps:$4 sm:$0xff]   ;;  %v7584_v48 = vld [vmem:[#allocation8] ss:$16 sps:$4 sm:$0xff]  }
 0x1c7   :  { %2736 = vmatpush1.bf16.msra.mxu0 %v7404_v49  ;;  %v7488_v49 = vld [vmem:[#allocation5 + $0x190] ss:$24 sps:$4 sm:$0xff]  }
 0x1c8   :  { %2908 = vmatpush1.bf16.msra.mxu1 %v7407_v51  ;;  %2737 = vmatprep.subr.bf16.mxu0 %v7412_v52  ;;  %v7493_v51 = vld [vmem:[#allocation5 + $0x1c4] ss:$24 sps:$4 sm:$0xff]  }
 0x1c9   :  { %2909 = vmatprep.subr.bf16.mxu1 %v7415_v53  ;;  %v7592_v52 = vld [vmem:[#allocation8 + $0x24] ss:$16 sps:$4 sm:$0xff]   ;;  %v7590_v53 = vld [vmem:[#allocation8 + $0x20] ss:$16 sps:$4 sm:$0xff]  }
 0x1cb   :  { %2738 = vmatpush1.bf16.msra.mxu0 %v7410_v54  ;;  %v7491_v54 = vld [vmem:[#allocation5 + $0x1c0] ss:$24 sps:$4 sm:$0xff]  }
 0x1cc   :  { %2910 = vmatpush1.bf16.msra.mxu1 %v7413_v55  ;;  %2739 = vmatprep.subr.bf16.mxu0 %v7418_v56  ;;  %v7496_v55 = vld [vmem:[#allocation5 + $0x1f4] ss:$24 sps:$4 sm:$0xff]  }
 0x1cd   :  { %2911 = vmatprep.subr.bf16.mxu1 %v7421_v57  ;;  %v7598_v56 = vld [vmem:[#allocation8 + $0x44] ss:$16 sps:$4 sm:$0xff]   ;;  %v7596_v57 = vld [vmem:[#allocation8 + $0x40] ss:$16 sps:$4 sm:$0xff]  }
 0x1cf   :  { %2740 = vmatpush1.bf16.msra.mxu0 %v7416_v58  ;;  %v7494_v58 = vld [vmem:[#allocation5 + $0x1f0] ss:$24 sps:$4 sm:$0xff]  }
 0x1d0   :  { %2912 = vmatpush1.bf16.msra.mxu1 %v7419_v59  ;;  %2741 = vmatprep.subr.bf16.mxu0 %v7424_v60  ;;  %v7499_v59 = vld [vmem:[#allocation5 + $0x224] ss:$24 sps:$4 sm:$0xff]  }
 0x1d1   :  { %2913 = vmatprep.subr.bf16.mxu1 %v7427_v61  ;;  %v7604_v60 = vld [vmem:[#allocation8 + $0x64] ss:$16 sps:$4 sm:$0xff]   ;;  %v7602_v61 = vld [vmem:[#allocation8 + $0x60] ss:$16 sps:$4 sm:$0xff]  }
 0x1d3   :  { %2742 = vmatpush1.bf16.msra.mxu0 %v7422_v62  ;;  %v7497_v62 = vld [vmem:[#allocation5 + $0x220] ss:$24 sps:$4 sm:$0xff]  }
 0x1d4   :  { %2914 = vmatpush1.bf16.msra.mxu1 %v7425_v63  ;;  %2743 = vmatprep.subr.bf16.mxu0 %v7430_v0  ;;  %v7502_v63 = vld [vmem:[#allocation5 + $0x254] ss:$24 sps:$4 sm:$0xff]  }
 0x1d5   :  { %2915 = vmatprep.subr.bf16.mxu1 %v7433_v1  ;;  %v7610_v0 = vld [vmem:[#allocation8 + $0x84] ss:$16 sps:$4 sm:$0xff]   ;;  %v7608_v1 = vld [vmem:[#allocation8 + $0x80] ss:$16 sps:$4 sm:$0xff]  }
 0x1d7   :  { %2744 = vmatpush1.bf16.msra.mxu0 %v7428_v2  ;;  %v7500_v2 = vld [vmem:[#allocation5 + $0x250] ss:$24 sps:$4 sm:$0xff]  }
 0x1d8   :  { %2916 = vmatpush1.bf16.msra.mxu1 %v7431_v3  ;;  %2745 = vmatprep.subr.bf16.mxu0 %v7436_v4  ;;  %v7505_v3 = vld [vmem:[#allocation5 + $0x284] ss:$24 sps:$4 sm:$0xff]  }
 0x1d9   :  { %2917 = vmatprep.subr.bf16.mxu1 %v7439_v6  ;;  %v7616_v4 = vld [vmem:[#allocation8 + $0xa4] ss:$16 sps:$4 sm:$0xff]   ;;  %v7614_v6 = vld [vmem:[#allocation8 + $0xa0] ss:$16 sps:$4 sm:$0xff]  }
 0x1db   :  { %2746 = vmatpush1.bf16.msra.mxu0 %v7434_v7  ;;  %v7503_v7 = vld [vmem:[#allocation5 + $0x280] ss:$24 sps:$4 sm:$0xff]  }
 0x1dc   :  { %2918 = vmatpush1.bf16.msra.mxu1 %v7437_v8  ;;  %2747 = vmatprep.subr.bf16.mxu0 %v7442_v9  ;;  %v7508_v8 = vld [vmem:[#allocation5 + $0x2b4] ss:$24 sps:$4 sm:$0xff]  }
 0x1dd   :  { %2919 = vmatprep.subr.bf16.mxu1 %v7445_v10  ;;  %v7622_v9 = vld [vmem:[#allocation8 + $0xc4] ss:$16 sps:$4 sm:$0xff]   ;;  %v7620_v10 = vld [vmem:[#allocation8 + $0xc0] ss:$16 sps:$4 sm:$0xff]  }
 0x1df   :  { %2748 = vmatpush1.bf16.msra.mxu0 %v7440_v12  ;;  %v7506_v12 = vld [vmem:[#allocation5 + $0x2b0] ss:$24 sps:$4 sm:$0xff]  }
 0x1e0   :  { %2920 = vmatpush1.bf16.msra.mxu1 %v7443_v13  ;;  %2749 = vmatprep.subr.bf16.mxu0 %v7448_v14  ;;  %v7511_v13 = vld [vmem:[#allocation5 + $0x2e4] ss:$24 sps:$4 sm:$0xff]  }
 0x1e1   :  { %2921 = vmatprep.subr.bf16.mxu1 %v7451_v15  ;;  %v7628_v14 = vld [vmem:[#allocation8 + $0xe4] ss:$16 sps:$4 sm:$0xff]   ;;  %v7626_v15 = vld [vmem:[#allocation8 + $0xe0] ss:$16 sps:$4 sm:$0xff]  }
 0x1e3   :  { %2750 = vmatpush1.bf16.msra.mxu0 %v7446_v19  ;;  %v7509_v19 = vld [vmem:[#allocation5 + $0x2e0] ss:$24 sps:$4 sm:$0xff]  }
 0x1e4   :  { %2922 = vmatpush1.bf16.msra.mxu1 %v7449_v20  ;;  %2751 = vmatprep.subr.bf16.mxu0 %v7454_v21  ;;  %v7514_v20 = vld [vmem:[#allocation5 + $0x314] ss:$24 sps:$4 sm:$0xff]  }
 0x1e5   :  { %2923 = vmatprep.subr.bf16.mxu1 %v7457_v22  ;;  %v7634_v21 = vld [vmem:[#allocation8 + $0x104] ss:$16 sps:$4 sm:$0xff]   ;;  %v7632_v22 = vld [vmem:[#allocation8 + $0x100] ss:$16 sps:$4 sm:$0xff]  }
 0x1e7   :  { %2752 = vmatpush1.bf16.msra.mxu0 %v7452_v23  ;;  %v7512_v23 = vld [vmem:[#allocation5 + $0x310] ss:$24 sps:$4 sm:$0xff]  }
 0x1e8   :  { %2924 = vmatpush1.bf16.msra.mxu1 %v7455_v27  ;;  %2753 = vmatprep.subr.bf16.mxu0 %v7460_v28  ;;  %v7517_v27 = vld [vmem:[#allocation5 + $0x344] ss:$24 sps:$4 sm:$0xff]  }
 0x1e9   :  { %2925 = vmatprep.subr.bf16.mxu1 %v7463_v16  ;;  %v7640_v28 = vld [vmem:[#allocation8 + $0x124] ss:$16 sps:$4 sm:$0xff]   ;;  %v7638_v16 = vld [vmem:[#allocation8 + $0x120] ss:$16 sps:$4 sm:$0xff]  }
 0x1eb   :  { %2754 = vmatpush1.bf16.msra.mxu0 %v7458_v17  ;;  %v7515_v17 = vld [vmem:[#allocation5 + $0x340] ss:$24 sps:$4 sm:$0xff]  }
 0x1ec   :  { %2926 = vmatpush1.bf16.msra.mxu1 %v7461_v30  ;;  %2938 = vmatprep.subr.bf16.mxu0 %v7466_v31  ;;  %v7520_v30 = vld [vmem:[#allocation5 + $0x374] ss:$24 sps:$4 sm:$0xff]  }
 0x1ed   :  { %4302 = vmatprep.subr.bf16.mxu1 %v7586_v47  ;;  %v7646_v31 = vld [vmem:[#allocation8 + $0x144] ss:$16 sps:$4 sm:$0xff]  }
 0x1ee   :  { %2756 = vmatmul.mubr.bf16.vlgmr.msra.gmra.mrb[0].mxu0 %v8802_v32  ;;  %v7535_v47 = vld [vmem:[#allocation5 + $0x464] ss:$24 sps:$4 sm:$0xff]  }
 0x1ef   :  { %2928 = vmatmul.mubr.bf16.vlgmr.msra.gmra.mrb[0].mxu1 %v8802_v32  ;;  %2939 = vmatpush1.bf16.msra.mxu0 %v7464_v33  ;;  %v7644_v33 = vld [vmem:[#allocation8 + $0x140] ss:$16 sps:$4 sm:$0xff]  }
 0x1f0   :  { %2970 = vmatprep.mubr.bf16.mxu0 %v8750_v50  ;;  %2940 = vmatprep.subr.bf16.mxu0 %v7469_v35  ;;  %v7487_v50 = vld [vmem:[#allocation5 + $0x164] ss:$24 sps:$4 sm:$0xff]   ;;  %v7518_v35 = vld [vmem:[#allocation5 + $0x370] ss:$24 sps:$4 sm:$0xff]  }
 0x1f1   :  { %4303 = vmatpush1.bf16.msra.mxu1 %v7584_v48  ;;  %v7533_v48 = vld [vmem:[#allocation5 + $0x460] ss:$24 sps:$4 sm:$0xff]  }
 0x1f2   :  { %4304 = vmatprep.subr.bf16.mxu1 %v7592_v52  ;;  %v7538_v52 = vld [vmem:[#allocation5 + $0x494] ss:$24 sps:$4 sm:$0xff]  }
 0x1f3   :  { %2941 = vmatpush1.bf16.msra.mxu0 %v7467_v36  ;;  %v7523_v36 = vld [vmem:[#allocation5 + $0x3a4] ss:$24 sps:$4 sm:$0xff]  }
 0x1f4   :  { %2942 = vmatprep.subr.bf16.mxu0 %v7472_v37  ;;  %v7652_v37 = vld [vmem:[#allocation8 + $0x164] ss:$16 sps:$4 sm:$0xff]  }
 0x1f5   :  { %4305 = vmatpush1.bf16.msra.mxu1 %v7590_v53  ;;  %v7536_v53 = vld [vmem:[#allocation5 + $0x490] ss:$24 sps:$4 sm:$0xff]  }
 0x1f6   :  { %4306 = vmatprep.subr.bf16.mxu1 %v7598_v56  ;;  %v7539_v56 = vld [vmem:[#allocation5 + $0x4c0] ss:$24 sps:$4 sm:$0xff]  }
 0x1f7   :  { %2943 = vmatpush1.bf16.msra.mxu0 %v7470_v38  ;;  %v7650_v38 = vld [vmem:[#allocation8 + $0x160] ss:$16 sps:$4 sm:$0xff]  }
 0x1f8   :  { %2944 = vmatprep.subr.bf16.mxu0 %v7475_v39  ;;  %v7526_v39 = vld [vmem:[#allocation5 + $0x3d4] ss:$24 sps:$4 sm:$0xff]  }
 0x1f9   :  { %4307 = vmatpush1.bf16.msra.mxu1 %v7596_v57  ;;  %v7544_v57 = vld [vmem:[#allocation5 + $0x4f4] ss:$24 sps:$4 sm:$0xff]  }
 0x1fa   :  { %4308 = vmatprep.subr.bf16.mxu1 %v7604_v60  ;;  %v7545_v60 = vld [vmem:[#allocation5 + $0x520] ss:$24 sps:$4 sm:$0xff]  }
 0x1fb   :  { %2945 = vmatpush1.bf16.msra.mxu0 %v7473_v25  ;;  %v7656_v25 = vld [vmem:[#allocation8 + $0x180] ss:$16 sps:$4 sm:$0xff]  }
 0x1fc   :  { %2946 = vmatprep.subr.bf16.mxu0 %v7478_v26  ;;  %v7524_v26 = vld [vmem:[#allocation5 + $0x3d0] ss:$24 sps:$4 sm:$0xff]  }
 0x1fd   :  { %4309 = vmatpush1.bf16.msra.mxu1 %v7602_v61  ;;  %v7550_v61 = vld [vmem:[#allocation5 + $0x554] ss:$24 sps:$4 sm:$0xff]  }
 0x1fe   :  { %4310 = vmatprep.subr.bf16.mxu1 %v7610_v0  ;;  %v7551_v0 = vld [vmem:[#allocation5 + $0x580] ss:$24 sps:$4 sm:$0xff]  }
 0x1ff   :  { %2947 = vmatpush1.bf16.msra.mxu0 %v7476_v40  ;;  %v7529_v40 = vld [vmem:[#allocation5 + $0x404] ss:$24 sps:$4 sm:$0xff]  }
 0x200   :  { %2948 = vmatprep.subr.bf16.mxu0 %v7481_v41  ;;  %v7664_v41 = vld [vmem:[#allocation8 + $0x1a4] ss:$16 sps:$4 sm:$0xff]  }
 0x201   :  { %4311 = vmatpush1.bf16.msra.mxu1 %v7608_v1  ;;  %v7556_v1 = vld [vmem:[#allocation5 + $0x5b4] ss:$24 sps:$4 sm:$0xff]  }
 0x202   :  { %4312 = vmatprep.subr.bf16.mxu1 %v7616_v4  ;;  %v7557_v4 = vld [vmem:[#allocation5 + $0x5e0] ss:$24 sps:$4 sm:$0xff]  }
 0x203   :  { %2949 = vmatpush1.bf16.msra.mxu0 %v7479_v42  ;;  %v7662_v42 = vld [vmem:[#allocation8 + $0x1a0] ss:$16 sps:$4 sm:$0xff]  }
 0x204   :  { %2950 = vmatprep.subr.bf16.mxu0 %v7484_v43  ;;  %v7527_v43 = vld [vmem:[#allocation5 + $0x400] ss:$24 sps:$4 sm:$0xff]  }
 0x205   :  { %4313 = vmatpush1.bf16.msra.mxu1 %v7614_v6  ;;  %v7562_v6 = vld [vmem:[#allocation5 + $0x614] ss:$24 sps:$4 sm:$0xff]  }
 0x206   :  { %4314 = vmatprep.subr.bf16.mxu1 %v7622_v9  ;;  %v7563_v9 = vld [vmem:[#allocation5 + $0x640] ss:$24 sps:$4 sm:$0xff]  }
 0x207   :  { %2951 = vmatpush1.bf16.msra.mxu0 %v7482_v44  ;;  %v7532_v44 = vld [vmem:[#allocation5 + $0x434] ss:$24 sps:$4 sm:$0xff]  }
 0x208   :  { %2952 = vmatprep.subr.bf16.mxu0 %v7487_v50  ;;  %v7530_v50 = vld [vmem:[#allocation5 + $0x430] ss:$24 sps:$4 sm:$0xff]  }
 0x209   :  { %4315 = vmatpush1.bf16.msra.mxu1 %v7620_v10  ;;  %v7568_v10 = vld [vmem:[#allocation5 + $0x674] ss:$24 sps:$4 sm:$0xff]  }
 0x20a   :  { %4316 = vmatprep.subr.bf16.mxu1 %v7628_v14  ;;  %v7569_v14 = vld [vmem:[#allocation5 + $0x6a0] ss:$24 sps:$4 sm:$0xff]  }
 0x20b   :  { %2953 = vmatpush1.bf16.msra.mxu0 %v7485_v45  ;;  %v7670_v45 = vld [vmem:[#allocation8 + $0x1c4] ss:$16 sps:$4 sm:$0xff]  }
 0x20c   :  { %2954 = vmatprep.subr.bf16.mxu0 %v7490_v46  ;;  %v7668_v46 = vld [vmem:[#allocation8 + $0x1c0] ss:$16 sps:$4 sm:$0xff]  }
 0x20d   :  { %4317 = vmatpush1.bf16.msra.mxu1 %v7626_v15  ;;  %v7574_v15 = vld [vmem:[#allocation5 + $0x6d4] ss:$24 sps:$4 sm:$0xff]  }
 0x20e   :  { %4318 = vmatprep.subr.bf16.mxu1 %v7634_v21  ;;  %v7575_v21 = vld [vmem:[#allocation5 + $0x700] ss:$24 sps:$4 sm:$0xff]  }
 0x20f   :  { %2955 = vmatpush1.bf16.msra.mxu0 %v7488_v49  ;;  %v7676_v49 = vld [vmem:[#allocation8 + $0x1e4] ss:$16 sps:$4 sm:$0xff]  }
 0x210   :  { %2956 = vmatprep.subr.bf16.mxu0 %v7493_v51  ;;  %v7674_v51 = vld [vmem:[#allocation8 + $0x1e0] ss:$16 sps:$4 sm:$0xff]  }
 0x211   :  { %4319 = vmatpush1.bf16.msra.mxu1 %v7632_v22  ;;  %v7578_v22 = vld [vmem:[#allocation5 + $0x730] ss:$24 sps:$4 sm:$0xff]  }
 0x212   :  { %4320 = vmatprep.subr.bf16.mxu1 %v7640_v28  ;;  %v7587_v28 = vld [vmem:[#allocation5 + $0x790] ss:$24 sps:$4 sm:$0xff]  }
 0x213   :  { %2957 = vmatpush1.bf16.msra.mxu0 %v7491_v54  ;;  %v7682_v54 = vld [vmem:[#allocation8 + $0x204] ss:$16 sps:$4 sm:$0xff]  }
 0x214   :  { %2958 = vmatprep.subr.bf16.mxu0 %v7496_v55  ;;  %v7541_v55 = vld [vmem:[#allocation5 + $0x4c4] ss:$24 sps:$4 sm:$0xff]  }
 0x215   :  { %4321 = vmatpush1.bf16.msra.mxu1 %v7638_v16  ;;  %v7595_v16 = vld [vmem:[#allocation5 + $0x7c4] ss:$24 sps:$4 sm:$0xff]  }
 0x216   :  { %4322 = vmatprep.subr.bf16.mxu1 %v7646_v31  ;;  %v7599_v31 = vld [vmem:[#allocation5 + $0x7f0] ss:$24 sps:$4 sm:$0xff]  }
 0x217   :  { %2959 = vmatpush1.bf16.msra.mxu0 %v7494_v58  ;;  %v7542_v58 = vld [vmem:[#allocation5 + $0x4f0] ss:$24 sps:$4 sm:$0xff]  }
 0x218   :  { %2960 = vmatprep.subr.bf16.mxu0 %v7499_v59  ;;  %v7547_v59 = vld [vmem:[#allocation5 + $0x524] ss:$24 sps:$4 sm:$0xff]  }
 0x219   :  { %4323 = vmatpush1.bf16.msra.mxu1 %v7644_v33  ;;  %v7607_v33 = vld [vmem:[#allocation5 + $0x824] ss:$24 sps:$4 sm:$0xff]  }
 0x21a   :  { %4324 = vmatprep.subr.bf16.mxu1 %v7652_v37  ;;  %v7611_v37 = vld [vmem:[#allocation5 + $0x850] ss:$24 sps:$4 sm:$0xff]  }
 0x21b   :  { %2961 = vmatpush1.bf16.msra.mxu0 %v7497_v62  ;;  %v7548_v62 = vld [vmem:[#allocation5 + $0x550] ss:$24 sps:$4 sm:$0xff]  }
 0x21c   :  { %2962 = vmatprep.subr.bf16.mxu0 %v7502_v63  ;;  %v7553_v63 = vld [vmem:[#allocation5 + $0x584] ss:$24 sps:$4 sm:$0xff]  }
 0x21d   :  { %4325 = vmatpush1.bf16.msra.mxu1 %v7650_v38  ;;  %v7619_v38 = vld [vmem:[#allocation5 + $0x884] ss:$24 sps:$4 sm:$0xff]  }
 0x21f   :  { %2963 = vmatpush1.bf16.msra.mxu0 %v7500_v2  ;;  %v7554_v2 = vld [vmem:[#allocation5 + $0x5b0] ss:$24 sps:$4 sm:$0xff]  }
 0x220   :  { %2964 = vmatprep.subr.bf16.mxu0 %v7505_v3  ;;  %v7559_v3 = vld [vmem:[#allocation5 + $0x5e4] ss:$24 sps:$4 sm:$0xff]  }
 0x223   :  { %2965 = vmatpush1.bf16.msra.mxu0 %v7503_v7  ;;  %v7560_v7 = vld [vmem:[#allocation5 + $0x610] ss:$24 sps:$4 sm:$0xff]  }
 0x224   :  { %2966 = vmatprep.subr.bf16.mxu0 %v7508_v8  ;;  %v7565_v8 = vld [vmem:[#allocation5 + $0x644] ss:$24 sps:$4 sm:$0xff]  }
 0x227   :  { %2967 = vmatpush1.bf16.msra.mxu0 %v7506_v12  ;;  %v7566_v12 = vld [vmem:[#allocation5 + $0x670] ss:$24 sps:$4 sm:$0xff]  }
 0x228   :  { %2968 = vmatprep.subr.bf16.mxu0 %v7511_v13  ;;  %v7571_v13 = vld [vmem:[#allocation5 + $0x6a4] ss:$24 sps:$4 sm:$0xff]  }
 0x22b   :  { %2969 = vmatpush1.bf16.msra.mxu0 %v7509_v19  ;;  %v7572_v19 = vld [vmem:[#allocation5 + $0x6d0] ss:$24 sps:$4 sm:$0xff]  }
 0x22c   :  { %2981 = vmatprep.subr.bf16.mxu0 %v7514_v20  ;;  %v7577_v20 = vld [vmem:[#allocation5 + $0x704] ss:$24 sps:$4 sm:$0xff]  }
 0x22e   :  { %2971 = vmatmul.mubr.bf16.vlgmr.msra.gmra.mrb[4].mxu0 %v8754_v5  ;;  %v7521_v5 = vld [vmem:[#allocation5 + $0x3a0] ss:$24 sps:$4 sm:$0xff]  }
 0x22f   :  { %2982 = vmatpush1.bf16.msra.mxu0 %v7512_v23  ;;  %3013 = vmatprep.mubr.bf16.mxu0 %v8764_v34  ;;  %v7658_v34 = vld [vmem:[#allocation8 + $0x184] ss:$16 sps:$4 sm:$0xff]  }
 0x230   :  { %2983 = vmatprep.subr.bf16.mxu0 %v7517_v27  ;;  %4326 = vmatprep.subr.bf16.mxu1 %v7658_v34  ;;  %v7583_v23 = vld [vmem:[#allocation5 + $0x764] ss:$24 sps:$4 sm:$0xff]   ;;  %v7589_v27 = vld [vmem:[#allocation5 + $0x794] ss:$24 sps:$4 sm:$0xff]   ;;  %v7623_v34 = vld [vmem:[#allocation5 + $0x8b0] ss:$24 sps:$4 sm:$0xff]  }
 0x231   :  { %4327 = vmatpush1.bf16.msra.mxu1 %v7656_v25  ;;  %v7631_v25 = vld [vmem:[#allocation5 + $0x8e4] ss:$24 sps:$4 sm:$0xff]  }
 0x232   :  { %4328 = vmatprep.subr.bf16.mxu1 %v7664_v41  ;;  %v7635_v41 = vld [vmem:[#allocation5 + $0x910] ss:$24 sps:$4 sm:$0xff]  }
 0x233   :  { %2984 = vmatpush1.bf16.msra.mxu0 %v7515_v17  ;;  %v7593_v17 = vld [vmem:[#allocation5 + $0x7c0] ss:$24 sps:$4 sm:$0xff]  }
 0x234   :  { %2985 = vmatprep.subr.bf16.mxu0 %v7520_v30  ;;  %v7601_v30 = vld [vmem:[#allocation5 + $0x7f4] ss:$24 sps:$4 sm:$0xff]  }
 0x235   :  { %4329 = vmatpush1.bf16.msra.mxu1 %v7662_v42  ;;  %v7643_v42 = vld [vmem:[#allocation5 + $0x944] ss:$24 sps:$4 sm:$0xff]  }
 0x236   :  { %4330 = vmatprep.subr.bf16.mxu1 %v7670_v45  ;;  %v7647_v45 = vld [vmem:[#allocation5 + $0x970] ss:$24 sps:$4 sm:$0xff]  }
 0x237   :  { %2986 = vmatpush1.bf16.msra.mxu0 %v7518_v35  ;;  %v7605_v35 = vld [vmem:[#allocation5 + $0x820] ss:$24 sps:$4 sm:$0xff]  }
 0x238   :  { %2987 = vmatprep.subr.bf16.mxu0 %v7523_v36  ;;  %v7613_v36 = vld [vmem:[#allocation5 + $0x854] ss:$24 sps:$4 sm:$0xff]  }
 0x239   :  { %4331 = vmatpush1.bf16.msra.mxu1 %v7668_v46  ;;  %v7655_v46 = vld [vmem:[#allocation5 + $0x9a4] ss:$24 sps:$4 sm:$0xff]  }
 0x23a   :  { %4332 = vmatprep.subr.bf16.mxu1 %v7676_v49  ;;  %v7661_v49 = vld [vmem:[#allocation5 + $0x9d4] ss:$24 sps:$4 sm:$0xff]  }
 0x23b   :  { %2988 = vmatpush1.bf16.msra.mxu0 %v7521_v5  ;;  %v7617_v5 = vld [vmem:[#allocation5 + $0x880] ss:$24 sps:$4 sm:$0xff]  }
 0x23c   :  { %2989 = vmatprep.subr.bf16.mxu0 %v7526_v39  ;;  %v7625_v39 = vld [vmem:[#allocation5 + $0x8b4] ss:$24 sps:$4 sm:$0xff]  }
 0x23d   :  { %4333 = vmatpush1.bf16.msra.mxu1 %v7674_v51 }
 0x23e   :  { %4345 = vmatprep.subr.bf16.mxu1 %v7682_v54 }
 0x23f   :  { %2990 = vmatpush1.bf16.msra.mxu0 %v7524_v26  ;;  %v7629_v26 = vld [vmem:[#allocation5 + $0x8e0] ss:$24 sps:$4 sm:$0xff]  }
 0x240   :  { %2991 = vmatprep.subr.bf16.mxu0 %v7529_v40  ;;  %v7637_v40 = vld [vmem:[#allocation5 + $0x914] ss:$24 sps:$4 sm:$0xff]  }
 0x243   :  { %2992 = vmatpush1.bf16.msra.mxu0 %v7527_v43  ;;  %v7641_v43 = vld [vmem:[#allocation5 + $0x940] ss:$24 sps:$4 sm:$0xff]  }
 0x244   :  { %2993 = vmatprep.subr.bf16.mxu0 %v7532_v44  ;;  %v7649_v44 = vld [vmem:[#allocation5 + $0x974] ss:$24 sps:$4 sm:$0xff]  }
 0x247   :  { %2994 = vmatpush1.bf16.msra.mxu0 %v7530_v50  ;;  %v604_v50 = vlaneseq }
 0x248   :  { %2995 = vmatprep.subr.bf16.mxu0 %v7535_v47 }
 0x249   :  { %v8813_v47 = vshrl.u32 %v604_v50, 7  ;;  %v7698_v50 = vld [vmem:[#allocation8 + $0x260] ss:$16 sps:$4 sm:$0xff]  }
 0x24b   :  { %2996 = vmatpush1.bf16.msra.mxu0 %v7533_v48  ;;  %v7653_v48 = vld [vmem:[#allocation5 + $0x9a0] ss:$24 sps:$4 sm:$0xff]   ;;  %v8816_v51 = vsub.s32 0, %v8813_v47  ;;  %v618_v54 = vsub.s32 3, %v8813_v47 }
 0x24c   :  { %2997 = vmatprep.subr.bf16.mxu0 %v7538_v52  ;;  %v8821_v52 = vld [vmem:[#allocation7] sm:$0x3f] }
 0x24f   :  { %2998 = vmatpush1.bf16.msra.mxu0 %v7536_v53  ;;  %v8824_v53 = vsub.s32 1, %v8813_v47 }
 0x250   :  { %2999 = vmatprep.subr.bf16.mxu0 %v7541_v55  ;;  %v7667_v55 = vld [vmem:[#allocation5 + $0xa04] ss:$24 sps:$4 sm:$0xff]  }
 0x253   :  { %3000 = vmatpush1.bf16.msra.mxu0 %v7539_v56  ;;  %v607_v56 = vrot.slane %v8821_v52, %v8816_v51 }
 0x254   :  { %3001 = vmatprep.subr.bf16.mxu0 %v7544_v57 }
 0x257   :  { %3002 = vmatpush1.bf16.msra.mxu0 %v7542_v58  ;;  %v611_v58 = vrot.slane %v8821_v52, %v8824_v53 }
 0x258   :  { %3003 = vmatprep.subr.bf16.mxu0 %v7547_v59  ;;  %v619_v59 = vrot.slane %v8821_v52, %v618_v54 }
 0x25b   :  { %3004 = vmatpush1.bf16.msra.mxu0 %v7545_v60  ;;  %v7665_v60 = vld [vmem:[#allocation5 + $0xa00] ss:$24 sps:$4 sm:$0xff]  }
 0x25c   :  { %3005 = vmatprep.subr.bf16.mxu0 %v7550_v61  ;;  %v7673_v61 = vld [vmem:[#allocation5 + $0xa34] ss:$24 sps:$4 sm:$0xff]  }
 0x25f   :  { %3006 = vmatpush1.bf16.msra.mxu0 %v7548_v62 }
 0x260   :  { %3007 = vmatprep.subr.bf16.mxu0 %v7553_v63 }
 0x263   :  { %3008 = vmatpush1.bf16.msra.mxu0 %v7551_v0 }
 0x264   :  { %3009 = vmatprep.subr.bf16.mxu0 %v7556_v1 }
 0x267   :  { %3010 = vmatpush1.bf16.msra.mxu0 %v7554_v2 }
 0x268   :  { %3011 = vmatprep.subr.bf16.mxu0 %v7559_v3 }
 0x26b   :  { %3012 = vmatpush1.bf16.msra.mxu0 %v7557_v4 }
 0x26c   :  { %3024 = vmatprep.subr.bf16.mxu0 %v7562_v6 }
 0x26e   :  { %3014 = vmatmul.mubr.bf16.vlgmr.msra.gmra.mrb[4].mxu0 %v8770_v11  ;;  %v7580_v11 = vld [vmem:[#allocation5 + $0x734] ss:$24 sps:$4 sm:$0xff]  }
 0x26f   :  { %3025 = vmatpush1.bf16.msra.mxu0 %v7560_v7  ;;  %3056 = vmatprep.mubr.bf16.mxu0 %v8778_v18  ;;  %v7581_v18 = vld [vmem:[#allocation5 + $0x760] ss:$24 sps:$4 sm:$0xff]  }
 0x270   :  { %3026 = vmatprep.subr.bf16.mxu0 %v7565_v8 }
 0x273   :  { %3027 = vmatpush1.bf16.msra.mxu0 %v7563_v9  ;;  %v7671_v9 = vld [vmem:[#allocation5 + $0xa30] ss:$24 sps:$4 sm:$0xff]  }
 0x274   :  { %3028 = vmatprep.subr.bf16.mxu0 %v7568_v10 }
 0x277   :  { %3029 = vmatpush1.bf16.msra.mxu0 %v7566_v12 }
 0x278   :  { %3030 = vmatprep.subr.bf16.mxu0 %v7571_v13 }
 0x27b   :  { %3031 = vmatpush1.bf16.msra.mxu0 %v7569_v14 }
 0x27c   :  { %3032 = vmatprep.subr.bf16.mxu0 %v7574_v15 }
 0x27f   :  { %3033 = vmatpush1.bf16.msra.mxu0 %v7572_v19  ;;  %v7679_v19 = vld [vmem:[#allocation5 + $0xa64] ss:$24 sps:$4 sm:$0xff]  }
 0x280   :  { %3034 = vmatprep.subr.bf16.mxu0 %v7577_v20 }
 0x283   :  { %3035 = vmatpush1.bf16.msra.mxu0 %v7575_v21 }
 0x284   :  { %3036 = vmatprep.subr.bf16.mxu0 %v7580_v11 }
 0x287   :  { %3037 = vmatpush1.bf16.msra.mxu0 %v7578_v22 }
 0x288   :  { %3038 = vmatprep.subr.bf16.mxu0 %v7583_v23 }
 0x28b   :  { %3039 = vmatpush1.bf16.msra.mxu0 %v7581_v18 }
 0x28c   :  { %3040 = vmatprep.subr.bf16.mxu0 %v7589_v27 }
 0x28f   :  { %3041 = vmatpush1.bf16.msra.mxu0 %v7587_v28 }
 0x290   :  { %3042 = vmatprep.subr.bf16.mxu0 %v7595_v16 }
 0x293   :  { %3043 = vmatpush1.bf16.msra.mxu0 %v7593_v17  ;;  %v7677_v17 = vld [vmem:[#allocation5 + $0xa60] ss:$24 sps:$4 sm:$0xff]  }
 0x294   :  { %3044 = vmatprep.subr.bf16.mxu0 %v7601_v30 }
 0x297   :  { %3045 = vmatpush1.bf16.msra.mxu0 %v7599_v31 }
 0x298   :  { %3046 = vmatprep.subr.bf16.mxu0 %v7607_v33  ;;  %v7685_v33 = vld [vmem:[#allocation5 + $0xa94] ss:$24 sps:$4 sm:$0xff]  }
 0x29b   :  { %3047 = vmatpush1.bf16.msra.mxu0 %v7605_v35 }
 0x29c   :  { %3048 = vmatprep.subr.bf16.mxu0 %v7613_v36 }
 0x29f   :  { %3049 = vmatpush1.bf16.msra.mxu0 %v7611_v37  ;;  %v7680_v37 = vld [vmem:[#allocation8 + $0x200] ss:$16 sps:$4 sm:$0xff]  }
 0x2a0   :  { %3050 = vmatprep.subr.bf16.mxu0 %v7619_v38  ;;  %v7688_v38 = vld [vmem:[#allocation8 + $0x224] ss:$16 sps:$4 sm:$0xff]  }
 0x2a3   :  { %3051 = vmatpush1.bf16.msra.mxu0 %v7617_v5  ;;  %v7683_v5 = vld [vmem:[#allocation5 + $0xa90] ss:$24 sps:$4 sm:$0xff]  }
 0x2a4   :  { %3052 = vmatprep.subr.bf16.mxu0 %v7625_v39  ;;  %v7691_v39 = vld [vmem:[#allocation5 + $0xac4] ss:$24 sps:$4 sm:$0xff]  }
 0x2a7   :  { %3053 = vmatpush1.bf16.msra.mxu0 %v7623_v34  ;;  %v7686_v34 = vld [vmem:[#allocation8 + $0x220] ss:$16 sps:$4 sm:$0xff]  }
 0x2a8   :  { %3054 = vmatprep.subr.bf16.mxu0 %v7631_v25  ;;  %v7694_v25 = vld [vmem:[#allocation8 + $0x244] ss:$16 sps:$4 sm:$0xff]  }
 0x2ab   :  { %3055 = vmatpush1.bf16.msra.mxu0 %v7629_v26  ;;  %v7689_v26 = vld [vmem:[#allocation5 + $0xac0] ss:$24 sps:$4 sm:$0xff]  }
 0x2ac   :  { %3067 = vmatprep.subr.bf16.mxu0 %v7637_v40  ;;  %v7697_v40 = vld [vmem:[#allocation5 + $0xaf4] ss:$24 sps:$4 sm:$0xff]  }
 0x2ae   :  { %3057 = vmatmul.mubr.bf16.vlgmr.msra.gmra.mrb[4].mxu0 %v8786_v24  ;;  %v8819_v24 = vsub.s32 2, %v8813_v47 }
 0x2af   :  { %3068 = vmatpush1.bf16.msra.mxu0 %v7635_v41  ;;  %3099 = vmatprep.mubr.bf16.mxu0 %v8794_v29  ;;  %v7659_v29 = vld [vmem:[#allocation5 + $0x9d0] ss:$24 sps:$4 sm:$0xff]  }
 0x2b0   :  { %3069 = vmatprep.subr.bf16.mxu0 %v7643_v42  ;;  %v615_v57 = vrot.slane %v8821_v52, %v8819_v24  ;;  %v7692_v41 = vld [vmem:[#allocation8 + $0x240] ss:$16 sps:$4 sm:$0xff]   ;;  %v7700_v42 = vld [vmem:[#allocation8 + $0x264] ss:$16 sps:$4 sm:$0xff]  }
 0x2b3   :  { %3070 = vmatpush1.bf16.msra.mxu0 %v7641_v43  ;;  %v7695_v43 = vld [vmem:[#allocation5 + $0xaf0] ss:$24 sps:$4 sm:$0xff]  }
 0x2b4   :  { %3071 = vmatprep.subr.bf16.mxu0 %v7649_v44  ;;  %v7703_v44 = vld [vmem:[#allocation5 + $0xb24] ss:$24 sps:$4 sm:$0xff]  }
 0x2b7   :  { %3072 = vmatpush1.bf16.msra.mxu0 %v7647_v45  ;;  %v7706_v45 = vld [vmem:[#allocation8 + $0x284] ss:$16 sps:$4 sm:$0xff]  }
 0x2b8   :  { %3073 = vmatprep.subr.bf16.mxu0 %v7655_v46  ;;  %v7701_v46 = vld [vmem:[#allocation5 + $0xb20] ss:$24 sps:$4 sm:$0xff]  }
 0x2bb   :  { %3074 = vmatpush1.bf16.msra.mxu0 %v7653_v48  ;;  %v7709_v48 = vld [vmem:[#allocation5 + $0xb54] ss:$24 sps:$4 sm:$0xff]  }
 0x2bc   :  { %3075 = vmatprep.subr.bf16.mxu0 %v7661_v49  ;;  %v7704_v49 = vld [vmem:[#allocation8 + $0x280] ss:$16 sps:$4 sm:$0xff]  }
 0x2bf   :  { %3076 = vmatpush1.bf16.msra.mxu0 %v7659_v29  ;;  %v7712_v29 = vld [vmem:[#allocation8 + $0x2a4] ss:$16 sps:$4 sm:$0xff]  }
 0x2c0   :  { %3077 = vmatprep.subr.bf16.mxu0 %v7667_v55  ;;  %v7707_v55 = vld [vmem:[#allocation5 + $0xb50] ss:$24 sps:$4 sm:$0xff]  }
 0x2c1   :  { %v2757_v62 = vpop.f32.mrb[0].mxu0 }
 0x2c2   :  { %v2929_v63 = vpop.f32.mrb[0].mxu1  ;;  %v6963_v0 = vadd.f32 %v2757_v62, %v607_v56  ;;  %v2759_v2 = vpop.f32.mrb[1].mxu0  ;;  %v7724_v62 = vld [vmem:[#allocation8 + $0x2e4] ss:$16 sps:$4 sm:$0xff]  }
 0x2c3   :  { %v6967_v1 = vadd.f32 %v2929_v63, %v615_v57  ;;  %v2931_v3 = vpop.f32.mrb[1].mxu1  ;;  %v6964_v4 = vadd.f32 %v2759_v2, %v611_v58  ;;  %v2761_v7 = vpop.f32.mrb[2].mxu0  ;;  %3078 = vmatpush1.bf16.msra.mxu0 %v7665_v60  ;;  %v7721_v60 = vld [vmem:[#allocation5 + $0xbb4] ss:$24 sps:$4 sm:$0xff]   ;;  %v7719_v63 = vld [vmem:[#allocation5 + $0xbb0] ss:$24 sps:$4 sm:$0xff]  }
 0x2c4   :  { %v6968_v6 = vadd.f32 %v2931_v3, %v619_v59  ;;  %v2933_v8 = vpop.f32.mrb[2].mxu1  ;;  %v6965_v12 = vadd.f32 %v2761_v7, %v607_v56  ;;  %v2763_v14 = vpop.f32.mrb[3].mxu0  ;;  %3079 = vmatprep.subr.bf16.mxu0 %v7673_v61  ;;  %v3110_v11 = vmax.f32 %v6963_v0, 0.0  ;;  %v7715_v56 = vld [vmem:[#allocation5 + $0xb84] ss:$24 sps:$4 sm:$0xff]  }
 0x2c5   :  { %v3112_v10 = vmax.f32 %v6967_v1, 0.0  ;;  %v6969_v13 = vadd.f32 %v2933_v8, %v615_v57  ;;  %v2935_v15 = vpop.f32.mrb[3].mxu1  ;;  %v6966_v20 = vadd.f32 %v2763_v14, %v611_v58  ;;  %v3111_v18 = vmax.f32 %v6964_v4, 0.0  ;;  %v7710_v57 = vld [vmem:[#allocation8 + $0x2a0] ss:$16 sps:$4 sm:$0xff]  }
 0x2c6   :  { %v6970_v21 = vadd.f32 %v2935_v15, %v619_v59  ;;  %v3116_v22 = vmax.f32 %v6965_v12, 0.0  ;;  %v3113_v27 = vmax.f32 %v6968_v6, 0.0  ;;  %v7718_v58 = vld [vmem:[#allocation8 + $0x2c4] ss:$16 sps:$4 sm:$0xff]   ;;  %v7716_v61 = vld [vmem:[#allocation8 + $0x2c0] ss:$16 sps:$4 sm:$0xff]  }
 0x2c7   :  { %v3118_v23 = vmax.f32 %v6969_v13, 0.0  ;;  %v3117_v28 = vmax.f32 %v6966_v20, 0.0  ;;  %3080 = vmatpush1.bf16.msra.mxu0 %v7671_v9  ;;  %v7713_v59 = vld [vmem:[#allocation5 + $0xb80] ss:$24 sps:$4 sm:$0xff]   ;;  %v7727_v0 = vld [vmem:[#allocation5 + $0xbe4] ss:$24 sps:$4 sm:$0xff]  }
 0x2c8   :  { %v3119_v16 = vmax.f32 %v6970_v21, 0.0  ;;  %v8836_v30 = vpack.c.bf16 %v3116_v22, %v3110_v11  ;;  %3081 = vmatprep.subr.bf16.mxu0 %v7679_v19  ;;  %v7722_v1 = vld [vmem:[#allocation8 + $0x2e0] ss:$16 sps:$4 sm:$0xff]   ;;  %v7730_v2 = vld [vmem:[#allocation8 + $0x304] ss:$16 sps:$4 sm:$0xff]  }
 0x2c9   :  { %v8838_v31 = vpack.c.bf16 %v3118_v23, %v3112_v10  ;;  %v8840_v35 = vpack.c.bf16 %v3117_v28, %v3111_v18  ;;  %v7725_v3 = vld [vmem:[#allocation5 + $0xbe0] ss:$24 sps:$4 sm:$0xff]  }
 0x2ca   :  { %v8842_v36 = vpack.c.bf16 %v3119_v16, %v3113_v27  ;;  %v7728_v4 = vld [vmem:[#allocation8 + $0x300] ss:$16 sps:$4 sm:$0xff]   ;;  %v7733_v6 = vld [vmem:[#allocation8 + $0x324] ss:$16 sps:$4 sm:$0xff]  }
 0x2cb   :  { %3082 = vmatpush1.bf16.msra.mxu0 %v7677_v17  ;;  %4334 = vmatprep.mubr.bf16.mxu1 %v8840_v35  ;;  %v7731_v7 = vld [vmem:[#allocation8 + $0x320] ss:$16 sps:$4 sm:$0xff]   ;;  %v7736_v8 = vld [vmem:[#allocation8 + $0x344] ss:$16 sps:$4 sm:$0xff]  }
 0x2cc   :  { %4335 = vmatmul.mubr.bf16.vlgmr.msra.gmra.mrb[4].mxu1 %v8836_v30  ;;  %3083 = vmatprep.subr.bf16.mxu0 %v7685_v33  ;;  %v7734_v9 = vld [vmem:[#allocation8 + $0x340] ss:$16 sps:$4 sm:$0xff]   ;;  %v7739_v10 = vld [vmem:[#allocation8 + $0x364] ss:$16 sps:$4 sm:$0xff]  }
 0x2cd   :  { %4346 = vmatpush1.bf16.msra.mxu1 %v7680_v37  ;;  %4377 = vmatprep.mubr.bf16.mxu1 %v8842_v36  ;;  %v7737_v12 = vld [vmem:[#allocation8 + $0x360] ss:$16 sps:$4 sm:$0xff]   ;;  %v7742_v13 = vld [vmem:[#allocation8 + $0x384] ss:$16 sps:$4 sm:$0xff]  }
 0x2ce   :  { %4347 = vmatprep.subr.bf16.mxu1 %v7688_v38  ;;  %v7740_v14 = vld [vmem:[#allocation8 + $0x380] ss:$16 sps:$4 sm:$0xff]   ;;  %v7745_v15 = vld [vmem:[#allocation8 + $0x3a4] ss:$16 sps:$4 sm:$0xff]  }
 0x2cf   :  { %3084 = vmatpush1.bf16.msra.mxu0 %v7683_v5  ;;  %v7743_v19 = vld [vmem:[#allocation8 + $0x3a0] ss:$16 sps:$4 sm:$0xff]   ;;  %v7748_v20 = vld [vmem:[#allocation8 + $0x3c4] ss:$16 sps:$4 sm:$0xff]  }
 0x2d0   :  { %3085 = vmatprep.subr.bf16.mxu0 %v7691_v39  ;;  %v7751_v21 = vld [vmem:[#allocation8 + $0x3e4] ss:$16 sps:$4 sm:$0xff]   ;;  %v7749_v11 = vld [vmem:[#allocation8 + $0x3e0] ss:$16 sps:$4 sm:$0xff]  }
 0x2d1   :  { %4348 = vmatpush1.bf16.msra.mxu1 %v7686_v34  ;;  %v7754_v22 = vld [vmem:[#allocation8 + $0x404] ss:$16 sps:$4 sm:$0xff]   ;;  %v7752_v23 = vld [vmem:[#allocation8 + $0x400] ss:$16 sps:$4 sm:$0xff]  }
 0x2d2   :  { %4349 = vmatprep.subr.bf16.mxu1 %v7694_v25  ;;  %v7757_v18 = vld [vmem:[#allocation8 + $0x424] ss:$16 sps:$4 sm:$0xff]   ;;  %v7755_v27 = vld [vmem:[#allocation8 + $0x420] ss:$16 sps:$4 sm:$0xff]  }
 0x2d3   :  { %3086 = vmatpush1.bf16.msra.mxu0 %v7689_v26  ;;  %v7760_v28 = vld [vmem:[#allocation8 + $0x444] ss:$16 sps:$4 sm:$0xff]   ;;  %v7758_v16 = vld [vmem:[#allocation8 + $0x440] ss:$16 sps:$4 sm:$0xff]  }
 0x2d4   :  { %3087 = vmatprep.subr.bf16.mxu0 %v7697_v40  ;;  %v7763_v17 = vld [vmem:[#allocation8 + $0x464] ss:$16 sps:$4 sm:$0xff]   ;;  %v7761_v33 = vld [vmem:[#allocation8 + $0x460] ss:$16 sps:$4 sm:$0xff]  }
 0x2d5   :  { %4350 = vmatpush1.bf16.msra.mxu1 %v7692_v41  ;;  %v7766_v37 = vld [vmem:[#allocation8 + $0x484] ss:$16 sps:$4 sm:$0xff]   ;;  %v7764_v38 = vld [vmem:[#allocation8 + $0x480] ss:$16 sps:$4 sm:$0xff]  }
 0x2d6   :  { %4351 = vmatprep.subr.bf16.mxu1 %v7700_v42  ;;  %v7769_v5 = vld [vmem:[#allocation8 + $0x4a4] ss:$16 sps:$4 sm:$0xff]   ;;  %v7767_v39 = vld [vmem:[#allocation8 + $0x4a0] ss:$16 sps:$4 sm:$0xff]  }
 0x2d7   :  { %3088 = vmatpush1.bf16.msra.mxu0 %v7695_v43  ;;  %v7772_v34 = vld [vmem:[#allocation8 + $0x4c4] ss:$16 sps:$4 sm:$0xff]   ;;  %v7770_v25 = vld [vmem:[#allocation8 + $0x4c0] ss:$16 sps:$4 sm:$0xff]  }
 0x2d8   :  { %3089 = vmatprep.subr.bf16.mxu0 %v7703_v44  ;;  %v7775_v26 = vld [vmem:[#allocation8 + $0x4e4] ss:$16 sps:$4 sm:$0xff]   ;;  %v7773_v40 = vld [vmem:[#allocation8 + $0x4e0] ss:$16 sps:$4 sm:$0xff]  }
 0x2d9   :  { %4352 = vmatpush1.bf16.msra.mxu1 %v7698_v50  ;;  %v7778_v41 = vld [vmem:[#allocation8 + $0x504] ss:$16 sps:$4 sm:$0xff]   ;;  %v7776_v42 = vld [vmem:[#allocation8 + $0x500] ss:$16 sps:$4 sm:$0xff]  }
 0x2da   :  { %4353 = vmatprep.subr.bf16.mxu1 %v7706_v45  ;;  %v7781_v43 = vld [vmem:[#allocation8 + $0x524] ss:$16 sps:$4 sm:$0xff]   ;;  %v7779_v44 = vld [vmem:[#allocation8 + $0x520] ss:$16 sps:$4 sm:$0xff]  }
 0x2db   :  { %3090 = vmatpush1.bf16.msra.mxu0 %v7701_v46  ;;  %v7784_v50 = vld [vmem:[#allocation8 + $0x544] ss:$16 sps:$4 sm:$0xff]   ;;  %v7782_v45 = vld [vmem:[#allocation8 + $0x540] ss:$16 sps:$4 sm:$0xff]  }
 0x2dc   :  { %3091 = vmatprep.subr.bf16.mxu0 %v7709_v48  ;;  %v7787_v46 = vld [vmem:[#allocation8 + $0x564] ss:$16 sps:$4 sm:$0xff]   ;;  %v7785_v48 = vld [vmem:[#allocation8 + $0x560] ss:$16 sps:$4 sm:$0xff]  }
 0x2dd   :  { %4354 = vmatpush1.bf16.msra.mxu1 %v7704_v49  ;;  %v7790_v49 = vld [vmem:[#allocation8 + $0x584] ss:$16 sps:$4 sm:$0xff]  }
 0x2de   :  { %4355 = vmatprep.subr.bf16.mxu1 %v7712_v29  ;;  %v7788_v29 = vld [vmem:[#allocation8 + $0x580] ss:$16 sps:$4 sm:$0xff]  }
 0x2df   :  { %3092 = vmatpush1.bf16.msra.mxu0 %v7707_v55  ;;  %v7793_v55 = vld [vmem:[#allocation8 + $0x5a4] ss:$16 sps:$4 sm:$0xff]  }
 0x2e0   :  { %3093 = vmatprep.subr.bf16.mxu0 %v7715_v56  ;;  %v7791_v56 = vld [vmem:[#allocation8 + $0x5a0] ss:$16 sps:$4 sm:$0xff]  }
 0x2e1   :  { %4356 = vmatpush1.bf16.msra.mxu1 %v7710_v57  ;;  %v7796_v57 = vld [vmem:[#allocation8 + $0x5c4] ss:$16 sps:$4 sm:$0xff]  }
 0x2e2   :  { %4357 = vmatprep.subr.bf16.mxu1 %v7718_v58  ;;  %v7794_v58 = vld [vmem:[#allocation8 + $0x5c0] ss:$16 sps:$4 sm:$0xff]  }
 0x2e3   :  { %3094 = vmatpush1.bf16.msra.mxu0 %v7713_v59  ;;  %v7799_v59 = vld [vmem:[#allocation8 + $0x5e4] ss:$16 sps:$4 sm:$0xff]  }
 0x2e4   :  { %3095 = vmatprep.subr.bf16.mxu0 %v7721_v60  ;;  %v7797_v60 = vld [vmem:[#allocation8 + $0x5e0] ss:$16 sps:$4 sm:$0xff]  }
 0x2e5   :  { %4358 = vmatpush1.bf16.msra.mxu1 %v7716_v61  ;;  %v7802_v61 = vld [vmem:[#allocation8 + $0xc] ss:$16 sps:$4 sm:$0xff]  }
 0x2e6   :  { %4359 = vmatprep.subr.bf16.mxu1 %v7724_v62  ;;  %v622_v62 = vsub.s32 4, %v8813_v47 }
 0x2e7   :  { %3096 = vmatpush1.bf16.msra.mxu0 %v7719_v63  ;;  %v626_v63 = vsub.s32 5, %v8813_v47  ;;  %v8059_v47 = vld [vmem:[#allocation11 + $0x20] ss:$12 sps:$4 sm:$0xff]  }
 0x2e8   :  { %3097 = vmatprep.subr.bf16.mxu0 %v7727_v0  ;;  %v623_v0 = vrot.slane %v8821_v52, %v622_v62  ;;  %v7952_v62 = vld [vmem:[#allocation11 + $0x7c] ss:$12 sps:$4 sm:$0xff]  }
 0x2e9   :  { %4360 = vmatpush1.bf16.msra.mxu1 %v7722_v1  ;;  %v627_v1 = vrot.slane %v8821_v52, %v626_v63  ;;  %v7803_v52 = vld [vmem:[#allocation8 + $0x28] ss:$16 sps:$4 sm:$0xff]   ;;  %v7844_v63 = vld [vmem:[#allocation8 + $0x1cc] ss:$16 sps:$4 sm:$0xff]  }
 0x2ea   :  { %4361 = vmatprep.subr.bf16.mxu1 %v7730_v2 }
 0x2eb   :  { %3098 = vmatpush1.bf16.msra.mxu0 %v7725_v3 }
 0x2ed   :  { %4362 = vmatpush1.bf16.msra.mxu1 %v7728_v4 }
 0x2ee   :  { %3100 = vmatmul.mubr.bf16.vlgmr.msra.gmra.mrb[4].mxu0 %v8802_v32  ;;  %4363 = vmatprep.subr.bf16.mxu1 %v7733_v6  ;;  %v7746_v32 = vld [vmem:[#allocation8 + $0x3c0] ss:$16 sps:$4 sm:$0xff]  }
 0x2f1   :  { %4364 = vmatpush1.bf16.msra.mxu1 %v7731_v7 }
 0x2f2   :  { %4365 = vmatprep.subr.bf16.mxu1 %v7736_v8 }
 0x2f5   :  { %4366 = vmatpush1.bf16.msra.mxu1 %v7734_v9 }
 0x2f6   :  { %4367 = vmatprep.subr.bf16.mxu1 %v7739_v10 }
 0x2f9   :  { %4368 = vmatpush1.bf16.msra.mxu1 %v7737_v12 }
 0x2fa   :  { %4369 = vmatprep.subr.bf16.mxu1 %v7742_v13 }
 0x2fd   :  { %4370 = vmatpush1.bf16.msra.mxu1 %v7740_v14 }
 0x2fe   :  { %4371 = vmatprep.subr.bf16.mxu1 %v7745_v15 }
 0x301   :  { %4372 = vmatpush1.bf16.msra.mxu1 %v7743_v19 }
 0x302   :  { %4373 = vmatprep.subr.bf16.mxu1 %v7748_v20 }
 0x305   :  { %4374 = vmatpush1.bf16.msra.mxu1 %v7746_v32  ;;  %v7800_v32 = vld [vmem:[#allocation8 + $0x8] ss:$16 sps:$4 sm:$0xff]  }
 0x306   :  { %4375 = vmatprep.subr.bf16.mxu1 %v7751_v21  ;;  %v7805_v21 = vld [vmem:[#allocation8 + $0x2c] ss:$16 sps:$4 sm:$0xff]  }
 0x309   :  { %4376 = vmatpush1.bf16.msra.mxu1 %v7749_v11  ;;  %v7808_v11 = vld [vmem:[#allocation8 + $0x4c] ss:$16 sps:$4 sm:$0xff]  }
 0x30a   :  { %4388 = vmatprep.subr.bf16.mxu1 %v7754_v22  ;;  %v7806_v22 = vld [vmem:[#allocation8 + $0x48] ss:$16 sps:$4 sm:$0xff]  }
 0x30c   :  { %4378 = vmatmul.mubr.bf16.vlgmr.msra.gmra.mrb[4].mxu1 %v8838_v31 }
 0x30d   :  { %4389 = vmatpush1.bf16.msra.mxu1 %v7752_v23  ;;  %v7811_v23 = vld [vmem:[#allocation8 + $0x6c] ss:$16 sps:$4 sm:$0xff]  }
 0x30e   :  { %4390 = vmatprep.subr.bf16.mxu1 %v7757_v18  ;;  %v7809_v18 = vld [vmem:[#allocation8 + $0x68] ss:$16 sps:$4 sm:$0xff]  }
 0x311   :  { %4391 = vmatpush1.bf16.msra.mxu1 %v7755_v27  ;;  %v7814_v27 = vld [vmem:[#allocation8 + $0x8c] ss:$16 sps:$4 sm:$0xff]  }
 0x312   :  { %4392 = vmatprep.subr.bf16.mxu1 %v7760_v28  ;;  %v7812_v28 = vld [vmem:[#allocation8 + $0x88] ss:$16 sps:$4 sm:$0xff]  }
 0x315   :  { %4393 = vmatpush1.bf16.msra.mxu1 %v7758_v16  ;;  %v7817_v16 = vld [vmem:[#allocation8 + $0xac] ss:$16 sps:$4 sm:$0xff]  }
 0x316   :  { %4394 = vmatprep.subr.bf16.mxu1 %v7763_v17  ;;  %v7815_v17 = vld [vmem:[#allocation8 + $0xa8] ss:$16 sps:$4 sm:$0xff]  }
 0x319   :  { %4395 = vmatpush1.bf16.msra.mxu1 %v7761_v33  ;;  %v7820_v33 = vld [vmem:[#allocation8 + $0xcc] ss:$16 sps:$4 sm:$0xff]  }
 0x31a   :  { %4396 = vmatprep.subr.bf16.mxu1 %v7766_v37  ;;  %v7823_v37 = vld [vmem:[#allocation8 + $0xec] ss:$16 sps:$4 sm:$0xff]  }
 0x31d   :  { %4397 = vmatpush1.bf16.msra.mxu1 %v7764_v38  ;;  %v7821_v38 = vld [vmem:[#allocation8 + $0xe8] ss:$16 sps:$4 sm:$0xff]  }
 0x31e   :  { %4398 = vmatprep.subr.bf16.mxu1 %v7769_v5  ;;  %v7826_v5 = vld [vmem:[#allocation8 + $0x10c] ss:$16 sps:$4 sm:$0xff]  }
 0x321   :  { %4399 = vmatpush1.bf16.msra.mxu1 %v7767_v39  ;;  %v7824_v39 = vld [vmem:[#allocation8 + $0x108] ss:$16 sps:$4 sm:$0xff]  }
 0x322   :  { %4400 = vmatprep.subr.bf16.mxu1 %v7772_v34  ;;  %v7920_v34 = vld [vmem:[#allocation11] ss:$12 sps:$4 sm:$0xff]  }
 0x325   :  { %4401 = vmatpush1.bf16.msra.mxu1 %v7770_v25  ;;  %v7922_v25 = vld [vmem:[#allocation11 + $0x4] ss:$12 sps:$4 sm:$0xff]  }
 0x326   :  { %4402 = vmatprep.subr.bf16.mxu1 %v7775_v26  ;;  %v7829_v26 = vld [vmem:[#allocation8 + $0x12c] ss:$16 sps:$4 sm:$0xff]   ;;  %5229 = vmatprep.subr.bf16.mxu0 %v7922_v25 }
 0x327   :  { %5230 = vmatpush1.bf16.msra.mxu0 %v7920_v34  ;;  %v7988_v34 = vld [vmem:[#allocation11 + $0x154] ss:$12 sps:$4 sm:$0xff]   ;;  %v7871_v25 = vld [vmem:[#allocation8 + $0x2ec] ss:$16 sps:$4 sm:$0xff]  }
 0x329   :  { %4403 = vmatpush1.bf16.msra.mxu1 %v7773_v40  ;;  %v7827_v40 = vld [vmem:[#allocation8 + $0x128] ss:$16 sps:$4 sm:$0xff]  }
 0x32a   :  { %4404 = vmatprep.subr.bf16.mxu1 %v7778_v41  ;;  %v7926_v41 = vld [vmem:[#allocation11 + $0x18] ss:$12 sps:$4 sm:$0xff]  }
 0x32d   :  { %4405 = vmatpush1.bf16.msra.mxu1 %v7776_v42  ;;  %v7928_v42 = vld [vmem:[#allocation11 + $0x1c] ss:$12 sps:$4 sm:$0xff]  }
 0x32e   :  { %4406 = vmatprep.subr.bf16.mxu1 %v7781_v43  ;;  %v7832_v43 = vld [vmem:[#allocation8 + $0x14c] ss:$16 sps:$4 sm:$0xff]   ;;  %5231 = vmatprep.subr.bf16.mxu0 %v7928_v42 }
 0x32f   :  { %5232 = vmatpush1.bf16.msra.mxu0 %v7926_v41  ;;  %v7991_v41 = vld [vmem:[#allocation11 + $0x16c] ss:$12 sps:$4 sm:$0xff]  }
 0x330   :  { %v7874_v42 = vld [vmem:[#allocation8 + $0x30c] ss:$16 sps:$4 sm:$0xff]  }
 0x331   :  { %4407 = vmatpush1.bf16.msra.mxu1 %v7779_v44  ;;  %v7830_v44 = vld [vmem:[#allocation8 + $0x148] ss:$16 sps:$4 sm:$0xff]  }
 0x332   :  { %4408 = vmatprep.subr.bf16.mxu1 %v7784_v50  ;;  %v7932_v50 = vld [vmem:[#allocation11 + $0x30] ss:$12 sps:$4 sm:$0xff]  }
 0x335   :  { %4409 = vmatpush1.bf16.msra.mxu1 %v7782_v45  ;;  %v7934_v45 = vld [vmem:[#allocation11 + $0x34] ss:$12 sps:$4 sm:$0xff]  }
 0x336   :  { %4410 = vmatprep.subr.bf16.mxu1 %v7787_v46  ;;  %v7835_v46 = vld [vmem:[#allocation8 + $0x16c] ss:$16 sps:$4 sm:$0xff]   ;;  %5233 = vmatprep.subr.bf16.mxu0 %v7934_v45  ;;  %v7994_v45 = vld [vmem:[#allocation11 + $0x184] ss:$12 sps:$4 sm:$0xff]  }
 0x337   :  { %5234 = vmatpush1.bf16.msra.mxu0 %v7932_v50  ;;  %v7877_v50 = vld [vmem:[#allocation8 + $0x32c] ss:$16 sps:$4 sm:$0xff]  }
 0x339   :  { %4411 = vmatpush1.bf16.msra.mxu1 %v7785_v48  ;;  %v7833_v48 = vld [vmem:[#allocation8 + $0x168] ss:$16 sps:$4 sm:$0xff]  }
 0x33a   :  { %4412 = vmatprep.subr.bf16.mxu1 %v7790_v49  ;;  %v7938_v49 = vld [vmem:[#allocation11 + $0x48] ss:$12 sps:$4 sm:$0xff]  }
 0x33d   :  { %4413 = vmatpush1.bf16.msra.mxu1 %v7788_v29  ;;  %v7940_v29 = vld [vmem:[#allocation11 + $0x4c] ss:$12 sps:$4 sm:$0xff]  }
 0x33e   :  { %4414 = vmatprep.subr.bf16.mxu1 %v7793_v55  ;;  %v7838_v55 = vld [vmem:[#allocation8 + $0x18c] ss:$16 sps:$4 sm:$0xff]   ;;  %5235 = vmatprep.subr.bf16.mxu0 %v7940_v29 }
 0x33f   :  { %5236 = vmatpush1.bf16.msra.mxu0 %v7938_v49  ;;  %v7878_v49 = vld [vmem:[#allocation8 + $0x348] ss:$16 sps:$4 sm:$0xff]   ;;  %v7883_v29 = vld [vmem:[#allocation8 + $0x36c] ss:$16 sps:$4 sm:$0xff]  }
 0x341   :  { %4415 = vmatpush1.bf16.msra.mxu1 %v7791_v56  ;;  %v7836_v56 = vld [vmem:[#allocation8 + $0x188] ss:$16 sps:$4 sm:$0xff]  }
 0x342   :  { %4416 = vmatprep.subr.bf16.mxu1 %v7796_v57  ;;  %v7944_v57 = vld [vmem:[#allocation11 + $0x60] ss:$12 sps:$4 sm:$0xff]  }
 0x345   :  { %4417 = vmatpush1.bf16.msra.mxu1 %v7794_v58  ;;  %v7946_v58 = vld [vmem:[#allocation11 + $0x64] ss:$12 sps:$4 sm:$0xff]  }
 0x346   :  { %4418 = vmatprep.subr.bf16.mxu1 %v7799_v59  ;;  %v7841_v59 = vld [vmem:[#allocation8 + $0x1ac] ss:$16 sps:$4 sm:$0xff]   ;;  %5237 = vmatprep.subr.bf16.mxu0 %v7946_v58 }
 0x347   :  { %5238 = vmatpush1.bf16.msra.mxu0 %v7944_v57  ;;  %v7884_v57 = vld [vmem:[#allocation8 + $0x388] ss:$16 sps:$4 sm:$0xff]   ;;  %v7889_v58 = vld [vmem:[#allocation8 + $0x3ac] ss:$16 sps:$4 sm:$0xff]  }
 0x348   :  { %5239 = vmatprep.subr.bf16.mxu0 %v7952_v62  ;;  %v7895_v62 = vld [vmem:[#allocation8 + $0x3ec] ss:$16 sps:$4 sm:$0xff]  }
 0x349   :  { %4419 = vmatpush1.bf16.msra.mxu1 %v7797_v60  ;;  %v7839_v60 = vld [vmem:[#allocation8 + $0x1a8] ss:$16 sps:$4 sm:$0xff]  }
 0x34a   :  { %4431 = vmatprep.subr.bf16.mxu1 %v7802_v61  ;;  %v7950_v61 = vld [vmem:[#allocation11 + $0x78] ss:$12 sps:$4 sm:$0xff]  }
 0x34b   :  { %5240 = vmatpush1.bf16.msra.mxu0 %v7950_v61  ;;  %v7890_v61 = vld [vmem:[#allocation8 + $0x3c8] ss:$16 sps:$4 sm:$0xff]  }
 0x3c1   :  { %v3101_v2 = vpop.f32.mrb[4].mxu0 }
 0x3c2   :  { %v6971_v3 = vadd.f32 %v3101_v2, %v623_v0  ;;  %v3103_v4 = vpop.f32.mrb[5].mxu0  ;;  %v7958_v2 = vld [vmem:[#allocation11 + $0x94] ss:$12 sps:$4 sm:$0xff]  }
 0x3c3   :  { %v6972_v6 = vadd.f32 %v3103_v4, %v627_v1  ;;  %v3105_v7 = vpop.f32.mrb[6].mxu0  ;;  %5241 = vmatprep.subr.bf16.mxu0 %v7958_v2  ;;  %v7845_v4 = vld [vmem:[#allocation8 + $0x1e8] ss:$16 sps:$4 sm:$0xff]   ;;  %v7901_v2 = vld [vmem:[#allocation8 + $0x42c] ss:$16 sps:$4 sm:$0xff]  }
 0x3c4   :  { %v6973_v8 = vadd.f32 %v3105_v7, %v623_v0  ;;  %v3107_v9 = vpop.f32.mrb[7].mxu0  ;;  %v3114_v12 = vmax.f32 %v6971_v3, 0.0  ;;  %v7842_v0 = vld [vmem:[#allocation8 + $0x1c8] ss:$16 sps:$4 sm:$0xff]   ;;  %v7847_v3 = vld [vmem:[#allocation8 + $0x1ec] ss:$16 sps:$4 sm:$0xff]  }
 0x3c5   :  { %v6974_v10 = vadd.f32 %v3107_v9, %v627_v1  ;;  %v3115_v14 = vmax.f32 %v6972_v6, 0.0  ;;  %v7956_v1 = vld [vmem:[#allocation11 + $0x90] ss:$12 sps:$4 sm:$0xff]   ;;  %v7962_v6 = vld [vmem:[#allocation11 + $0xa8] ss:$12 sps:$4 sm:$0xff]  }
 0x3c6   :  { %v3120_v13 = vmax.f32 %v6973_v8, 0.0  ;;  %5242 = vmatpush1.bf16.msra.mxu0 %v7956_v1  ;;  %v7964_v7 = vld [vmem:[#allocation11 + $0xac] ss:$12 sps:$4 sm:$0xff]   ;;  %v7848_v9 = vld [vmem:[#allocation8 + $0x208] ss:$16 sps:$4 sm:$0xff]  }
 0x3c7   :  { %v3121_v15 = vmax.f32 %v6974_v10, 0.0  ;;  %v7850_v8 = vld [vmem:[#allocation8 + $0x20c] ss:$16 sps:$4 sm:$0xff]   ;;  %5243 = vmatprep.subr.bf16.mxu0 %v7964_v7  ;;  %v7968_v10 = vld [vmem:[#allocation11 + $0xc0] ss:$12 sps:$4 sm:$0xff]  }
 0x3c8   :  { %v8853_v19 = vpack.c.bf16 %v3120_v13, %v3114_v12  ;;  %v7970_v12 = vld [vmem:[#allocation11 + $0xc4] ss:$12 sps:$4 sm:$0xff]   ;;  %v7853_v13 = vld [vmem:[#allocation8 + $0x22c] ss:$16 sps:$4 sm:$0xff]  }
 0x3c9   :  { %v8855_v20 = vpack.c.bf16 %v3121_v15, %v3115_v14  ;;  %v7971_v14 = vld [vmem:[#allocation11 + $0xd8] ss:$12 sps:$4 sm:$0xff]   ;;  %v7973_v15 = vld [vmem:[#allocation11 + $0xdc] ss:$12 sps:$4 sm:$0xff]  }
 0x3ca   :  { %5244 = vmatpush1.bf16.msra.mxu0 %v7962_v6  ;;  %v7896_v1 = vld [vmem:[#allocation8 + $0x408] ss:$16 sps:$4 sm:$0xff]   ;;  %v7907_v7 = vld [vmem:[#allocation8 + $0x46c] ss:$16 sps:$4 sm:$0xff]  }
 0x3cb   :  { %4420 = vmatprep.mubr.bf16.mxu1 %v8855_v20  ;;  %5245 = vmatprep.subr.bf16.mxu0 %v7970_v12  ;;  %v7902_v6 = vld [vmem:[#allocation8 + $0x448] ss:$16 sps:$4 sm:$0xff]   ;;  %v7913_v12 = vld [vmem:[#allocation8 + $0x4ac] ss:$16 sps:$4 sm:$0xff]  }
 0x3cc   :  { %4421 = vmatmul.mubr.bf16.vlgmr.msra.gmra.mrb[4].mxu1 %v8853_v19 }
 0x3cd   :  { %4432 = vmatpush1.bf16.msra.mxu1 %v7800_v32  ;;  %4463 = vmatprep.mubr.bf16.mxu1 %v8840_v35  ;;  %v7818_v35 = vld [vmem:[#allocation8 + $0xc8] ss:$16 sps:$4 sm:$0xff]  }
 0x3ce   :  { %4433 = vmatprep.subr.bf16.mxu1 %v7805_v21  ;;  %5246 = vmatpush1.bf16.msra.mxu0 %v7968_v10  ;;  %v7851_v32 = vld [vmem:[#allocation8 + $0x228] ss:$16 sps:$4 sm:$0xff]  }
 0x3cf   :  { %v7976_v21 = vld [vmem:[#allocation11 + $0xf4] ss:$12 sps:$4 sm:$0xff]   ;;  %5247 = vmatprep.subr.bf16.mxu0 %v7973_v15 }
 0x3d0   :  { %v7908_v10 = vld [vmem:[#allocation8 + $0x488] ss:$16 sps:$4 sm:$0xff]  }
 0x3d1   :  { %4434 = vmatpush1.bf16.msra.mxu1 %v7803_v52  ;;  %v7856_v52 = vld [vmem:[#allocation8 + $0x24c] ss:$16 sps:$4 sm:$0xff]   ;;  %v7917_v15 = vld [vmem:[#allocation8 + $0x4e8] ss:$16 sps:$4 sm:$0xff]  }
 0x3d2   :  { %4435 = vmatprep.subr.bf16.mxu1 %v7808_v11  ;;  %5248 = vmatpush1.bf16.msra.mxu0 %v7971_v14  ;;  %v7974_v11 = vld [vmem:[#allocation11 + $0xf0] ss:$12 sps:$4 sm:$0xff]   ;;  %v7919_v14 = vld [vmem:[#allocation8 + $0x4ec] ss:$16 sps:$4 sm:$0xff]  }
 0x3d3   :  { %5249 = vmatprep.subr.bf16.mxu0 %v7976_v21  ;;  %v7923_v21 = vld [vmem:[#allocation8 + $0x508] ss:$16 sps:$4 sm:$0xff]  }
 0x3d5   :  { %4436 = vmatpush1.bf16.msra.mxu1 %v7806_v22  ;;  %v7854_v22 = vld [vmem:[#allocation8 + $0x248] ss:$16 sps:$4 sm:$0xff]  }
 0x3d6   :  { %4437 = vmatprep.subr.bf16.mxu1 %v7811_v23  ;;  %v7979_v23 = vld [vmem:[#allocation11 + $0x10c] ss:$12 sps:$4 sm:$0xff]   ;;  %5250 = vmatpush1.bf16.msra.mxu0 %v7974_v11  ;;  %v7929_v11 = vld [vmem:[#allocation8 + $0x528] ss:$16 sps:$4 sm:$0xff]  }
 0x3d7   :  { %5251 = vmatprep.subr.bf16.mxu0 %v7979_v23  ;;  %v7935_v23 = vld [vmem:[#allocation8 + $0x548] ss:$16 sps:$4 sm:$0xff]  }
 0x3d9   :  { %4438 = vmatpush1.bf16.msra.mxu1 %v7809_v18  ;;  %v7859_v18 = vld [vmem:[#allocation8 + $0x26c] ss:$16 sps:$4 sm:$0xff]  }
 0x3da   :  { %4439 = vmatprep.subr.bf16.mxu1 %v7814_v27  ;;  %v7857_v27 = vld [vmem:[#allocation8 + $0x268] ss:$16 sps:$4 sm:$0xff]  }
 0x3dd   :  { %4440 = vmatpush1.bf16.msra.mxu1 %v7812_v28  ;;  %v7982_v28 = vld [vmem:[#allocation11 + $0x124] ss:$12 sps:$4 sm:$0xff]  }
 0x3de   :  { %4441 = vmatprep.subr.bf16.mxu1 %v7817_v16  ;;  %v7980_v16 = vld [vmem:[#allocation11 + $0x120] ss:$12 sps:$4 sm:$0xff]  }
 0x3e1   :  { %4442 = vmatpush1.bf16.msra.mxu1 %v7815_v17  ;;  %v7860_v17 = vld [vmem:[#allocation8 + $0x288] ss:$16 sps:$4 sm:$0xff]  }
 0x3e2   :  { %4443 = vmatprep.subr.bf16.mxu1 %v7820_v33  ;;  %v7985_v33 = vld [vmem:[#allocation11 + $0x13c] ss:$12 sps:$4 sm:$0xff]  }
 0x3e5   :  { %4444 = vmatpush1.bf16.msra.mxu1 %v7818_v35  ;;  %v7865_v35 = vld [vmem:[#allocation8 + $0x2ac] ss:$16 sps:$4 sm:$0xff]  }
 0x3e6   :  { %4445 = vmatprep.subr.bf16.mxu1 %v7823_v37  ;;  %v7983_v37 = vld [vmem:[#allocation11 + $0x138] ss:$12 sps:$4 sm:$0xff]  }
 0x3e9   :  { %4446 = vmatpush1.bf16.msra.mxu1 %v7821_v38  ;;  %v7863_v38 = vld [vmem:[#allocation8 + $0x2a8] ss:$16 sps:$4 sm:$0xff]  }
 0x3ea   :  { %4447 = vmatprep.subr.bf16.mxu1 %v7826_v5  ;;  %v7868_v5 = vld [vmem:[#allocation8 + $0x2cc] ss:$16 sps:$4 sm:$0xff]  }
 0x3ed   :  { %4448 = vmatpush1.bf16.msra.mxu1 %v7824_v39  ;;  %v7866_v39 = vld [vmem:[#allocation8 + $0x2c8] ss:$16 sps:$4 sm:$0xff]  }
 0x3ee   :  { %4449 = vmatprep.subr.bf16.mxu1 %v7829_v26  ;;  %v7986_v26 = vld [vmem:[#allocation11 + $0x150] ss:$12 sps:$4 sm:$0xff]  }
 0x3f1   :  { %4450 = vmatpush1.bf16.msra.mxu1 %v7827_v40  ;;  %v7869_v40 = vld [vmem:[#allocation8 + $0x2e8] ss:$16 sps:$4 sm:$0xff]  }
 0x3f2   :  { %4451 = vmatprep.subr.bf16.mxu1 %v7832_v43  ;;  %v7989_v43 = vld [vmem:[#allocation11 + $0x168] ss:$12 sps:$4 sm:$0xff]  }
 0x3f5   :  { %4452 = vmatpush1.bf16.msra.mxu1 %v7830_v44  ;;  %v7872_v44 = vld [vmem:[#allocation8 + $0x308] ss:$16 sps:$4 sm:$0xff]  }
 0x3f6   :  { %4453 = vmatprep.subr.bf16.mxu1 %v7835_v46  ;;  %v7875_v46 = vld [vmem:[#allocation8 + $0x328] ss:$16 sps:$4 sm:$0xff]  }
 0x3f9   :  { %4454 = vmatpush1.bf16.msra.mxu1 %v7833_v48  ;;  %v7880_v48 = vld [vmem:[#allocation8 + $0x34c] ss:$16 sps:$4 sm:$0xff]  }
 0x3fa   :  { %4455 = vmatprep.subr.bf16.mxu1 %v7838_v55  ;;  %v7881_v55 = vld [vmem:[#allocation8 + $0x368] ss:$16 sps:$4 sm:$0xff]  }
 0x3fd   :  { %4456 = vmatpush1.bf16.msra.mxu1 %v7836_v56  ;;  %v7886_v56 = vld [vmem:[#allocation8 + $0x38c] ss:$16 sps:$4 sm:$0xff]  }
 0x3fe   :  { %4457 = vmatprep.subr.bf16.mxu1 %v7841_v59  ;;  %v7887_v59 = vld [vmem:[#allocation8 + $0x3a8] ss:$16 sps:$4 sm:$0xff]  }
 0x401   :  { %4458 = vmatpush1.bf16.msra.mxu1 %v7839_v60  ;;  %v7892_v60 = vld [vmem:[#allocation8 + $0x3cc] ss:$16 sps:$4 sm:$0xff]  }
 0x402   :  { %4459 = vmatprep.subr.bf16.mxu1 %v7844_v63  ;;  %v7893_v63 = vld [vmem:[#allocation8 + $0x3e8] ss:$16 sps:$4 sm:$0xff]  }
 0x405   :  { %4460 = vmatpush1.bf16.msra.mxu1 %v7842_v0  ;;  %v7898_v0 = vld [vmem:[#allocation8 + $0x40c] ss:$16 sps:$4 sm:$0xff]  }
 0x406   :  { %4461 = vmatprep.subr.bf16.mxu1 %v7847_v3  ;;  %v7899_v3 = vld [vmem:[#allocation8 + $0x428] ss:$16 sps:$4 sm:$0xff]  }
 0x409   :  { %4462 = vmatpush1.bf16.msra.mxu1 %v7845_v4  ;;  %v7904_v4 = vld [vmem:[#allocation8 + $0x44c] ss:$16 sps:$4 sm:$0xff]  }
 0x40a   :  { %4474 = vmatprep.subr.bf16.mxu1 %v7850_v8  ;;  %v7905_v8 = vld [vmem:[#allocation8 + $0x468] ss:$16 sps:$4 sm:$0xff]  }
 0x40c   :  { %4464 = vmatmul.mubr.bf16.vlgmr.msra.gmra.mrb[8].mxu1 %v8836_v30  ;;  %v7977_v30 = vld [vmem:[#allocation11 + $0x108] ss:$12 sps:$4 sm:$0xff]  }
 0x40d   :  { %4475 = vmatpush1.bf16.msra.mxu1 %v7848_v9  ;;  %4506 = vmatprep.mubr.bf16.mxu1 %v8842_v36  ;;  %v7862_v36 = vld [vmem:[#allocation8 + $0x28c] ss:$16 sps:$4 sm:$0xff]  }
 0x40e   :  { %4476 = vmatprep.subr.bf16.mxu1 %v7853_v13  ;;  %5252 = vmatpush1.bf16.msra.mxu0 %v7977_v30  ;;  %v7910_v9 = vld [vmem:[#allocation8 + $0x48c] ss:$16 sps:$4 sm:$0xff]   ;;  %v7941_v30 = vld [vmem:[#allocation8 + $0x568] ss:$16 sps:$4 sm:$0xff]  }
 0x40f   :  { %5253 = vmatprep.subr.bf16.mxu0 %v7982_v28  ;;  %v7916_v13 = vld [vmem:[#allocation8 + $0x4cc] ss:$16 sps:$4 sm:$0xff]   ;;  %v7947_v28 = vld [vmem:[#allocation8 + $0x588] ss:$16 sps:$4 sm:$0xff]  }
 0x411   :  { %4477 = vmatpush1.bf16.msra.mxu1 %v7851_v32  ;;  %v7925_v32 = vld [vmem:[#allocation8 + $0x50c] ss:$16 sps:$4 sm:$0xff]  }
 0x412   :  { %4478 = vmatprep.subr.bf16.mxu1 %v7856_v52  ;;  %5254 = vmatpush1.bf16.msra.mxu0 %v7980_v16  ;;  %v7931_v52 = vld [vmem:[#allocation8 + $0x52c] ss:$16 sps:$4 sm:$0xff]   ;;  %v7953_v16 = vld [vmem:[#allocation8 + $0x5a8] ss:$16 sps:$4 sm:$0xff]  }
 0x413   :  { %5255 = vmatprep.subr.bf16.mxu0 %v7985_v33  ;;  %v7959_v33 = vld [vmem:[#allocation8 + $0x5c8] ss:$16 sps:$4 sm:$0xff]  }
 0x415   :  { %4479 = vmatpush1.bf16.msra.mxu1 %v7854_v22  ;;  %v7937_v22 = vld [vmem:[#allocation8 + $0x54c] ss:$16 sps:$4 sm:$0xff]  }
 0x416   :  { %4480 = vmatprep.subr.bf16.mxu1 %v7859_v18  ;;  %5256 = vmatpush1.bf16.msra.mxu0 %v7983_v37  ;;  %v7943_v18 = vld [vmem:[#allocation8 + $0x56c] ss:$16 sps:$4 sm:$0xff]   ;;  %v7965_v37 = vld [vmem:[#allocation8 + $0x5e8] ss:$16 sps:$4 sm:$0xff]  }
 0x417   :  { %5257 = vmatprep.subr.bf16.mxu0 %v7988_v34  ;;  %v8025_v34 = vld [vmem:[#allocation11 + $0x1a0] ss:$12 sps:$4 sm:$0xff]  }
 0x419   :  { %4481 = vmatpush1.bf16.msra.mxu1 %v7857_v27  ;;  %v7949_v27 = vld [vmem:[#allocation8 + $0x58c] ss:$16 sps:$4 sm:$0xff]  }
 0x41a   :  { %4482 = vmatprep.subr.bf16.mxu1 %v7862_v36  ;;  %5258 = vmatpush1.bf16.msra.mxu0 %v7986_v26  ;;  %v7955_v36 = vld [vmem:[#allocation8 + $0x5ac] ss:$16 sps:$4 sm:$0xff]  }
 0x41b   :  { %5259 = vmatprep.subr.bf16.mxu0 %v7991_v41  ;;  %v8030_v26 = vld [vmem:[#allocation11 + $0x1b8] ss:$12 sps:$4 sm:$0xff]   ;;  %v8035_v41 = vld [vmem:[#allocation11 + $0x1d0] ss:$12 sps:$4 sm:$0xff]  }
 0x41d   :  { %4483 = vmatpush1.bf16.msra.mxu1 %v7860_v17  ;;  %v7961_v17 = vld [vmem:[#allocation8 + $0x5cc] ss:$16 sps:$4 sm:$0xff]  }
 0x41e   :  { %4484 = vmatprep.subr.bf16.mxu1 %v7865_v35  ;;  %5260 = vmatpush1.bf16.msra.mxu0 %v7989_v43  ;;  %v7967_v35 = vld [vmem:[#allocation8 + $0x5ec] ss:$16 sps:$4 sm:$0xff]   ;;  %v8865_v43 = vld [vmem:[#allocation10] sm:$0xf] }
 0x41f   :  { %5272 = vmatprep.subr.bf16.mxu0 %v7994_v45  ;;  %v3329_v45 = vrot.slane %v8865_v43, %v8824_v53 }
 0x421   :  { %4485 = vmatpush1.bf16.msra.mxu1 %v7863_v38  ;;  %v8019_v38 = vld [vmem:[#allocation11 + $0x248] ss:$12 sps:$4 sm:$0xff]  }
 0x422   :  { %4486 = vmatprep.subr.bf16.mxu1 %v7868_v5  ;;  %v8020_v5 = vld [vmem:[#allocation11 + $0x188] ss:$12 sps:$4 sm:$0xff]  }
 0x425   :  { %4487 = vmatpush1.bf16.msra.mxu1 %v7866_v39  ;;  %v8024_v39 = vld [vmem:[#allocation11 + $0x260] ss:$12 sps:$4 sm:$0xff]  }
 0x426   :  { %4488 = vmatprep.subr.bf16.mxu1 %v7871_v25  ;;  %v8029_v25 = vld [vmem:[#allocation11 + $0x278] ss:$12 sps:$4 sm:$0xff]  }
 0x429   :  { %4489 = vmatpush1.bf16.msra.mxu1 %v7869_v40  ;;  %v8034_v40 = vld [vmem:[#allocation11 + $0x290] ss:$12 sps:$4 sm:$0xff]  }
 0x42a   :  { %4490 = vmatprep.subr.bf16.mxu1 %v7874_v42  ;;  %v8039_v42 = vld [vmem:[#allocation11 + $0x2a8] ss:$12 sps:$4 sm:$0xff]  }
 0x42d   :  { %4491 = vmatpush1.bf16.msra.mxu1 %v7872_v44  ;;  %v8040_v44 = vld [vmem:[#allocation11 + $0x1e8] ss:$12 sps:$4 sm:$0xff]  }
 0x42e   :  { %4492 = vmatprep.subr.bf16.mxu1 %v7877_v50  ;;  %v8044_v50 = vld [vmem:[#allocation11 + $0x2c0] ss:$12 sps:$4 sm:$0xff]  }
 0x431   :  { %4493 = vmatpush1.bf16.msra.mxu1 %v7875_v46 }
 0x432   :  { %4494 = vmatprep.subr.bf16.mxu1 %v7880_v48 }
 0x435   :  { %4495 = vmatpush1.bf16.msra.mxu1 %v7878_v49 }
 0x436   :  { %4496 = vmatprep.subr.bf16.mxu1 %v7883_v29 }
 0x439   :  { %4497 = vmatpush1.bf16.msra.mxu1 %v7881_v55 }
 0x43a   :  { %4498 = vmatprep.subr.bf16.mxu1 %v7886_v56 }
 0x43d   :  { %4499 = vmatpush1.bf16.msra.mxu1 %v7884_v57 }
 0x43e   :  { %4500 = vmatprep.subr.bf16.mxu1 %v7889_v58 }
 0x441   :  { %4501 = vmatpush1.bf16.msra.mxu1 %v7887_v59 }
 0x442   :  { %4502 = vmatprep.subr.bf16.mxu1 %v7892_v60 }
 0x445   :  { %4503 = vmatpush1.bf16.msra.mxu1 %v7890_v61 }
 0x446   :  { %4504 = vmatprep.subr.bf16.mxu1 %v7895_v62 }
 0x449   :  { %4505 = vmatpush1.bf16.msra.mxu1 %v7893_v63 }
 0x44a   :  { %4517 = vmatprep.subr.bf16.mxu1 %v7898_v0 }
 0x44c   :  { %4507 = vmatmul.mubr.bf16.vlgmr.msra.gmra.mrb[8].mxu1 %v8838_v31  ;;  %v7911_v31 = vld [vmem:[#allocation8 + $0x4a8] ss:$16 sps:$4 sm:$0xff]  }
 0x44d   :  { %4518 = vmatpush1.bf16.msra.mxu1 %v7896_v1  ;;  %4549 = vmatprep.mubr.bf16.mxu1 %v8855_v20  ;;  %v7914_v20 = vld [vmem:[#allocation8 + $0x4c8] ss:$16 sps:$4 sm:$0xff]   ;;  %v7992_v1 = vld [vmem:[#allocation11 + $0x180] ss:$12 sps:$4 sm:$0xff]  }
 0x44e   :  { %4519 = vmatprep.subr.bf16.mxu1 %v7901_v2  ;;  %v7997_v2 = vld [vmem:[#allocation11 + $0x19c] ss:$12 sps:$4 sm:$0xff]  }
 0x451   :  { %4520 = vmatpush1.bf16.msra.mxu1 %v7899_v3  ;;  %v7995_v3 = vld [vmem:[#allocation11 + $0x198] ss:$12 sps:$4 sm:$0xff]  }
 0x452   :  { %4521 = vmatprep.subr.bf16.mxu1 %v7904_v4  ;;  %v8000_v4 = vld [vmem:[#allocation11 + $0x1b4] ss:$12 sps:$4 sm:$0xff]  }
 0x455   :  { %4522 = vmatpush1.bf16.msra.mxu1 %v7902_v6  ;;  %v7998_v6 = vld [vmem:[#allocation11 + $0x1b0] ss:$12 sps:$4 sm:$0xff]  }
 0x456   :  { %4523 = vmatprep.subr.bf16.mxu1 %v7907_v7  ;;  %v8003_v7 = vld [vmem:[#allocation11 + $0x1cc] ss:$12 sps:$4 sm:$0xff]  }
 0x459   :  { %4524 = vmatpush1.bf16.msra.mxu1 %v7905_v8  ;;  %v8001_v8 = vld [vmem:[#allocation11 + $0x1c8] ss:$12 sps:$4 sm:$0xff]  }
 0x45a   :  { %4525 = vmatprep.subr.bf16.mxu1 %v7910_v9  ;;  %v8006_v9 = vld [vmem:[#allocation11 + $0x1e4] ss:$12 sps:$4 sm:$0xff]  }
 0x45d   :  { %4526 = vmatpush1.bf16.msra.mxu1 %v7908_v10  ;;  %v8004_v10 = vld [vmem:[#allocation11 + $0x1e0] ss:$12 sps:$4 sm:$0xff]  }
 0x45e   :  { %4527 = vmatprep.subr.bf16.mxu1 %v7913_v12  ;;  %v8009_v12 = vld [vmem:[#allocation11 + $0x1fc] ss:$12 sps:$4 sm:$0xff]  }
 0x461   :  { %4528 = vmatpush1.bf16.msra.mxu1 %v7911_v31  ;;  %v8007_v31 = vld [vmem:[#allocation11 + $0x1f8] ss:$12 sps:$4 sm:$0xff]  }
 0x462   :  { %4529 = vmatprep.subr.bf16.mxu1 %v7916_v13  ;;  %v8012_v13 = vld [vmem:[#allocation11 + $0x214] ss:$12 sps:$4 sm:$0xff]  }
 0x465   :  { %4530 = vmatpush1.bf16.msra.mxu1 %v7914_v20  ;;  %v8010_v20 = vld [vmem:[#allocation11 + $0x210] ss:$12 sps:$4 sm:$0xff]  }
 0x466   :  { %4531 = vmatprep.subr.bf16.mxu1 %v7919_v14  ;;  %v8015_v14 = vld [vmem:[#allocation11 + $0x22c] ss:$12 sps:$4 sm:$0xff]  }
 0x469   :  { %4532 = vmatpush1.bf16.msra.mxu1 %v7917_v15  ;;  %v8013_v15 = vld [vmem:[#allocation11 + $0x228] ss:$12 sps:$4 sm:$0xff]  }
 0x46a   :  { %4533 = vmatprep.subr.bf16.mxu1 %v7925_v32  ;;  %v8018_v32 = vld [vmem:[#allocation11 + $0x244] ss:$12 sps:$4 sm:$0xff]  }
 0x46d   :  { %4534 = vmatpush1.bf16.msra.mxu1 %v7923_v21  ;;  %v8016_v21 = vld [vmem:[#allocation11 + $0x240] ss:$12 sps:$4 sm:$0xff]  }
 0x46e   :  { %4535 = vmatprep.subr.bf16.mxu1 %v7931_v52  ;;  %v8023_v52 = vld [vmem:[#allocation11 + $0x25c] ss:$12 sps:$4 sm:$0xff]  }
 0x471   :  { %4536 = vmatpush1.bf16.msra.mxu1 %v7929_v11  ;;  %v8021_v11 = vld [vmem:[#allocation11 + $0x258] ss:$12 sps:$4 sm:$0xff]  }
 0x472   :  { %4537 = vmatprep.subr.bf16.mxu1 %v7937_v22  ;;  %v8028_v22 = vld [vmem:[#allocation11 + $0x274] ss:$12 sps:$4 sm:$0xff]  }
 0x475   :  { %4538 = vmatpush1.bf16.msra.mxu1 %v7935_v23  ;;  %v8026_v23 = vld [vmem:[#allocation11 + $0x270] ss:$12 sps:$4 sm:$0xff]  }
 0x476   :  { %4539 = vmatprep.subr.bf16.mxu1 %v7943_v18  ;;  %v8033_v18 = vld [vmem:[#allocation11 + $0x28c] ss:$12 sps:$4 sm:$0xff]  }
 0x479   :  { %4540 = vmatpush1.bf16.msra.mxu1 %v7941_v30  ;;  %v8031_v30 = vld [vmem:[#allocation11 + $0x288] ss:$12 sps:$4 sm:$0xff]  }
 0x47a   :  { %4541 = vmatprep.subr.bf16.mxu1 %v7949_v27  ;;  %v8038_v27 = vld [vmem:[#allocation11 + $0x2a4] ss:$12 sps:$4 sm:$0xff]  }
 0x47d   :  { %4542 = vmatpush1.bf16.msra.mxu1 %v7947_v28  ;;  %v8036_v28 = vld [vmem:[#allocation11 + $0x2a0] ss:$12 sps:$4 sm:$0xff]  }
 0x47e   :  { %4543 = vmatprep.subr.bf16.mxu1 %v7955_v36  ;;  %v8043_v36 = vld [vmem:[#allocation11 + $0x2bc] ss:$12 sps:$4 sm:$0xff]  }
 0x481   :  { %4544 = vmatpush1.bf16.msra.mxu1 %v7953_v16  ;;  %v8041_v16 = vld [vmem:[#allocation11 + $0x2b8] ss:$12 sps:$4 sm:$0xff]  }
 0x482   :  { %4545 = vmatprep.subr.bf16.mxu1 %v7961_v17  ;;  %v8045_v17 = vld [vmem:[#allocation11 + $0x200] ss:$12 sps:$4 sm:$0xff]  }
 0x485   :  { %4546 = vmatpush1.bf16.msra.mxu1 %v7959_v33  ;;  %v8048_v33 = vld [vmem:[#allocation11 + $0x2d4] ss:$12 sps:$4 sm:$0xff]  }
 0x486   :  { %4547 = vmatprep.subr.bf16.mxu1 %v7967_v35  ;;  %v8046_v35 = vld [vmem:[#allocation11 + $0x2d0] ss:$12 sps:$4 sm:$0xff]  }
 0x489   :  { %4548 = vmatpush1.bf16.msra.mxu1 %v7965_v37  ;;  %v8049_v37 = vld [vmem:[#allocation11 + $0x2d8] ss:$12 sps:$4 sm:$0xff]  }
 0x48a   :  { %6890 = vmatprep.subr.bf16.mxu1 %v8019_v38  ;;  %v8050_v38 = vld [vmem:[#allocation11 + $0x218] ss:$12 sps:$4 sm:$0xff]  }
 0x48c   :  { %4550 = vmatmul.mubr.bf16.vlgmr.msra.gmra.mrb[8].mxu1 %v8853_v19  ;;  %v3325_v19 = vrot.slane %v8865_v43, %v8816_v51 }
 0x48d   :  { %6891 = vmatpush3.bf16.msra.mxu1 %v8020_v5  ;;  %v8053_v5 = vld [vmem:[#allocation11 + $0x2ec] ss:$12 sps:$4 sm:$0xff]  }
 0x48e   :  { %6892 = vmatprep.subr.bf16.mxu1 %v8024_v39  ;;  %v8051_v39 = vld [vmem:[#allocation11 + $0x2e8] ss:$12 sps:$4 sm:$0xff]  }
 0x491   :  { %6893 = vmatpush3.bf16.msra.mxu1 %v8025_v34  ;;  %v8054_v34 = vld [vmem:[#allocation11 + $0x2f0] ss:$12 sps:$4 sm:$0xff]  }
 0x492   :  { %6894 = vmatprep.subr.bf16.mxu1 %v8029_v25  ;;  %v8055_v25 = vld [vmem:[#allocation11 + $0x230] ss:$12 sps:$4 sm:$0xff]  }
 0x495   :  { %6895 = vmatpush3.bf16.msra.mxu1 %v8030_v26  ;;  %v8056_v26 = vld [vmem:[#allocation11 + $0xc8] ss:$12 sps:$4 sm:$0xff]  }
 0x496   :  { %6896 = vmatprep.subr.bf16.mxu1 %v8034_v40  ;;  %v3333_v40 = vrot.slane %v8865_v43, %v8819_v24 }
 0x499   :  { %6897 = vmatpush3.bf16.msra.mxu1 %v8035_v41  ;;  %v3337_v41 = vrot.slane %v8865_v43, %v618_v54  ;;  %v8060_v54 = vld [vmem:[#allocation11 + $0xf8] ss:$12 sps:$4 sm:$0xff]  }
 0x49a   :  { %6898 = vmatprep.subr.bf16.mxu1 %v8039_v42  ;;  %v8061_v43 = vld [vmem:[#allocation11 + $0x38] ss:$12 sps:$4 sm:$0xff]  }
 0x49d   :  { %6899 = vmatpush3.bf16.msra.mxu1 %v8040_v44 }
 0x49e   :  { %6900 = vmatprep.subr.bf16.mxu1 %v8044_v50 }
 0x49f   :  { %v4422_v46 = vpop.f32.mrb[4].mxu1 }
 0x4a0   :  { %v6975_v48 = vadd.f32 %v4422_v46, %v3325_v19  ;;  %v4424_v49 = vpop.f32.mrb[5].mxu1 }
 0x4a1   :  { %v6976_v29 = vadd.f32 %v4424_v49, %v3329_v45  ;;  %v4426_v55 = vpop.f32.mrb[6].mxu1  ;;  %6901 = vmatpush3.bf16.msra.mxu1 %v8045_v17  ;;  %v8104_v17 = vld [vmem:[#allocation14 + $0xa4] ss:$8 sps:$4 sm:$0xff]  }
 0x4a2   :  { %v6977_v56 = vadd.f32 %v4426_v55, %v3325_v19  ;;  %v4428_v57 = vpop.f32.mrb[7].mxu1  ;;  %v4560_v59 = vmax.f32 %v6975_v48, 0.0  ;;  %6902 = vmatprep.subr.bf16.mxu1 %v8049_v37  ;;  %v8105_v37 = vld [vmem:[#allocation14 + $0xb0] ss:$8 sps:$4 sm:$0xff]  }
 0x4a3   :  { %v6978_v58 = vadd.f32 %v4428_v57, %v3329_v45  ;;  %v4561_v61 = vmax.f32 %v6976_v29, 0.0 }
 0x4a4   :  { %v4564_v60 = vmax.f32 %v6977_v56, 0.0 }
 0x4a5   :  { %v4565_v62 = vmax.f32 %v6978_v58, 0.0  ;;  %6903 = vmatpush3.bf16.msra.mxu1 %v8050_v38  ;;  %v8110_v38 = vld [vmem:[#allocation14 + $0xc4] ss:$8 sps:$4 sm:$0xff]  }
 0x4a6   :  { %v8871_v63 = vpack.c.bf16 %v4564_v60, %v4560_v59  ;;  %6904 = vmatprep.subr.bf16.mxu1 %v8054_v34  ;;  %v8057_v60 = vld [vmem:[#allocation11 + $0x8] ss:$12 sps:$4 sm:$0xff]  }
 0x4a7   :  { %v8873_v0 = vpack.c.bf16 %v4565_v62, %v4561_v61  ;;  %v8058_v61 = vld [vmem:[#allocation11 + $0xe0] ss:$12 sps:$4 sm:$0xff]   ;;  %v8062_v62 = vld [vmem:[#allocation11 + $0x110] ss:$12 sps:$4 sm:$0xff]  }
 0x4a8   :  { %v8111_v34 = vld [vmem:[#allocation14 + $0xd0] ss:$8 sps:$4 sm:$0xff]  }
 0x4a9   :  { %5261 = vmatprep.mubr.bf16.mxu0 %v8873_v0  ;;  %6905 = vmatpush3.bf16.msra.mxu1 %v8055_v25  ;;  %v8116_v25 = vld [vmem:[#allocation14 + $0xe4] ss:$8 sps:$4 sm:$0xff]  }
 0x4aa   :  { %5262 = vmatmul.mubr.bf16.vlgmr.msra.gmra.mrb[8].mxu0 %v8871_v63 }
 0x4ab   :  { %5273 = vmatpush1.bf16.msra.mxu0 %v7992_v1  ;;  %v8063_v1 = vld [vmem:[#allocation11 + $0x50] ss:$12 sps:$4 sm:$0xff]  }
 0x4ac   :  { %5274 = vmatprep.subr.bf16.mxu0 %v7997_v2  ;;  %v8064_v2 = vld [vmem:[#allocation11 + $0x128] ss:$12 sps:$4 sm:$0xff]  }
 0x4af   :  { %5275 = vmatpush1.bf16.msra.mxu0 %v7995_v3  ;;  %v8065_v3 = vld [vmem:[#allocation11 + $0x68] ss:$12 sps:$4 sm:$0xff]  }
 0x4b0   :  { %5276 = vmatprep.subr.bf16.mxu0 %v8000_v4  ;;  %v8066_v4 = vld [vmem:[#allocation11 + $0x140] ss:$12 sps:$4 sm:$0xff]  }
 0x4b3   :  { %5277 = vmatpush1.bf16.msra.mxu0 %v7998_v6  ;;  %v8067_v6 = vld [vmem:[#allocation11 + $0x80] ss:$12 sps:$4 sm:$0xff]  }
 0x4b4   :  { %5278 = vmatprep.subr.bf16.mxu0 %v8003_v7  ;;  %v8068_v7 = vld [vmem:[#allocation11 + $0x158] ss:$12 sps:$4 sm:$0xff]  }
 0x4b7   :  { %5279 = vmatpush1.bf16.msra.mxu0 %v8001_v8  ;;  %v8070_v8 = vld [vmem:[#allocation11 + $0x170] ss:$12 sps:$4 sm:$0xff]  }
 0x4b8   :  { %5280 = vmatprep.subr.bf16.mxu0 %v8006_v9  ;;  %v8071_v9 = vld [vmem:[#allocation11 + $0xb0] ss:$12 sps:$4 sm:$0xff]  }
 0x4bb   :  { %5281 = vmatpush1.bf16.msra.mxu0 %v8004_v10  ;;  %v8074_v10 = vld [vmem:[#allocation14 + $0x4] ss:$8 sps:$4 sm:$0xff]  }
 0x4bc   :  { %5282 = vmatprep.subr.bf16.mxu0 %v8009_v12  ;;  %v8072_v12 = vld [vmem:[#allocation14] ss:$8 sps:$4 sm:$0xff]  }
 0x4bf   :  { %5283 = vmatpush1.bf16.msra.mxu0 %v8007_v31  ;;  %v8077_v31 = vld [vmem:[#allocation14 + $0x14] ss:$8 sps:$4 sm:$0xff]  }
 0x4c0   :  { %5284 = vmatprep.subr.bf16.mxu0 %v8012_v13  ;;  %v8075_v13 = vld [vmem:[#allocation14 + $0x10] ss:$8 sps:$4 sm:$0xff]  }
 0x4c3   :  { %5285 = vmatpush1.bf16.msra.mxu0 %v8010_v20  ;;  %v8080_v20 = vld [vmem:[#allocation14 + $0x24] ss:$8 sps:$4 sm:$0xff]  }
 0x4c4   :  { %5286 = vmatprep.subr.bf16.mxu0 %v8015_v14  ;;  %v8078_v14 = vld [vmem:[#allocation14 + $0x20] ss:$8 sps:$4 sm:$0xff]  }
 0x4c7   :  { %5287 = vmatpush1.bf16.msra.mxu0 %v8013_v15  ;;  %v8083_v15 = vld [vmem:[#allocation14 + $0x34] ss:$8 sps:$4 sm:$0xff]  }
 0x4c8   :  { %5288 = vmatprep.subr.bf16.mxu0 %v8018_v32  ;;  %v8081_v32 = vld [vmem:[#allocation14 + $0x30] ss:$8 sps:$4 sm:$0xff]  }
 0x4cb   :  { %5289 = vmatpush1.bf16.msra.mxu0 %v8016_v21  ;;  %v8086_v21 = vld [vmem:[#allocation14 + $0x44] ss:$8 sps:$4 sm:$0xff]  }
 0x4cc   :  { %5290 = vmatprep.subr.bf16.mxu0 %v8023_v52  ;;  %v8084_v52 = vld [vmem:[#allocation14 + $0x40] ss:$8 sps:$4 sm:$0xff]  }
 0x4cf   :  { %5291 = vmatpush1.bf16.msra.mxu0 %v8021_v11  ;;  %v8089_v11 = vld [vmem:[#allocation14 + $0x54] ss:$8 sps:$4 sm:$0xff]  }
 0x4d0   :  { %5292 = vmatprep.subr.bf16.mxu0 %v8028_v22  ;;  %v8087_v22 = vld [vmem:[#allocation14 + $0x50] ss:$8 sps:$4 sm:$0xff]  }
 0x4d3   :  { %5293 = vmatpush1.bf16.msra.mxu0 %v8026_v23  ;;  %v8090_v23 = vld [vmem:[#allocation14 + $0x60] ss:$8 sps:$4 sm:$0xff]  }
 0x4d4   :  { %5294 = vmatprep.subr.bf16.mxu0 %v8033_v18  ;;  %v8095_v18 = vld [vmem:[#allocation14 + $0x74] ss:$8 sps:$4 sm:$0xff]  }
 0x4d7   :  { %5295 = vmatpush1.bf16.msra.mxu0 %v8031_v30  ;;  %v8093_v30 = vld [vmem:[#allocation14 + $0x70] ss:$8 sps:$4 sm:$0xff]  }
 0x4d8   :  { %5296 = vmatprep.subr.bf16.mxu0 %v8038_v27  ;;  %v8098_v27 = vld [vmem:[#allocation14 + $0x84] ss:$8 sps:$4 sm:$0xff]  }
 0x4db   :  { %5297 = vmatpush1.bf16.msra.mxu0 %v8036_v28  ;;  %v8096_v28 = vld [vmem:[#allocation14 + $0x80] ss:$8 sps:$4 sm:$0xff]  }
 0x4dc   :  { %5298 = vmatprep.subr.bf16.mxu0 %v8043_v36  ;;  %v8101_v36 = vld [vmem:[#allocation14 + $0x94] ss:$8 sps:$4 sm:$0xff]  }
 0x4df   :  { %5299 = vmatpush1.bf16.msra.mxu0 %v8041_v16  ;;  %v8099_v16 = vld [vmem:[#allocation14 + $0x90] ss:$8 sps:$4 sm:$0xff]  }
 0x4e0   :  { %5300 = vmatprep.subr.bf16.mxu0 %v8048_v33  ;;  %v8102_v33 = vld [vmem:[#allocation14 + $0xa0] ss:$8 sps:$4 sm:$0xff]  }
 0x4e3   :  { %5301 = vmatpush1.bf16.msra.mxu0 %v8046_v35  ;;  %v8107_v35 = vld [vmem:[#allocation14 + $0xb4] ss:$8 sps:$4 sm:$0xff]  }
 0x4e4   :  { %5302 = vmatprep.subr.bf16.mxu0 %v8053_v5  ;;  %v8108_v5 = vld [vmem:[#allocation14 + $0xc0] ss:$8 sps:$4 sm:$0xff]  }
 0x4e7   :  { %5303 = vmatpush1.bf16.msra.mxu0 %v8051_v39  ;;  %v8113_v39 = vld [vmem:[#allocation14 + $0xd4] ss:$8 sps:$4 sm:$0xff]  }
 0x4e8   :  { %6868 = vmatprep.subr.bf16.mxu0 %v8056_v26  ;;  %v8114_v26 = vld [vmem:[#allocation14 + $0xe0] ss:$8 sps:$4 sm:$0xff]  }
 0x55f   :  { %v4551_v42 = vpop.f32.mrb[8].mxu1 }
 0x560   :  { %v6979_v44 = vadd.f32 %v4551_v42, %v3333_v40  ;;  %v4553_v50 = vpop.f32.mrb[9].mxu1  ;;  %v8122_v42 = vld [vmem:[#allocation14 + $0x104] ss:$8 sps:$4 sm:$0xff]  }
 0x561   :  { %v6980_v19 = vadd.f32 %v4553_v50, %v3337_v41  ;;  %v4555_v45 = vpop.f32.mrb[10].mxu1  ;;  %v8145_v50 = vld [vmem:[#allocation17] sm:$0xff]  }
 0x562   :  { %v6981_v46 = vadd.f32 %v4555_v45, %v3333_v40  ;;  %v4557_v48 = vpop.f32.mrb[11].mxu1  ;;  %v4562_v29 = vmax.f32 %v6979_v44, 0.0  ;;  %v8119_v40 = vld [vmem:[#allocation14 + $0xf4] ss:$8 sps:$4 sm:$0xff]   ;;  %v8144_v44 = vld [vmem:[#allocation17 + $0x40] sm:$0xff]   ;;  %v8147_v45 = vld [vmem:[#allocation17 + $0x8] sm:$0xff]  }
 0x563   :  { %v6982_v49 = vadd.f32 %v4557_v48, %v3337_v41  ;;  %v4563_v56 = vmax.f32 %v6980_v19, 0.0  ;;  %v8117_v41 = vld [vmem:[#allocation14 + $0xf0] ss:$8 sps:$4 sm:$0xff]   ;;  %6912 = vmatprep.subr.bf16.mxu1 %v8144_v44 }
 0x564   :  { %v4566_v55 = vmax.f32 %v6981_v46, 0.0  ;;  %v8146_v19 = vld [vmem:[#allocation17 + $0x48] sm:$0xff]   ;;  %v8148_v46 = vld [vmem:[#allocation17 + $0x50] sm:$0xff]  }
 0x565   :  { %v4567_v57 = vmax.f32 %v6982_v49, 0.0  ;;  %v8149_v48 = vld [vmem:[#allocation17 + $0x10] sm:$0xff]   ;;  %v8150_v49 = vld [vmem:[#allocation17 + $0x58] sm:$0xff]  }
 0x566   :  { %v4570_v58 = vpack.c.bf16 %v4566_v55, %v4562_v29  ;;  %v8151_v29 = vld [vmem:[#allocation17 + $0x18] sm:$0xff]   ;;  %v8152_v55 = vld [vmem:[#allocation17 + $0x60] sm:$0xff]  }
 0x567   :  { %v4571_v59 = vpack.c.bf16 %v4567_v57, %v4563_v56  ;;  %v8153_v56 = vld [vmem:[#allocation17 + $0x20] sm:$0xff]   ;;  %v8154_v57 = vld [vmem:[#allocation17 + $0x68] sm:$0xff]  }
 0x569   :  { %5304 = vmatprep.mubr.bf16.mxu0 %v4571_v59  ;;  %5388 = vmatprep.mubr.bf16.mxu1 %v4571_v59 }
 0x56a   :  { %5305 = vmatmul.mubr.bf16.vlgmr.msra.gmra.mrb[8].mxu0 %v4570_v58  ;;  %5389 = vmatmul.mubr.bf16.vlgmr.msra.gmra.mrb[12].mxu1 %v4570_v58  ;;  %v4700_v58 = vld [vmem:[#allocation13] sm:$0x7] }
 0x56b   :  { %6869 = vmatpush3.bf16.msra.mxu0 %v8057_v60  ;;  %5347 = vmatprep.mubr.bf16.mxu0 %v8873_v0  ;;  %v8069_v0 = vld [vmem:[#allocation11 + $0x98] ss:$12 sps:$4 sm:$0xff]   ;;  %v4705_v59 = vrot.slane %v4700_v58, %v8816_v51  ;;  %v4709_v60 = vrot.slane %v4700_v58, %v8824_v53 }
 0x56c   :  { %6870 = vmatprep.subr.bf16.mxu0 %v8058_v61  ;;  %6913 = vmatpush3.bf16.msra.mxu1 %v8145_v50 }
 0x56d   :  { %6914 = vmatprep.subr.bf16.mxu1 %v8146_v19  ;;  %v8155_v19 = vld [vmem:[#allocation17 + $0x28] sm:$0xff]  }
 0x56f   :  { %6871 = vmatpush3.bf16.msra.mxu0 %v8059_v47 }
 0x570   :  { %6872 = vmatprep.subr.bf16.mxu0 %v8060_v54  ;;  %6915 = vmatpush3.bf16.msra.mxu1 %v8147_v45  ;;  %v8156_v45 = vld [vmem:[#allocation17 + $0x70] sm:$0xff]  }
 0x571   :  { %6916 = vmatprep.subr.bf16.mxu1 %v8148_v46  ;;  %v8157_v46 = vld [vmem:[#allocation17 + $0x30] sm:$0xff]  }
 0x573   :  { %6873 = vmatpush3.bf16.msra.mxu0 %v8061_v43 }
 0x574   :  { %6874 = vmatprep.subr.bf16.mxu0 %v8062_v62  ;;  %6917 = vmatpush3.bf16.msra.mxu1 %v8149_v48  ;;  %v8158_v48 = vld [vmem:[#allocation17 + $0x78] sm:$0xff]  }
 0x575   :  { %6918 = vmatprep.subr.bf16.mxu1 %v8150_v49  ;;  %v8159_v49 = vld [vmem:[#allocation17 + $0x38] sm:$0xff]  }
 0x577   :  { %6875 = vmatpush3.bf16.msra.mxu0 %v8063_v1 }
 0x578   :  { %6876 = vmatprep.subr.bf16.mxu0 %v8064_v2  ;;  %6919 = vmatpush3.bf16.msra.mxu1 %v8151_v29  ;;  %v8518_v29 = vmov 0.0  }
 0x579   :  { %6920 = vmatprep.subr.bf16.mxu1 %v8152_v55  ;;  %v5454_v55 = vld [vmem:[#allocation16] sm:$0x3] }
 0x57b   :  { %6877 = vmatpush3.bf16.msra.mxu0 %v8065_v3 }
 0x57c   :  { %6878 = vmatprep.subr.bf16.mxu0 %v8066_v4  ;;  %6921 = vmatpush3.bf16.msra.mxu1 %v8153_v56  ;;  %v5459_v56 = vrot.slane %v5454_v55, %v8816_v51  ;;  %v8161_v51 = vld [vmem:[#allocation20 + $0x8] sm:$0xff]  }
 0x57d   :  { %6922 = vmatprep.subr.bf16.mxu1 %v8154_v57  ;;  %v5463_v57 = vrot.slane %v5454_v55, %v8824_v53  ;;  %v8162_v53 = vld [vmem:[#allocation20 + $0x10] sm:$0xff]  }
 0x57f   :  { %6879 = vmatpush3.bf16.msra.mxu0 %v8067_v6 }
 0x580   :  { %6880 = vmatprep.subr.bf16.mxu0 %v8068_v7  ;;  %6923 = vmatpush3.bf16.msra.mxu1 %v8155_v19 }
 0x581   :  { %6924 = vmatprep.subr.bf16.mxu1 %v8156_v45 }
 0x583   :  { %6881 = vmatpush3.bf16.msra.mxu0 %v8069_v0 }
 0x584   :  { %6882 = vmatprep.subr.bf16.mxu0 %v8070_v8  ;;  %6925 = vmatpush3.bf16.msra.mxu1 %v8157_v46 }
 0x585   :  { %6926 = vmatprep.subr.bf16.mxu1 %v8158_v48 }
 0x587   :  { %6883 = vmatpush3.bf16.msra.mxu0 %v8071_v9 }
 0x588   :  { %5706 = vmatprep.subr.bf16.mxu0 %v8074_v10  ;;  %6927 = vmatpush3.bf16.msra.mxu1 %v8159_v49 }
 0x589   :  { %6943 = vmatprep.subr.bf16.mxu1 %v8518_v29 }
 0x58a   :  { %5348 = vmatmul.mubr.bf16.vlgmr.msra.gmra.mrb[12].mxu0 %v8871_v63  ;;  %v8092_v63 = vld [vmem:[#allocation14 + $0x64] ss:$8 sps:$4 sm:$0xff]  }
 0x58b   :  { %5707 = vmatpush1.bf16.msra.mxu0 %v8072_v12 }
 0x58c   :  { %5708 = vmatprep.subr.bf16.mxu0 %v8077_v31 }
 0x58f   :  { %5709 = vmatpush1.bf16.msra.mxu0 %v8075_v13 }
 0x590   :  { %5710 = vmatprep.subr.bf16.mxu0 %v8080_v20 }
 0x593   :  { %5711 = vmatpush1.bf16.msra.mxu0 %v8078_v14 }
 0x594   :  { %5712 = vmatprep.subr.bf16.mxu0 %v8083_v15  ;;  %v8120_v15 = vld [vmem:[#allocation14 + $0x100] ss:$8 sps:$4 sm:$0xff]  }
 0x597   :  { %5713 = vmatpush1.bf16.msra.mxu0 %v8081_v32  ;;  %v8125_v32 = vld [vmem:[#allocation14 + $0x114] ss:$8 sps:$4 sm:$0xff]  }
 0x598   :  { %5714 = vmatprep.subr.bf16.mxu0 %v8086_v21  ;;  %v8123_v21 = vld [vmem:[#allocation14 + $0x110] ss:$8 sps:$4 sm:$0xff]  }
 0x59b   :  { %5715 = vmatpush1.bf16.msra.mxu0 %v8084_v52  ;;  %v8517_v52 = vmov 0  }
 0x59c   :  { %5716 = vmatprep.subr.bf16.mxu0 %v8089_v11  ;;  %v8128_v11 = vld [vmem:[#allocation14 + $0x124] ss:$8 sps:$4 sm:$0xff]  }
 0x59f   :  { %5717 = vmatpush1.bf16.msra.mxu0 %v8087_v22  ;;  %v8126_v22 = vld [vmem:[#allocation14 + $0x120] ss:$8 sps:$4 sm:$0xff]  }
 0x5a0   :  { %5718 = vmatprep.subr.bf16.mxu0 %v8092_v63  ;;  %v8131_v63 = vld [vmem:[#allocation14 + $0x134] ss:$8 sps:$4 sm:$0xff]  }
 0x5a3   :  { %5719 = vmatpush1.bf16.msra.mxu0 %v8090_v23  ;;  %v8129_v23 = vld [vmem:[#allocation14 + $0x130] ss:$8 sps:$4 sm:$0xff]  }
 0x5a4   :  { %5720 = vmatprep.subr.bf16.mxu0 %v8095_v18  ;;  %v8134_v18 = vld [vmem:[#allocation14 + $0x144] ss:$8 sps:$4 sm:$0xff]  }
 0x5a7   :  { %5721 = vmatpush1.bf16.msra.mxu0 %v8093_v30  ;;  %v8132_v30 = vld [vmem:[#allocation14 + $0x140] ss:$8 sps:$4 sm:$0xff]  }
 0x5a8   :  { %5722 = vmatprep.subr.bf16.mxu0 %v8098_v27  ;;  %v8137_v27 = vld [vmem:[#allocation14 + $0x154] ss:$8 sps:$4 sm:$0xff]  }
 0x5ab   :  { %5723 = vmatpush1.bf16.msra.mxu0 %v8096_v28  ;;  %v8135_v28 = vld [vmem:[#allocation14 + $0x150] ss:$8 sps:$4 sm:$0xff]  }
 0x5ac   :  { %5724 = vmatprep.subr.bf16.mxu0 %v8101_v36  ;;  %v8140_v36 = vld [vmem:[#allocation14 + $0x164] ss:$8 sps:$4 sm:$0xff]  }
 0x5af   :  { %5725 = vmatpush1.bf16.msra.mxu0 %v8099_v16 }
 0x5b0   :  { %5726 = vmatprep.subr.bf16.mxu0 %v8104_v17  ;;  %v4713_v17 = vrot.slane %v4700_v58, %v8819_v24 }
 0x5b3   :  { %5727 = vmatpush1.bf16.msra.mxu0 %v8102_v33  ;;  %v8138_v33 = vld [vmem:[#allocation14 + $0x160] ss:$8 sps:$4 sm:$0xff]  }
 0x5b4   :  { %5728 = vmatprep.subr.bf16.mxu0 %v8107_v35 }
 0x5b7   :  { %5729 = vmatpush1.bf16.msra.mxu0 %v8105_v37  ;;  %v8143_v37 = vld [vmem:[#allocation14 + $0x174] ss:$8 sps:$4 sm:$0xff]  }
 0x5b8   :  { %5730 = vmatprep.subr.bf16.mxu0 %v8110_v38 }
 0x5bb   :  { %5731 = vmatpush1.bf16.msra.mxu0 %v8108_v5 }
 0x5bc   :  { %5732 = vmatprep.subr.bf16.mxu0 %v8113_v39 }
 0x5bf   :  { %5733 = vmatpush1.bf16.msra.mxu0 %v8111_v34 }
 0x5c0   :  { %5734 = vmatprep.subr.bf16.mxu0 %v8116_v25 }
 0x5c3   :  { %5735 = vmatpush1.bf16.msra.mxu0 %v8114_v26  ;;  %v8141_v26 = vld [vmem:[#allocation14 + $0x170] ss:$8 sps:$4 sm:$0xff]  }
 0x5c4   :  { %5736 = vmatprep.subr.bf16.mxu0 %v8119_v40 }
 0x5c7   :  { %5737 = vmatpush1.bf16.msra.mxu0 %v8117_v41 }
 0x5c8   :  { %5749 = vmatprep.subr.bf16.mxu0 %v8122_v42 }
 0x63d   :  { %v5306_v61 = vpop.f32.mrb[8].mxu0  ;;  %v6906_v47 = vpop.f32.mrb[12].mxu1 }
 0x63e   :  { %v6983_v54 = vadd.f32 %v5306_v61, %v4705_v59  ;;  %v5308_v43 = vpop.f32.mrb[9].mxu0  ;;  %v6907_v62 = vpop.f32.mrb[13].mxu1 }
 0x63f   :  { %v6984_v1 = vadd.f32 %v5308_v43, %v4709_v60  ;;  %v6908_v2 = vadd.f32 %v6907_v62, %v6906_v47  ;;  %v5310_v3 = vpop.f32.mrb[10].mxu0  ;;  %v6909_v4 = vpop.f32.mrb[14].mxu1 }
 0x640   :  { %v6985_v6 = vadd.f32 %v5310_v3, %v4705_v59  ;;  %v5312_v7 = vpop.f32.mrb[11].mxu0  ;;  %v6910_v0 = vpop.f32.mrb[15].mxu1  ;;  %v5397_v10 = vmax.f32 %v6983_v54, 0.0 }
 0x641   :  { %v6986_v8 = vadd.f32 %v5312_v7, %v4709_v60  ;;  %v6911_v9 = vadd.f32 %v6910_v0, %v6909_v4  ;;  %v5398_v31 = vmax.f32 %v6984_v1, 0.0  ;;  %v8160_v0 = vld [vmem:[#allocation20] sm:$0xff]  }
 0x642   :  { %v5400_v12 = vmax.f32 %v6985_v6, 0.0 }
 0x643   :  { %v5401_v13 = vmax.f32 %v6986_v8, 0.0  ;;  %v8163_v8 = vld [vmem:[#allocation20 + $0x18] sm:$0xff]  }
 0x644   :  { %v5403_v20 = vpack.c.bf16 %v5400_v12, %v5397_v10  ;;  %v8165_v10 = vld [vmem:[#allocation20 + $0x28] sm:$0xff]   ;;  %v8166_v12 = vld [vmem:[#allocation20 + $0x30] sm:$0xff]  }
 0x645   :  { %v5404_v14 = vpack.c.bf16 %v5401_v13, %v5398_v31  ;;  %v8167_v31 = vld [vmem:[#allocation20 + $0x38] sm:$0xff]  }
 0x647   :  { %5738 = vmatprep.mubr.bf16.mxu0 %v5404_v14 }
 0x648   :  { %5739 = vmatmul.mubr.bf16.vlgmr.msra.gmra.mrb[16].mxu0 %v5403_v20  ;;  %v6842_v20 = vld [vmem:[#allocation19] ss:$0 sm:$0xff] }
 0x649   :  { %5750 = vmatpush1.bf16.msra.mxu0 %v8120_v15  ;;  %5781 = vmatprep.mubr.bf16.mxu0 %v8517_v52 }
 0x64a   :  { %5751 = vmatprep.subr.bf16.mxu0 %v8125_v32 }
 0x64d   :  { %5752 = vmatpush1.bf16.msra.mxu0 %v8123_v21 }
 0x64e   :  { %5753 = vmatprep.subr.bf16.mxu0 %v8128_v11 }
 0x651   :  { %5754 = vmatpush1.bf16.msra.mxu0 %v8126_v22 }
 0x652   :  { %5755 = vmatprep.subr.bf16.mxu0 %v8131_v63 }
 0x655   :  { %5756 = vmatpush1.bf16.msra.mxu0 %v8129_v23 }
 0x656   :  { %5757 = vmatprep.subr.bf16.mxu0 %v8134_v18 }
 0x659   :  { %5758 = vmatpush1.bf16.msra.mxu0 %v8132_v30  ;;  %v6859_v30 = vld [vmem:[#allocation22] ss:$0 sm:$0xff] }
 0x65a   :  { %5759 = vmatprep.subr.bf16.mxu0 %v8137_v27 }
 0x65d   :  { %v6884_v16 = vpop.f32.mrb[12].mxu0  ;;  %5760 = vmatpush1.bf16.msra.mxu0 %v8135_v28 }
 0x65e   :  { %v6885_v35 = vpop.f32.mrb[13].mxu0  ;;  %5761 = vmatprep.subr.bf16.mxu0 %v8140_v36 }
 0x65f   :  { %v6886_v38 = vadd.f32 %v6885_v35, %v6884_v16  ;;  %v6887_v5 = vpop.f32.mrb[14].mxu0 }
 0x660   :  { %v6888_v39 = vpop.f32.mrb[15].mxu0 }
 0x661   :  { %v5350_v34 = vadd.f32 %v6886_v38, %v4713_v17  ;;  %v6889_v25 = vadd.f32 %v6888_v39, %v6887_v5  ;;  %5762 = vmatpush1.bf16.msra.mxu0 %v8138_v33 }
 0x662   :  { %5763 = vmatprep.subr.bf16.mxu0 %v8143_v37 }
 0x663   :  { %v5391_v40 = vadd.f32 %v6908_v2, %v5350_v34  ;;  %v5353_v41 = vadd.f32 %v6889_v25, %v4713_v17 }
 0x665   :  { %v5394_v42 = vadd.f32 %v6911_v9, %v5353_v41  ;;  %5764 = vmatpush1.bf16.msra.mxu0 %v8141_v26  ;;  %v5399_v44 = vmax.f32 %v5391_v40, 0.0  ;;  %v8164_v9 = vld [vmem:[#allocation20 + $0x20] sm:$0xff]  }
 0x667   :  { %v5402_v50 = vmax.f32 %v5394_v42, 0.0 }
 0x669   :  { %v5405_v24 = vpack.c.bf16 %v5402_v50, %v5399_v44 }
 0x66b   :  { %5782 = vmatmul.mubr.bf16.vlgmr.msra.gmra.mrb[16].mxu0 %v5405_v24 }
 0x73e   :  { %v5783_v58 = vpop.f32.mrb[16].mxu0 }
 0x73f   :  { %v6987_v59 = vadd.f32 %v5783_v58, %v5459_v56  ;;  %v5785_v60 = vpop.f32.mrb[17].mxu0 }
 0x740   :  { %v6988_v61 = vadd.f32 %v5785_v60, %v5463_v57  ;;  %v5787_v47 = vpop.f32.mrb[18].mxu0 }
 0x741   :  { %v6989_v54 = vadd.f32 %v5787_v47, %v5459_v56  ;;  %v5789_v43 = vpop.f32.mrb[19].mxu0  ;;  %v5792_v1 = vmax.f32 %v6987_v59, 0.0 }
 0x742   :  { %v6990_v62 = vadd.f32 %v5789_v43, %v5463_v57  ;;  %v5793_v3 = vmax.f32 %v6988_v61, 0.0 }
 0x743   :  { %v5794_v2 = vmax.f32 %v6989_v54, 0.0 }
 0x744   :  { %v5795_v4 = vmax.f32 %v6990_v62, 0.0 }
 0x745   :  { %v5796_v6 = vpack.c.bf16 %v5794_v2, %v5792_v1 }
 0x746   :  { %v5797_v7 = vpack.c.bf16 %v5795_v4, %v5793_v3 }
 0x748   :  { %5965 = vmatprep.mubr.bf16.mxu1 %v5797_v7 }
 0x749   :  { %5966 = vmatmul.mubr.bf16.vlgmr.msra.gmra.mrb[16].mxu1 %v5796_v6 }
 0x74a   :  { %6944 = vmatpush3.bf16.msra.mxu1 %v8160_v0  ;;  %6959 = vmatprep.mubr.msk.bf16.mxu1 %vm8519_vm0, %v8518_v29 }
 0x74b   :  { %6945 = vmatprep.subr.bf16.mxu1 %v8518_v29 }
 0x74e   :  { %6946 = vmatpush3.bf16.msra.mxu1 %v8161_v51 }
 0x74f   :  { %6947 = vmatprep.subr.bf16.mxu1 %v8518_v29 }
 0x752   :  { %6948 = vmatpush3.bf16.msra.mxu1 %v8162_v53 }
 0x753   :  { %6949 = vmatprep.subr.bf16.mxu1 %v8518_v29 }
 0x756   :  { %6950 = vmatpush3.bf16.msra.mxu1 %v8163_v8 }
 0x757   :  { %6951 = vmatprep.subr.bf16.mxu1 %v8518_v29 }
 0x75a   :  { %6952 = vmatpush3.bf16.msra.mxu1 %v8164_v9 }
 0x75b   :  { %6953 = vmatprep.subr.bf16.mxu1 %v8518_v29 }
 0x75e   :  { %6954 = vmatpush3.bf16.msra.mxu1 %v8165_v10 }
 0x75f   :  { %6955 = vmatprep.subr.bf16.mxu1 %v8518_v29 }
 0x762   :  { %6956 = vmatpush3.bf16.msra.mxu1 %v8166_v12 }
 0x763   :  { %6957 = vmatprep.subr.bf16.mxu1 %v8518_v29 }
 0x766   :  { %6958 = vmatpush3.bf16.msra.mxu1 %v8167_v31 }
 0x81c   :  { %v6928_v13 = vpop.f32.mrb[16].mxu1 }
 0x81d   :  { %v6929_v14 = vpop.f32.mrb[17].mxu1 }
 0x81e   :  { %v6930_v15 = vadd.f32 %v6929_v14, %v6928_v13  ;;  %v6931_v32 = vpop.f32.mrb[18].mxu1 }
 0x81f   :  { %v6932_v21 = vpop.f32.mrb[19].mxu1 }
 0x820   :  { %v5968_v52 = vadd.f32 %v6930_v15, %v6842_v20  ;;  %v6933_v11 = vadd.f32 %v6932_v21, %v6931_v32 }
 0x822   :  { %v5971_v22 = vadd.f32 %v6933_v11, %v6842_v20  ;;  %v5974_v63 = vmax.f32 %v5968_v52, 0.0 }
 0x824   :  { %v5975_v23 = vmax.f32 %v5971_v22, 0.0 }
 0x826   :  { %v5976_v18 = vpack.c.bf16 %v5975_v23, %v5974_v63 }
 0x828   :  { %6960 = vmatmul.mubr.bf16.vlgmr.msra.gmra.mrb[20].mxu1 %v5976_v18 }
 0x8fb   :  { %v6082_v27 = vpop.f32.mrb[20].mxu1 }
 0x8fc   :  { %v6083_v28 = vadd.f32 %v6859_v30, %v6082_v27  ;;  %v6961_v36 = vpop.f32.mrb[21].mxu1 }
 0x8fd   :  { %v6085_v16 = vpop.f32.mrb[22].mxu1 }
 0x8fe   :  { %6089 = vst [vmem:[#allocation23] sm:$0xff] %v6083_v28  ;;  %v6086_v17 = vadd.f32 %v6859_v30, %v6085_v16  ;;  %v6962_v33 = vpop.f32.mrb[23].mxu1 }
 0x900   :  { %6090 = vst [vmem:[#allocation23 + $0x8] sm:$0xff] %v6086_v17 }
 0x901   :  { %8465 = shalt.err (!%p8462_p10)
}
 0x902   :  { %s8466_s29 = scalar_lea.hbm %s8917_s13, 256 }
 0x903   :  { %p8467_p11 = scmp.ne.s32.totalorder %s8917_s13, %s8466_s29  ;;  %p8470_p12 = scmp.lt.u32.totalorder %s8466_s29, %s8917_s13 }
 0x905   :  { %p8472_p13 = pnand %p8470_p12, %p8467_p11 }
 0x907   :  { %8475 = shalt.err (!%p8472_p13)
}
 0x908   :  { %6102 = dma.vmem_to_hbm [thread:$0]  %s6097_s3, 256, %s8917_s13, [#allocation4], %s8502_s5, %s8502_s5, %s8503_s19  }
 0x909   :  { %8490 = dma.done.wait [#allocation4], 256  }
 0x90a   :  { %8491 = vsyncadd [#allocation4], 4294967040 }
 0x90b   :  { %6106 = vsyncpa [#allocation3], 1 }
 0x90c   :  { %6107 = vsyncpa [#allocation6], 1 }
 0x90d   :  { %6108 = vsyncpa [#allocation9], 1 }
 0x90e   :  { %6109 = vsyncpa [#allocation12], 1 }
 0x90f   :  { %6110 = vsyncpa [#allocation15], 1 }
 0x910   :  { %6111 = vsyncpa [#allocation18], 1 }
 0x911   :  { %6112 = vsyncpa [#allocation21], 1 }
 0x912   :  { %6113 = vsyncpa [#allocation4], 1 }

// kernel: tpu_custom_call.1
= control target key start
LH: loop header
LB: loop body
LE: loop exit
PB: predicated region body
PF: predicated region fallthrough
CT: control target
= control target key end

     0   :  { %18 = vsyncpa [#allocation3], 0  ;;  %s8904_s0 = inlined_call_operand.hbm [shape: bf16[16,1024], index: 0, kind: input, shape index: {}]   ;;  %s8905_s1 = inlined_call_operand.hbm [shape: bf16[1024,768], index: 1, kind: input, shape index: {}]   ;;  %s8906_s2 = inlined_call_operand.hbm [shape: f32[1,768], index: 2, kind: input, shape index: {}]   ;;  %s8907_s3 = inlined_call_operand.hbm [shape: bf16[768,512], index: 3, kind: input, shape index: {}]   ;;  %s8908_s4 = inlined_call_operand.hbm [shape: f32[1,512], index: 4, kind: input, shape index: {}]   ;;  %s8909_s5 = inlined_call_operand.hbm [shape: bf16[512,384], index: 5, kind: input, shape index: {}]   ;;  %s8910_s6 = inlined_call_operand.hbm [shape: f32[1,384], index: 6, kind: input, shape index: {}]   ;;  %s8911_s7 = inlined_call_operand.hbm [shape: bf16[384,256], index: 7, kind: input, shape index: {}]   ;;  %s8912_s8 = inlined_call_operand.hbm [shape: f32[1,256], index: 8, kind: input, shape index: {}]   ;;  %s8913_s9 = inlined_call_operand.hbm [shape: bf16[256,128], index: 9, kind: input, shape index: {}]   ;;  %s8914_s10 = inlined_call_operand.hbm [shape: f32[1,128], index: 10, kind: input, shape index: {}]   ;;  %s8915_s11 = inlined_call_operand.hbm [shape: bf16[128,128], index: 11, kind: input, shape index: {}]   ;;  %s8916_s12 = inlined_call_operand.hbm [shape: f32[1,128], index: 12, kind: input, shape index: {}]   ;;  %s8917_s13 = inlined_call_operand.hbm [shape: f32[16,128], index: 13, kind: output, shape index: {}]  }
   0x1   :  { %19 = vsyncpa [#allocation6], 0 }
   0x2   :  { %20 = vsyncpa [#allocation9], 0 }
   0x3   :  { %21 = vsyncpa [#allocation12], 0 }
   0x4   :  { %22 = vsyncpa [#allocation15], 0 }
   0x5   :  { %23 = vsyncpa [#allocation18], 0 }
   0x6   :  { %24 = vsyncpa [#allocation21], 0 }
   0x7   :  { %25 = vsyncpa [#allocation4], 0  ;;  %s8492_s25 = smov [#allocation5]   ;;  %s8168_s29 = scalar_lea.hbm %s8905_s1, 49152 }
   0x8   :  { %s43_s26 = sshll.u32 %s8492_s25, 4  ;;  %p8169_p0 = scmp.ne.s32.totalorder %s8905_s1, %s8168_s29  ;;  %s44_s26 = int_to_ptr.vmem [resolvable:$true] %s43_s26 }
   0x9   :  { %p8172_p1 = scmp.lt.u32.totalorder %s8168_s29, %s8905_s1 }
   0xb   :  { %p8174_p2 = pnand %p8172_p1, %p8169_p0 }
   0xd   :  { %8177 = shalt.err (!%p8174_p2)
}
   0xe   :  { %s8178_s17 = scalar_lea.vmem %s44_s26, 49152  ;;  %p8183_p4 = scmp.lt.s32.totalorder %s44_s26, %s44_s26 }
   0xf   :  { %p8179_p3 = scmp.ne.s32.totalorder %s44_s26, %s8178_s17  ;;  %p8184_p5 = scmp.lt.s32.totalorder %s8178_s17, %s8178_s17 }
  0x11   :  { %p8185_p6 = por %p8184_p5, %p8183_p4 }
  0x13   :  { %p8186_p7 = pnand %p8185_p6, %p8179_p3 }
  0x15   :  { %8189 = shalt.err (!%p8186_p7)
}
  0x16   :  { %s8493_s18 = smov 384   ;;  %s8494_s19 = smov 24  }
  0x17   :  { %49 = dma.hbm_to_vmem [thread:$0]  %s8905_s1, 49152, %s44_s26, [#allocation6], %s8493_s18, %s8493_s18, %s8494_s19  }
  0x18   :  { %s8495_s22 = smov [#allocation8]   ;;  %s8190_s27 = scalar_lea.hbm %s8907_s3, 24576 }
  0x19   :  { %s65_s23 = sshll.u32 %s8495_s22, 4  ;;  %p8191_p8 = scmp.ne.s32.totalorder %s8907_s3, %s8190_s27  ;;  %s66_s23 = int_to_ptr.vmem [resolvable:$true] %s65_s23 }
  0x1a   :  { %p8194_p9 = scmp.lt.u32.totalorder %s8190_s27, %s8907_s3 }
  0x1c   :  { %p8196_p10 = pnand %p8194_p9, %p8191_p8 }
  0x1e   :  { %8199 = shalt.err (!%p8196_p10)
}
  0x1f   :  { %s8200_s15 = scalar_lea.vmem %s66_s23, 24576  ;;  %p8205_p12 = scmp.lt.s32.totalorder %s66_s23, %s66_s23 }
  0x20   :  { %p8201_p11 = scmp.ne.s32.totalorder %s66_s23, %s8200_s15  ;;  %p8206_p13 = scmp.lt.s32.totalorder %s8200_s15, %s8200_s15 }
  0x22   :  { %p8207_p0 = por %p8206_p13, %p8205_p12 }
  0x24   :  { %p8208_p1 = pnand %p8207_p0, %p8201_p11 }
  0x26   :  { %8211 = shalt.err (!%p8208_p1)
}
  0x27   :  { %s8496_s1 = smov 256   ;;  %s8497_s26 = smov 16  }
  0x28   :  { %71 = dma.hbm_to_vmem [thread:$0]  %s8907_s3, 24576, %s66_s23, [#allocation9], %s8496_s1, %s8496_s1, %s8497_s26  }
  0x29   :  { %s8498_s18 = smov [#allocation11]   ;;  %s8212_s22 = scalar_lea.hbm %s8909_s5, 12288 }
  0x2a   :  { %s87_s19 = sshll.u32 %s8498_s18, 4  ;;  %p8213_p2 = scmp.ne.s32.totalorder %s8909_s5, %s8212_s22  ;;  %s88_s19 = int_to_ptr.vmem [resolvable:$true] %s87_s19 }
  0x2b   :  { %p8216_p3 = scmp.lt.u32.totalorder %s8212_s22, %s8909_s5 }
  0x2d   :  { %p8218_p4 = pnand %p8216_p3, %p8213_p2 }
  0x2f   :  { %8221 = shalt.err (!%p8218_p4)
}
  0x30   :  { %s8222_s29 = scalar_lea.vmem %s88_s19, 12288  ;;  %p8227_p6 = scmp.lt.s32.totalorder %s88_s19, %s88_s19 }
  0x31   :  { %p8223_p5 = scmp.ne.s32.totalorder %s88_s19, %s8222_s29  ;;  %p8228_p7 = scmp.lt.s32.totalorder %s8222_s29, %s8222_s29 }
  0x33   :  { %p8229_p8 = por %p8228_p7, %p8227_p6 }
  0x35   :  { %p8230_p9 = pnand %p8229_p8, %p8223_p5 }
  0x37   :  { %8233 = shalt.err (!%p8230_p9)
}
  0x38   :  { %s8499_s3 = smov 192   ;;  %s8500_s23 = smov 12  }
  0x39   :  { %93 = dma.hbm_to_vmem [thread:$0]  %s8909_s5, 12288, %s88_s19, [#allocation12], %s8499_s3, %s8499_s3, %s8500_s23  }
  0x3a   :  { %s8501_s15 = smov [#allocation14]   ;;  %s8234_s17 = scalar_lea.hbm %s8911_s7, 6144 }
  0x3b   :  { %s109_s1 = sshll.u32 %s8501_s15, 4  ;;  %p8235_p10 = scmp.ne.s32.totalorder %s8911_s7, %s8234_s17  ;;  %s110_s1 = int_to_ptr.vmem [resolvable:$true] %s109_s1 }
  0x3c   :  { %p8238_p11 = scmp.lt.u32.totalorder %s8234_s17, %s8911_s7 }
  0x3e   :  { %p8240_p12 = pnand %p8238_p11, %p8235_p10 }
  0x40   :  { %8243 = shalt.err (!%p8240_p12)
}
  0x41   :  { %s8244_s24 = scalar_lea.vmem %s110_s1, 6144  ;;  %p8249_p0 = scmp.lt.s32.totalorder %s110_s1, %s110_s1 }
  0x42   :  { %p8245_p13 = scmp.ne.s32.totalorder %s110_s1, %s8244_s24  ;;  %p8250_p1 = scmp.lt.s32.totalorder %s8244_s24, %s8244_s24 }
  0x44   :  { %p8251_p2 = por %p8250_p1, %p8249_p0 }
  0x46   :  { %p8252_p3 = pnand %p8251_p2, %p8245_p13 }
  0x48   :  { %8255 = shalt.err (!%p8252_p3)
}
  0x49   :  { %s8502_s5 = smov 128   ;;  %s8503_s19 = smov 8  }
  0x4a   :  { %115 = dma.hbm_to_vmem [thread:$0]  %s8911_s7, 6144, %s110_s1, [#allocation15], %s8502_s5, %s8502_s5, %s8503_s19  }
  0x4b   :  { %s8504_s28 = smov [#allocation17]   ;;  %s8256_s30 = scalar_lea.hbm %s8913_s9, 2048 }
  0x4c   :  { %s131_s29 = sshll.u32 %s8504_s28, 4  ;;  %p8257_p4 = scmp.ne.s32.totalorder %s8913_s9, %s8256_s30  ;;  %s132_s29 = int_to_ptr.vmem [resolvable:$true] %s131_s29 }
  0x4d   :  { %p8260_p5 = scmp.lt.u32.totalorder %s8256_s30, %s8913_s9 }
  0x4f   :  { %p8262_p6 = pnand %p8260_p5, %p8257_p4 }
  0x51   :  { %8265 = shalt.err (!%p8262_p6)
}
  0x52   :  { %s8266_s17 = scalar_lea.vmem %s132_s29, 2048  ;;  %p8271_p8 = scmp.lt.s32.totalorder %s132_s29, %s132_s29 }
  0x53   :  { %p8267_p7 = scmp.ne.s32.totalorder %s132_s29, %s8266_s17  ;;  %p8272_p9 = scmp.lt.s32.totalorder %s8266_s17, %s8266_s17 }
  0x55   :  { %p8273_p10 = por %p8272_p9, %p8271_p8 }
  0x57   :  { %p8274_p11 = pnand %p8273_p10, %p8267_p7 }
  0x59   :  { %8277 = shalt.err (!%p8274_p11)
}
  0x5a   :  { %s8505_s7 = smov 64   ;;  %s8506_s1 = smov 4  }
  0x5b   :  { %137 = dma.hbm_to_vmem [thread:$0]  %s8913_s9, 2048, %s132_s29, [#allocation18], %s8505_s7, %s8505_s7, %s8506_s1  }
  0x5c   :  { %s8507_s21 = smov [#allocation20]   ;;  %s8508_s24 = smov [#allocation2]  }
  0x5d   :  { %s153_s22 = sshll.u32 %s8507_s21, 4  ;;  %s31_s25 = sshll.u32 %s8508_s24, 4  ;;  %s154_s22 = int_to_ptr.vmem [resolvable:$true] %s153_s22  ;;  %s32_s25 = int_to_ptr.vmem [resolvable:$true] %s31_s25 }
  0x5e   :  { %s8278_s3 = scalar_lea.hbm %s8915_s11, 1024 }
  0x5f   :  { %p8279_p12 = scmp.ne.s32.totalorder %s8915_s11, %s8278_s3  ;;  %p8282_p13 = scmp.lt.u32.totalorder %s8278_s3, %s8915_s11 }
  0x61   :  { %p8284_p0 = pnand %p8282_p13, %p8279_p12 }
  0x63   :  { %8287 = shalt.err (!%p8284_p0)
}
  0x64   :  { %s8288_s9 = scalar_lea.vmem %s154_s22, 1024  ;;  %p8293_p2 = scmp.lt.s32.totalorder %s154_s22, %s154_s22 }
  0x65   :  { %p8289_p1 = scmp.ne.s32.totalorder %s154_s22, %s8288_s9  ;;  %p8294_p3 = scmp.lt.s32.totalorder %s8288_s9, %s8288_s9 }
  0x67   :  { %p8295_p4 = por %p8294_p3, %p8293_p2 }
  0x69   :  { %p8296_p5 = pnand %p8295_p4, %p8289_p1 }
  0x6b   :  { %8299 = shalt.err (!%p8296_p5)
}
  0x6c   :  { %159 = dma.hbm_to_vmem [thread:$0]  %s8915_s11, 1024, %s154_s22, [#allocation21], %s8505_s7, %s8505_s7, %s8506_s1  }
  0x6d   :  { %s8300_s18 = scalar_lea.hbm %s8904_s0, 1024 }
  0x6e   :  { %p8301_p6 = scmp.ne.s32.totalorder %s8904_s0, %s8300_s18  ;;  %p8304_p7 = scmp.lt.u32.totalorder %s8300_s18, %s8904_s0 }
  0x70   :  { %p8306_p8 = pnand %p8304_p7, %p8301_p6 }
  0x72   :  { %8309 = shalt.err (!%p8306_p8)
}
  0x73   :  { %s8310_s28 = scalar_lea.vmem %s32_s25, 1024  ;;  %p8315_p10 = scmp.lt.s32.totalorder %s32_s25, %s32_s25 }
  0x74   :  { %p8311_p9 = scmp.ne.s32.totalorder %s32_s25, %s8310_s28  ;;  %p8316_p11 = scmp.lt.s32.totalorder %s8310_s28, %s8310_s28 }
  0x76   :  { %p8317_p12 = por %p8316_p11, %p8315_p10 }
  0x78   :  { %p8318_p13 = pnand %p8317_p12, %p8311_p9 }
  0x7a   :  { %8321 = shalt.err (!%p8318_p13)
}
  0x7b   :  { %s8509_s11 = smov 512   ;;  %s8510_s7 = smov 32  }
  0x7c   :  { %37 = dma.hbm_to_vmem [thread:$0]  %s8904_s0, 1024, %s32_s25, [#allocation3], %s8509_s11, %s8509_s11, %s8510_s7  }
  0x7d   :  { %s8511_s3 = smov [#allocation7]   ;;  %s8512_s30 = smov [#allocation10]  }
  0x7e   :  { %s56_s23 = sshll.u32 %s8511_s3, 4  ;;  %s78_s14 = sshll.u32 %s8512_s30, 4  ;;  %s57_s23 = int_to_ptr.vmem [resolvable:$true] %s56_s23  ;;  %s79_s14 = int_to_ptr.vmem [resolvable:$true] %s78_s14 }
  0x7f   :  { %s8322_s29 = scalar_lea.hbm %s8906_s2, 96 }
  0x80   :  { %p8323_p0 = scmp.ne.s32.totalorder %s8906_s2, %s8322_s29  ;;  %p8326_p1 = scmp.lt.u32.totalorder %s8322_s29, %s8906_s2 }
  0x82   :  { %p8328_p2 = pnand %p8326_p1, %p8323_p0 }
  0x84   :  { %8331 = shalt.err (!%p8328_p2)
}
  0x85   :  { %s8332_s0 = scalar_lea.vmem %s57_s23, 96  ;;  %p8337_p4 = scmp.lt.s32.totalorder %s57_s23, %s57_s23 }
  0x86   :  { %p8333_p3 = scmp.ne.s32.totalorder %s57_s23, %s8332_s0  ;;  %p8338_p5 = scmp.lt.s32.totalorder %s8332_s0, %s8332_s0 }
  0x88   :  { %p8339_p6 = por %p8338_p5, %p8337_p4 }
  0x8a   :  { %p8340_p7 = pnand %p8339_p6, %p8333_p3 }
  0x8c   :  { %8343 = shalt.err (!%p8340_p7)
}
  0x8d   :  { %59 = dma.hbm_to_vmem [thread:$0]  %s8906_s2, 96, %s57_s23, [#allocation6]  }
  0x8e   :  { %s8344_s27 = scalar_lea.hbm %s8908_s4, 64 }
  0x8f   :  { %p8345_p8 = scmp.ne.s32.totalorder %s8908_s4, %s8344_s27  ;;  %p8348_p9 = scmp.lt.u32.totalorder %s8344_s27, %s8908_s4 }
  0x91   :  { %p8350_p10 = pnand %p8348_p9, %p8345_p8 }
  0x93   :  { %8353 = shalt.err (!%p8350_p10)
}
  0x94   :  { %s8354_s22 = scalar_lea.vmem %s79_s14, 64  ;;  %p8359_p12 = scmp.lt.s32.totalorder %s79_s14, %s79_s14 }
  0x95   :  { %p8355_p11 = scmp.ne.s32.totalorder %s79_s14, %s8354_s22  ;;  %p8360_p13 = scmp.lt.s32.totalorder %s8354_s22, %s8354_s22 }
  0x97   :  { %p8361_p0 = por %p8360_p13, %p8359_p12 }
  0x99   :  { %p8362_p1 = pnand %p8361_p0, %p8355_p11 }
  0x9b   :  { %8365 = shalt.err (!%p8362_p1)
}
  0x9c   :  { %81 = dma.hbm_to_vmem [thread:$0]  %s8908_s4, 64, %s79_s14, [#allocation9]  }
  0x9d   :  { %s8513_s23 = smov [#allocation13]   ;;  %s8514_s15 = smov [#allocation16]  }
  0x9e   :  { %s100_s30 = sshll.u32 %s8513_s23, 4  ;;  %s122_s9 = sshll.u32 %s8514_s15, 4  ;;  %s101_s30 = int_to_ptr.vmem [resolvable:$true] %s100_s30  ;;  %s123_s9 = int_to_ptr.vmem [resolvable:$true] %s122_s9 }
  0x9f   :  { %s8366_s16 = scalar_lea.hbm %s8910_s6, 48 }
  0xa0   :  { %p8367_p2 = scmp.ne.s32.totalorder %s8910_s6, %s8366_s16  ;;  %p8370_p3 = scmp.lt.u32.totalorder %s8366_s16, %s8910_s6 }
  0xa2   :  { %p8372_p4 = pnand %p8370_p3, %p8367_p2 }
  0xa4   :  { %8375 = shalt.err (!%p8372_p4)
}
  0xa5   :  { %s8376_s4 = scalar_lea.vmem %s101_s30, 48  ;;  %s8380_s14 = scalar_lea.vmem %s101_s30, 64 }
  0xa6   :  { %p8377_p5 = scmp.ne.s32.totalorder %s101_s30, %s8376_s4  ;;  %p8381_p6 = scmp.lt.s32.totalorder %s101_s30, %s101_s30 }
  0xa7   :  { %p8382_p7 = scmp.lt.s32.totalorder %s8380_s14, %s8376_s4 }
  0xa9   :  { %p8383_p8 = por %p8382_p7, %p8381_p6 }
  0xab   :  { %p8384_p9 = pnand %p8383_p8, %p8377_p5 }
  0xad   :  { %8387 = shalt.err (!%p8384_p9)
}
  0xae   :  { %103 = dma.hbm_to_vmem [thread:$0]  %s8910_s6, 48, %s101_s30, [#allocation12]  }
  0xaf   :  { %s8388_s28 = scalar_lea.hbm %s8912_s8, 32 }
  0xb0   :  { %p8389_p10 = scmp.ne.s32.totalorder %s8912_s8, %s8388_s28  ;;  %p8392_p11 = scmp.lt.u32.totalorder %s8388_s28, %s8912_s8 }
  0xb2   :  { %p8394_p12 = pnand %p8392_p11, %p8389_p10 }
  0xb4   :  { %8397 = shalt.err (!%p8394_p12)
}
  0xb5   :  { %s8398_s2 = scalar_lea.vmem %s123_s9, 32  ;;  %p8403_p0 = scmp.lt.s32.totalorder %s123_s9, %s123_s9 }
  0xb6   :  { %p8399_p13 = scmp.ne.s32.totalorder %s123_s9, %s8398_s2  ;;  %p8404_p1 = scmp.lt.s32.totalorder %s8398_s2, %s8398_s2 }
  0xb8   :  { %p8405_p2 = por %p8404_p1, %p8403_p0 }
  0xba   :  { %p8406_p3 = pnand %p8405_p2, %p8399_p13 }
  0xbc   :  { %8409 = shalt.err (!%p8406_p3)
}
  0xbd   :  { %125 = dma.hbm_to_vmem [thread:$0]  %s8912_s8, 32, %s123_s9, [#allocation15]  }
  0xbe   :  { %s8515_s23 = smov [#allocation19]   ;;  %s8516_s15 = smov [#allocation22]  }
  0xbf   :  { %s144_s30 = sshll.u32 %s8515_s23, 4  ;;  %s166_s29 = sshll.u32 %s8516_s15, 4  ;;  %s145_s30 = int_to_ptr.vmem [resolvable:$true] %s144_s30  ;;  %s167_s29 = int_to_ptr.vmem [resolvable:$true] %s166_s29 }
  0xc0   :  { %s8410_s17 = scalar_lea.hbm %s8914_s10, 16 }
  0xc1   :  { %p8411_p4 = scmp.ne.s32.totalorder %s8914_s10, %s8410_s17  ;;  %p8414_p5 = scmp.lt.u32.totalorder %s8410_s17, %s8914_s10 }
  0xc3   :  { %p8416_p6 = pnand %p8414_p5, %p8411_p4 }
  0xc5   :  { %8419 = shalt.err (!%p8416_p6)
}
  0xc6   :  { %s8420_s8 = scalar_lea.vmem %s145_s30, 16  ;;  %s8424_s9 = scalar_lea.vmem %s145_s30, 32 }
  0xc7   :  { %p8421_p7 = scmp.ne.s32.totalorder %s145_s30, %s8420_s8  ;;  %p8425_p8 = scmp.lt.s32.totalorder %s145_s30, %s145_s30 }
  0xc8   :  { %p8426_p9 = scmp.lt.s32.totalorder %s8424_s9, %s8420_s8 }
  0xca   :  { %p8427_p10 = por %p8426_p9, %p8425_p8 }
  0xcc   :  { %p8428_p11 = pnand %p8427_p10, %p8421_p7 }
  0xce   :  { %8431 = shalt.err (!%p8428_p11)
}
  0xcf   :  { %147 = dma.hbm_to_vmem [thread:$0]  %s8914_s10, 16, %s145_s30, [#allocation18]  }
  0xd0   :  { %s8432_s27 = scalar_lea.hbm %s8916_s12, 16 }
  0xd1   :  { %p8433_p12 = scmp.ne.s32.totalorder %s8916_s12, %s8432_s27  ;;  %p8436_p13 = scmp.lt.u32.totalorder %s8432_s27, %s8916_s12 }
  0xd3   :  { %p8438_p0 = pnand %p8436_p13, %p8433_p12 }
  0xd5   :  { %8441 = shalt.err (!%p8438_p0)
}
  0xd6   :  { %s8442_s22 = scalar_lea.vmem %s167_s29, 16  ;;  %s8446_s2 = scalar_lea.vmem %s167_s29, 32 }
  0xd7   :  { %p8443_p1 = scmp.ne.s32.totalorder %s167_s29, %s8442_s22  ;;  %p8447_p2 = scmp.lt.s32.totalorder %s167_s29, %s167_s29 }
  0xd8   :  { %p8448_p3 = scmp.lt.s32.totalorder %s8446_s2, %s8442_s22 }
  0xda   :  { %p8449_p4 = por %p8448_p3, %p8447_p2 }
  0xdc   :  { %p8450_p5 = pnand %p8449_p4, %p8443_p1 }
  0xde   :  { %8453 = shalt.err (!%p8450_p5)
}
  0xdf   :  { %169 = dma.hbm_to_vmem [thread:$0]  %s8916_s12, 16, %s167_s29, [#allocation21]  }
  0xe0   :  { %8476 = dma.done.wait [#allocation3], 1024  }
  0xe1   :  { %8477 = vsyncadd [#allocation3], 4294966272 }
  0xe2   :  { %8478 = dma.done.wait [#allocation6], 49248  }
  0xe3   :  { %8479 = vsyncadd [#allocation6], 4294918048 }
  0xe4   :  { %8480 = dma.done.wait [#allocation9], 24640  }
  0xe5   :  { %8481 = vsyncadd [#allocation9], 4294942656 }
  0xe6   :  { %8482 = dma.done.wait [#allocation12], 12336  }
  0xe7   :  { %8483 = vsyncadd [#allocation12], 4294954960 }
  0xe8   :  { %8484 = dma.done.wait [#allocation15], 6176  }
  0xe9   :  { %8485 = vsyncadd [#allocation15], 4294961120 }
  0xea   :  { %8486 = dma.done.wait [#allocation18], 2064  }
  0xeb   :  { %8487 = vsyncadd [#allocation18], 4294965232 }
  0xec   :  { %8488 = dma.done.wait [#allocation21], 1040  }
  0xed   :  { %8489 = vsyncadd [#allocation21], 4294966256  ;;  %v7080_v0 = vld [vmem:[#allocation5 + $0x4] ss:$24 sps:$4 sm:$0xff]   ;;  %v7084_v2 = vld [vmem:[#allocation5] ss:$24 sps:$4 sm:$0xff]  }
  0xee   :  { %v7082_v1 = vld [vmem:[#allocation5 + $0xc] ss:$24 sps:$4 sm:$0xff]   ;;  %2594 = vmatprep.subr.bf16.mxu0 %v7080_v0  ;;  %v7085_v3 = vld [vmem:[#allocation5 + $0x8] ss:$24 sps:$4 sm:$0xff]   ;;  %v7088_v5 = vld [vmem:[#allocation5 + $0x3c] ss:$24 sps:$4 sm:$0xff]  }
  0xef   :  { %2766 = vmatprep.subr.bf16.mxu1 %v7082_v1  ;;  %v7086_v4 = vld [vmem:[#allocation5 + $0x34] ss:$24 sps:$4 sm:$0xff]   ;;  %2595 = vmatpush1.bf16.msra.mxu0 %v7084_v2  ;;  %v7090_v6 = vld [vmem:[#allocation5 + $0x30] ss:$24 sps:$4 sm:$0xff]   ;;  %v7092_v8 = vld [vmem:[#allocation5 + $0x64] ss:$24 sps:$4 sm:$0xff]  }
  0xf0   :  { %2767 = vmatpush1.bf16.msra.mxu1 %v7085_v3  ;;  %2596 = vmatprep.subr.bf16.mxu0 %v7086_v4  ;;  %v7091_v7 = vld [vmem:[#allocation5 + $0x38] ss:$24 sps:$4 sm:$0xff]   ;;  %v7094_v9 = vld [vmem:[#allocation5 + $0x6c] ss:$24 sps:$4 sm:$0xff]   ;;  %v7097_v11 = vld [vmem:[#allocation5 + $0x68] ss:$24 sps:$4 sm:$0xff]  }
  0xf1   :  { %2768 = vmatprep.subr.bf16.mxu1 %v7088_v5  ;;  %v7096_v10 = vld [vmem:[#allocation5 + $0x60] ss:$24 sps:$4 sm:$0xff]   ;;  %v7098_v12 = vld [vmem:[#allocation5 + $0x94] ss:$24 sps:$4 sm:$0xff]   ;;  %v7102_v14 = vld [vmem:[#allocation5 + $0x90] ss:$24 sps:$4 sm:$0xff]  }
  0xf2   :  { %v7100_v13 = vld [vmem:[#allocation5 + $0x9c] ss:$24 sps:$4 sm:$0xff]   ;;  %v7103_v15 = vld [vmem:[#allocation5 + $0x98] ss:$24 sps:$4 sm:$0xff]   ;;  %v7106_v17 = vld [vmem:[#allocation5 + $0xcc] ss:$24 sps:$4 sm:$0xff]  }
  0xf3   :  { %2597 = vmatpush1.bf16.msra.mxu0 %v7090_v6  ;;  %v7104_v16 = vld [vmem:[#allocation5 + $0xc4] ss:$24 sps:$4 sm:$0xff]   ;;  %v7108_v18 = vld [vmem:[#allocation5 + $0xc0] ss:$24 sps:$4 sm:$0xff]   ;;  %v7110_v20 = vld [vmem:[#allocation5 + $0xf4] ss:$24 sps:$4 sm:$0xff]  }
  0xf4   :  { %2769 = vmatpush1.bf16.msra.mxu1 %v7091_v7  ;;  %2598 = vmatprep.subr.bf16.mxu0 %v7092_v8  ;;  %v7109_v19 = vld [vmem:[#allocation5 + $0xc8] ss:$24 sps:$4 sm:$0xff]   ;;  %v7112_v21 = vld [vmem:[#allocation5 + $0xfc] ss:$24 sps:$4 sm:$0xff]   ;;  %v7115_v23 = vld [vmem:[#allocation5 + $0xf8] ss:$24 sps:$4 sm:$0xff]  }
  0xf5   :  { %2770 = vmatprep.subr.bf16.mxu1 %v7094_v9  ;;  %v7114_v22 = vld [vmem:[#allocation5 + $0xf0] ss:$24 sps:$4 sm:$0xff]   ;;  %v7116_v24 = vld [vmem:[#allocation5 + $0x124] ss:$24 sps:$4 sm:$0xff]   ;;  %v7120_v26 = vld [vmem:[#allocation5 + $0x120] ss:$24 sps:$4 sm:$0xff]  }
  0xf6   :  { %v7118_v25 = vld [vmem:[#allocation5 + $0x12c] ss:$24 sps:$4 sm:$0xff]   ;;  %v7121_v27 = vld [vmem:[#allocation5 + $0x128] ss:$24 sps:$4 sm:$0xff]   ;;  %v7124_v29 = vld [vmem:[#allocation5 + $0x15c] ss:$24 sps:$4 sm:$0xff]  }
  0xf7   :  { %2599 = vmatpush1.bf16.msra.mxu0 %v7096_v10  ;;  %v7122_v28 = vld [vmem:[#allocation5 + $0x154] ss:$24 sps:$4 sm:$0xff]   ;;  %v7126_v30 = vld [vmem:[#allocation5 + $0x150] ss:$24 sps:$4 sm:$0xff]   ;;  %v7128_v32 = vld [vmem:[#allocation5 + $0x184] ss:$24 sps:$4 sm:$0xff]  }
  0xf8   :  { %2771 = vmatpush1.bf16.msra.mxu1 %v7097_v11  ;;  %2600 = vmatprep.subr.bf16.mxu0 %v7098_v12  ;;  %v7127_v31 = vld [vmem:[#allocation5 + $0x158] ss:$24 sps:$4 sm:$0xff]   ;;  %v7130_v33 = vld [vmem:[#allocation5 + $0x18c] ss:$24 sps:$4 sm:$0xff]   ;;  %v7133_v35 = vld [vmem:[#allocation5 + $0x188] ss:$24 sps:$4 sm:$0xff]  }
  0xf9   :  { %2772 = vmatprep.subr.bf16.mxu1 %v7100_v13  ;;  %v7132_v34 = vld [vmem:[#allocation5 + $0x180] ss:$24 sps:$4 sm:$0xff]   ;;  %v7134_v36 = vld [vmem:[#allocation5 + $0x1b4] ss:$24 sps:$4 sm:$0xff]   ;;  %v7138_v38 = vld [vmem:[#allocation5 + $0x1b0] ss:$24 sps:$4 sm:$0xff]  }
  0xfa   :  { %v7136_v37 = vld [vmem:[#allocation5 + $0x1bc] ss:$24 sps:$4 sm:$0xff]   ;;  %v7139_v39 = vld [vmem:[#allocation5 + $0x1b8] ss:$24 sps:$4 sm:$0xff]   ;;  %v7142_v41 = vld [vmem:[#allocation5 + $0x1ec] ss:$24 sps:$4 sm:$0xff]  }
  0xfb   :  { %2601 = vmatpush1.bf16.msra.mxu0 %v7102_v14  ;;  %v7140_v40 = vld [vmem:[#allocation5 + $0x1e4] ss:$24 sps:$4 sm:$0xff]   ;;  %v7144_v42 = vld [vmem:[#allocation5 + $0x1e0] ss:$24 sps:$4 sm:$0xff]   ;;  %v7146_v44 = vld [vmem:[#allocation5 + $0x214] ss:$24 sps:$4 sm:$0xff]  }
  0xfc   :  { %2773 = vmatpush1.bf16.msra.mxu1 %v7103_v15  ;;  %2602 = vmatprep.subr.bf16.mxu0 %v7104_v16  ;;  %v7145_v43 = vld [vmem:[#allocation5 + $0x1e8] ss:$24 sps:$4 sm:$0xff]   ;;  %v7148_v45 = vld [vmem:[#allocation5 + $0x21c] ss:$24 sps:$4 sm:$0xff]   ;;  %v7151_v49 = vld [vmem:[#allocation5 + $0x218] ss:$24 sps:$4 sm:$0xff]  }
  0xfd   :  { %2774 = vmatprep.subr.bf16.mxu1 %v7106_v17  ;;  %v210_v46 = vld [vmem:[#allocation2] sm:$0xff]  ;;  %v7150_v48 = vld [vmem:[#allocation5 + $0x210] ss:$24 sps:$4 sm:$0xff]   ;;  %v7158_v55 = vld [vmem:[#allocation5 + $0x274] ss:$24 sps:$4 sm:$0xff]   ;;  %vm8519_vm0 = vmmov 0  }
  0xfe   :  { %v214_v47 = vld [vmem:[#allocation2 + $0x20] sm:$0xff]  ;;  %v7160_v56 = vld [vmem:[#allocation5 + $0x27c] ss:$24 sps:$4 sm:$0xff]   ;;  %v7162_v57 = vld [vmem:[#allocation5 + $0x270] ss:$24 sps:$4 sm:$0xff]   ;;  %s8520_s12 = smov [#allocation23]  }
  0xff   :  { %2603 = vmatpush1.bf16.msra.mxu0 %v7108_v18  ;;  %v8750_v50 = vcombine.high %v210_v46, %v214_v47  ;;  %v7152_v51 = vld [vmem:[#allocation5 + $0x244] ss:$24 sps:$4 sm:$0xff]   ;;  %v7156_v53 = vld [vmem:[#allocation5 + $0x240] ss:$24 sps:$4 sm:$0xff]   ;;  %v7170_v63 = vld [vmem:[#allocation5 + $0x2d4] ss:$24 sps:$4 sm:$0xff]   ;;  %v8754_v5 = vcombine.low %v210_v46, %v214_v47 }
 0x100   :  { %2775 = vmatpush1.bf16.msra.mxu1 %v7109_v19  ;;  %2604 = vmatprep.subr.bf16.mxu0 %v7110_v20  ;;  %v7154_v52 = vld [vmem:[#allocation5 + $0x24c] ss:$24 sps:$4 sm:$0xff]   ;;  %v7157_v54 = vld [vmem:[#allocation5 + $0x248] ss:$24 sps:$4 sm:$0xff]   ;;  %v7163_v58 = vld [vmem:[#allocation5 + $0x278] ss:$24 sps:$4 sm:$0xff]  }
 0x101   :  { %2776 = vmatprep.subr.bf16.mxu1 %v7112_v21  ;;  %2626 = vmatprep.mubr.bf16.mxu0 %v8750_v50  ;;  %v7164_v59 = vld [vmem:[#allocation5 + $0x2a4] ss:$24 sps:$4 sm:$0xff]   ;;  %v7168_v61 = vld [vmem:[#allocation5 + $0x2a0] ss:$24 sps:$4 sm:$0xff]   ;;  %v7174_v1 = vld [vmem:[#allocation5 + $0x2d0] ss:$24 sps:$4 sm:$0xff]  }
 0x102   :  { %2798 = vmatprep.mubr.bf16.mxu1 %v8750_v50  ;;  %v7166_v60 = vld [vmem:[#allocation5 + $0x2ac] ss:$24 sps:$4 sm:$0xff]   ;;  %v7169_v62 = vld [vmem:[#allocation5 + $0x2a8] ss:$24 sps:$4 sm:$0xff]   ;;  %v7172_v0 = vld [vmem:[#allocation5 + $0x2dc] ss:$24 sps:$4 sm:$0xff]  }
 0x103   :  { %2605 = vmatpush1.bf16.msra.mxu0 %v7114_v22  ;;  %v7175_v2 = vld [vmem:[#allocation5 + $0x2d8] ss:$24 sps:$4 sm:$0xff]   ;;  %v7178_v3 = vld [vmem:[#allocation5 + $0x304] ss:$24 sps:$4 sm:$0xff]   ;;  %v7179_v7 = vld [vmem:[#allocation5 + $0x308] ss:$24 sps:$4 sm:$0xff]  }
 0x104   :  { %2777 = vmatpush1.bf16.msra.mxu1 %v7115_v23  ;;  %2606 = vmatprep.subr.bf16.mxu0 %v7116_v24  ;;  %v7181_v4 = vld [vmem:[#allocation5 + $0x30c] ss:$24 sps:$4 sm:$0xff]   ;;  %v7176_v6 = vld [vmem:[#allocation5 + $0x300] ss:$24 sps:$4 sm:$0xff]   ;;  %v7187_v9 = vld [vmem:[#allocation5 + $0x33c] ss:$24 sps:$4 sm:$0xff]  }
 0x105   :  { %2778 = vmatprep.subr.bf16.mxu1 %v7118_v25  ;;  %v7184_v8 = vld [vmem:[#allocation5 + $0x334] ss:$24 sps:$4 sm:$0xff]   ;;  %v7182_v10 = vld [vmem:[#allocation5 + $0x330] ss:$24 sps:$4 sm:$0xff]   ;;  %v7190_v12 = vld [vmem:[#allocation5 + $0x364] ss:$24 sps:$4 sm:$0xff]  }
 0x106   :  { %v7185_v11 = vld [vmem:[#allocation5 + $0x338] ss:$24 sps:$4 sm:$0xff]   ;;  %v7193_v13 = vld [vmem:[#allocation5 + $0x36c] ss:$24 sps:$4 sm:$0xff]   ;;  %v7191_v15 = vld [vmem:[#allocation5 + $0x368] ss:$24 sps:$4 sm:$0xff]  }
 0x107   :  { %2607 = vmatpush1.bf16.msra.mxu0 %v7120_v26  ;;  %v7188_v14 = vld [vmem:[#allocation5 + $0x360] ss:$24 sps:$4 sm:$0xff]   ;;  %v7196_v16 = vld [vmem:[#allocation5 + $0x394] ss:$24 sps:$4 sm:$0xff]   ;;  %v7194_v18 = vld [vmem:[#allocation5 + $0x390] ss:$24 sps:$4 sm:$0xff]  }
 0x108   :  { %2779 = vmatpush1.bf16.msra.mxu1 %v7121_v27  ;;  %2608 = vmatprep.subr.bf16.mxu0 %v7122_v28  ;;  %v7199_v17 = vld [vmem:[#allocation5 + $0x39c] ss:$24 sps:$4 sm:$0xff]   ;;  %v7197_v19 = vld [vmem:[#allocation5 + $0x398] ss:$24 sps:$4 sm:$0xff]   ;;  %v7205_v21 = vld [vmem:[#allocation5 + $0x3cc] ss:$24 sps:$4 sm:$0xff]  }
 0x109   :  { %2780 = vmatprep.subr.bf16.mxu1 %v7124_v29  ;;  %v7202_v20 = vld [vmem:[#allocation5 + $0x3c4] ss:$24 sps:$4 sm:$0xff]   ;;  %v7200_v22 = vld [vmem:[#allocation5 + $0x3c0] ss:$24 sps:$4 sm:$0xff]   ;;  %v7208_v24 = vld [vmem:[#allocation5 + $0x3f4] ss:$24 sps:$4 sm:$0xff]  }
 0x10a   :  { %v7203_v23 = vld [vmem:[#allocation5 + $0x3c8] ss:$24 sps:$4 sm:$0xff]   ;;  %v7211_v25 = vld [vmem:[#allocation5 + $0x3fc] ss:$24 sps:$4 sm:$0xff]   ;;  %v7209_v27 = vld [vmem:[#allocation5 + $0x3f8] ss:$24 sps:$4 sm:$0xff]  }
 0x10b   :  { %2609 = vmatpush1.bf16.msra.mxu0 %v7126_v30  ;;  %v7206_v26 = vld [vmem:[#allocation5 + $0x3f0] ss:$24 sps:$4 sm:$0xff]   ;;  %v7214_v28 = vld [vmem:[#allocation5 + $0x424] ss:$24 sps:$4 sm:$0xff]   ;;  %s6096_s3 = sshll.u32 %s8520_s12, 4  ;;  %s6097_s3 = int_to_ptr.vmem [resolvable:$true] %s6096_s3 }
 0x10c   :  { %2781 = vmatpush1.bf16.msra.mxu1 %v7127_v31  ;;  %2610 = vmatprep.subr.bf16.mxu0 %v7128_v32  ;;  %v7217_v29 = vld [vmem:[#allocation5 + $0x42c] ss:$24 sps:$4 sm:$0xff]   ;;  %v7212_v32 = vld [vmem:[#allocation5 + $0x420] ss:$24 sps:$4 sm:$0xff]   ;;  %s8454_s23 = scalar_lea.vmem %s6097_s3, 256  ;;  %p8459_p7 = scmp.lt.s32.totalorder %s6097_s3, %s6097_s3 }
 0x10d   :  { %2782 = vmatprep.subr.bf16.mxu1 %v7130_v33  ;;  %v8758_v30 = vld [vmem:[#allocation2 + $0x8] sm:$0xff]  ;;  %v7233_v46 = vld [vmem:[#allocation5 + $0x4b8] ss:$24 sps:$4 sm:$0xff]   ;;  %v7238_v47 = vld [vmem:[#allocation5 + $0x4e4] ss:$24 sps:$4 sm:$0xff]   ;;  %p8455_p6 = scmp.ne.s32.totalorder %s6097_s3, %s8454_s23  ;;  %p8460_p8 = scmp.lt.s32.totalorder %s8454_s23, %s8454_s23 }
 0x10e   :  { %v8760_v31 = vld [vmem:[#allocation2 + $0x28] sm:$0xff] }
 0x10f   :  { %2611 = vmatpush1.bf16.msra.mxu0 %v7132_v34  ;;  %v7215_v33 = vld [vmem:[#allocation5 + $0x428] ss:$24 sps:$4 sm:$0xff]   ;;  %v8764_v34 = vcombine.high %v8758_v30, %v8760_v31  ;;  %p8461_p9 = por %p8460_p8, %p8459_p7 }
 0x110   :  { %2783 = vmatpush1.bf16.msra.mxu1 %v7133_v35  ;;  %2612 = vmatprep.subr.bf16.mxu0 %v7134_v36  ;;  %v7220_v35 = vld [vmem:[#allocation5 + $0x454] ss:$24 sps:$4 sm:$0xff]  }
 0x111   :  { %2784 = vmatprep.subr.bf16.mxu1 %v7136_v37  ;;  %v7223_v36 = vld [vmem:[#allocation5 + $0x45c] ss:$24 sps:$4 sm:$0xff]   ;;  %v7218_v37 = vld [vmem:[#allocation5 + $0x450] ss:$24 sps:$4 sm:$0xff]   ;;  %p8462_p10 = pnand %p8461_p9, %p8455_p6 }
 0x113   :  { %2613 = vmatpush1.bf16.msra.mxu0 %v7138_v38  ;;  %v7221_v38 = vld [vmem:[#allocation5 + $0x458] ss:$24 sps:$4 sm:$0xff]  }
 0x114   :  { %2785 = vmatpush1.bf16.msra.mxu1 %v7139_v39  ;;  %2614 = vmatprep.subr.bf16.mxu0 %v7140_v40  ;;  %v7226_v39 = vld [vmem:[#allocation5 + $0x484] ss:$24 sps:$4 sm:$0xff]  }
 0x115   :  { %2786 = vmatprep.subr.bf16.mxu1 %v7142_v41  ;;  %v7229_v40 = vld [vmem:[#allocation5 + $0x48c] ss:$24 sps:$4 sm:$0xff]   ;;  %v7224_v41 = vld [vmem:[#allocation5 + $0x480] ss:$24 sps:$4 sm:$0xff]  }
 0x117   :  { %2615 = vmatpush1.bf16.msra.mxu0 %v7144_v42  ;;  %v7227_v42 = vld [vmem:[#allocation5 + $0x488] ss:$24 sps:$4 sm:$0xff]  }
 0x118   :  { %2787 = vmatpush1.bf16.msra.mxu1 %v7145_v43  ;;  %2616 = vmatprep.subr.bf16.mxu0 %v7146_v44  ;;  %v7232_v43 = vld [vmem:[#allocation5 + $0x4b4] ss:$24 sps:$4 sm:$0xff]  }
 0x119   :  { %2788 = vmatprep.subr.bf16.mxu1 %v7148_v45  ;;  %v7235_v44 = vld [vmem:[#allocation5 + $0x4bc] ss:$24 sps:$4 sm:$0xff]   ;;  %v7230_v45 = vld [vmem:[#allocation5 + $0x4b0] ss:$24 sps:$4 sm:$0xff]  }
 0x11b   :  { %2617 = vmatpush1.bf16.msra.mxu0 %v7150_v48  ;;  %v7241_v48 = vld [vmem:[#allocation5 + $0x4ec] ss:$24 sps:$4 sm:$0xff]  }
 0x11c   :  { %2789 = vmatpush1.bf16.msra.mxu1 %v7151_v49  ;;  %2618 = vmatprep.subr.bf16.mxu0 %v7152_v51  ;;  %v7236_v49 = vld [vmem:[#allocation5 + $0x4e0] ss:$24 sps:$4 sm:$0xff]  }
 0x11d   :  { %2790 = vmatprep.subr.bf16.mxu1 %v7154_v52  ;;  %v7239_v51 = vld [vmem:[#allocation5 + $0x4e8] ss:$24 sps:$4 sm:$0xff]   ;;  %v7244_v52 = vld [vmem:[#allocation5 + $0x514] ss:$24 sps:$4 sm:$0xff]  }
 0x11f   :  { %2619 = vmatpush1.bf16.msra.mxu0 %v7156_v53  ;;  %v7247_v53 = vld [vmem:[#allocation5 + $0x51c] ss:$24 sps:$4 sm:$0xff]  }
 0x120   :  { %2791 = vmatpush1.bf16.msra.mxu1 %v7157_v54  ;;  %2620 = vmatprep.subr.bf16.mxu0 %v7158_v55  ;;  %v7242_v54 = vld [vmem:[#allocation5 + $0x510] ss:$24 sps:$4 sm:$0xff]  }
 0x121   :  { %2792 = vmatprep.subr.bf16.mxu1 %v7160_v56  ;;  %v7245_v55 = vld [vmem:[#allocation5 + $0x518] ss:$24 sps:$4 sm:$0xff]   ;;  %v7250_v56 = vld [vmem:[#allocation5 + $0x544] ss:$24 sps:$4 sm:$0xff]  }
 0x123   :  { %2621 = vmatpush1.bf16.msra.mxu0 %v7162_v57  ;;  %v7253_v57 = vld [vmem:[#allocation5 + $0x54c] ss:$24 sps:$4 sm:$0xff]  }
 0x124   :  { %2793 = vmatpush1.bf16.msra.mxu1 %v7163_v58  ;;  %2622 = vmatprep.subr.bf16.mxu0 %v7164_v59  ;;  %v7248_v58 = vld [vmem:[#allocation5 + $0x540] ss:$24 sps:$4 sm:$0xff]  }
 0x125   :  { %2794 = vmatprep.subr.bf16.mxu1 %v7166_v60  ;;  %v7251_v59 = vld [vmem:[#allocation5 + $0x548] ss:$24 sps:$4 sm:$0xff]   ;;  %v7256_v60 = vld [vmem:[#allocation5 + $0x574] ss:$24 sps:$4 sm:$0xff]  }
 0x127   :  { %2623 = vmatpush1.bf16.msra.mxu0 %v7168_v61  ;;  %v7259_v61 = vld [vmem:[#allocation5 + $0x57c] ss:$24 sps:$4 sm:$0xff]  }
 0x128   :  { %2795 = vmatpush1.bf16.msra.mxu1 %v7169_v62  ;;  %2624 = vmatprep.subr.bf16.mxu0 %v7170_v63  ;;  %v7254_v62 = vld [vmem:[#allocation5 + $0x570] ss:$24 sps:$4 sm:$0xff]  }
 0x129   :  { %2796 = vmatprep.subr.bf16.mxu1 %v7172_v0  ;;  %v7257_v63 = vld [vmem:[#allocation5 + $0x578] ss:$24 sps:$4 sm:$0xff]   ;;  %v7262_v0 = vld [vmem:[#allocation5 + $0x5a4] ss:$24 sps:$4 sm:$0xff]  }
 0x12b   :  { %2625 = vmatpush1.bf16.msra.mxu0 %v7174_v1  ;;  %v7265_v1 = vld [vmem:[#allocation5 + $0x5ac] ss:$24 sps:$4 sm:$0xff]  }
 0x12c   :  { %2797 = vmatpush1.bf16.msra.mxu1 %v7175_v2  ;;  %2637 = vmatprep.subr.bf16.mxu0 %v7178_v3  ;;  %v7260_v2 = vld [vmem:[#allocation5 + $0x5a0] ss:$24 sps:$4 sm:$0xff]  }
 0x12d   :  { %2809 = vmatprep.subr.bf16.mxu1 %v7181_v4  ;;  %v7263_v3 = vld [vmem:[#allocation5 + $0x5a8] ss:$24 sps:$4 sm:$0xff]   ;;  %v7268_v4 = vld [vmem:[#allocation5 + $0x5d4] ss:$24 sps:$4 sm:$0xff]  }
 0x12e   :  { %2627 = vmatmul.mubr.bf16.vlgmr.msra.gmra.mrb[0].mxu0 %v8754_v5 }
 0x12f   :  { %2799 = vmatmul.mubr.bf16.vlgmr.msra.gmra.mrb[0].mxu1 %v8754_v5  ;;  %2638 = vmatpush1.bf16.msra.mxu0 %v7176_v6  ;;  %v7271_v6 = vld [vmem:[#allocation5 + $0x5dc] ss:$24 sps:$4 sm:$0xff]  }
 0x130   :  { %2810 = vmatpush1.bf16.msra.mxu1 %v7179_v7  ;;  %2639 = vmatprep.subr.bf16.mxu0 %v7184_v8  ;;  %v7266_v7 = vld [vmem:[#allocation5 + $0x5d0] ss:$24 sps:$4 sm:$0xff]  }
 0x131   :  { %2811 = vmatprep.subr.bf16.mxu1 %v7187_v9  ;;  %2669 = vmatprep.mubr.bf16.mxu0 %v8764_v34  ;;  %v7269_v8 = vld [vmem:[#allocation5 + $0x5d8] ss:$24 sps:$4 sm:$0xff]   ;;  %v7274_v9 = vld [vmem:[#allocation5 + $0x604] ss:$24 sps:$4 sm:$0xff]  }
 0x132   :  { %2841 = vmatprep.mubr.bf16.mxu1 %v8764_v34 }
 0x133   :  { %2640 = vmatpush1.bf16.msra.mxu0 %v7182_v10  ;;  %v7277_v10 = vld [vmem:[#allocation5 + $0x60c] ss:$24 sps:$4 sm:$0xff]  }
 0x134   :  { %2812 = vmatpush1.bf16.msra.mxu1 %v7185_v11  ;;  %2641 = vmatprep.subr.bf16.mxu0 %v7190_v12  ;;  %v8770_v11 = vcombine.low %v8758_v30, %v8760_v31  ;;  %v7272_v12 = vld [vmem:[#allocation5 + $0x600] ss:$24 sps:$4 sm:$0xff]   ;;  %v7301_v30 = vld [vmem:[#allocation5 + $0x6cc] ss:$24 sps:$4 sm:$0xff]  }
 0x135   :  { %2813 = vmatprep.subr.bf16.mxu1 %v7193_v13  ;;  %v7275_v13 = vld [vmem:[#allocation5 + $0x608] ss:$24 sps:$4 sm:$0xff]  }
 0x136   :  { %v7296_v31 = vld [vmem:[#allocation5 + $0x6c0] ss:$24 sps:$4 sm:$0xff]  }
 0x137   :  { %2642 = vmatpush1.bf16.msra.mxu0 %v7188_v14  ;;  %v7280_v14 = vld [vmem:[#allocation5 + $0x634] ss:$24 sps:$4 sm:$0xff]  }
 0x138   :  { %2814 = vmatpush1.bf16.msra.mxu1 %v7191_v15  ;;  %2643 = vmatprep.subr.bf16.mxu0 %v7196_v16  ;;  %v7283_v15 = vld [vmem:[#allocation5 + $0x63c] ss:$24 sps:$4 sm:$0xff]  }
 0x139   :  { %2815 = vmatprep.subr.bf16.mxu1 %v7199_v17  ;;  %v8772_v16 = vld [vmem:[#allocation2 + $0x10] sm:$0xff] }
 0x13a   :  { %v8774_v17 = vld [vmem:[#allocation2 + $0x30] sm:$0xff] }
 0x13b   :  { %2644 = vmatpush1.bf16.msra.mxu0 %v7194_v18  ;;  %v8778_v18 = vcombine.high %v8772_v16, %v8774_v17 }
 0x13c   :  { %2816 = vmatpush1.bf16.msra.mxu1 %v7197_v19  ;;  %2645 = vmatprep.subr.bf16.mxu0 %v7202_v20  ;;  %v7278_v19 = vld [vmem:[#allocation5 + $0x630] ss:$24 sps:$4 sm:$0xff]  }
 0x13d   :  { %2817 = vmatprep.subr.bf16.mxu1 %v7205_v21  ;;  %v7281_v20 = vld [vmem:[#allocation5 + $0x638] ss:$24 sps:$4 sm:$0xff]   ;;  %v7286_v21 = vld [vmem:[#allocation5 + $0x664] ss:$24 sps:$4 sm:$0xff]  }
 0x13f   :  { %2646 = vmatpush1.bf16.msra.mxu0 %v7200_v22  ;;  %v7289_v22 = vld [vmem:[#allocation5 + $0x66c] ss:$24 sps:$4 sm:$0xff]  }
 0x140   :  { %2818 = vmatpush1.bf16.msra.mxu1 %v7203_v23  ;;  %2647 = vmatprep.subr.bf16.mxu0 %v7208_v24  ;;  %v7284_v23 = vld [vmem:[#allocation5 + $0x660] ss:$24 sps:$4 sm:$0xff]  }
 0x141   :  { %2819 = vmatprep.subr.bf16.mxu1 %v7211_v25  ;;  %v7287_v24 = vld [vmem:[#allocation5 + $0x668] ss:$24 sps:$4 sm:$0xff]   ;;  %v7292_v25 = vld [vmem:[#allocation5 + $0x694] ss:$24 sps:$4 sm:$0xff]  }
 0x143   :  { %2648 = vmatpush1.bf16.msra.mxu0 %v7206_v26  ;;  %v7295_v26 = vld [vmem:[#allocation5 + $0x69c] ss:$24 sps:$4 sm:$0xff]  }
 0x144   :  { %2820 = vmatpush1.bf16.msra.mxu1 %v7209_v27  ;;  %2649 = vmatprep.subr.bf16.mxu0 %v7214_v28  ;;  %v7290_v27 = vld [vmem:[#allocation5 + $0x690] ss:$24 sps:$4 sm:$0xff]  }
 0x145   :  { %2821 = vmatprep.subr.bf16.mxu1 %v7217_v29  ;;  %v7293_v28 = vld [vmem:[#allocation5 + $0x698] ss:$24 sps:$4 sm:$0xff]   ;;  %v7298_v29 = vld [vmem:[#allocation5 + $0x6c4] ss:$24 sps:$4 sm:$0xff]  }
 0x147   :  { %2650 = vmatpush1.bf16.msra.mxu0 %v7212_v32  ;;  %v7299_v32 = vld [vmem:[#allocation5 + $0x6c8] ss:$24 sps:$4 sm:$0xff]  }
 0x148   :  { %2822 = vmatpush1.bf16.msra.mxu1 %v7215_v33  ;;  %2651 = vmatprep.subr.bf16.mxu0 %v7220_v35  ;;  %v7304_v33 = vld [vmem:[#allocation5 + $0x6f4] ss:$24 sps:$4 sm:$0xff]  }
 0x149   :  { %2823 = vmatprep.subr.bf16.mxu1 %v7223_v36  ;;  %v7307_v35 = vld [vmem:[#allocation5 + $0x6fc] ss:$24 sps:$4 sm:$0xff]   ;;  %v7302_v36 = vld [vmem:[#allocation5 + $0x6f0] ss:$24 sps:$4 sm:$0xff]  }
 0x14b   :  { %2652 = vmatpush1.bf16.msra.mxu0 %v7218_v37  ;;  %v7305_v37 = vld [vmem:[#allocation5 + $0x6f8] ss:$24 sps:$4 sm:$0xff]  }
 0x14c   :  { %2824 = vmatpush1.bf16.msra.mxu1 %v7221_v38  ;;  %2653 = vmatprep.subr.bf16.mxu0 %v7226_v39  ;;  %v7310_v38 = vld [vmem:[#allocation5 + $0x724] ss:$24 sps:$4 sm:$0xff]  }
 0x14d   :  { %2825 = vmatprep.subr.bf16.mxu1 %v7229_v40  ;;  %v7313_v39 = vld [vmem:[#allocation5 + $0x72c] ss:$24 sps:$4 sm:$0xff]   ;;  %v7308_v40 = vld [vmem:[#allocation5 + $0x720] ss:$24 sps:$4 sm:$0xff]  }
 0x14f   :  { %2654 = vmatpush1.bf16.msra.mxu0 %v7224_v41  ;;  %v7311_v41 = vld [vmem:[#allocation5 + $0x728] ss:$24 sps:$4 sm:$0xff]  }
 0x150   :  { %2826 = vmatpush1.bf16.msra.mxu1 %v7227_v42  ;;  %2655 = vmatprep.subr.bf16.mxu0 %v7232_v43  ;;  %v7316_v42 = vld [vmem:[#allocation5 + $0x754] ss:$24 sps:$4 sm:$0xff]  }
 0x151   :  { %2827 = vmatprep.subr.bf16.mxu1 %v7235_v44  ;;  %v7319_v43 = vld [vmem:[#allocation5 + $0x75c] ss:$24 sps:$4 sm:$0xff]   ;;  %v7314_v44 = vld [vmem:[#allocation5 + $0x750] ss:$24 sps:$4 sm:$0xff]  }
 0x153   :  { %2656 = vmatpush1.bf16.msra.mxu0 %v7230_v45  ;;  %v7317_v45 = vld [vmem:[#allocation5 + $0x758] ss:$24 sps:$4 sm:$0xff]  }
 0x154   :  { %2828 = vmatpush1.bf16.msra.mxu1 %v7233_v46  ;;  %2657 = vmatprep.subr.bf16.mxu0 %v7238_v47  ;;  %v7322_v46 = vld [vmem:[#allocation5 + $0x784] ss:$24 sps:$4 sm:$0xff]  }
 0x155   :  { %2829 = vmatprep.subr.bf16.mxu1 %v7241_v48  ;;  %v7325_v47 = vld [vmem:[#allocation5 + $0x78c] ss:$24 sps:$4 sm:$0xff]   ;;  %v7320_v48 = vld [vmem:[#allocation5 + $0x780] ss:$24 sps:$4 sm:$0xff]  }
 0x157   :  { %2658 = vmatpush1.bf16.msra.mxu0 %v7236_v49  ;;  %v7323_v49 = vld [vmem:[#allocation5 + $0x788] ss:$24 sps:$4 sm:$0xff]  }
 0x158   :  { %2830 = vmatpush1.bf16.msra.mxu1 %v7239_v51  ;;  %2659 = vmatprep.subr.bf16.mxu0 %v7244_v52  ;;  %v7328_v51 = vld [vmem:[#allocation5 + $0x7b4] ss:$24 sps:$4 sm:$0xff]  }
 0x159   :  { %2831 = vmatprep.subr.bf16.mxu1 %v7247_v53  ;;  %v7331_v52 = vld [vmem:[#allocation5 + $0x7bc] ss:$24 sps:$4 sm:$0xff]   ;;  %v7326_v53 = vld [vmem:[#allocation5 + $0x7b0] ss:$24 sps:$4 sm:$0xff]  }
 0x15b   :  { %2660 = vmatpush1.bf16.msra.mxu0 %v7242_v54  ;;  %v7329_v54 = vld [vmem:[#allocation5 + $0x7b8] ss:$24 sps:$4 sm:$0xff]  }
 0x15c   :  { %2832 = vmatpush1.bf16.msra.mxu1 %v7245_v55  ;;  %2661 = vmatprep.subr.bf16.mxu0 %v7250_v56  ;;  %v7334_v55 = vld [vmem:[#allocation5 + $0x7e4] ss:$24 sps:$4 sm:$0xff]  }
 0x15d   :  { %2833 = vmatprep.subr.bf16.mxu1 %v7253_v57  ;;  %v7337_v56 = vld [vmem:[#allocation5 + $0x7ec] ss:$24 sps:$4 sm:$0xff]   ;;  %v7332_v57 = vld [vmem:[#allocation5 + $0x7e0] ss:$24 sps:$4 sm:$0xff]  }
 0x15f   :  { %2662 = vmatpush1.bf16.msra.mxu0 %v7248_v58  ;;  %v7335_v58 = vld [vmem:[#allocation5 + $0x7e8] ss:$24 sps:$4 sm:$0xff]  }
 0x160   :  { %2834 = vmatpush1.bf16.msra.mxu1 %v7251_v59  ;;  %2663 = vmatprep.subr.bf16.mxu0 %v7256_v60  ;;  %v7340_v59 = vld [vmem:[#allocation5 + $0x814] ss:$24 sps:$4 sm:$0xff]  }
 0x161   :  { %2835 = vmatprep.subr.bf16.mxu1 %v7259_v61  ;;  %v7343_v60 = vld [vmem:[#allocation5 + $0x81c] ss:$24 sps:$4 sm:$0xff]   ;;  %v7338_v61 = vld [vmem:[#allocation5 + $0x810] ss:$24 sps:$4 sm:$0xff]  }
 0x163   :  { %2664 = vmatpush1.bf16.msra.mxu0 %v7254_v62  ;;  %v7341_v62 = vld [vmem:[#allocation5 + $0x818] ss:$24 sps:$4 sm:$0xff]  }
 0x164   :  { %2836 = vmatpush1.bf16.msra.mxu1 %v7257_v63  ;;  %2665 = vmatprep.subr.bf16.mxu0 %v7262_v0  ;;  %v7346_v63 = vld [vmem:[#allocation5 + $0x844] ss:$24 sps:$4 sm:$0xff]  }
 0x165   :  { %2837 = vmatprep.subr.bf16.mxu1 %v7265_v1  ;;  %v7349_v0 = vld [vmem:[#allocation5 + $0x84c] ss:$24 sps:$4 sm:$0xff]   ;;  %v7344_v1 = vld [vmem:[#allocation5 + $0x840] ss:$24 sps:$4 sm:$0xff]  }
 0x167   :  { %2666 = vmatpush1.bf16.msra.mxu0 %v7260_v2  ;;  %v7347_v2 = vld [vmem:[#allocation5 + $0x848] ss:$24 sps:$4 sm:$0xff]  }
 0x168   :  { %2838 = vmatpush1.bf16.msra.mxu1 %v7263_v3  ;;  %2667 = vmatprep.subr.bf16.mxu0 %v7268_v4  ;;  %v7352_v3 = vld [vmem:[#allocation5 + $0x874] ss:$24 sps:$4 sm:$0xff]  }
 0x169   :  { %2839 = vmatprep.subr.bf16.mxu1 %v7271_v6  ;;  %v7355_v4 = vld [vmem:[#allocation5 + $0x87c] ss:$24 sps:$4 sm:$0xff]   ;;  %v7350_v6 = vld [vmem:[#allocation5 + $0x870] ss:$24 sps:$4 sm:$0xff]  }
 0x16b   :  { %2668 = vmatpush1.bf16.msra.mxu0 %v7266_v7  ;;  %v7353_v7 = vld [vmem:[#allocation5 + $0x878] ss:$24 sps:$4 sm:$0xff]  }
 0x16c   :  { %2840 = vmatpush1.bf16.msra.mxu1 %v7269_v8  ;;  %2680 = vmatprep.subr.bf16.mxu0 %v7274_v9  ;;  %v7358_v8 = vld [vmem:[#allocation5 + $0x8a4] ss:$24 sps:$4 sm:$0xff]  }
 0x16d   :  { %2852 = vmatprep.subr.bf16.mxu1 %v7277_v10  ;;  %v7361_v9 = vld [vmem:[#allocation5 + $0x8ac] ss:$24 sps:$4 sm:$0xff]   ;;  %v7356_v10 = vld [vmem:[#allocation5 + $0x8a0] ss:$24 sps:$4 sm:$0xff]  }
 0x16e   :  { %2670 = vmatmul.mubr.bf16.vlgmr.msra.gmra.mrb[0].mxu0 %v8770_v11 }
 0x16f   :  { %2842 = vmatmul.mubr.bf16.vlgmr.msra.gmra.mrb[0].mxu1 %v8770_v11  ;;  %2681 = vmatpush1.bf16.msra.mxu0 %v7272_v12  ;;  %v7359_v12 = vld [vmem:[#allocation5 + $0x8a8] ss:$24 sps:$4 sm:$0xff]  }
 0x170   :  { %2853 = vmatpush1.bf16.msra.mxu1 %v7275_v13  ;;  %2682 = vmatprep.subr.bf16.mxu0 %v7280_v14  ;;  %v7364_v13 = vld [vmem:[#allocation5 + $0x8d4] ss:$24 sps:$4 sm:$0xff]  }
 0x171   :  { %2854 = vmatprep.subr.bf16.mxu1 %v7283_v15  ;;  %2712 = vmatprep.mubr.bf16.mxu0 %v8778_v18  ;;  %v7367_v14 = vld [vmem:[#allocation5 + $0x8dc] ss:$24 sps:$4 sm:$0xff]   ;;  %v7362_v15 = vld [vmem:[#allocation5 + $0x8d0] ss:$24 sps:$4 sm:$0xff]  }
 0x172   :  { %2884 = vmatprep.mubr.bf16.mxu1 %v8778_v18 }
 0x173   :  { %2683 = vmatpush1.bf16.msra.mxu0 %v7278_v19  ;;  %v7365_v19 = vld [vmem:[#allocation5 + $0x8d8] ss:$24 sps:$4 sm:$0xff]  }
 0x174   :  { %2855 = vmatpush1.bf16.msra.mxu1 %v7281_v20  ;;  %2684 = vmatprep.subr.bf16.mxu0 %v7286_v21  ;;  %v7370_v20 = vld [vmem:[#allocation5 + $0x904] ss:$24 sps:$4 sm:$0xff]  }
 0x175   :  { %2856 = vmatprep.subr.bf16.mxu1 %v7289_v22  ;;  %v7373_v21 = vld [vmem:[#allocation5 + $0x90c] ss:$24 sps:$4 sm:$0xff]   ;;  %v7368_v22 = vld [vmem:[#allocation5 + $0x900] ss:$24 sps:$4 sm:$0xff]  }
 0x177   :  { %2685 = vmatpush1.bf16.msra.mxu0 %v7284_v23  ;;  %v7371_v23 = vld [vmem:[#allocation5 + $0x908] ss:$24 sps:$4 sm:$0xff]  }
 0x178   :  { %2857 = vmatpush1.bf16.msra.mxu1 %v7287_v24  ;;  %2686 = vmatprep.subr.bf16.mxu0 %v7292_v25  ;;  %v8786_v24 = vcombine.low %v8772_v16, %v8774_v17  ;;  %v8788_v25 = vld [vmem:[#allocation2 + $0x18] sm:$0xff]  ;;  %v7374_v16 = vld [vmem:[#allocation5 + $0x930] ss:$24 sps:$4 sm:$0xff]  }
 0x179   :  { %2858 = vmatprep.subr.bf16.mxu1 %v7295_v26  ;;  %v8790_v26 = vld [vmem:[#allocation2 + $0x38] sm:$0xff] }
 0x17a   :  { %v7377_v17 = vld [vmem:[#allocation5 + $0x938] ss:$24 sps:$4 sm:$0xff]  }
 0x17b   :  { %2687 = vmatpush1.bf16.msra.mxu0 %v7290_v27  ;;  %v7376_v27 = vld [vmem:[#allocation5 + $0x934] ss:$24 sps:$4 sm:$0xff]  }
 0x17c   :  { %2859 = vmatpush1.bf16.msra.mxu1 %v7293_v28  ;;  %2688 = vmatprep.subr.bf16.mxu0 %v7298_v29  ;;  %v7379_v28 = vld [vmem:[#allocation5 + $0x93c] ss:$24 sps:$4 sm:$0xff]   ;;  %v8794_v29 = vcombine.high %v8788_v25, %v8790_v26 }
 0x17d   :  { %2860 = vmatprep.subr.bf16.mxu1 %v7301_v30  ;;  %v7382_v30 = vld [vmem:[#allocation5 + $0x964] ss:$24 sps:$4 sm:$0xff]  }
 0x17f   :  { %2689 = vmatpush1.bf16.msra.mxu0 %v7296_v31  ;;  %v7385_v31 = vld [vmem:[#allocation5 + $0x96c] ss:$24 sps:$4 sm:$0xff]  }
 0x180   :  { %2861 = vmatpush1.bf16.msra.mxu1 %v7299_v32  ;;  %2690 = vmatprep.subr.bf16.mxu0 %v7304_v33  ;;  %v7380_v32 = vld [vmem:[#allocation5 + $0x960] ss:$24 sps:$4 sm:$0xff]  }
 0x181   :  { %2862 = vmatprep.subr.bf16.mxu1 %v7307_v35  ;;  %v7383_v33 = vld [vmem:[#allocation5 + $0x968] ss:$24 sps:$4 sm:$0xff]   ;;  %v7388_v35 = vld [vmem:[#allocation5 + $0x994] ss:$24 sps:$4 sm:$0xff]  }
 0x183   :  { %2691 = vmatpush1.bf16.msra.mxu0 %v7302_v36  ;;  %v7391_v36 = vld [vmem:[#allocation5 + $0x99c] ss:$24 sps:$4 sm:$0xff]  }
 0x184   :  { %2863 = vmatpush1.bf16.msra.mxu1 %v7305_v37  ;;  %2692 = vmatprep.subr.bf16.mxu0 %v7310_v38  ;;  %v7386_v37 = vld [vmem:[#allocation5 + $0x990] ss:$24 sps:$4 sm:$0xff]  }
 0x185   :  { %2864 = vmatprep.subr.bf16.mxu1 %v7313_v39  ;;  %v7389_v38 = vld [vmem:[#allocation5 + $0x998] ss:$24 sps:$4 sm:$0xff]   ;;  %v7394_v39 = vld [vmem:[#allocation5 + $0x9c4] ss:$24 sps:$4 sm:$0xff]  }
 0x187   :  { %2693 = vmatpush1.bf16.msra.mxu0 %v7308_v40  ;;  %v7397_v40 = vld [vmem:[#allocation5 + $0x9cc] ss:$24 sps:$4 sm:$0xff]  }
 0x188   :  { %2865 = vmatpush1.bf16.msra.mxu1 %v7311_v41  ;;  %2694 = vmatprep.subr.bf16.mxu0 %v7316_v42  ;;  %v7392_v41 = vld [vmem:[#allocation5 + $0x9c0] ss:$24 sps:$4 sm:$0xff]  }
 0x189   :  { %2866 = vmatprep.subr.bf16.mxu1 %v7319_v43  ;;  %v7395_v42 = vld [vmem:[#allocation5 + $0x9c8] ss:$24 sps:$4 sm:$0xff]   ;;  %v7400_v43 = vld [vmem:[#allocation5 + $0x9f4] ss:$24 sps:$4 sm:$0xff]  }
 0x18b   :  { %2695 = vmatpush1.bf16.msra.mxu0 %v7314_v44  ;;  %v7403_v44 = vld [vmem:[#allocation5 + $0x9fc] ss:$24 sps:$4 sm:$0xff]  }
 0x18c   :  { %2867 = vmatpush1.bf16.msra.mxu1 %v7317_v45  ;;  %2696 = vmatprep.subr.bf16.mxu0 %v7322_v46  ;;  %v7398_v45 = vld [vmem:[#allocation5 + $0x9f0] ss:$24 sps:$4 sm:$0xff]  }
 0x18d   :  { %2868 = vmatprep.subr.bf16.mxu1 %v7325_v47  ;;  %v7401_v46 = vld [vmem:[#allocation5 + $0x9f8] ss:$24 sps:$4 sm:$0xff]   ;;  %v7406_v47 = vld [vmem:[#allocation5 + $0xa24] ss:$24 sps:$4 sm:$0xff]  }
 0x18f   :  { %2697 = vmatpush1.bf16.msra.mxu0 %v7320_v48  ;;  %v7409_v48 = vld [vmem:[#allocation5 + $0xa2c] ss:$24 sps:$4 sm:$0xff]  }
 0x190   :  { %2869 = vmatpush1.bf16.msra.mxu1 %v7323_v49  ;;  %2698 = vmatprep.subr.bf16.mxu0 %v7328_v51  ;;  %v7404_v49 = vld [vmem:[#allocation5 + $0xa20] ss:$24 sps:$4 sm:$0xff]  }
 0x191   :  { %2870 = vmatprep.subr.bf16.mxu1 %v7331_v52  ;;  %v7407_v51 = vld [vmem:[#allocation5 + $0xa28] ss:$24 sps:$4 sm:$0xff]   ;;  %v7412_v52 = vld [vmem:[#allocation5 + $0xa54] ss:$24 sps:$4 sm:$0xff]  }
 0x193   :  { %2699 = vmatpush1.bf16.msra.mxu0 %v7326_v53  ;;  %v7415_v53 = vld [vmem:[#allocation5 + $0xa5c] ss:$24 sps:$4 sm:$0xff]  }
 0x194   :  { %2871 = vmatpush1.bf16.msra.mxu1 %v7329_v54  ;;  %2700 = vmatprep.subr.bf16.mxu0 %v7334_v55  ;;  %v7410_v54 = vld [vmem:[#allocation5 + $0xa50] ss:$24 sps:$4 sm:$0xff]  }
 0x195   :  { %2872 = vmatprep.subr.bf16.mxu1 %v7337_v56  ;;  %v7413_v55 = vld [vmem:[#allocation5 + $0xa58] ss:$24 sps:$4 sm:$0xff]   ;;  %v7418_v56 = vld [vmem:[#allocation5 + $0xa84] ss:$24 sps:$4 sm:$0xff]  }
 0x197   :  { %2701 = vmatpush1.bf16.msra.mxu0 %v7332_v57  ;;  %v7421_v57 = vld [vmem:[#allocation5 + $0xa8c] ss:$24 sps:$4 sm:$0xff]  }
 0x198   :  { %2873 = vmatpush1.bf16.msra.mxu1 %v7335_v58  ;;  %2702 = vmatprep.subr.bf16.mxu0 %v7340_v59  ;;  %v7416_v58 = vld [vmem:[#allocation5 + $0xa80] ss:$24 sps:$4 sm:$0xff]  }
 0x199   :  { %2874 = vmatprep.subr.bf16.mxu1 %v7343_v60  ;;  %v7419_v59 = vld [vmem:[#allocation5 + $0xa88] ss:$24 sps:$4 sm:$0xff]   ;;  %v7424_v60 = vld [vmem:[#allocation5 + $0xab4] ss:$24 sps:$4 sm:$0xff]  }
 0x19b   :  { %2703 = vmatpush1.bf16.msra.mxu0 %v7338_v61  ;;  %v7427_v61 = vld [vmem:[#allocation5 + $0xabc] ss:$24 sps:$4 sm:$0xff]  }
 0x19c   :  { %2875 = vmatpush1.bf16.msra.mxu1 %v7341_v62  ;;  %2704 = vmatprep.subr.bf16.mxu0 %v7346_v63  ;;  %v7422_v62 = vld [vmem:[#allocation5 + $0xab0] ss:$24 sps:$4 sm:$0xff]  }
 0x19d   :  { %2876 = vmatprep.subr.bf16.mxu1 %v7349_v0  ;;  %v7425_v63 = vld [vmem:[#allocation5 + $0xab8] ss:$24 sps:$4 sm:$0xff]   ;;  %v7430_v0 = vld [vmem:[#allocation5 + $0xae4] ss:$24 sps:$4 sm:$0xff]  }
 0x19f   :  { %2705 = vmatpush1.bf16.msra.mxu0 %v7344_v1  ;;  %v7433_v1 = vld [vmem:[#allocation5 + $0xaec] ss:$24 sps:$4 sm:$0xff]  }
 0x1a0   :  { %2877 = vmatpush1.bf16.msra.mxu1 %v7347_v2  ;;  %2706 = vmatprep.subr.bf16.mxu0 %v7352_v3  ;;  %v7428_v2 = vld [vmem:[#allocation5 + $0xae0] ss:$24 sps:$4 sm:$0xff]  }
 0x1a1   :  { %2878 = vmatprep.subr.bf16.mxu1 %v7355_v4  ;;  %v7431_v3 = vld [vmem:[#allocation5 + $0xae8] ss:$24 sps:$4 sm:$0xff]   ;;  %v7436_v4 = vld [vmem:[#allocation5 + $0xb14] ss:$24 sps:$4 sm:$0xff]  }
 0x1a3   :  { %2707 = vmatpush1.bf16.msra.mxu0 %v7350_v6  ;;  %v7439_v6 = vld [vmem:[#allocation5 + $0xb1c] ss:$24 sps:$4 sm:$0xff]  }
 0x1a4   :  { %2879 = vmatpush1.bf16.msra.mxu1 %v7353_v7  ;;  %2708 = vmatprep.subr.bf16.mxu0 %v7358_v8  ;;  %v7434_v7 = vld [vmem:[#allocation5 + $0xb10] ss:$24 sps:$4 sm:$0xff]  }
 0x1a5   :  { %2880 = vmatprep.subr.bf16.mxu1 %v7361_v9  ;;  %v7437_v8 = vld [vmem:[#allocation5 + $0xb18] ss:$24 sps:$4 sm:$0xff]   ;;  %v7442_v9 = vld [vmem:[#allocation5 + $0xb44] ss:$24 sps:$4 sm:$0xff]  }
 0x1a7   :  { %2709 = vmatpush1.bf16.msra.mxu0 %v7356_v10  ;;  %v7445_v10 = vld [vmem:[#allocation5 + $0xb4c] ss:$24 sps:$4 sm:$0xff]  }
 0x1a8   :  { %2881 = vmatpush1.bf16.msra.mxu1 %v7359_v12  ;;  %2710 = vmatprep.subr.bf16.mxu0 %v7364_v13  ;;  %v7440_v12 = vld [vmem:[#allocation5 + $0xb40] ss:$24 sps:$4 sm:$0xff]  }
 0x1a9   :  { %2882 = vmatprep.subr.bf16.mxu1 %v7367_v14  ;;  %v7443_v13 = vld [vmem:[#allocation5 + $0xb48] ss:$24 sps:$4 sm:$0xff]   ;;  %v7448_v14 = vld [vmem:[#allocation5 + $0xb74] ss:$24 sps:$4 sm:$0xff]  }
 0x1ab   :  { %2711 = vmatpush1.bf16.msra.mxu0 %v7362_v15  ;;  %v7451_v15 = vld [vmem:[#allocation5 + $0xb7c] ss:$24 sps:$4 sm:$0xff]  }
 0x1ac   :  { %2883 = vmatpush1.bf16.msra.mxu1 %v7365_v19  ;;  %2723 = vmatprep.subr.bf16.mxu0 %v7370_v20  ;;  %v7446_v19 = vld [vmem:[#allocation5 + $0xb70] ss:$24 sps:$4 sm:$0xff]  }
 0x1ad   :  { %2895 = vmatprep.subr.bf16.mxu1 %v7373_v21  ;;  %v7449_v20 = vld [vmem:[#allocation5 + $0xb78] ss:$24 sps:$4 sm:$0xff]   ;;  %v7454_v21 = vld [vmem:[#allocation5 + $0xba4] ss:$24 sps:$4 sm:$0xff]  }
 0x1ae   :  { %2713 = vmatmul.mubr.bf16.vlgmr.msra.gmra.mrb[0].mxu0 %v8786_v24 }
 0x1af   :  { %2885 = vmatmul.mubr.bf16.vlgmr.msra.gmra.mrb[0].mxu1 %v8786_v24  ;;  %2724 = vmatpush1.bf16.msra.mxu0 %v7368_v22  ;;  %v7457_v22 = vld [vmem:[#allocation5 + $0xbac] ss:$24 sps:$4 sm:$0xff]  }
 0x1b0   :  { %2896 = vmatpush1.bf16.msra.mxu1 %v7371_v23  ;;  %2725 = vmatprep.subr.bf16.mxu0 %v7376_v27  ;;  %v7452_v23 = vld [vmem:[#allocation5 + $0xba0] ss:$24 sps:$4 sm:$0xff]  }
 0x1b1   :  { %2897 = vmatprep.subr.bf16.mxu1 %v7379_v28  ;;  %2755 = vmatprep.mubr.bf16.mxu0 %v8794_v29  ;;  %v7455_v27 = vld [vmem:[#allocation5 + $0xba8] ss:$24 sps:$4 sm:$0xff]   ;;  %v7460_v28 = vld [vmem:[#allocation5 + $0xbd4] ss:$24 sps:$4 sm:$0xff]  }
 0x1b2   :  { %2927 = vmatprep.mubr.bf16.mxu1 %v8794_v29 }
 0x1b3   :  { %2726 = vmatpush1.bf16.msra.mxu0 %v7374_v16  ;;  %v7463_v16 = vld [vmem:[#allocation5 + $0xbdc] ss:$24 sps:$4 sm:$0xff]  }
 0x1b4   :  { %2898 = vmatpush1.bf16.msra.mxu1 %v7377_v17  ;;  %2727 = vmatprep.subr.bf16.mxu0 %v7382_v30  ;;  %v7458_v17 = vld [vmem:[#allocation5 + $0xbd0] ss:$24 sps:$4 sm:$0xff]  }
 0x1b5   :  { %2899 = vmatprep.subr.bf16.mxu1 %v7385_v31  ;;  %v7461_v30 = vld [vmem:[#allocation5 + $0xbd8] ss:$24 sps:$4 sm:$0xff]   ;;  %v7466_v31 = vld [vmem:[#allocation5 + $0x14] ss:$24 sps:$4 sm:$0xff]  }
 0x1b7   :  { %2728 = vmatpush1.bf16.msra.mxu0 %v7380_v32  ;;  %v8802_v32 = vcombine.low %v8788_v25, %v8790_v26  ;;  %v7473_v25 = vld [vmem:[#allocation5 + $0xa0] ss:$24 sps:$4 sm:$0xff]   ;;  %v7478_v26 = vld [vmem:[#allocation5 + $0xd4] ss:$24 sps:$4 sm:$0xff]  }
 0x1b8   :  { %2900 = vmatpush1.bf16.msra.mxu1 %v7383_v33  ;;  %2729 = vmatprep.subr.bf16.mxu0 %v7388_v35  ;;  %v7464_v33 = vld [vmem:[#allocation5 + $0x10] ss:$24 sps:$4 sm:$0xff]   ;;  %v7469_v35 = vld [vmem:[#allocation5 + $0x44] ss:$24 sps:$4 sm:$0xff]  }
 0x1b9   :  { %2901 = vmatprep.subr.bf16.mxu1 %v7391_v36  ;;  %v7467_v36 = vld [vmem:[#allocation5 + $0x40] ss:$24 sps:$4 sm:$0xff]  }
 0x1bb   :  { %2730 = vmatpush1.bf16.msra.mxu0 %v7386_v37  ;;  %v7472_v37 = vld [vmem:[#allocation5 + $0x74] ss:$24 sps:$4 sm:$0xff]  }
 0x1bc   :  { %2902 = vmatpush1.bf16.msra.mxu1 %v7389_v38  ;;  %2731 = vmatprep.subr.bf16.mxu0 %v7394_v39  ;;  %v7470_v38 = vld [vmem:[#allocation5 + $0x70] ss:$24 sps:$4 sm:$0xff]   ;;  %v7475_v39 = vld [vmem:[#allocation5 + $0xa4] ss:$24 sps:$4 sm:$0xff]  }
 0x1bd   :  { %2903 = vmatprep.subr.bf16.mxu1 %v7397_v40  ;;  %v7476_v40 = vld [vmem:[#allocation5 + $0xd0] ss:$24 sps:$4 sm:$0xff]  }
 0x1bf   :  { %2732 = vmatpush1.bf16.msra.mxu0 %v7392_v41  ;;  %v7481_v41 = vld [vmem:[#allocation5 + $0x104] ss:$24 sps:$4 sm:$0xff]  }
 0x1c0   :  { %2904 = vmatpush1.bf16.msra.mxu1 %v7395_v42  ;;  %2733 = vmatprep.subr.bf16.mxu0 %v7400_v43  ;;  %v7479_v42 = vld [vmem:[#allocation5 + $0x100] ss:$24 sps:$4 sm:$0xff]   ;;  %v7484_v43 = vld [vmem:[#allocation5 + $0x134] ss:$24 sps:$4 sm:$0xff]  }
 0x1c1   :  { %2905 = vmatprep.subr.bf16.mxu1 %v7403_v44  ;;  %v7482_v44 = vld [vmem:[#allocation5 + $0x130] ss:$24 sps:$4 sm:$0xff]  }
 0x1c3   :  { %2734 = vmatpush1.bf16.msra.mxu0 %v7398_v45  ;;  %v7485_v45 = vld [vmem:[#allocation5 + $0x160] ss:$24 sps:$4 sm:$0xff]  }
 0x1c4   :  { %2906 = vmatpush1.bf16.msra.mxu1 %v7401_v46  ;;  %2735 = vmatprep.subr.bf16.mxu0 %v7406_v47  ;;  %v7490_v46 = vld [vmem:[#allocation5 + $0x194] ss:$24 sps:$4 sm:$0xff]  }
 0x1c5   :  { %2907 = vmatprep.subr.bf16.mxu1 %v7409_v48  ;;  %v7586_v47 = vld [vmem:[#allocation8 + $0x4] ss:$16 sps:$4 sm:$0xff]   ;;  %v7584_v48 = vld [vmem:[#allocation8] ss:$16 sps:$4 sm:$0xff]  }
 0x1c7   :  { %2736 = vmatpush1.bf16.msra.mxu0 %v7404_v49  ;;  %v7488_v49 = vld [vmem:[#allocation5 + $0x190] ss:$24 sps:$4 sm:$0xff]  }
 0x1c8   :  { %2908 = vmatpush1.bf16.msra.mxu1 %v7407_v51  ;;  %2737 = vmatprep.subr.bf16.mxu0 %v7412_v52  ;;  %v7493_v51 = vld [vmem:[#allocation5 + $0x1c4] ss:$24 sps:$4 sm:$0xff]  }
 0x1c9   :  { %2909 = vmatprep.subr.bf16.mxu1 %v7415_v53  ;;  %v7592_v52 = vld [vmem:[#allocation8 + $0x24] ss:$16 sps:$4 sm:$0xff]   ;;  %v7590_v53 = vld [vmem:[#allocation8 + $0x20] ss:$16 sps:$4 sm:$0xff]  }
 0x1cb   :  { %2738 = vmatpush1.bf16.msra.mxu0 %v7410_v54  ;;  %v7491_v54 = vld [vmem:[#allocation5 + $0x1c0] ss:$24 sps:$4 sm:$0xff]  }
 0x1cc   :  { %2910 = vmatpush1.bf16.msra.mxu1 %v7413_v55  ;;  %2739 = vmatprep.subr.bf16.mxu0 %v7418_v56  ;;  %v7496_v55 = vld [vmem:[#allocation5 + $0x1f4] ss:$24 sps:$4 sm:$0xff]  }
 0x1cd   :  { %2911 = vmatprep.subr.bf16.mxu1 %v7421_v57  ;;  %v7598_v56 = vld [vmem:[#allocation8 + $0x44] ss:$16 sps:$4 sm:$0xff]   ;;  %v7596_v57 = vld [vmem:[#allocation8 + $0x40] ss:$16 sps:$4 sm:$0xff]  }
 0x1cf   :  { %2740 = vmatpush1.bf16.msra.mxu0 %v7416_v58  ;;  %v7494_v58 = vld [vmem:[#allocation5 + $0x1f0] ss:$24 sps:$4 sm:$0xff]  }
 0x1d0   :  { %2912 = vmatpush1.bf16.msra.mxu1 %v7419_v59  ;;  %2741 = vmatprep.subr.bf16.mxu0 %v7424_v60  ;;  %v7499_v59 = vld [vmem:[#allocation5 + $0x224] ss:$24 sps:$4 sm:$0xff]  }
 0x1d1   :  { %2913 = vmatprep.subr.bf16.mxu1 %v7427_v61  ;;  %v7604_v60 = vld [vmem:[#allocation8 + $0x64] ss:$16 sps:$4 sm:$0xff]   ;;  %v7602_v61 = vld [vmem:[#allocation8 + $0x60] ss:$16 sps:$4 sm:$0xff]  }
 0x1d3   :  { %2742 = vmatpush1.bf16.msra.mxu0 %v7422_v62  ;;  %v7497_v62 = vld [vmem:[#allocation5 + $0x220] ss:$24 sps:$4 sm:$0xff]  }
 0x1d4   :  { %2914 = vmatpush1.bf16.msra.mxu1 %v7425_v63  ;;  %2743 = vmatprep.subr.bf16.mxu0 %v7430_v0  ;;  %v7502_v63 = vld [vmem:[#allocation5 + $0x254] ss:$24 sps:$4 sm:$0xff]  }
 0x1d5   :  { %2915 = vmatprep.subr.bf16.mxu1 %v7433_v1  ;;  %v7610_v0 = vld [vmem:[#allocation8 + $0x84] ss:$16 sps:$4 sm:$0xff]   ;;  %v7608_v1 = vld [vmem:[#allocation8 + $0x80] ss:$16 sps:$4 sm:$0xff]  }
 0x1d7   :  { %2744 = vmatpush1.bf16.msra.mxu0 %v7428_v2  ;;  %v7500_v2 = vld [vmem:[#allocation5 + $0x250] ss:$24 sps:$4 sm:$0xff]  }
 0x1d8   :  { %2916 = vmatpush1.bf16.msra.mxu1 %v7431_v3  ;;  %2745 = vmatprep.subr.bf16.mxu0 %v7436_v4  ;;  %v7505_v3 = vld [vmem:[#allocation5 + $0x284] ss:$24 sps:$4 sm:$0xff]  }
 0x1d9   :  { %2917 = vmatprep.subr.bf16.mxu1 %v7439_v6  ;;  %v7616_v4 = vld [vmem:[#allocation8 + $0xa4] ss:$16 sps:$4 sm:$0xff]   ;;  %v7614_v6 = vld [vmem:[#allocation8 + $0xa0] ss:$16 sps:$4 sm:$0xff]  }
 0x1db   :  { %2746 = vmatpush1.bf16.msra.mxu0 %v7434_v7  ;;  %v7503_v7 = vld [vmem:[#allocation5 + $0x280] ss:$24 sps:$4 sm:$0xff]  }
 0x1dc   :  { %2918 = vmatpush1.bf16.msra.mxu1 %v7437_v8  ;;  %2747 = vmatprep.subr.bf16.mxu0 %v7442_v9  ;;  %v7508_v8 = vld [vmem:[#allocation5 + $0x2b4] ss:$24 sps:$4 sm:$0xff]  }
 0x1dd   :  { %2919 = vmatprep.subr.bf16.mxu1 %v7445_v10  ;;  %v7622_v9 = vld [vmem:[#allocation8 + $0xc4] ss:$16 sps:$4 sm:$0xff]   ;;  %v7620_v10 = vld [vmem:[#allocation8 + $0xc0] ss:$16 sps:$4 sm:$0xff]  }
 0x1df   :  { %2748 = vmatpush1.bf16.msra.mxu0 %v7440_v12  ;;  %v7506_v12 = vld [vmem:[#allocation5 + $0x2b0] ss:$24 sps:$4 sm:$0xff]  }
 0x1e0   :  { %2920 = vmatpush1.bf16.msra.mxu1 %v7443_v13  ;;  %2749 = vmatprep.subr.bf16.mxu0 %v7448_v14  ;;  %v7511_v13 = vld [vmem:[#allocation5 + $0x2e4] ss:$24 sps:$4 sm:$0xff]  }
 0x1e1   :  { %2921 = vmatprep.subr.bf16.mxu1 %v7451_v15  ;;  %v7628_v14 = vld [vmem:[#allocation8 + $0xe4] ss:$16 sps:$4 sm:$0xff]   ;;  %v7626_v15 = vld [vmem:[#allocation8 + $0xe0] ss:$16 sps:$4 sm:$0xff]  }
 0x1e3   :  { %2750 = vmatpush1.bf16.msra.mxu0 %v7446_v19  ;;  %v7509_v19 = vld [vmem:[#allocation5 + $0x2e0] ss:$24 sps:$4 sm:$0xff]  }
 0x1e4   :  { %2922 = vmatpush1.bf16.msra.mxu1 %v7449_v20  ;;  %2751 = vmatprep.subr.bf16.mxu0 %v7454_v21  ;;  %v7514_v20 = vld [vmem:[#allocation5 + $0x314] ss:$24 sps:$4 sm:$0xff]  }
 0x1e5   :  { %2923 = vmatprep.subr.bf16.mxu1 %v7457_v22  ;;  %v7634_v21 = vld [vmem:[#allocation8 + $0x104] ss:$16 sps:$4 sm:$0xff]   ;;  %v7632_v22 = vld [vmem:[#allocation8 + $0x100] ss:$16 sps:$4 sm:$0xff]  }
 0x1e7   :  { %2752 = vmatpush1.bf16.msra.mxu0 %v7452_v23  ;;  %v7512_v23 = vld [vmem:[#allocation5 + $0x310] ss:$24 sps:$4 sm:$0xff]  }
 0x1e8   :  { %2924 = vmatpush1.bf16.msra.mxu1 %v7455_v27  ;;  %2753 = vmatprep.subr.bf16.mxu0 %v7460_v28  ;;  %v7517_v27 = vld [vmem:[#allocation5 + $0x344] ss:$24 sps:$4 sm:$0xff]  }
 0x1e9   :  { %2925 = vmatprep.subr.bf16.mxu1 %v7463_v16  ;;  %v7640_v28 = vld [vmem:[#allocation8 + $0x124] ss:$16 sps:$4 sm:$0xff]   ;;  %v7638_v16 = vld [vmem:[#allocation8 + $0x120] ss:$16 sps:$4 sm:$0xff]  }
 0x1eb   :  { %2754 = vmatpush1.bf16.msra.mxu0 %v7458_v17  ;;  %v7515_v17 = vld [vmem:[#allocation5 + $0x340] ss:$24 sps:$4 sm:$0xff]  }
 0x1ec   :  { %2926 = vmatpush1.bf16.msra.mxu1 %v7461_v30  ;;  %2938 = vmatprep.subr.bf16.mxu0 %v7466_v31  ;;  %v7520_v30 = vld [vmem:[#allocation5 + $0x374] ss:$24 sps:$4 sm:$0xff]  }
 0x1ed   :  { %4302 = vmatprep.subr.bf16.mxu1 %v7586_v47  ;;  %v7646_v31 = vld [vmem:[#allocation8 + $0x144] ss:$16 sps:$4 sm:$0xff]  }
 0x1ee   :  { %2756 = vmatmul.mubr.bf16.vlgmr.msra.gmra.mrb[0].mxu0 %v8802_v32  ;;  %v7535_v47 = vld [vmem:[#allocation5 + $0x464] ss:$24 sps:$4 sm:$0xff]  }
 0x1ef   :  { %2928 = vmatmul.mubr.bf16.vlgmr.msra.gmra.mrb[0].mxu1 %v8802_v32  ;;  %2939 = vmatpush1.bf16.msra.mxu0 %v7464_v33  ;;  %v7644_v33 = vld [vmem:[#allocation8 + $0x140] ss:$16 sps:$4 sm:$0xff]  }
 0x1f0   :  { %2970 = vmatprep.mubr.bf16.mxu0 %v8750_v50  ;;  %2940 = vmatprep.subr.bf16.mxu0 %v7469_v35  ;;  %v7487_v50 = vld [vmem:[#allocation5 + $0x164] ss:$24 sps:$4 sm:$0xff]   ;;  %v7518_v35 = vld [vmem:[#allocation5 + $0x370] ss:$24 sps:$4 sm:$0xff]  }
 0x1f1   :  { %4303 = vmatpush1.bf16.msra.mxu1 %v7584_v48  ;;  %v7533_v48 = vld [vmem:[#allocation5 + $0x460] ss:$24 sps:$4 sm:$0xff]  }
 0x1f2   :  { %4304 = vmatprep.subr.bf16.mxu1 %v7592_v52  ;;  %v7538_v52 = vld [vmem:[#allocation5 + $0x494] ss:$24 sps:$4 sm:$0xff]  }
 0x1f3   :  { %2941 = vmatpush1.bf16.msra.mxu0 %v7467_v36  ;;  %v7523_v36 = vld [vmem:[#allocation5 + $0x3a4] ss:$24 sps:$4 sm:$0xff]  }
 0x1f4   :  { %2942 = vmatprep.subr.bf16.mxu0 %v7472_v37  ;;  %v7652_v37 = vld [vmem:[#allocation8 + $0x164] ss:$16 sps:$4 sm:$0xff]  }
 0x1f5   :  { %4305 = vmatpush1.bf16.msra.mxu1 %v7590_v53  ;;  %v7536_v53 = vld [vmem:[#allocation5 + $0x490] ss:$24 sps:$4 sm:$0xff]  }
 0x1f6   :  { %4306 = vmatprep.subr.bf16.mxu1 %v7598_v56  ;;  %v7539_v56 = vld [vmem:[#allocation5 + $0x4c0] ss:$24 sps:$4 sm:$0xff]  }
 0x1f7   :  { %2943 = vmatpush1.bf16.msra.mxu0 %v7470_v38  ;;  %v7650_v38 = vld [vmem:[#allocation8 + $0x160] ss:$16 sps:$4 sm:$0xff]  }
 0x1f8   :  { %2944 = vmatprep.subr.bf16.mxu0 %v7475_v39  ;;  %v7526_v39 = vld [vmem:[#allocation5 + $0x3d4] ss:$24 sps:$4 sm:$0xff]  }
 0x1f9   :  { %4307 = vmatpush1.bf16.msra.mxu1 %v7596_v57  ;;  %v7544_v57 = vld [vmem:[#allocation5 + $0x4f4] ss:$24 sps:$4 sm:$0xff]  }
 0x1fa   :  { %4308 = vmatprep.subr.bf16.mxu1 %v7604_v60  ;;  %v7545_v60 = vld [vmem:[#allocation5 + $0x520] ss:$24 sps:$4 sm:$0xff]  }
 0x1fb   :  { %2945 = vmatpush1.bf16.msra.mxu0 %v7473_v25  ;;  %v7656_v25 = vld [vmem:[#allocation8 + $0x180] ss:$16 sps:$4 sm:$0xff]  }
 0x1fc   :  { %2946 = vmatprep.subr.bf16.mxu0 %v7478_v26  ;;  %v7524_v26 = vld [vmem:[#allocation5 + $0x3d0] ss:$24 sps:$4 sm:$0xff]  }
 0x1fd   :  { %4309 = vmatpush1.bf16.msra.mxu1 %v7602_v61  ;;  %v7550_v61 = vld [vmem:[#allocation5 + $0x554] ss:$24 sps:$4 sm:$0xff]  }
 0x1fe   :  { %4310 = vmatprep.subr.bf16.mxu1 %v7610_v0  ;;  %v7551_v0 = vld [vmem:[#allocation5 + $0x580] ss:$24 sps:$4 sm:$0xff]  }
 0x1ff   :  { %2947 = vmatpush1.bf16.msra.mxu0 %v7476_v40  ;;  %v7529_v40 = vld [vmem:[#allocation5 + $0x404] ss:$24 sps:$4 sm:$0xff]  }
 0x200   :  { %2948 = vmatprep.subr.bf16.mxu0 %v7481_v41  ;;  %v7664_v41 = vld [vmem:[#allocation8 + $0x1a4] ss:$16 sps:$4 sm:$0xff]  }
 0x201   :  { %4311 = vmatpush1.bf16.msra.mxu1 %v7608_v1  ;;  %v7556_v1 = vld [vmem:[#allocation5 + $0x5b4] ss:$24 sps:$4 sm:$0xff]  }
 0x202   :  { %4312 = vmatprep.subr.bf16.mxu1 %v7616_v4  ;;  %v7557_v4 = vld [vmem:[#allocation5 + $0x5e0] ss:$24 sps:$4 sm:$0xff]  }
 0x203   :  { %2949 = vmatpush1.bf16.msra.mxu0 %v7479_v42  ;;  %v7662_v42 = vld [vmem:[#allocation8 + $0x1a0] ss:$16 sps:$4 sm:$0xff]  }
 0x204   :  { %2950 = vmatprep.subr.bf16.mxu0 %v7484_v43  ;;  %v7527_v43 = vld [vmem:[#allocation5 + $0x400] ss:$24 sps:$4 sm:$0xff]  }
 0x205   :  { %4313 = vmatpush1.bf16.msra.mxu1 %v7614_v6  ;;  %v7562_v6 = vld [vmem:[#allocation5 + $0x614] ss:$24 sps:$4 sm:$0xff]  }
 0x206   :  { %4314 = vmatprep.subr.bf16.mxu1 %v7622_v9  ;;  %v7563_v9 = vld [vmem:[#allocation5 + $0x640] ss:$24 sps:$4 sm:$0xff]  }
 0x207   :  { %2951 = vmatpush1.bf16.msra.mxu0 %v7482_v44  ;;  %v7532_v44 = vld [vmem:[#allocation5 + $0x434] ss:$24 sps:$4 sm:$0xff]  }
 0x208   :  { %2952 = vmatprep.subr.bf16.mxu0 %v7487_v50  ;;  %v7530_v50 = vld [vmem:[#allocation5 + $0x430] ss:$24 sps:$4 sm:$0xff]  }
 0x209   :  { %4315 = vmatpush1.bf16.msra.mxu1 %v7620_v10  ;;  %v7568_v10 = vld [vmem:[#allocation5 + $0x674] ss:$24 sps:$4 sm:$0xff]  }
 0x20a   :  { %4316 = vmatprep.subr.bf16.mxu1 %v7628_v14  ;;  %v7569_v14 = vld [vmem:[#allocation5 + $0x6a0] ss:$24 sps:$4 sm:$0xff]  }
 0x20b   :  { %2953 = vmatpush1.bf16.msra.mxu0 %v7485_v45  ;;  %v7670_v45 = vld [vmem:[#allocation8 + $0x1c4] ss:$16 sps:$4 sm:$0xff]  }
 0x20c   :  { %2954 = vmatprep.subr.bf16.mxu0 %v7490_v46  ;;  %v7668_v46 = vld [vmem:[#allocation8 + $0x1c0] ss:$16 sps:$4 sm:$0xff]  }
 0x20d   :  { %4317 = vmatpush1.bf16.msra.mxu1 %v7626_v15  ;;  %v7574_v15 = vld [vmem:[#allocation5 + $0x6d4] ss:$24 sps:$4 sm:$0xff]  }
 0x20e   :  { %4318 = vmatprep.subr.bf16.mxu1 %v7634_v21  ;;  %v7575_v21 = vld [vmem:[#allocation5 + $0x700] ss:$24 sps:$4 sm:$0xff]  }
 0x20f   :  { %2955 = vmatpush1.bf16.msra.mxu0 %v7488_v49  ;;  %v7676_v49 = vld [vmem:[#allocation8 + $0x1e4] ss:$16 sps:$4 sm:$0xff]  }
 0x210   :  { %2956 = vmatprep.subr.bf16.mxu0 %v7493_v51  ;;  %v7674_v51 = vld [vmem:[#allocation8 + $0x1e0] ss:$16 sps:$4 sm:$0xff]  }
 0x211   :  { %4319 = vmatpush1.bf16.msra.mxu1 %v7632_v22  ;;  %v7578_v22 = vld [vmem:[#allocation5 + $0x730] ss:$24 sps:$4 sm:$0xff]  }
 0x212   :  { %4320 = vmatprep.subr.bf16.mxu1 %v7640_v28  ;;  %v7587_v28 = vld [vmem:[#allocation5 + $0x790] ss:$24 sps:$4 sm:$0xff]  }
 0x213   :  { %2957 = vmatpush1.bf16.msra.mxu0 %v7491_v54  ;;  %v7682_v54 = vld [vmem:[#allocation8 + $0x204] ss:$16 sps:$4 sm:$0xff]  }
 0x214   :  { %2958 = vmatprep.subr.bf16.mxu0 %v7496_v55  ;;  %v7541_v55 = vld [vmem:[#allocation5 + $0x4c4] ss:$24 sps:$4 sm:$0xff]  }
 0x215   :  { %4321 = vmatpush1.bf16.msra.mxu1 %v7638_v16  ;;  %v7595_v16 = vld [vmem:[#allocation5 + $0x7c4] ss:$24 sps:$4 sm:$0xff]  }
 0x216   :  { %4322 = vmatprep.subr.bf16.mxu1 %v7646_v31  ;;  %v7599_v31 = vld [vmem:[#allocation5 + $0x7f0] ss:$24 sps:$4 sm:$0xff]  }
 0x217   :  { %2959 = vmatpush1.bf16.msra.mxu0 %v7494_v58  ;;  %v7542_v58 = vld [vmem:[#allocation5 + $0x4f0] ss:$24 sps:$4 sm:$0xff]  }
 0x218   :  { %2960 = vmatprep.subr.bf16.mxu0 %v7499_v59  ;;  %v7547_v59 = vld [vmem:[#allocation5 + $0x524] ss:$24 sps:$4 sm:$0xff]  }
 0x219   :  { %4323 = vmatpush1.bf16.msra.mxu1 %v7644_v33  ;;  %v7607_v33 = vld [vmem:[#allocation5 + $0x824] ss:$24 sps:$4 sm:$0xff]  }
 0x21a   :  { %4324 = vmatprep.subr.bf16.mxu1 %v7652_v37  ;;  %v7611_v37 = vld [vmem:[#allocation5 + $0x850] ss:$24 sps:$4 sm:$0xff]  }
 0x21b   :  { %2961 = vmatpush1.bf16.msra.mxu0 %v7497_v62  ;;  %v7548_v62 = vld [vmem:[#allocation5 + $0x550] ss:$24 sps:$4 sm:$0xff]  }
 0x21c   :  { %2962 = vmatprep.subr.bf16.mxu0 %v7502_v63  ;;  %v7553_v63 = vld [vmem:[#allocation5 + $0x584] ss:$24 sps:$4 sm:$0xff]  }
 0x21d   :  { %4325 = vmatpush1.bf16.msra.mxu1 %v7650_v38  ;;  %v7619_v38 = vld [vmem:[#allocation5 + $0x884] ss:$24 sps:$4 sm:$0xff]  }
 0x21f   :  { %2963 = vmatpush1.bf16.msra.mxu0 %v7500_v2  ;;  %v7554_v2 = vld [vmem:[#allocation5 + $0x5b0] ss:$24 sps:$4 sm:$0xff]  }
 0x220   :  { %2964 = vmatprep.subr.bf16.mxu0 %v7505_v3  ;;  %v7559_v3 = vld [vmem:[#allocation5 + $0x5e4] ss:$24 sps:$4 sm:$0xff]  }
 0x223   :  { %2965 = vmatpush1.bf16.msra.mxu0 %v7503_v7  ;;  %v7560_v7 = vld [vmem:[#allocation5 + $0x610] ss:$24 sps:$4 sm:$0xff]  }
 0x224   :  { %2966 = vmatprep.subr.bf16.mxu0 %v7508_v8  ;;  %v7565_v8 = vld [vmem:[#allocation5 + $0x644] ss:$24 sps:$4 sm:$0xff]  }
 0x227   :  { %2967 = vmatpush1.bf16.msra.mxu0 %v7506_v12  ;;  %v7566_v12 = vld [vmem:[#allocation5 + $0x670] ss:$24 sps:$4 sm:$0xff]  }
 0x228   :  { %2968 = vmatprep.subr.bf16.mxu0 %v7511_v13  ;;  %v7571_v13 = vld [vmem:[#allocation5 + $0x6a4] ss:$24 sps:$4 sm:$0xff]  }
 0x22b   :  { %2969 = vmatpush1.bf16.msra.mxu0 %v7509_v19  ;;  %v7572_v19 = vld [vmem:[#allocation5 + $0x6d0] ss:$24 sps:$4 sm:$0xff]  }
 0x22c   :  { %2981 = vmatprep.subr.bf16.mxu0 %v7514_v20  ;;  %v7577_v20 = vld [vmem:[#allocation5 + $0x704] ss:$24 sps:$4 sm:$0xff]  }
 0x22e   :  { %2971 = vmatmul.mubr.bf16.vlgmr.msra.gmra.mrb[4].mxu0 %v8754_v5  ;;  %v7521_v5 = vld [vmem:[#allocation5 + $0x3a0] ss:$24 sps:$4 sm:$0xff]  }
 0x22f   :  { %2982 = vmatpush1.bf16.msra.mxu0 %v7512_v23  ;;  %3013 = vmatprep.mubr.bf16.mxu0 %v8764_v34  ;;  %v7658_v34 = vld [vmem:[#allocation8 + $0x184] ss:$16 sps:$4 sm:$0xff]  }
 0x230   :  { %2983 = vmatprep.subr.bf16.mxu0 %v7517_v27  ;;  %4326 = vmatprep.subr.bf16.mxu1 %v7658_v34  ;;  %v7583_v23 = vld [vmem:[#allocation5 + $0x764] ss:$24 sps:$4 sm:$0xff]   ;;  %v7589_v27 = vld [vmem:[#allocation5 + $0x794] ss:$24 sps:$4 sm:$0xff]   ;;  %v7623_v34 = vld [vmem:[#allocation5 + $0x8b0] ss:$24 sps:$4 sm:$0xff]  }
 0x231   :  { %4327 = vmatpush1.bf16.msra.mxu1 %v7656_v25  ;;  %v7631_v25 = vld [vmem:[#allocation5 + $0x8e4] ss:$24 sps:$4 sm:$0xff]  }
 0x232   :  { %4328 = vmatprep.subr.bf16.mxu1 %v7664_v41  ;;  %v7635_v41 = vld [vmem:[#allocation5 + $0x910] ss:$24 sps:$4 sm:$0xff]  }
 0x233   :  { %2984 = vmatpush1.bf16.msra.mxu0 %v7515_v17  ;;  %v7593_v17 = vld [vmem:[#allocation5 + $0x7c0] ss:$24 sps:$4 sm:$0xff]  }
 0x234   :  { %2985 = vmatprep.subr.bf16.mxu0 %v7520_v30  ;;  %v7601_v30 = vld [vmem:[#allocation5 + $0x7f4] ss:$24 sps:$4 sm:$0xff]  }
 0x235   :  { %4329 = vmatpush1.bf16.msra.mxu1 %v7662_v42  ;;  %v7643_v42 = vld [vmem:[#allocation5 + $0x944] ss:$24 sps:$4 sm:$0xff]  }
 0x236   :  { %4330 = vmatprep.subr.bf16.mxu1 %v7670_v45  ;;  %v7647_v45 = vld [vmem:[#allocation5 + $0x970] ss:$24 sps:$4 sm:$0xff]  }
 0x237   :  { %2986 = vmatpush1.bf16.msra.mxu0 %v7518_v35  ;;  %v7605_v35 = vld [vmem:[#allocation5 + $0x820] ss:$24 sps:$4 sm:$0xff]  }
 0x238   :  { %2987 = vmatprep.subr.bf16.mxu0 %v7523_v36  ;;  %v7613_v36 = vld [vmem:[#allocation5 + $0x854] ss:$24 sps:$4 sm:$0xff]  }
 0x239   :  { %4331 = vmatpush1.bf16.msra.mxu1 %v7668_v46  ;;  %v7655_v46 = vld [vmem:[#allocation5 + $0x9a4] ss:$24 sps:$4 sm:$0xff]  }
 0x23a   :  { %4332 = vmatprep.subr.bf16.mxu1 %v7676_v49  ;;  %v7661_v49 = vld [vmem:[#allocation5 + $0x9d4] ss:$24 sps:$4 sm:$0xff]  }
 0x23b   :  { %2988 = vmatpush1.bf16.msra.mxu0 %v7521_v5  ;;  %v7617_v5 = vld [vmem:[#allocation5 + $0x880] ss:$24 sps:$4 sm:$0xff]  }
 0x23c   :  { %2989 = vmatprep.subr.bf16.mxu0 %v7526_v39  ;;  %v7625_v39 = vld [vmem:[#allocation5 + $0x8b4] ss:$24 sps:$4 sm:$0xff]  }
 0x23d   :  { %4333 = vmatpush1.bf16.msra.mxu1 %v7674_v51 }
 0x23e   :  { %4345 = vmatprep.subr.bf16.mxu1 %v7682_v54 }
 0x23f   :  { %2990 = vmatpush1.bf16.msra.mxu0 %v7524_v26  ;;  %v7629_v26 = vld [vmem:[#allocation5 + $0x8e0] ss:$24 sps:$4 sm:$0xff]  }
 0x240   :  { %2991 = vmatprep.subr.bf16.mxu0 %v7529_v40  ;;  %v7637_v40 = vld [vmem:[#allocation5 + $0x914] ss:$24 sps:$4 sm:$0xff]  }
 0x243   :  { %2992 = vmatpush1.bf16.msra.mxu0 %v7527_v43  ;;  %v7641_v43 = vld [vmem:[#allocation5 + $0x940] ss:$24 sps:$4 sm:$0xff]  }
 0x244   :  { %2993 = vmatprep.subr.bf16.mxu0 %v7532_v44  ;;  %v7649_v44 = vld [vmem:[#allocation5 + $0x974] ss:$24 sps:$4 sm:$0xff]  }
 0x247   :  { %2994 = vmatpush1.bf16.msra.mxu0 %v7530_v50  ;;  %v604_v50 = vlaneseq }
 0x248   :  { %2995 = vmatprep.subr.bf16.mxu0 %v7535_v47 }
 0x249   :  { %v8813_v47 = vshrl.u32 %v604_v50, 7  ;;  %v7698_v50 = vld [vmem:[#allocation8 + $0x260] ss:$16 sps:$4 sm:$0xff]  }
 0x24b   :  { %2996 = vmatpush1.bf16.msra.mxu0 %v7533_v48  ;;  %v7653_v48 = vld [vmem:[#allocation5 + $0x9a0] ss:$24 sps:$4 sm:$0xff]   ;;  %v8816_v51 = vsub.s32 0, %v8813_v47  ;;  %v618_v54 = vsub.s32 3, %v8813_v47 }
 0x24c   :  { %2997 = vmatprep.subr.bf16.mxu0 %v7538_v52  ;;  %v8821_v52 = vld [vmem:[#allocation7] sm:$0x3f] }
 0x24f   :  { %2998 = vmatpush1.bf16.msra.mxu0 %v7536_v53  ;;  %v8824_v53 = vsub.s32 1, %v8813_v47 }
 0x250   :  { %2999 = vmatprep.subr.bf16.mxu0 %v7541_v55  ;;  %v7667_v55 = vld [vmem:[#allocation5 + $0xa04] ss:$24 sps:$4 sm:$0xff]  }
 0x253   :  { %3000 = vmatpush1.bf16.msra.mxu0 %v7539_v56  ;;  %v607_v56 = vrot.slane %v8821_v52, %v8816_v51 }
 0x254   :  { %3001 = vmatprep.subr.bf16.mxu0 %v7544_v57 }
 0x257   :  { %3002 = vmatpush1.bf16.msra.mxu0 %v7542_v58  ;;  %v611_v58 = vrot.slane %v8821_v52, %v8824_v53 }
 0x258   :  { %3003 = vmatprep.subr.bf16.mxu0 %v7547_v59  ;;  %v619_v59 = vrot.slane %v8821_v52, %v618_v54 }
 0x25b   :  { %3004 = vmatpush1.bf16.msra.mxu0 %v7545_v60  ;;  %v7665_v60 = vld [vmem:[#allocation5 + $0xa00] ss:$24 sps:$4 sm:$0xff]  }
 0x25c   :  { %3005 = vmatprep.subr.bf16.mxu0 %v7550_v61  ;;  %v7673_v61 = vld [vmem:[#allocation5 + $0xa34] ss:$24 sps:$4 sm:$0xff]  }
 0x25f   :  { %3006 = vmatpush1.bf16.msra.mxu0 %v7548_v62 }
 0x260   :  { %3007 = vmatprep.subr.bf16.mxu0 %v7553_v63 }
 0x263   :  { %3008 = vmatpush1.bf16.msra.mxu0 %v7551_v0 }
 0x264   :  { %3009 = vmatprep.subr.bf16.mxu0 %v7556_v1 }
 0x267   :  { %3010 = vmatpush1.bf16.msra.mxu0 %v7554_v2 }
 0x268   :  { %3011 = vmatprep.subr.bf16.mxu0 %v7559_v3 }
 0x26b   :  { %3012 = vmatpush1.bf16.msra.mxu0 %v7557_v4 }
 0x26c   :  { %3024 = vmatprep.subr.bf16.mxu0 %v7562_v6 }
 0x26e   :  { %3014 = vmatmul.mubr.bf16.vlgmr.msra.gmra.mrb[4].mxu0 %v8770_v11  ;;  %v7580_v11 = vld [vmem:[#allocation5 + $0x734] ss:$24 sps:$4 sm:$0xff]  }
 0x26f   :  { %3025 = vmatpush1.bf16.msra.mxu0 %v7560_v7  ;;  %3056 = vmatprep.mubr.bf16.mxu0 %v8778_v18  ;;  %v7581_v18 = vld [vmem:[#allocation5 + $0x760] ss:$24 sps:$4 sm:$0xff]  }
 0x270   :  { %3026 = vmatprep.subr.bf16.mxu0 %v7565_v8 }
 0x273   :  { %3027 = vmatpush1.bf16.msra.mxu0 %v7563_v9  ;;  %v7671_v9 = vld [vmem:[#allocation5 + $0xa30] ss:$24 sps:$4 sm:$0xff]  }
 0x274   :  { %3028 = vmatprep.subr.bf16.mxu0 %v7568_v10 }
 0x277   :  { %3029 = vmatpush1.bf16.msra.mxu0 %v7566_v12 }
 0x278   :  { %3030 = vmatprep.subr.bf16.mxu0 %v7571_v13 }
 0x27b   :  { %3031 = vmatpush1.bf16.msra.mxu0 %v7569_v14 }
 0x27c   :  { %3032 = vmatprep.subr.bf16.mxu0 %v7574_v15 }
 0x27f   :  { %3033 = vmatpush1.bf16.msra.mxu0 %v7572_v19  ;;  %v7679_v19 = vld [vmem:[#allocation5 + $0xa64] ss:$24 sps:$4 sm:$0xff]  }
 0x280   :  { %3034 = vmatprep.subr.bf16.mxu0 %v7577_v20 }
 0x283   :  { %3035 = vmatpush1.bf16.msra.mxu0 %v7575_v21 }
 0x284   :  { %3036 = vmatprep.subr.bf16.mxu0 %v7580_v11 }
 0x287   :  { %3037 = vmatpush1.bf16.msra.mxu0 %v7578_v22 }
 0x288   :  { %3038 = vmatprep.subr.bf16.mxu0 %v7583_v23 }
 0x28b   :  { %3039 = vmatpush1.bf16.msra.mxu0 %v7581_v18 }
 0x28c   :  { %3040 = vmatprep.subr.bf16.mxu0 %v7589_v27 }
 0x28f   :  { %3041 = vmatpush1.bf16.msra.mxu0 %v7587_v28 }
 0x290   :  { %3042 = vmatprep.subr.bf16.mxu0 %v7595_v16 }
 0x293   :  { %3043 = vmatpush1.bf16.msra.mxu0 %v7593_v17  ;;  %v7677_v17 = vld [vmem:[#allocation5 + $0xa60] ss:$24 sps:$4 sm:$0xff]  }
 0x294   :  { %3044 = vmatprep.subr.bf16.mxu0 %v7601_v30 }
 0x297   :  { %3045 = vmatpush1.bf16.msra.mxu0 %v7599_v31 }
 0x298   :  { %3046 = vmatprep.subr.bf16.mxu0 %v7607_v33  ;;  %v7685_v33 = vld [vmem:[#allocation5 + $0xa94] ss:$24 sps:$4 sm:$0xff]  }
 0x29b   :  { %3047 = vmatpush1.bf16.msra.mxu0 %v7605_v35 }
 0x29c   :  { %3048 = vmatprep.subr.bf16.mxu0 %v7613_v36 }
 0x29f   :  { %3049 = vmatpush1.bf16.msra.mxu0 %v7611_v37  ;;  %v7680_v37 = vld [vmem:[#allocation8 + $0x200] ss:$16 sps:$4 sm:$0xff]  }
 0x2a0   :  { %3050 = vmatprep.subr.bf16.mxu0 %v7619_v38  ;;  %v7688_v38 = vld [vmem:[#allocation8 + $0x224] ss:$16 sps:$4 sm:$0xff]  }
 0x2a3   :  { %3051 = vmatpush1.bf16.msra.mxu0 %v7617_v5  ;;  %v7683_v5 = vld [vmem:[#allocation5 + $0xa90] ss:$24 sps:$4 sm:$0xff]  }
 0x2a4   :  { %3052 = vmatprep.subr.bf16.mxu0 %v7625_v39  ;;  %v7691_v39 = vld [vmem:[#allocation5 + $0xac4] ss:$24 sps:$4 sm:$0xff]  }
 0x2a7   :  { %3053 = vmatpush1.bf16.msra.mxu0 %v7623_v34  ;;  %v7686_v34 = vld [vmem:[#allocation8 + $0x220] ss:$16 sps:$4 sm:$0xff]  }
 0x2a8   :  { %3054 = vmatprep.subr.bf16.mxu0 %v7631_v25  ;;  %v7694_v25 = vld [vmem:[#allocation8 + $0x244] ss:$16 sps:$4 sm:$0xff]  }
 0x2ab   :  { %3055 = vmatpush1.bf16.msra.mxu0 %v7629_v26  ;;  %v7689_v26 = vld [vmem:[#allocation5 + $0xac0] ss:$24 sps:$4 sm:$0xff]  }
 0x2ac   :  { %3067 = vmatprep.subr.bf16.mxu0 %v7637_v40  ;;  %v7697_v40 = vld [vmem:[#allocation5 + $0xaf4] ss:$24 sps:$4 sm:$0xff]  }
 0x2ae   :  { %3057 = vmatmul.mubr.bf16.vlgmr.msra.gmra.mrb[4].mxu0 %v8786_v24  ;;  %v8819_v24 = vsub.s32 2, %v8813_v47 }
 0x2af   :  { %3068 = vmatpush1.bf16.msra.mxu0 %v7635_v41  ;;  %3099 = vmatprep.mubr.bf16.mxu0 %v8794_v29  ;;  %v7659_v29 = vld [vmem:[#allocation5 + $0x9d0] ss:$24 sps:$4 sm:$0xff]  }
 0x2b0   :  { %3069 = vmatprep.subr.bf16.mxu0 %v7643_v42  ;;  %v615_v57 = vrot.slane %v8821_v52, %v8819_v24  ;;  %v7692_v41 = vld [vmem:[#allocation8 + $0x240] ss:$16 sps:$4 sm:$0xff]   ;;  %v7700_v42 = vld [vmem:[#allocation8 + $0x264] ss:$16 sps:$4 sm:$0xff]  }
 0x2b3   :  { %3070 = vmatpush1.bf16.msra.mxu0 %v7641_v43  ;;  %v7695_v43 = vld [vmem:[#allocation5 + $0xaf0] ss:$24 sps:$4 sm:$0xff]  }
 0x2b4   :  { %3071 = vmatprep.subr.bf16.mxu0 %v7649_v44  ;;  %v7703_v44 = vld [vmem:[#allocation5 + $0xb24] ss:$24 sps:$4 sm:$0xff]  }
 0x2b7   :  { %3072 = vmatpush1.bf16.msra.mxu0 %v7647_v45  ;;  %v7706_v45 = vld [vmem:[#allocation8 + $0x284] ss:$16 sps:$4 sm:$0xff]  }
 0x2b8   :  { %3073 = vmatprep.subr.bf16.mxu0 %v7655_v46  ;;  %v7701_v46 = vld [vmem:[#allocation5 + $0xb20] ss:$24 sps:$4 sm:$0xff]  }
 0x2bb   :  { %3074 = vmatpush1.bf16.msra.mxu0 %v7653_v48  ;;  %v7709_v48 = vld [vmem:[#allocation5 + $0xb54] ss:$24 sps:$4 sm:$0xff]  }
 0x2bc   :  { %3075 = vmatprep.subr.bf16.mxu0 %v7661_v49  ;;  %v7704_v49 = vld [vmem:[#allocation8 + $0x280] ss:$16 sps:$4 sm:$0xff]  }
 0x2bf   :  { %3076 = vmatpush1.bf16.msra.mxu0 %v7659_v29  ;;  %v7712_v29 = vld [vmem:[#allocation8 + $0x2a4] ss:$16 sps:$4 sm:$0xff]  }
 0x2c0   :  { %3077 = vmatprep.subr.bf16.mxu0 %v7667_v55  ;;  %v7707_v55 = vld [vmem:[#allocation5 + $0xb50] ss:$24 sps:$4 sm:$0xff]  }
 0x2c1   :  { %v2757_v62 = vpop.f32.mrb[0].mxu0 }
 0x2c2   :  { %v2929_v63 = vpop.f32.mrb[0].mxu1  ;;  %v6963_v0 = vadd.f32 %v2757_v62, %v607_v56  ;;  %v2759_v2 = vpop.f32.mrb[1].mxu0  ;;  %v7724_v62 = vld [vmem:[#allocation8 + $0x2e4] ss:$16 sps:$4 sm:$0xff]  }
 0x2c3   :  { %v6967_v1 = vadd.f32 %v2929_v63, %v615_v57  ;;  %v2931_v3 = vpop.f32.mrb[1].mxu1  ;;  %v6964_v4 = vadd.f32 %v2759_v2, %v611_v58  ;;  %v2761_v7 = vpop.f32.mrb[2].mxu0  ;;  %3078 = vmatpush1.bf16.msra.mxu0 %v7665_v60  ;;  %v7721_v60 = vld [vmem:[#allocation5 + $0xbb4] ss:$24 sps:$4 sm:$0xff]   ;;  %v7719_v63 = vld [vmem:[#allocation5 + $0xbb0] ss:$24 sps:$4 sm:$0xff]  }
 0x2c4   :  { %v6968_v6 = vadd.f32 %v2931_v3, %v619_v59  ;;  %v2933_v8 = vpop.f32.mrb[2].mxu1  ;;  %v6965_v12 = vadd.f32 %v2761_v7, %v607_v56  ;;  %v2763_v14 = vpop.f32.mrb[3].mxu0  ;;  %3079 = vmatprep.subr.bf16.mxu0 %v7673_v61  ;;  %v3110_v11 = vmax.f32 %v6963_v0, 0.0  ;;  %v7715_v56 = vld [vmem:[#allocation5 + $0xb84] ss:$24 sps:$4 sm:$0xff]  }
 0x2c5   :  { %v3112_v10 = vmax.f32 %v6967_v1, 0.0  ;;  %v6969_v13 = vadd.f32 %v2933_v8, %v615_v57  ;;  %v2935_v15 = vpop.f32.mrb[3].mxu1  ;;  %v6966_v20 = vadd.f32 %v2763_v14, %v611_v58  ;;  %v3111_v18 = vmax.f32 %v6964_v4, 0.0  ;;  %v7710_v57 = vld [vmem:[#allocation8 + $0x2a0] ss:$16 sps:$4 sm:$0xff]  }
 0x2c6   :  { %v6970_v21 = vadd.f32 %v2935_v15, %v619_v59  ;;  %v3116_v22 = vmax.f32 %v6965_v12, 0.0  ;;  %v3113_v27 = vmax.f32 %v6968_v6, 0.0  ;;  %v7718_v58 = vld [vmem:[#allocation8 + $0x2c4] ss:$16 sps:$4 sm:$0xff]   ;;  %v7716_v61 = vld [vmem:[#allocation8 + $0x2c0] ss:$16 sps:$4 sm:$0xff]  }
 0x2c7   :  { %v3118_v23 = vmax.f32 %v6969_v13, 0.0  ;;  %v3117_v28 = vmax.f32 %v6966_v20, 0.0  ;;  %3080 = vmatpush1.bf16.msra.mxu0 %v7671_v9  ;;  %v7713_v59 = vld [vmem:[#allocation5 + $0xb80] ss:$24 sps:$4 sm:$0xff]   ;;  %v7727_v0 = vld [vmem:[#allocation5 + $0xbe4] ss:$24 sps:$4 sm:$0xff]  }
 0x2c8   :  { %v3119_v16 = vmax.f32 %v6970_v21, 0.0  ;;  %v8836_v30 = vpack.c.bf16 %v3116_v22, %v3110_v11  ;;  %3081 = vmatprep.subr.bf16.mxu0 %v7679_v19  ;;  %v7722_v1 = vld [vmem:[#allocation8 + $0x2e0] ss:$16 sps:$4 sm:$0xff]   ;;  %v7730_v2 = vld [vmem:[#allocation8 + $0x304] ss:$16 sps:$4 sm:$0xff]  }
 0x2c9   :  { %v8838_v31 = vpack.c.bf16 %v3118_v23, %v3112_v10  ;;  %v8840_v35 = vpack.c.bf16 %v3117_v28, %v3111_v18  ;;  %v7725_v3 = vld [vmem:[#allocation5 + $0xbe0] ss:$24 sps:$4 sm:$0xff]  }
 0x2ca   :  { %v8842_v36 = vpack.c.bf16 %v3119_v16, %v3113_v27  ;;  %v7728_v4 = vld [vmem:[#allocation8 + $0x300] ss:$16 sps:$4 sm:$0xff]   ;;  %v7733_v6 = vld [vmem:[#allocation8 + $0x324] ss:$16 sps:$4 sm:$0xff]  }
 0x2cb   :  { %3082 = vmatpush1.bf16.msra.mxu0 %v7677_v17  ;;  %4334 = vmatprep.mubr.bf16.mxu1 %v8840_v35  ;;  %v7731_v7 = vld [vmem:[#allocation8 + $0x320] ss:$16 sps:$4 sm:$0xff]   ;;  %v7736_v8 = vld [vmem:[#allocation8 + $0x344] ss:$16 sps:$4 sm:$0xff]  }
 0x2cc   :  { %4335 = vmatmul.mubr.bf16.vlgmr.msra.gmra.mrb[4].mxu1 %v8836_v30  ;;  %3083 = vmatprep.subr.bf16.mxu0 %v7685_v33  ;;  %v7734_v9 = vld [vmem:[#allocation8 + $0x340] ss:$16 sps:$4 sm:$0xff]   ;;  %v7739_v10 = vld [vmem:[#allocation8 + $0x364] ss:$16 sps:$4 sm:$0xff]  }
 0x2cd   :  { %4346 = vmatpush1.bf16.msra.mxu1 %v7680_v37  ;;  %4377 = vmatprep.mubr.bf16.mxu1 %v8842_v36  ;;  %v7737_v12 = vld [vmem:[#allocation8 + $0x360] ss:$16 sps:$4 sm:$0xff]   ;;  %v7742_v13 = vld [vmem:[#allocation8 + $0x384] ss:$16 sps:$4 sm:$0xff]  }
 0x2ce   :  { %4347 = vmatprep.subr.bf16.mxu1 %v7688_v38  ;;  %v7740_v14 = vld [vmem:[#allocation8 + $0x380] ss:$16 sps:$4 sm:$0xff]   ;;  %v7745_v15 = vld [vmem:[#allocation8 + $0x3a4] ss:$16 sps:$4 sm:$0xff]  }
 0x2cf   :  { %3084 = vmatpush1.bf16.msra.mxu0 %v7683_v5  ;;  %v7743_v19 = vld [vmem:[#allocation8 + $0x3a0] ss:$16 sps:$4 sm:$0xff]   ;;  %v7748_v20 = vld [vmem:[#allocation8 + $0x3c4] ss:$16 sps:$4 sm:$0xff]  }
 0x2d0   :  { %3085 = vmatprep.subr.bf16.mxu0 %v7691_v39  ;;  %v7751_v21 = vld [vmem:[#allocation8 + $0x3e4] ss:$16 sps:$4 sm:$0xff]   ;;  %v7749_v11 = vld [vmem:[#allocation8 + $0x3e0] ss:$16 sps:$4 sm:$0xff]  }
 0x2d1   :  { %4348 = vmatpush1.bf16.msra.mxu1 %v7686_v34  ;;  %v7754_v22 = vld [vmem:[#allocation8 + $0x404] ss:$16 sps:$4 sm:$0xff]   ;;  %v7752_v23 = vld [vmem:[#allocation8 + $0x400] ss:$16 sps:$4 sm:$0xff]  }
 0x2d2   :  { %4349 = vmatprep.subr.bf16.mxu1 %v7694_v25  ;;  %v7757_v18 = vld [vmem:[#allocation8 + $0x424] ss:$16 sps:$4 sm:$0xff]   ;;  %v7755_v27 = vld [vmem:[#allocation8 + $0x420] ss:$16 sps:$4 sm:$0xff]  }
 0x2d3   :  { %3086 = vmatpush1.bf16.msra.mxu0 %v7689_v26  ;;  %v7760_v28 = vld [vmem:[#allocation8 + $0x444] ss:$16 sps:$4 sm:$0xff]   ;;  %v7758_v16 = vld [vmem:[#allocation8 + $0x440] ss:$16 sps:$4 sm:$0xff]  }
 0x2d4   :  { %3087 = vmatprep.subr.bf16.mxu0 %v7697_v40  ;;  %v7763_v17 = vld [vmem:[#allocation8 + $0x464] ss:$16 sps:$4 sm:$0xff]   ;;  %v7761_v33 = vld [vmem:[#allocation8 + $0x460] ss:$16 sps:$4 sm:$0xff]  }
 0x2d5   :  { %4350 = vmatpush1.bf16.msra.mxu1 %v7692_v41  ;;  %v7766_v37 = vld [vmem:[#allocation8 + $0x484] ss:$16 sps:$4 sm:$0xff]   ;;  %v7764_v38 = vld [vmem:[#allocation8 + $0x480] ss:$16 sps:$4 sm:$0xff]  }
 0x2d6   :  { %4351 = vmatprep.subr.bf16.mxu1 %v7700_v42  ;;  %v7769_v5 = vld [vmem:[#allocation8 + $0x4a4] ss:$16 sps:$4 sm:$0xff]   ;;  %v7767_v39 = vld [vmem:[#allocation8 + $0x4a0] ss:$16 sps:$4 sm:$0xff]  }
 0x2d7   :  { %3088 = vmatpush1.bf16.msra.mxu0 %v7695_v43  ;;  %v7772_v34 = vld [vmem:[#allocation8 + $0x4c4] ss:$16 sps:$4 sm:$0xff]   ;;  %v7770_v25 = vld [vmem:[#allocation8 + $0x4c0] ss:$16 sps:$4 sm:$0xff]  }
 0x2d8   :  { %3089 = vmatprep.subr.bf16.mxu0 %v7703_v44  ;;  %v7775_v26 = vld [vmem:[#allocation8 + $0x4e4] ss:$16 sps:$4 sm:$0xff]   ;;  %v7773_v40 = vld [vmem:[#allocation8 + $0x4e0] ss:$16 sps:$4 sm:$0xff]  }
 0x2d9   :  { %4352 = vmatpush1.bf16.msra.mxu1 %v7698_v50  ;;  %v7778_v41 = vld [vmem:[#allocation8 + $0x504] ss:$16 sps:$4 sm:$0xff]   ;;  %v7776_v42 = vld [vmem:[#allocation8 + $0x500] ss:$16 sps:$4 sm:$0xff]  }
 0x2da   :  { %4353 = vmatprep.subr.bf16.mxu1 %v7706_v45  ;;  %v7781_v43 = vld [vmem:[#allocation8 + $0x524] ss:$16 sps:$4 sm:$0xff]   ;;  %v7779_v44 = vld [vmem:[#allocation8 + $0x520] ss:$16 sps:$4 sm:$0xff]  }
 0x2db   :  { %3090 = vmatpush1.bf16.msra.mxu0 %v7701_v46  ;;  %v7784_v50 = vld [vmem:[#allocation8 + $0x544] ss:$16 sps:$4 sm:$0xff]   ;;  %v7782_v45 = vld [vmem:[#allocation8 + $0x540] ss:$16 sps:$4 sm:$0xff]  }
 0x2dc   :  { %3091 = vmatprep.subr.bf16.mxu0 %v7709_v48  ;;  %v7787_v46 = vld [vmem:[#allocation8 + $0x564] ss:$16 sps:$4 sm:$0xff]   ;;  %v7785_v48 = vld [vmem:[#allocation8 + $0x560] ss:$16 sps:$4 sm:$0xff]  }
 0x2dd   :  { %4354 = vmatpush1.bf16.msra.mxu1 %v7704_v49  ;;  %v7790_v49 = vld [vmem:[#allocation8 + $0x584] ss:$16 sps:$4 sm:$0xff]  }
 0x2de   :  { %4355 = vmatprep.subr.bf16.mxu1 %v7712_v29  ;;  %v7788_v29 = vld [vmem:[#allocation8 + $0x580] ss:$16 sps:$4 sm:$0xff]  }
 0x2df   :  { %3092 = vmatpush1.bf16.msra.mxu0 %v7707_v55  ;;  %v7793_v55 = vld [vmem:[#allocation8 + $0x5a4] ss:$16 sps:$4 sm:$0xff]  }
 0x2e0   :  { %3093 = vmatprep.subr.bf16.mxu0 %v7715_v56  ;;  %v7791_v56 = vld [vmem:[#allocation8 + $0x5a0] ss:$16 sps:$4 sm:$0xff]  }
 0x2e1   :  { %4356 = vmatpush1.bf16.msra.mxu1 %v7710_v57  ;;  %v7796_v57 = vld [vmem:[#allocation8 + $0x5c4] ss:$16 sps:$4 sm:$0xff]  }
 0x2e2   :  { %4357 = vmatprep.subr.bf16.mxu1 %v7718_v58  ;;  %v7794_v58 = vld [vmem:[#allocation8 + $0x5c0] ss:$16 sps:$4 sm:$0xff]  }
 0x2e3   :  { %3094 = vmatpush1.bf16.msra.mxu0 %v7713_v59  ;;  %v7799_v59 = vld [vmem:[#allocation8 + $0x5e4] ss:$16 sps:$4 sm:$0xff]  }
 0x2e4   :  { %3095 = vmatprep.subr.bf16.mxu0 %v7721_v60  ;;  %v7797_v60 = vld [vmem:[#allocation8 + $0x5e0] ss:$16 sps:$4 sm:$0xff]  }
 0x2e5   :  { %4358 = vmatpush1.bf16.msra.mxu1 %v7716_v61  ;;  %v7802_v61 = vld [vmem:[#allocation8 + $0xc] ss:$16 sps:$4 sm:$0xff]  }
 0x2e6   :  { %4359 = vmatprep.subr.bf16.mxu1 %v7724_v62  ;;  %v622_v62 = vsub.s32 4, %v8813_v47 }
 0x2e7   :  { %3096 = vmatpush1.bf16.msra.mxu0 %v7719_v63  ;;  %v626_v63 = vsub.s32 5, %v8813_v47  ;;  %v8059_v47 = vld [vmem:[#allocation11 + $0x20] ss:$12 sps:$4 sm:$0xff]  }
 0x2e8   :  { %3097 = vmatprep.subr.bf16.mxu0 %v7727_v0  ;;  %v623_v0 = vrot.slane %v8821_v52, %v622_v62  ;;  %v7952_v62 = vld [vmem:[#allocation11 + $0x7c] ss:$12 sps:$4 sm:$0xff]  }
 0x2e9   :  { %4360 = vmatpush1.bf16.msra.mxu1 %v7722_v1  ;;  %v627_v1 = vrot.slane %v8821_v52, %v626_v63  ;;  %v7803_v52 = vld [vmem:[#allocation8 + $0x28] ss:$16 sps:$4 sm:$0xff]   ;;  %v7844_v63 = vld [vmem:[#allocation8 + $0x1cc] ss:$16 sps:$4 sm:$0xff]  }
 0x2ea   :  { %4361 = vmatprep.subr.bf16.mxu1 %v7730_v2 }
 0x2eb   :  { %3098 = vmatpush1.bf16.msra.mxu0 %v7725_v3 }
 0x2ed   :  { %4362 = vmatpush1.bf16.msra.mxu1 %v7728_v4 }
 0x2ee   :  { %3100 = vmatmul.mubr.bf16.vlgmr.msra.gmra.mrb[4].mxu0 %v8802_v32  ;;  %4363 = vmatprep.subr.bf16.mxu1 %v7733_v6  ;;  %v7746_v32 = vld [vmem:[#allocation8 + $0x3c0] ss:$16 sps:$4 sm:$0xff]  }
 0x2f1   :  { %4364 = vmatpush1.bf16.msra.mxu1 %v7731_v7 }
 0x2f2   :  { %4365 = vmatprep.subr.bf16.mxu1 %v7736_v8 }
 0x2f5   :  { %4366 = vmatpush1.bf16.msra.mxu1 %v7734_v9 }
 0x2f6   :  { %4367 = vmatprep.subr.bf16.mxu1 %v7739_v10 }
 0x2f9   :  { %4368 = vmatpush1.bf16.msra.mxu1 %v7737_v12 }
 0x2fa   :  { %4369 = vmatprep.subr.bf16.mxu1 %v7742_v13 }
 0x2fd   :  { %4370 = vmatpush1.bf16.msra.mxu1 %v7740_v14 }
 0x2fe   :  { %4371 = vmatprep.subr.bf16.mxu1 %v7745_v15 }
 0x301   :  { %4372 = vmatpush1.bf16.msra.mxu1 %v7743_v19 }
 0x302   :  { %4373 = vmatprep.subr.bf16.mxu1 %v7748_v20 }
 0x305   :  { %4374 = vmatpush1.bf16.msra.mxu1 %v7746_v32  ;;  %v7800_v32 = vld [vmem:[#allocation8 + $0x8] ss:$16 sps:$4 sm:$0xff]  }
 0x306   :  { %4375 = vmatprep.subr.bf16.mxu1 %v7751_v21  ;;  %v7805_v21 = vld [vmem:[#allocation8 + $0x2c] ss:$16 sps:$4 sm:$0xff]  }
 0x309   :  { %4376 = vmatpush1.bf16.msra.mxu1 %v7749_v11  ;;  %v7808_v11 = vld [vmem:[#allocation8 + $0x4c] ss:$16 sps:$4 sm:$0xff]  }
 0x30a   :  { %4388 = vmatprep.subr.bf16.mxu1 %v7754_v22  ;;  %v7806_v22 = vld [vmem:[#allocation8 + $0x48] ss:$16 sps:$4 sm:$0xff]  }
 0x30c   :  { %4378 = vmatmul.mubr.bf16.vlgmr.msra.gmra.mrb[4].mxu1 %v8838_v31 }
 0x30d   :  { %4389 = vmatpush1.bf16.msra.mxu1 %v7752_v23  ;;  %v7811_v23 = vld [vmem:[#allocation8 + $0x6c] ss:$16 sps:$4 sm:$0xff]  }
 0x30e   :  { %4390 = vmatprep.subr.bf16.mxu1 %v7757_v18  ;;  %v7809_v18 = vld [vmem:[#allocation8 + $0x68] ss:$16 sps:$4 sm:$0xff]  }
 0x311   :  { %4391 = vmatpush1.bf16.msra.mxu1 %v7755_v27  ;;  %v7814_v27 = vld [vmem:[#allocation8 + $0x8c] ss:$16 sps:$4 sm:$0xff]  }
 0x312   :  { %4392 = vmatprep.subr.bf16.mxu1 %v7760_v28  ;;  %v7812_v28 = vld [vmem:[#allocation8 + $0x88] ss:$16 sps:$4 sm:$0xff]  }
 0x315   :  { %4393 = vmatpush1.bf16.msra.mxu1 %v7758_v16  ;;  %v7817_v16 = vld [vmem:[#allocation8 + $0xac] ss:$16 sps:$4 sm:$0xff]  }
 0x316   :  { %4394 = vmatprep.subr.bf16.mxu1 %v7763_v17  ;;  %v7815_v17 = vld [vmem:[#allocation8 + $0xa8] ss:$16 sps:$4 sm:$0xff]  }
 0x319   :  { %4395 = vmatpush1.bf16.msra.mxu1 %v7761_v33  ;;  %v7820_v33 = vld [vmem:[#allocation8 + $0xcc] ss:$16 sps:$4 sm:$0xff]  }
 0x31a   :  { %4396 = vmatprep.subr.bf16.mxu1 %v7766_v37  ;;  %v7823_v37 = vld [vmem:[#allocation8 + $0xec] ss:$16 sps:$4 sm:$0xff]  }
 0x31d   :  { %4397 = vmatpush1.bf16.msra.mxu1 %v7764_v38  ;;  %v7821_v38 = vld [vmem:[#allocation8 + $0xe8] ss:$16 sps:$4 sm:$0xff]  }
 0x31e   :  { %4398 = vmatprep.subr.bf16.mxu1 %v7769_v5  ;;  %v7826_v5 = vld [vmem:[#allocation8 + $0x10c] ss:$16 sps:$4 sm:$0xff]  }
 0x321   :  { %4399 = vmatpush1.bf16.msra.mxu1 %v7767_v39  ;;  %v7824_v39 = vld [vmem:[#allocation8 + $0x108] ss:$16 sps:$4 sm:$0xff]  }
 0x322   :  { %4400 = vmatprep.subr.bf16.mxu1 %v7772_v34  ;;  %v7920_v34 = vld [vmem:[#allocation11] ss:$12 sps:$4 sm:$0xff]  }
 0x325   :  { %4401 = vmatpush1.bf16.msra.mxu1 %v7770_v25  ;;  %v7922_v25 = vld [vmem:[#allocation11 + $0x4] ss:$12 sps:$4 sm:$0xff]  }
 0x326   :  { %4402 = vmatprep.subr.bf16.mxu1 %v7775_v26  ;;  %v7829_v26 = vld [vmem:[#allocation8 + $0x12c] ss:$16 sps:$4 sm:$0xff]   ;;  %5229 = vmatprep.subr.bf16.mxu0 %v7922_v25 }
 0x327   :  { %5230 = vmatpush1.bf16.msra.mxu0 %v7920_v34  ;;  %v7988_v34 = vld [vmem:[#allocation11 + $0x154] ss:$12 sps:$4 sm:$0xff]   ;;  %v7871_v25 = vld [vmem:[#allocation8 + $0x2ec] ss:$16 sps:$4 sm:$0xff]  }
 0x329   :  { %4403 = vmatpush1.bf16.msra.mxu1 %v7773_v40  ;;  %v7827_v40 = vld [vmem:[#allocation8 + $0x128] ss:$16 sps:$4 sm:$0xff]  }
 0x32a   :  { %4404 = vmatprep.subr.bf16.mxu1 %v7778_v41  ;;  %v7926_v41 = vld [vmem:[#allocation11 + $0x18] ss:$12 sps:$4 sm:$0xff]  }
 0x32d   :  { %4405 = vmatpush1.bf16.msra.mxu1 %v7776_v42  ;;  %v7928_v42 = vld [vmem:[#allocation11 + $0x1c] ss:$12 sps:$4 sm:$0xff]  }
 0x32e   :  { %4406 = vmatprep.subr.bf16.mxu1 %v7781_v43  ;;  %v7832_v43 = vld [vmem:[#allocation8 + $0x14c] ss:$16 sps:$4 sm:$0xff]   ;;  %5231 = vmatprep.subr.bf16.mxu0 %v7928_v42 }
 0x32f   :  { %5232 = vmatpush1.bf16.msra.mxu0 %v7926_v41  ;;  %v7991_v41 = vld [vmem:[#allocation11 + $0x16c] ss:$12 sps:$4 sm:$0xff]  }
 0x330   :  { %v7874_v42 = vld [vmem:[#allocation8 + $0x30c] ss:$16 sps:$4 sm:$0xff]  }
 0x331   :  { %4407 = vmatpush1.bf16.msra.mxu1 %v7779_v44  ;;  %v7830_v44 = vld [vmem:[#allocation8 + $0x148] ss:$16 sps:$4 sm:$0xff]  }
 0x332   :  { %4408 = vmatprep.subr.bf16.mxu1 %v7784_v50  ;;  %v7932_v50 = vld [vmem:[#allocation11 + $0x30] ss:$12 sps:$4 sm:$0xff]  }
 0x335   :  { %4409 = vmatpush1.bf16.msra.mxu1 %v7782_v45  ;;  %v7934_v45 = vld [vmem:[#allocation11 + $0x34] ss:$12 sps:$4 sm:$0xff]  }
 0x336   :  { %4410 = vmatprep.subr.bf16.mxu1 %v7787_v46  ;;  %v7835_v46 = vld [vmem:[#allocation8 + $0x16c] ss:$16 sps:$4 sm:$0xff]   ;;  %5233 = vmatprep.subr.bf16.mxu0 %v7934_v45  ;;  %v7994_v45 = vld [vmem:[#allocation11 + $0x184] ss:$12 sps:$4 sm:$0xff]  }
 0x337   :  { %5234 = vmatpush1.bf16.msra.mxu0 %v7932_v50  ;;  %v7877_v50 = vld [vmem:[#allocation8 + $0x32c] ss:$16 sps:$4 sm:$0xff]  }
 0x339   :  { %4411 = vmatpush1.bf16.msra.mxu1 %v7785_v48  ;;  %v7833_v48 = vld [vmem:[#allocation8 + $0x168] ss:$16 sps:$4 sm:$0xff]  }
 0x33a   :  { %4412 = vmatprep.subr.bf16.mxu1 %v7790_v49  ;;  %v7938_v49 = vld [vmem:[#allocation11 + $0x48] ss:$12 sps:$4 sm:$0xff]  }
 0x33d   :  { %4413 = vmatpush1.bf16.msra.mxu1 %v7788_v29  ;;  %v7940_v29 = vld [vmem:[#allocation11 + $0x4c] ss:$12 sps:$4 sm:$0xff]  }
 0x33e   :  { %4414 = vmatprep.subr.bf16.mxu1 %v7793_v55  ;;  %v7838_v55 = vld [vmem:[#allocation8 + $0x18c] ss:$16 sps:$4 sm:$0xff]   ;;  %5235 = vmatprep.subr.bf16.mxu0 %v7940_v29 }
 0x33f   :  { %5236 = vmatpush1.bf16.msra.mxu0 %v7938_v49  ;;  %v7878_v49 = vld [vmem:[#allocation8 + $0x348] ss:$16 sps:$4 sm:$0xff]   ;;  %v7883_v29 = vld [vmem:[#allocation8 + $0x36c] ss:$16 sps:$4 sm:$0xff]  }
 0x341   :  { %4415 = vmatpush1.bf16.msra.mxu1 %v7791_v56  ;;  %v7836_v56 = vld [vmem:[#allocation8 + $0x188] ss:$16 sps:$4 sm:$0xff]  }
 0x342   :  { %4416 = vmatprep.subr.bf16.mxu1 %v7796_v57  ;;  %v7944_v57 = vld [vmem:[#allocation11 + $0x60] ss:$12 sps:$4 sm:$0xff]  }
 0x345   :  { %4417 = vmatpush1.bf16.msra.mxu1 %v7794_v58  ;;  %v7946_v58 = vld [vmem:[#allocation11 + $0x64] ss:$12 sps:$4 sm:$0xff]  }
 0x346   :  { %4418 = vmatprep.subr.bf16.mxu1 %v7799_v59  ;;  %v7841_v59 = vld [vmem:[#allocation8 + $0x1ac] ss:$16 sps:$4 sm:$0xff]   ;;  %5237 = vmatprep.subr.bf16.mxu0 %v7946_v58 }
 0x347   :  { %5238 = vmatpush1.bf16.msra.mxu0 %v7944_v57  ;;  %v7884_v57 = vld [vmem:[#allocation8 + $0x388] ss:$16 sps:$4 sm:$0xff]   ;;  %v7889_v58 = vld [vmem:[#allocation8 + $0x3ac] ss:$16 sps:$4 sm:$0xff]  }
 0x348   :  { %5239 = vmatprep.subr.bf16.mxu0 %v7952_v62  ;;  %v7895_v62 = vld [vmem:[#allocation8 + $0x3ec] ss:$16 sps:$4 sm:$0xff]  }
 0x349   :  { %4419 = vmatpush1.bf16.msra.mxu1 %v7797_v60  ;;  %v7839_v60 = vld [vmem:[#allocation8 + $0x1a8] ss:$16 sps:$4 sm:$0xff]  }
 0x34a   :  { %4431 = vmatprep.subr.bf16.mxu1 %v7802_v61  ;;  %v7950_v61 = vld [vmem:[#allocation11 + $0x78] ss:$12 sps:$4 sm:$0xff]  }
 0x34b   :  { %5240 = vmatpush1.bf16.msra.mxu0 %v7950_v61  ;;  %v7890_v61 = vld [vmem:[#allocation8 + $0x3c8] ss:$16 sps:$4 sm:$0xff]  }
 0x3c1   :  { %v3101_v2 = vpop.f32.mrb[4].mxu0 }
 0x3c2   :  { %v6971_v3 = vadd.f32 %v3101_v2, %v623_v0  ;;  %v3103_v4 = vpop.f32.mrb[5].mxu0  ;;  %v7958_v2 = vld [vmem:[#allocation11 + $0x94] ss:$12 sps:$4 sm:$0xff]  }
 0x3c3   :  { %v6972_v6 = vadd.f32 %v3103_v4, %v627_v1  ;;  %v3105_v7 = vpop.f32.mrb[6].mxu0  ;;  %5241 = vmatprep.subr.bf16.mxu0 %v7958_v2  ;;  %v7845_v4 = vld [vmem:[#allocation8 + $0x1e8] ss:$16 sps:$4 sm:$0xff]   ;;  %v7901_v2 = vld [vmem:[#allocation8 + $0x42c] ss:$16 sps:$4 sm:$0xff]  }
 0x3c4   :  { %v6973_v8 = vadd.f32 %v3105_v7, %v623_v0  ;;  %v3107_v9 = vpop.f32.mrb[7].mxu0  ;;  %v3114_v12 = vmax.f32 %v6971_v3, 0.0  ;;  %v7842_v0 = vld [vmem:[#allocation8 + $0x1c8] ss:$16 sps:$4 sm:$0xff]   ;;  %v7847_v3 = vld [vmem:[#allocation8 + $0x1ec] ss:$16 sps:$4 sm:$0xff]  }
 0x3c5   :  { %v6974_v10 = vadd.f32 %v3107_v9, %v627_v1  ;;  %v3115_v14 = vmax.f32 %v6972_v6, 0.0  ;;  %v7956_v1 = vld [vmem:[#allocation11 + $0x90] ss:$12 sps:$4 sm:$0xff]   ;;  %v7962_v6 = vld [vmem:[#allocation11 + $0xa8] ss:$12 sps:$4 sm:$0xff]  }
 0x3c6   :  { %v3120_v13 = vmax.f32 %v6973_v8, 0.0  ;;  %5242 = vmatpush1.bf16.msra.mxu0 %v7956_v1  ;;  %v7964_v7 = vld [vmem:[#allocation11 + $0xac] ss:$12 sps:$4 sm:$0xff]   ;;  %v7848_v9 = vld [vmem:[#allocation8 + $0x208] ss:$16 sps:$4 sm:$0xff]  }
 0x3c7   :  { %v3121_v15 = vmax.f32 %v6974_v10, 0.0  ;;  %v7850_v8 = vld [vmem:[#allocation8 + $0x20c] ss:$16 sps:$4 sm:$0xff]   ;;  %5243 = vmatprep.subr.bf16.mxu0 %v7964_v7  ;;  %v7968_v10 = vld [vmem:[#allocation11 + $0xc0] ss:$12 sps:$4 sm:$0xff]  }
 0x3c8   :  { %v8853_v19 = vpack.c.bf16 %v3120_v13, %v3114_v12  ;;  %v7970_v12 = vld [vmem:[#allocation11 + $0xc4] ss:$12 sps:$4 sm:$0xff]   ;;  %v7853_v13 = vld [vmem:[#allocation8 + $0x22c] ss:$16 sps:$4 sm:$0xff]  }
 0x3c9   :  { %v8855_v20 = vpack.c.bf16 %v3121_v15, %v3115_v14  ;;  %v7971_v14 = vld [vmem:[#allocation11 + $0xd8] ss:$12 sps:$4 sm:$0xff]   ;;  %v7973_v15 = vld [vmem:[#allocation11 + $0xdc] ss:$12 sps:$4 sm:$0xff]  }
 0x3ca   :  { %5244 = vmatpush1.bf16.msra.mxu0 %v7962_v6  ;;  %v7896_v1 = vld [vmem:[#allocation8 + $0x408] ss:$16 sps:$4 sm:$0xff]   ;;  %v7907_v7 = vld [vmem:[#allocation8 + $0x46c] ss:$16 sps:$4 sm:$0xff]  }
 0x3cb   :  { %4420 = vmatprep.mubr.bf16.mxu1 %v8855_v20  ;;  %5245 = vmatprep.subr.bf16.mxu0 %v7970_v12  ;;  %v7902_v6 = vld [vmem:[#allocation8 + $0x448] ss:$16 sps:$4 sm:$0xff]   ;;  %v7913_v12 = vld [vmem:[#allocation8 + $0x4ac] ss:$16 sps:$4 sm:$0xff]  }
 0x3cc   :  { %4421 = vmatmul.mubr.bf16.vlgmr.msra.gmra.mrb[4].mxu1 %v8853_v19 }
 0x3cd   :  { %4432 = vmatpush1.bf16.msra.mxu1 %v7800_v32  ;;  %4463 = vmatprep.mubr.bf16.mxu1 %v8840_v35  ;;  %v7818_v35 = vld [vmem:[#allocation8 + $0xc8] ss:$16 sps:$4 sm:$0xff]  }
 0x3ce   :  { %4433 = vmatprep.subr.bf16.mxu1 %v7805_v21  ;;  %5246 = vmatpush1.bf16.msra.mxu0 %v7968_v10  ;;  %v7851_v32 = vld [vmem:[#allocation8 + $0x228] ss:$16 sps:$4 sm:$0xff]  }
 0x3cf   :  { %v7976_v21 = vld [vmem:[#allocation11 + $0xf4] ss:$12 sps:$4 sm:$0xff]   ;;  %5247 = vmatprep.subr.bf16.mxu0 %v7973_v15 }
 0x3d0   :  { %v7908_v10 = vld [vmem:[#allocation8 + $0x488] ss:$16 sps:$4 sm:$0xff]  }
 0x3d1   :  { %4434 = vmatpush1.bf16.msra.mxu1 %v7803_v52  ;;  %v7856_v52 = vld [vmem:[#allocation8 + $0x24c] ss:$16 sps:$4 sm:$0xff]   ;;  %v7917_v15 = vld [vmem:[#allocation8 + $0x4e8] ss:$16 sps:$4 sm:$0xff]  }
 0x3d2   :  { %4435 = vmatprep.subr.bf16.mxu1 %v7808_v11  ;;  %5248 = vmatpush1.bf16.msra.mxu0 %v7971_v14  ;;  %v7974_v11 = vld [vmem:[#allocation11 + $0xf0] ss:$12 sps:$4 sm:$0xff]   ;;  %v7919_v14 = vld [vmem:[#allocation8 + $0x4ec] ss:$16 sps:$4 sm:$0xff]  }
 0x3d3   :  { %5249 = vmatprep.subr.bf16.mxu0 %v7976_v21  ;;  %v7923_v21 = vld [vmem:[#allocation8 + $0x508] ss:$16 sps:$4 sm:$0xff]  }
 0x3d5   :  { %4436 = vmatpush1.bf16.msra.mxu1 %v7806_v22  ;;  %v7854_v22 = vld [vmem:[#allocation8 + $0x248] ss:$16 sps:$4 sm:$0xff]  }
 0x3d6   :  { %4437 = vmatprep.subr.bf16.mxu1 %v7811_v23  ;;  %v7979_v23 = vld [vmem:[#allocation11 + $0x10c] ss:$12 sps:$4 sm:$0xff]   ;;  %5250 = vmatpush1.bf16.msra.mxu0 %v7974_v11  ;;  %v7929_v11 = vld [vmem:[#allocation8 + $0x528] ss:$16 sps:$4 sm:$0xff]  }
 0x3d7   :  { %5251 = vmatprep.subr.bf16.mxu0 %v7979_v23  ;;  %v7935_v23 = vld [vmem:[#allocation8 + $0x548] ss:$16 sps:$4 sm:$0xff]  }
 0x3d9   :  { %4438 = vmatpush1.bf16.msra.mxu1 %v7809_v18  ;;  %v7859_v18 = vld [vmem:[#allocation8 + $0x26c] ss:$16 sps:$4 sm:$0xff]  }
 0x3da   :  { %4439 = vmatprep.subr.bf16.mxu1 %v7814_v27  ;;  %v7857_v27 = vld [vmem:[#allocation8 + $0x268] ss:$16 sps:$4 sm:$0xff]  }
 0x3dd   :  { %4440 = vmatpush1.bf16.msra.mxu1 %v7812_v28  ;;  %v7982_v28 = vld [vmem:[#allocation11 + $0x124] ss:$12 sps:$4 sm:$0xff]  }
 0x3de   :  { %4441 = vmatprep.subr.bf16.mxu1 %v7817_v16  ;;  %v7980_v16 = vld [vmem:[#allocation11 + $0x120] ss:$12 sps:$4 sm:$0xff]  }
 0x3e1   :  { %4442 = vmatpush1.bf16.msra.mxu1 %v7815_v17  ;;  %v7860_v17 = vld [vmem:[#allocation8 + $0x288] ss:$16 sps:$4 sm:$0xff]  }
 0x3e2   :  { %4443 = vmatprep.subr.bf16.mxu1 %v7820_v33  ;;  %v7985_v33 = vld [vmem:[#allocation11 + $0x13c] ss:$12 sps:$4 sm:$0xff]  }
 0x3e5   :  { %4444 = vmatpush1.bf16.msra.mxu1 %v7818_v35  ;;  %v7865_v35 = vld [vmem:[#allocation8 + $0x2ac] ss:$16 sps:$4 sm:$0xff]  }
 0x3e6   :  { %4445 = vmatprep.subr.bf16.mxu1 %v7823_v37  ;;  %v7983_v37 = vld [vmem:[#allocation11 + $0x138] ss:$12 sps:$4 sm:$0xff]  }
 0x3e9   :  { %4446 = vmatpush1.bf16.msra.mxu1 %v7821_v38  ;;  %v7863_v38 = vld [vmem:[#allocation8 + $0x2a8] ss:$16 sps:$4 sm:$0xff]  }
 0x3ea   :  { %4447 = vmatprep.subr.bf16.mxu1 %v7826_v5  ;;  %v7868_v5 = vld [vmem:[#allocation8 + $0x2cc] ss:$16 sps:$4 sm:$0xff]  }
 0x3ed   :  { %4448 = vmatpush1.bf16.msra.mxu1 %v7824_v39  ;;  %v7866_v39 = vld [vmem:[#allocation8 + $0x2c8] ss:$16 sps:$4 sm:$0xff]  }
 0x3ee   :  { %4449 = vmatprep.subr.bf16.mxu1 %v7829_v26  ;;  %v7986_v26 = vld [vmem:[#allocation11 + $0x150] ss:$12 sps:$4 sm:$0xff]  }
 0x3f1   :  { %4450 = vmatpush1.bf16.msra.mxu1 %v7827_v40  ;;  %v7869_v40 = vld [vmem:[#allocation8 + $0x2e8] ss:$16 sps:$4 sm:$0xff]  }
 0x3f2   :  { %4451 = vmatprep.subr.bf16.mxu1 %v7832_v43  ;;  %v7989_v43 = vld [vmem:[#allocation11 + $0x168] ss:$12 sps:$4 sm:$0xff]  }
 0x3f5   :  { %4452 = vmatpush1.bf16.msra.mxu1 %v7830_v44  ;;  %v7872_v44 = vld [vmem:[#allocation8 + $0x308] ss:$16 sps:$4 sm:$0xff]  }
 0x3f6   :  { %4453 = vmatprep.subr.bf16.mxu1 %v7835_v46  ;;  %v7875_v46 = vld [vmem:[#allocation8 + $0x328] ss:$16 sps:$4 sm:$0xff]  }
 0x3f9   :  { %4454 = vmatpush1.bf16.msra.mxu1 %v7833_v48  ;;  %v7880_v48 = vld [vmem:[#allocation8 + $0x34c] ss:$16 sps:$4 sm:$0xff]  }
 0x3fa   :  { %4455 = vmatprep.subr.bf16.mxu1 %v7838_v55  ;;  %v7881_v55 = vld [vmem:[#allocation8 + $0x368] ss:$16 sps:$4 sm:$0xff]  }
 0x3fd   :  { %4456 = vmatpush1.bf16.msra.mxu1 %v7836_v56  ;;  %v7886_v56 = vld [vmem:[#allocation8 + $0x38c] ss:$16 sps:$4 sm:$0xff]  }
 0x3fe   :  { %4457 = vmatprep.subr.bf16.mxu1 %v7841_v59  ;;  %v7887_v59 = vld [vmem:[#allocation8 + $0x3a8] ss:$16 sps:$4 sm:$0xff]  }
 0x401   :  { %4458 = vmatpush1.bf16.msra.mxu1 %v7839_v60  ;;  %v7892_v60 = vld [vmem:[#allocation8 + $0x3cc] ss:$16 sps:$4 sm:$0xff]  }
 0x402   :  { %4459 = vmatprep.subr.bf16.mxu1 %v7844_v63  ;;  %v7893_v63 = vld [vmem:[#allocation8 + $0x3e8] ss:$16 sps:$4 sm:$0xff]  }
 0x405   :  { %4460 = vmatpush1.bf16.msra.mxu1 %v7842_v0  ;;  %v7898_v0 = vld [vmem:[#allocation8 + $0x40c] ss:$16 sps:$4 sm:$0xff]  }
 0x406   :  { %4461 = vmatprep.subr.bf16.mxu1 %v7847_v3  ;;  %v7899_v3 = vld [vmem:[#allocation8 + $0x428] ss:$16 sps:$4 sm:$0xff]  }
 0x409   :  { %4462 = vmatpush1.bf16.msra.mxu1 %v7845_v4  ;;  %v7904_v4 = vld [vmem:[#allocation8 + $0x44c] ss:$16 sps:$4 sm:$0xff]  }
 0x40a   :  { %4474 = vmatprep.subr.bf16.mxu1 %v7850_v8  ;;  %v7905_v8 = vld [vmem:[#allocation8 + $0x468] ss:$16 sps:$4 sm:$0xff]  }
 0x40c   :  { %4464 = vmatmul.mubr.bf16.vlgmr.msra.gmra.mrb[8].mxu1 %v8836_v30  ;;  %v7977_v30 = vld [vmem:[#allocation11 + $0x108] ss:$12 sps:$4 sm:$0xff]  }
 0x40d   :  { %4475 = vmatpush1.bf16.msra.mxu1 %v7848_v9  ;;  %4506 = vmatprep.mubr.bf16.mxu1 %v8842_v36  ;;  %v7862_v36 = vld [vmem:[#allocation8 + $0x28c] ss:$16 sps:$4 sm:$0xff]  }
 0x40e   :  { %4476 = vmatprep.subr.bf16.mxu1 %v7853_v13  ;;  %5252 = vmatpush1.bf16.msra.mxu0 %v7977_v30  ;;  %v7910_v9 = vld [vmem:[#allocation8 + $0x48c] ss:$16 sps:$4 sm:$0xff]   ;;  %v7941_v30 = vld [vmem:[#allocation8 + $0x568] ss:$16 sps:$4 sm:$0xff]  }
 0x40f   :  { %5253 = vmatprep.subr.bf16.mxu0 %v7982_v28  ;;  %v7916_v13 = vld [vmem:[#allocation8 + $0x4cc] ss:$16 sps:$4 sm:$0xff]   ;;  %v7947_v28 = vld [vmem:[#allocation8 + $0x588] ss:$16 sps:$4 sm:$0xff]  }
 0x411   :  { %4477 = vmatpush1.bf16.msra.mxu1 %v7851_v32  ;;  %v7925_v32 = vld [vmem:[#allocation8 + $0x50c] ss:$16 sps:$4 sm:$0xff]  }
 0x412   :  { %4478 = vmatprep.subr.bf16.mxu1 %v7856_v52  ;;  %5254 = vmatpush1.bf16.msra.mxu0 %v7980_v16  ;;  %v7931_v52 = vld [vmem:[#allocation8 + $0x52c] ss:$16 sps:$4 sm:$0xff]   ;;  %v7953_v16 = vld [vmem:[#allocation8 + $0x5a8] ss:$16 sps:$4 sm:$0xff]  }
 0x413   :  { %5255 = vmatprep.subr.bf16.mxu0 %v7985_v33  ;;  %v7959_v33 = vld [vmem:[#allocation8 + $0x5c8] ss:$16 sps:$4 sm:$0xff]  }
 0x415   :  { %4479 = vmatpush1.bf16.msra.mxu1 %v7854_v22  ;;  %v7937_v22 = vld [vmem:[#allocation8 + $0x54c] ss:$16 sps:$4 sm:$0xff]  }
 0x416   :  { %4480 = vmatprep.subr.bf16.mxu1 %v7859_v18  ;;  %5256 = vmatpush1.bf16.msra.mxu0 %v7983_v37  ;;  %v7943_v18 = vld [vmem:[#allocation8 + $0x56c] ss:$16 sps:$4 sm:$0xff]   ;;  %v7965_v37 = vld [vmem:[#allocation8 + $0x5e8] ss:$16 sps:$4 sm:$0xff]  }
 0x417   :  { %5257 = vmatprep.subr.bf16.mxu0 %v7988_v34  ;;  %v8025_v34 = vld [vmem:[#allocation11 + $0x1a0] ss:$12 sps:$4 sm:$0xff]  }
 0x419   :  { %4481 = vmatpush1.bf16.msra.mxu1 %v7857_v27  ;;  %v7949_v27 = vld [vmem:[#allocation8 + $0x58c] ss:$16 sps:$4 sm:$0xff]  }
 0x41a   :  { %4482 = vmatprep.subr.bf16.mxu1 %v7862_v36  ;;  %5258 = vmatpush1.bf16.msra.mxu0 %v7986_v26  ;;  %v7955_v36 = vld [vmem:[#allocation8 + $0x5ac] ss:$16 sps:$4 sm:$0xff]  }
 0x41b   :  { %5259 = vmatprep.subr.bf16.mxu0 %v7991_v41  ;;  %v8030_v26 = vld [vmem:[#allocation11 + $0x1b8] ss:$12 sps:$4 sm:$0xff]   ;;  %v8035_v41 = vld [vmem:[#allocation11 + $0x1d0] ss:$12 sps:$4 sm:$0xff]  }
 0x41d   :  { %4483 = vmatpush1.bf16.msra.mxu1 %v7860_v17  ;;  %v7961_v17 = vld [vmem:[#allocation8 + $0x5cc] ss:$16 sps:$4 sm:$0xff]  }
 0x41e   :  { %4484 = vmatprep.subr.bf16.mxu1 %v7865_v35  ;;  %5260 = vmatpush1.bf16.msra.mxu0 %v7989_v43  ;;  %v7967_v35 = vld [vmem:[#allocation8 + $0x5ec] ss:$16 sps:$4 sm:$0xff]   ;;  %v8865_v43 = vld [vmem:[#allocation10] sm:$0xf] }
 0x41f   :  { %5272 = vmatprep.subr.bf16.mxu0 %v7994_v45  ;;  %v3329_v45 = vrot.slane %v8865_v43, %v8824_v53 }
 0x421   :  { %4485 = vmatpush1.bf16.msra.mxu1 %v7863_v38  ;;  %v8019_v38 = vld [vmem:[#allocation11 + $0x248] ss:$12 sps:$4 sm:$0xff]  }
 0x422   :  { %4486 = vmatprep.subr.bf16.mxu1 %v7868_v5  ;;  %v8020_v5 = vld [vmem:[#allocation11 + $0x188] ss:$12 sps:$4 sm:$0xff]  }
 0x425   :  { %4487 = vmatpush1.bf16.msra.mxu1 %v7866_v39  ;;  %v8024_v39 = vld [vmem:[#allocation11 + $0x260] ss:$12 sps:$4 sm:$0xff]  }
 0x426   :  { %4488 = vmatprep.subr.bf16.mxu1 %v7871_v25  ;;  %v8029_v25 = vld [vmem:[#allocation11 + $0x278] ss:$12 sps:$4 sm:$0xff]  }
 0x429   :  { %4489 = vmatpush1.bf16.msra.mxu1 %v7869_v40  ;;  %v8034_v40 = vld [vmem:[#allocation11 + $0x290] ss:$12 sps:$4 sm:$0xff]  }
 0x42a   :  { %4490 = vmatprep.subr.bf16.mxu1 %v7874_v42  ;;  %v8039_v42 = vld [vmem:[#allocation11 + $0x2a8] ss:$12 sps:$4 sm:$0xff]  }
 0x42d   :  { %4491 = vmatpush1.bf16.msra.mxu1 %v7872_v44  ;;  %v8040_v44 = vld [vmem:[#allocation11 + $0x1e8] ss:$12 sps:$4 sm:$0xff]  }
 0x42e   :  { %4492 = vmatprep.subr.bf16.mxu1 %v7877_v50  ;;  %v8044_v50 = vld [vmem:[#allocation11 + $0x2c0] ss:$12 sps:$4 sm:$0xff]  }
 0x431   :  { %4493 = vmatpush1.bf16.msra.mxu1 %v7875_v46 }
 0x432   :  { %4494 = vmatprep.subr.bf16.mxu1 %v7880_v48 }
 0x435   :  { %4495 = vmatpush1.bf16.msra.mxu1 %v7878_v49 }
 0x436   :  { %4496 = vmatprep.subr.bf16.mxu1 %v7883_v29 }
 0x439   :  { %4497 = vmatpush1.bf16.msra.mxu1 %v7881_v55 }
 0x43a   :  { %4498 = vmatprep.subr.bf16.mxu1 %v7886_v56 }
 0x43d   :  { %4499 = vmatpush1.bf16.msra.mxu1 %v7884_v57 }
 0x43e   :  { %4500 = vmatprep.subr.bf16.mxu1 %v7889_v58 }
 0x441   :  { %4501 = vmatpush1.bf16.msra.mxu1 %v7887_v59 }
 0x442   :  { %4502 = vmatprep.subr.bf16.mxu1 %v7892_v60 }
 0x445   :  { %4503 = vmatpush1.bf16.msra.mxu1 %v7890_v61 }
 0x446   :  { %4504 = vmatprep.subr.bf16.mxu1 %v7895_v62 }
 0x449   :  { %4505 = vmatpush1.bf16.msra.mxu1 %v7893_v63 }
 0x44a   :  { %4517 = vmatprep.subr.bf16.mxu1 %v7898_v0 }
 0x44c   :  { %4507 = vmatmul.mubr.bf16.vlgmr.msra.gmra.mrb[8].mxu1 %v8838_v31  ;;  %v7911_v31 = vld [vmem:[#allocation8 + $0x4a8] ss:$16 sps:$4 sm:$0xff]  }
 0x44d   :  { %4518 = vmatpush1.bf16.msra.mxu1 %v7896_v1  ;;  %4549 = vmatprep.mubr.bf16.mxu1 %v8855_v20  ;;  %v7914_v20 = vld [vmem:[#allocation8 + $0x4c8] ss:$16 sps:$4 sm:$0xff]   ;;  %v7992_v1 = vld [vmem:[#allocation11 + $0x180] ss:$12 sps:$4 sm:$0xff]  }
 0x44e   :  { %4519 = vmatprep.subr.bf16.mxu1 %v7901_v2  ;;  %v7997_v2 = vld [vmem:[#allocation11 + $0x19c] ss:$12 sps:$4 sm:$0xff]  }
 0x451   :  { %4520 = vmatpush1.bf16.msra.mxu1 %v7899_v3  ;;  %v7995_v3 = vld [vmem:[#allocation11 + $0x198] ss:$12 sps:$4 sm:$0xff]  }
 0x452   :  { %4521 = vmatprep.subr.bf16.mxu1 %v7904_v4  ;;  %v8000_v4 = vld [vmem:[#allocation11 + $0x1b4] ss:$12 sps:$4 sm:$0xff]  }
 0x455   :  { %4522 = vmatpush1.bf16.msra.mxu1 %v7902_v6  ;;  %v7998_v6 = vld [vmem:[#allocation11 + $0x1b0] ss:$12 sps:$4 sm:$0xff]  }
 0x456   :  { %4523 = vmatprep.subr.bf16.mxu1 %v7907_v7  ;;  %v8003_v7 = vld [vmem:[#allocation11 + $0x1cc] ss:$12 sps:$4 sm:$0xff]  }
 0x459   :  { %4524 = vmatpush1.bf16.msra.mxu1 %v7905_v8  ;;  %v8001_v8 = vld [vmem:[#allocation11 + $0x1c8] ss:$12 sps:$4 sm:$0xff]  }
 0x45a   :  { %4525 = vmatprep.subr.bf16.mxu1 %v7910_v9  ;;  %v8006_v9 = vld [vmem:[#allocation11 + $0x1e4] ss:$12 sps:$4 sm:$0xff]  }
 0x45d   :  { %4526 = vmatpush1.bf16.msra.mxu1 %v7908_v10  ;;  %v8004_v10 = vld [vmem:[#allocation11 + $0x1e0] ss:$12 sps:$4 sm:$0xff]  }
 0x45e   :  { %4527 = vmatprep.subr.bf16.mxu1 %v7913_v12  ;;  %v8009_v12 = vld [vmem:[#allocation11 + $0x1fc] ss:$12 sps:$4 sm:$0xff]  }
 0x461   :  { %4528 = vmatpush1.bf16.msra.mxu1 %v7911_v31  ;;  %v8007_v31 = vld [vmem:[#allocation11 + $0x1f8] ss:$12 sps:$4 sm:$0xff]  }
 0x462   :  { %4529 = vmatprep.subr.bf16.mxu1 %v7916_v13  ;;  %v8012_v13 = vld [vmem:[#allocation11 + $0x214] ss:$12 sps:$4 sm:$0xff]  }
 0x465   :  { %4530 = vmatpush1.bf16.msra.mxu1 %v7914_v20  ;;  %v8010_v20 = vld [vmem:[#allocation11 + $0x210] ss:$12 sps:$4 sm:$0xff]  }
 0x466   :  { %4531 = vmatprep.subr.bf16.mxu1 %v7919_v14  ;;  %v8015_v14 = vld [vmem:[#allocation11 + $0x22c] ss:$12 sps:$4 sm:$0xff]  }
 0x469   :  { %4532 = vmatpush1.bf16.msra.mxu1 %v7917_v15  ;;  %v8013_v15 = vld [vmem:[#allocation11 + $0x228] ss:$12 sps:$4 sm:$0xff]  }
 0x46a   :  { %4533 = vmatprep.subr.bf16.mxu1 %v7925_v32  ;;  %v8018_v32 = vld [vmem:[#allocation11 + $0x244] ss:$12 sps:$4 sm:$0xff]  }
 0x46d   :  { %4534 = vmatpush1.bf16.msra.mxu1 %v7923_v21  ;;  %v8016_v21 = vld [vmem:[#allocation11 + $0x240] ss:$12 sps:$4 sm:$0xff]  }
 0x46e   :  { %4535 = vmatprep.subr.bf16.mxu1 %v7931_v52  ;;  %v8023_v52 = vld [vmem:[#allocation11 + $0x25c] ss:$12 sps:$4 sm:$0xff]  }
 0x471   :  { %4536 = vmatpush1.bf16.msra.mxu1 %v7929_v11  ;;  %v8021_v11 = vld [vmem:[#allocation11 + $0x258] ss:$12 sps:$4 sm:$0xff]  }
 0x472   :  { %4537 = vmatprep.subr.bf16.mxu1 %v7937_v22  ;;  %v8028_v22 = vld [vmem:[#allocation11 + $0x274] ss:$12 sps:$4 sm:$0xff]  }
 0x475   :  { %4538 = vmatpush1.bf16.msra.mxu1 %v7935_v23  ;;  %v8026_v23 = vld [vmem:[#allocation11 + $0x270] ss:$12 sps:$4 sm:$0xff]  }
 0x476   :  { %4539 = vmatprep.subr.bf16.mxu1 %v7943_v18  ;;  %v8033_v18 = vld [vmem:[#allocation11 + $0x28c] ss:$12 sps:$4 sm:$0xff]  }
 0x479   :  { %4540 = vmatpush1.bf16.msra.mxu1 %v7941_v30  ;;  %v8031_v30 = vld [vmem:[#allocation11 + $0x288] ss:$12 sps:$4 sm:$0xff]  }
 0x47a   :  { %4541 = vmatprep.subr.bf16.mxu1 %v7949_v27  ;;  %v8038_v27 = vld [vmem:[#allocation11 + $0x2a4] ss:$12 sps:$4 sm:$0xff]  }
 0x47d   :  { %4542 = vmatpush1.bf16.msra.mxu1 %v7947_v28  ;;  %v8036_v28 = vld [vmem:[#allocation11 + $0x2a0] ss:$12 sps:$4 sm:$0xff]  }
 0x47e   :  { %4543 = vmatprep.subr.bf16.mxu1 %v7955_v36  ;;  %v8043_v36 = vld [vmem:[#allocation11 + $0x2bc] ss:$12 sps:$4 sm:$0xff]  }
 0x481   :  { %4544 = vmatpush1.bf16.msra.mxu1 %v7953_v16  ;;  %v8041_v16 = vld [vmem:[#allocation11 + $0x2b8] ss:$12 sps:$4 sm:$0xff]  }
 0x482   :  { %4545 = vmatprep.subr.bf16.mxu1 %v7961_v17  ;;  %v8045_v17 = vld [vmem:[#allocation11 + $0x200] ss:$12 sps:$4 sm:$0xff]  }
 0x485   :  { %4546 = vmatpush1.bf16.msra.mxu1 %v7959_v33  ;;  %v8048_v33 = vld [vmem:[#allocation11 + $0x2d4] ss:$12 sps:$4 sm:$0xff]  }
 0x486   :  { %4547 = vmatprep.subr.bf16.mxu1 %v7967_v35  ;;  %v8046_v35 = vld [vmem:[#allocation11 + $0x2d0] ss:$12 sps:$4 sm:$0xff]  }
 0x489   :  { %4548 = vmatpush1.bf16.msra.mxu1 %v7965_v37  ;;  %v8049_v37 = vld [vmem:[#allocation11 + $0x2d8] ss:$12 sps:$4 sm:$0xff]  }
 0x48a   :  { %6890 = vmatprep.subr.bf16.mxu1 %v8019_v38  ;;  %v8050_v38 = vld [vmem:[#allocation11 + $0x218] ss:$12 sps:$4 sm:$0xff]  }
 0x48c   :  { %4550 = vmatmul.mubr.bf16.vlgmr.msra.gmra.mrb[8].mxu1 %v8853_v19  ;;  %v3325_v19 = vrot.slane %v8865_v43, %v8816_v51 }
 0x48d   :  { %6891 = vmatpush3.bf16.msra.mxu1 %v8020_v5  ;;  %v8053_v5 = vld [vmem:[#allocation11 + $0x2ec] ss:$12 sps:$4 sm:$0xff]  }
 0x48e   :  { %6892 = vmatprep.subr.bf16.mxu1 %v8024_v39  ;;  %v8051_v39 = vld [vmem:[#allocation11 + $0x2e8] ss:$12 sps:$4 sm:$0xff]  }
 0x491   :  { %6893 = vmatpush3.bf16.msra.mxu1 %v8025_v34  ;;  %v8054_v34 = vld [vmem:[#allocation11 + $0x2f0] ss:$12 sps:$4 sm:$0xff]  }
 0x492   :  { %6894 = vmatprep.subr.bf16.mxu1 %v8029_v25  ;;  %v8055_v25 = vld [vmem:[#allocation11 + $0x230] ss:$12 sps:$4 sm:$0xff]  }
 0x495   :  { %6895 = vmatpush3.bf16.msra.mxu1 %v8030_v26  ;;  %v8056_v26 = vld [vmem:[#allocation11 + $0xc8] ss:$12 sps:$4 sm:$0xff]  }
 0x496   :  { %6896 = vmatprep.subr.bf16.mxu1 %v8034_v40  ;;  %v3333_v40 = vrot.slane %v8865_v43, %v8819_v24 }
 0x499   :  { %6897 = vmatpush3.bf16.msra.mxu1 %v8035_v41  ;;  %v3337_v41 = vrot.slane %v8865_v43, %v618_v54  ;;  %v8060_v54 = vld [vmem:[#allocation11 + $0xf8] ss:$12 sps:$4 sm:$0xff]  }
 0x49a   :  { %6898 = vmatprep.subr.bf16.mxu1 %v8039_v42  ;;  %v8061_v43 = vld [vmem:[#allocation11 + $0x38] ss:$12 sps:$4 sm:$0xff]  }
 0x49d   :  { %6899 = vmatpush3.bf16.msra.mxu1 %v8040_v44 }
 0x49e   :  { %6900 = vmatprep.subr.bf16.mxu1 %v8044_v50 }
 0x49f   :  { %v4422_v46 = vpop.f32.mrb[4].mxu1 }
 0x4a0   :  { %v6975_v48 = vadd.f32 %v4422_v46, %v3325_v19  ;;  %v4424_v49 = vpop.f32.mrb[5].mxu1 }
 0x4a1   :  { %v6976_v29 = vadd.f32 %v4424_v49, %v3329_v45  ;;  %v4426_v55 = vpop.f32.mrb[6].mxu1  ;;  %6901 = vmatpush3.bf16.msra.mxu1 %v8045_v17  ;;  %v8104_v17 = vld [vmem:[#allocation14 + $0xa4] ss:$8 sps:$4 sm:$0xff]  }
 0x4a2   :  { %v6977_v56 = vadd.f32 %v4426_v55, %v3325_v19  ;;  %v4428_v57 = vpop.f32.mrb[7].mxu1  ;;  %v4560_v59 = vmax.f32 %v6975_v48, 0.0  ;;  %6902 = vmatprep.subr.bf16.mxu1 %v8049_v37  ;;  %v8105_v37 = vld [vmem:[#allocation14 + $0xb0] ss:$8 sps:$4 sm:$0xff]  }
 0x4a3   :  { %v6978_v58 = vadd.f32 %v4428_v57, %v3329_v45  ;;  %v4561_v61 = vmax.f32 %v6976_v29, 0.0 }
 0x4a4   :  { %v4564_v60 = vmax.f32 %v6977_v56, 0.0 }
 0x4a5   :  { %v4565_v62 = vmax.f32 %v6978_v58, 0.0  ;;  %6903 = vmatpush3.bf16.msra.mxu1 %v8050_v38  ;;  %v8110_v38 = vld [vmem:[#allocation14 + $0xc4] ss:$8 sps:$4 sm:$0xff]  }
 0x4a6   :  { %v8871_v63 = vpack.c.bf16 %v4564_v60, %v4560_v59  ;;  %6904 = vmatprep.subr.bf16.mxu1 %v8054_v34  ;;  %v8057_v60 = vld [vmem:[#allocation11 + $0x8] ss:$12 sps:$4 sm:$0xff]  }
 0x4a7   :  { %v8873_v0 = vpack.c.bf16 %v4565_v62, %v4561_v61  ;;  %v8058_v61 = vld [vmem:[#allocation11 + $0xe0] ss:$12 sps:$4 sm:$0xff]   ;;  %v8062_v62 = vld [vmem:[#allocation11 + $0x110] ss:$12 sps:$4 sm:$0xff]  }
 0x4a8   :  { %v8111_v34 = vld [vmem:[#allocation14 + $0xd0] ss:$8 sps:$4 sm:$0xff]  }
 0x4a9   :  { %5261 = vmatprep.mubr.bf16.mxu0 %v8873_v0  ;;  %6905 = vmatpush3.bf16.msra.mxu1 %v8055_v25  ;;  %v8116_v25 = vld [vmem:[#allocation14 + $0xe4] ss:$8 sps:$4 sm:$0xff]  }
 0x4aa   :  { %5262 = vmatmul.mubr.bf16.vlgmr.msra.gmra.mrb[8].mxu0 %v8871_v63 }
 0x4ab   :  { %5273 = vmatpush1.bf16.msra.mxu0 %v7992_v1  ;;  %v8063_v1 = vld [vmem:[#allocation11 + $0x50] ss:$12 sps:$4 sm:$0xff]  }
 0x4ac   :  { %5274 = vmatprep.subr.bf16.mxu0 %v7997_v2  ;;  %v8064_v2 = vld [vmem:[#allocation11 + $0x128] ss:$12 sps:$4 sm:$0xff]  }
 0x4af   :  { %5275 = vmatpush1.bf16.msra.mxu0 %v7995_v3  ;;  %v8065_v3 = vld [vmem:[#allocation11 + $0x68] ss:$12 sps:$4 sm:$0xff]  }
 0x4b0   :  { %5276 = vmatprep.subr.bf16.mxu0 %v8000_v4  ;;  %v8066_v4 = vld [vmem:[#allocation11 + $0x140] ss:$12 sps:$4 sm:$0xff]  }
 0x4b3   :  { %5277 = vmatpush1.bf16.msra.mxu0 %v7998_v6  ;;  %v8067_v6 = vld [vmem:[#allocation11 + $0x80] ss:$12 sps:$4 sm:$0xff]  }
 0x4b4   :  { %5278 = vmatprep.subr.bf16.mxu0 %v8003_v7  ;;  %v8068_v7 = vld [vmem:[#allocation11 + $0x158] ss:$12 sps:$4 sm:$0xff]  }
 0x4b7   :  { %5279 = vmatpush1.bf16.msra.mxu0 %v8001_v8  ;;  %v8070_v8 = vld [vmem:[#allocation11 + $0x170] ss:$12 sps:$4 sm:$0xff]  }
 0x4b8   :  { %5280 = vmatprep.subr.bf16.mxu0 %v8006_v9  ;;  %v8071_v9 = vld [vmem:[#allocation11 + $0xb0] ss:$12 sps:$4 sm:$0xff]  }
 0x4bb   :  { %5281 = vmatpush1.bf16.msra.mxu0 %v8004_v10  ;;  %v8074_v10 = vld [vmem:[#allocation14 + $0x4] ss:$8 sps:$4 sm:$0xff]  }
 0x4bc   :  { %5282 = vmatprep.subr.bf16.mxu0 %v8009_v12  ;;  %v8072_v12 = vld [vmem:[#allocation14] ss:$8 sps:$4 sm:$0xff]  }
 0x4bf   :  { %5283 = vmatpush1.bf16.msra.mxu0 %v8007_v31  ;;  %v8077_v31 = vld [vmem:[#allocation14 + $0x14] ss:$8 sps:$4 sm:$0xff]  }
 0x4c0   :  { %5284 = vmatprep.subr.bf16.mxu0 %v8012_v13  ;;  %v8075_v13 = vld [vmem:[#allocation14 + $0x10] ss:$8 sps:$4 sm:$0xff]  }
 0x4c3   :  { %5285 = vmatpush1.bf16.msra.mxu0 %v8010_v20  ;;  %v8080_v20 = vld [vmem:[#allocation14 + $0x24] ss:$8 sps:$4 sm:$0xff]  }
 0x4c4   :  { %5286 = vmatprep.subr.bf16.mxu0 %v8015_v14  ;;  %v8078_v14 = vld [vmem:[#allocation14 + $0x20] ss:$8 sps:$4 sm:$0xff]  }
 0x4c7   :  { %5287 = vmatpush1.bf16.msra.mxu0 %v8013_v15  ;;  %v8083_v15 = vld [vmem:[#allocation14 + $0x34] ss:$8 sps:$4 sm:$0xff]  }
 0x4c8   :  { %5288 = vmatprep.subr.bf16.mxu0 %v8018_v32  ;;  %v8081_v32 = vld [vmem:[#allocation14 + $0x30] ss:$8 sps:$4 sm:$0xff]  }
 0x4cb   :  { %5289 = vmatpush1.bf16.msra.mxu0 %v8016_v21  ;;  %v8086_v21 = vld [vmem:[#allocation14 + $0x44] ss:$8 sps:$4 sm:$0xff]  }
 0x4cc   :  { %5290 = vmatprep.subr.bf16.mxu0 %v8023_v52  ;;  %v8084_v52 = vld [vmem:[#allocation14 + $0x40] ss:$8 sps:$4 sm:$0xff]  }
 0x4cf   :  { %5291 = vmatpush1.bf16.msra.mxu0 %v8021_v11  ;;  %v8089_v11 = vld [vmem:[#allocation14 + $0x54] ss:$8 sps:$4 sm:$0xff]  }
 0x4d0   :  { %5292 = vmatprep.subr.bf16.mxu0 %v8028_v22  ;;  %v8087_v22 = vld [vmem:[#allocation14 + $0x50] ss:$8 sps:$4 sm:$0xff]  }
 0x4d3   :  { %5293 = vmatpush1.bf16.msra.mxu0 %v8026_v23  ;;  %v8090_v23 = vld [vmem:[#allocation14 + $0x60] ss:$8 sps:$4 sm:$0xff]  }
 0x4d4   :  { %5294 = vmatprep.subr.bf16.mxu0 %v8033_v18  ;;  %v8095_v18 = vld [vmem:[#allocation14 + $0x74] ss:$8 sps:$4 sm:$0xff]  }
 0x4d7   :  { %5295 = vmatpush1.bf16.msra.mxu0 %v8031_v30  ;;  %v8093_v30 = vld [vmem:[#allocation14 + $0x70] ss:$8 sps:$4 sm:$0xff]  }
 0x4d8   :  { %5296 = vmatprep.subr.bf16.mxu0 %v8038_v27  ;;  %v8098_v27 = vld [vmem:[#allocation14 + $0x84] ss:$8 sps:$4 sm:$0xff]  }
 0x4db   :  { %5297 = vmatpush1.bf16.msra.mxu0 %v8036_v28  ;;  %v8096_v28 = vld [vmem:[#allocation14 + $0x80] ss:$8 sps:$4 sm:$0xff]  }
 0x4dc   :  { %5298 = vmatprep.subr.bf16.mxu0 %v8043_v36  ;;  %v8101_v36 = vld [vmem:[#allocation14 + $0x94] ss:$8 sps:$4 sm:$0xff]  }
 0x4df   :  { %5299 = vmatpush1.bf16.msra.mxu0 %v8041_v16  ;;  %v8099_v16 = vld [vmem:[#allocation14 + $0x90] ss:$8 sps:$4 sm:$0xff]  }
 0x4e0   :  { %5300 = vmatprep.subr.bf16.mxu0 %v8048_v33  ;;  %v8102_v33 = vld [vmem:[#allocation14 + $0xa0] ss:$8 sps:$4 sm:$0xff]  }
 0x4e3   :  { %5301 = vmatpush1.bf16.msra.mxu0 %v8046_v35  ;;  %v8107_v35 = vld [vmem:[#allocation14 + $0xb4] ss:$8 sps:$4 sm:$0xff]  }
 0x4e4   :  { %5302 = vmatprep.subr.bf16.mxu0 %v8053_v5  ;;  %v8108_v5 = vld [vmem:[#allocation14 + $0xc0] ss:$8 sps:$4 sm:$0xff]  }
 0x4e7   :  { %5303 = vmatpush1.bf16.msra.mxu0 %v8051_v39  ;;  %v8113_v39 = vld [vmem:[#allocation14 + $0xd4] ss:$8 sps:$4 sm:$0xff]  }
 0x4e8   :  { %6868 = vmatprep.subr.bf16.mxu0 %v8056_v26  ;;  %v8114_v26 = vld [vmem:[#allocation14 + $0xe0] ss:$8 sps:$4 sm:$0xff]  }
 0x55f   :  { %v4551_v42 = vpop.f32.mrb[8].mxu1 }
 0x560   :  { %v6979_v44 = vadd.f32 %v4551_v42, %v3333_v40  ;;  %v4553_v50 = vpop.f32.mrb[9].mxu1  ;;  %v8122_v42 = vld [vmem:[#allocation14 + $0x104] ss:$8 sps:$4 sm:$0xff]  }
 0x561   :  { %v6980_v19 = vadd.f32 %v4553_v50, %v3337_v41  ;;  %v4555_v45 = vpop.f32.mrb[10].mxu1  ;;  %v8145_v50 = vld [vmem:[#allocation17] sm:$0xff]  }
 0x562   :  { %v6981_v46 = vadd.f32 %v4555_v45, %v3333_v40  ;;  %v4557_v48 = vpop.f32.mrb[11].mxu1  ;;  %v4562_v29 = vmax.f32 %v6979_v44, 0.0  ;;  %v8119_v40 = vld [vmem:[#allocation14 + $0xf4] ss:$8 sps:$4 sm:$0xff]   ;;  %v8144_v44 = vld [vmem:[#allocation17 + $0x40] sm:$0xff]   ;;  %v8147_v45 = vld [vmem:[#allocation17 + $0x8] sm:$0xff]  }
 0x563   :  { %v6982_v49 = vadd.f32 %v4557_v48, %v3337_v41  ;;  %v4563_v56 = vmax.f32 %v6980_v19, 0.0  ;;  %v8117_v41 = vld [vmem:[#allocation14 + $0xf0] ss:$8 sps:$4 sm:$0xff]   ;;  %6912 = vmatprep.subr.bf16.mxu1 %v8144_v44 }
 0x564   :  { %v4566_v55 = vmax.f32 %v6981_v46, 0.0  ;;  %v8146_v19 = vld [vmem:[#allocation17 + $0x48] sm:$0xff]   ;;  %v8148_v46 = vld [vmem:[#allocation17 + $0x50] sm:$0xff]  }
 0x565   :  { %v4567_v57 = vmax.f32 %v6982_v49, 0.0  ;;  %v8149_v48 = vld [vmem:[#allocation17 + $0x10] sm:$0xff]   ;;  %v8150_v49 = vld [vmem:[#allocation17 + $0x58] sm:$0xff]  }
 0x566   :  { %v4570_v58 = vpack.c.bf16 %v4566_v55, %v4562_v29  ;;  %v8151_v29 = vld [vmem:[#allocation17 + $0x18] sm:$0xff]   ;;  %v8152_v55 = vld [vmem:[#allocation17 + $0x60] sm:$0xff]  }
 0x567   :  { %v4571_v59 = vpack.c.bf16 %v4567_v57, %v4563_v56  ;;  %v8153_v56 = vld [vmem:[#allocation17 + $0x20] sm:$0xff]   ;;  %v8154_v57 = vld [vmem:[#allocation17 + $0x68] sm:$0xff]  }
 0x569   :  { %5304 = vmatprep.mubr.bf16.mxu0 %v4571_v59  ;;  %5388 = vmatprep.mubr.bf16.mxu1 %v4571_v59 }
 0x56a   :  { %5305 = vmatmul.mubr.bf16.vlgmr.msra.gmra.mrb[8].mxu0 %v4570_v58  ;;  %5389 = vmatmul.mubr.bf16.vlgmr.msra.gmra.mrb[12].mxu1 %v4570_v58  ;;  %v4700_v58 = vld [vmem:[#allocation13] sm:$0x7] }
 0x56b   :  { %6869 = vmatpush3.bf16.msra.mxu0 %v8057_v60  ;;  %5347 = vmatprep.mubr.bf16.mxu0 %v8873_v0  ;;  %v8069_v0 = vld [vmem:[#allocation11 + $0x98] ss:$12 sps:$4 sm:$0xff]   ;;  %v4705_v59 = vrot.slane %v4700_v58, %v8816_v51  ;;  %v4709_v60 = vrot.slane %v4700_v58, %v8824_v53 }
 0x56c   :  { %6870 = vmatprep.subr.bf16.mxu0 %v8058_v61  ;;  %6913 = vmatpush3.bf16.msra.mxu1 %v8145_v50 }
 0x56d   :  { %6914 = vmatprep.subr.bf16.mxu1 %v8146_v19  ;;  %v8155_v19 = vld [vmem:[#allocation17 + $0x28] sm:$0xff]  }
 0x56f   :  { %6871 = vmatpush3.bf16.msra.mxu0 %v8059_v47 }
 0x570   :  { %6872 = vmatprep.subr.bf16.mxu0 %v8060_v54  ;;  %6915 = vmatpush3.bf16.msra.mxu1 %v8147_v45  ;;  %v8156_v45 = vld [vmem:[#allocation17 + $0x70] sm:$0xff]  }
 0x571   :  { %6916 = vmatprep.subr.bf16.mxu1 %v8148_v46  ;;  %v8157_v46 = vld [vmem:[#allocation17 + $0x30] sm:$0xff]  }
 0x573   :  { %6873 = vmatpush3.bf16.msra.mxu0 %v8061_v43 }
 0x574   :  { %6874 = vmatprep.subr.bf16.mxu0 %v8062_v62  ;;  %6917 = vmatpush3.bf16.msra.mxu1 %v8149_v48  ;;  %v8158_v48 = vld [vmem:[#allocation17 + $0x78] sm:$0xff]  }
 0x575   :  { %6918 = vmatprep.subr.bf16.mxu1 %v8150_v49  ;;  %v8159_v49 = vld [vmem:[#allocation17 + $0x38] sm:$0xff]  }
 0x577   :  { %6875 = vmatpush3.bf16.msra.mxu0 %v8063_v1 }
 0x578   :  { %6876 = vmatprep.subr.bf16.mxu0 %v8064_v2  ;;  %6919 = vmatpush3.bf16.msra.mxu1 %v8151_v29  ;;  %v8518_v29 = vmov 0.0  }
 0x579   :  { %6920 = vmatprep.subr.bf16.mxu1 %v8152_v55  ;;  %v5454_v55 = vld [vmem:[#allocation16] sm:$0x3] }
 0x57b   :  { %6877 = vmatpush3.bf16.msra.mxu0 %v8065_v3 }
 0x57c   :  { %6878 = vmatprep.subr.bf16.mxu0 %v8066_v4  ;;  %6921 = vmatpush3.bf16.msra.mxu1 %v8153_v56  ;;  %v5459_v56 = vrot.slane %v5454_v55, %v8816_v51  ;;  %v8161_v51 = vld [vmem:[#allocation20 + $0x8] sm:$0xff]  }
 0x57d   :  { %6922 = vmatprep.subr.bf16.mxu1 %v8154_v57  ;;  %v5463_v57 = vrot.slane %v5454_v55, %v8824_v53  ;;  %v8162_v53 = vld [vmem:[#allocation20 + $0x10] sm:$0xff]  }
 0x57f   :  { %6879 = vmatpush3.bf16.msra.mxu0 %v8067_v6 }
 0x580   :  { %6880 = vmatprep.subr.bf16.mxu0 %v8068_v7  ;;  %6923 = vmatpush3.bf16.msra.mxu1 %v8155_v19 }
 0x581   :  { %6924 = vmatprep.subr.bf16.mxu1 %v8156_v45 }
 0x583   :  { %6881 = vmatpush3.bf16.msra.mxu0 %v8069_v0 }
 0x584   :  { %6882 = vmatprep.subr.bf16.mxu0 %v8070_v8  ;;  %6925 = vmatpush3.bf16.msra.mxu1 %v8157_v46 }
 0x585   :  { %6926 = vmatprep.subr.bf16.mxu1 %v8158_v48 }
 0x587   :  { %6883 = vmatpush3.bf16.msra.mxu0 %v8071_v9 }
 0x588   :  { %5706 = vmatprep.subr.bf16.mxu0 %v8074_v10  ;;  %6927 = vmatpush3.bf16.msra.mxu1 %v8159_v49 }
 0x589   :  { %6943 = vmatprep.subr.bf16.mxu1 %v8518_v29 }
 0x58a   :  { %5348 = vmatmul.mubr.bf16.vlgmr.msra.gmra.mrb[12].mxu0 %v8871_v63  ;;  %v8092_v63 = vld [vmem:[#allocation14 + $0x64] ss:$8 sps:$4 sm:$0xff]  }
 0x58b   :  { %5707 = vmatpush1.bf16.msra.mxu0 %v8072_v12 }
 0x58c   :  { %5708 = vmatprep.subr.bf16.mxu0 %v8077_v31 }
 0x58f   :  { %5709 = vmatpush1.bf16.msra.mxu0 %v8075_v13 }
 0x590   :  { %5710 = vmatprep.subr.bf16.mxu0 %v8080_v20 }
 0x593   :  { %5711 = vmatpush1.bf16.msra.mxu0 %v8078_v14 }
 0x594   :  { %5712 = vmatprep.subr.bf16.mxu0 %v8083_v15  ;;  %v8120_v15 = vld [vmem:[#allocation14 + $0x100] ss:$8 sps:$4 sm:$0xff]  }
 0x597   :  { %5713 = vmatpush1.bf16.msra.mxu0 %v8081_v32  ;;  %v8125_v32 = vld [vmem:[#allocation14 + $0x114] ss:$8 sps:$4 sm:$0xff]  }
 0x598   :  { %5714 = vmatprep.subr.bf16.mxu0 %v8086_v21  ;;  %v8123_v21 = vld [vmem:[#allocation14 + $0x110] ss:$8 sps:$4 sm:$0xff]  }
 0x59b   :  { %5715 = vmatpush1.bf16.msra.mxu0 %v8084_v52  ;;  %v8517_v52 = vmov 0  }
 0x59c   :  { %5716 = vmatprep.subr.bf16.mxu0 %v8089_v11  ;;  %v8128_v11 = vld [vmem:[#allocation14 + $0x124] ss:$8 sps:$4 sm:$0xff]  }
 0x59f   :  { %5717 = vmatpush1.bf16.msra.mxu0 %v8087_v22  ;;  %v8126_v22 = vld [vmem:[#allocation14 + $0x120] ss:$8 sps:$4 sm:$0xff]  }
 0x5a0   :  { %5718 = vmatprep.subr.bf16.mxu0 %v8092_v63  ;;  %v8131_v63 = vld [vmem:[#allocation14 + $0x134] ss:$8 sps:$4 sm:$0xff]  }
 0x5a3   :  { %5719 = vmatpush1.bf16.msra.mxu0 %v8090_v23  ;;  %v8129_v23 = vld [vmem:[#allocation14 + $0x130] ss:$8 sps:$4 sm:$0xff]  }
 0x5a4   :  { %5720 = vmatprep.subr.bf16.mxu0 %v8095_v18  ;;  %v8134_v18 = vld [vmem:[#allocation14 + $0x144] ss:$8 sps:$4 sm:$0xff]  }
 0x5a7   :  { %5721 = vmatpush1.bf16.msra.mxu0 %v8093_v30  ;;  %v8132_v30 = vld [vmem:[#allocation14 + $0x140] ss:$8 sps:$4 sm:$0xff]  }
 0x5a8   :  { %5722 = vmatprep.subr.bf16.mxu0 %v8098_v27  ;;  %v8137_v27 = vld [vmem:[#allocation14 + $0x154] ss:$8 sps:$4 sm:$0xff]  }
 0x5ab   :  { %5723 = vmatpush1.bf16.msra.mxu0 %v8096_v28  ;;  %v8135_v28 = vld [vmem:[#allocation14 + $0x150] ss:$8 sps:$4 sm:$0xff]  }
 0x5ac   :  { %5724 = vmatprep.subr.bf16.mxu0 %v8101_v36  ;;  %v8140_v36 = vld [vmem:[#allocation14 + $0x164] ss:$8 sps:$4 sm:$0xff]  }
 0x5af   :  { %5725 = vmatpush1.bf16.msra.mxu0 %v8099_v16 }
 0x5b0   :  { %5726 = vmatprep.subr.bf16.mxu0 %v8104_v17  ;;  %v4713_v17 = vrot.slane %v4700_v58, %v8819_v24 }
 0x5b3   :  { %5727 = vmatpush1.bf16.msra.mxu0 %v8102_v33  ;;  %v8138_v33 = vld [vmem:[#allocation14 + $0x160] ss:$8 sps:$4 sm:$0xff]  }
 0x5b4   :  { %5728 = vmatprep.subr.bf16.mxu0 %v8107_v35 }
 0x5b7   :  { %5729 = vmatpush1.bf16.msra.mxu0 %v8105_v37  ;;  %v8143_v37 = vld [vmem:[#allocation14 + $0x174] ss:$8 sps:$4 sm:$0xff]  }
 0x5b8   :  { %5730 = vmatprep.subr.bf16.mxu0 %v8110_v38 }
 0x5bb   :  { %5731 = vmatpush1.bf16.msra.mxu0 %v8108_v5 }
 0x5bc   :  { %5732 = vmatprep.subr.bf16.mxu0 %v8113_v39 }
 0x5bf   :  { %5733 = vmatpush1.bf16.msra.mxu0 %v8111_v34 }
 0x5c0   :  { %5734 = vmatprep.subr.bf16.mxu0 %v8116_v25 }
 0x5c3   :  { %5735 = vmatpush1.bf16.msra.mxu0 %v8114_v26  ;;  %v8141_v26 = vld [vmem:[#allocation14 + $0x170] ss:$8 sps:$4 sm:$0xff]  }
 0x5c4   :  { %5736 = vmatprep.subr.bf16.mxu0 %v8119_v40 }
 0x5c7   :  { %5737 = vmatpush1.bf16.msra.mxu0 %v8117_v41 }
 0x5c8   :  { %5749 = vmatprep.subr.bf16.mxu0 %v8122_v42 }
 0x63d   :  { %v5306_v61 = vpop.f32.mrb[8].mxu0  ;;  %v6906_v47 = vpop.f32.mrb[12].mxu1 }
 0x63e   :  { %v6983_v54 = vadd.f32 %v5306_v61, %v4705_v59  ;;  %v5308_v43 = vpop.f32.mrb[9].mxu0  ;;  %v6907_v62 = vpop.f32.mrb[13].mxu1 }
 0x63f   :  { %v6984_v1 = vadd.f32 %v5308_v43, %v4709_v60  ;;  %v6908_v2 = vadd.f32 %v6907_v62, %v6906_v47  ;;  %v5310_v3 = vpop.f32.mrb[10].mxu0  ;;  %v6909_v4 = vpop.f32.mrb[14].mxu1 }
 0x640   :  { %v6985_v6 = vadd.f32 %v5310_v3, %v4705_v59  ;;  %v5312_v7 = vpop.f32.mrb[11].mxu0  ;;  %v6910_v0 = vpop.f32.mrb[15].mxu1  ;;  %v5397_v10 = vmax.f32 %v6983_v54, 0.0 }
 0x641   :  { %v6986_v8 = vadd.f32 %v5312_v7, %v4709_v60  ;;  %v6911_v9 = vadd.f32 %v6910_v0, %v6909_v4  ;;  %v5398_v31 = vmax.f32 %v6984_v1, 0.0  ;;  %v8160_v0 = vld [vmem:[#allocation20] sm:$0xff]  }
 0x642   :  { %v5400_v12 = vmax.f32 %v6985_v6, 0.0 }
 0x643   :  { %v5401_v13 = vmax.f32 %v6986_v8, 0.0  ;;  %v8163_v8 = vld [vmem:[#allocation20 + $0x18] sm:$0xff]  }
 0x644   :  { %v5403_v20 = vpack.c.bf16 %v5400_v12, %v5397_v10  ;;  %v8165_v10 = vld [vmem:[#allocation20 + $0x28] sm:$0xff]   ;;  %v8166_v12 = vld [vmem:[#allocation20 + $0x30] sm:$0xff]  }
 0x645   :  { %v5404_v14 = vpack.c.bf16 %v5401_v13, %v5398_v31  ;;  %v8167_v31 = vld [vmem:[#allocation20 + $0x38] sm:$0xff]  }
 0x647   :  { %5738 = vmatprep.mubr.bf16.mxu0 %v5404_v14 }
 0x648   :  { %5739 = vmatmul.mubr.bf16.vlgmr.msra.gmra.mrb[16].mxu0 %v5403_v20  ;;  %v6842_v20 = vld [vmem:[#allocation19] ss:$0 sm:$0xff] }
 0x649   :  { %5750 = vmatpush1.bf16.msra.mxu0 %v8120_v15  ;;  %5781 = vmatprep.mubr.bf16.mxu0 %v8517_v52 }
 0x64a   :  { %5751 = vmatprep.subr.bf16.mxu0 %v8125_v32 }
 0x64d   :  { %5752 = vmatpush1.bf16.msra.mxu0 %v8123_v21 }
 0x64e   :  { %5753 = vmatprep.subr.bf16.mxu0 %v8128_v11 }
 0x651   :  { %5754 = vmatpush1.bf16.msra.mxu0 %v8126_v22 }
 0x652   :  { %5755 = vmatprep.subr.bf16.mxu0 %v8131_v63 }
 0x655   :  { %5756 = vmatpush1.bf16.msra.mxu0 %v8129_v23 }
 0x656   :  { %5757 = vmatprep.subr.bf16.mxu0 %v8134_v18 }
 0x659   :  { %5758 = vmatpush1.bf16.msra.mxu0 %v8132_v30  ;;  %v6859_v30 = vld [vmem:[#allocation22] ss:$0 sm:$0xff] }
 0x65a   :  { %5759 = vmatprep.subr.bf16.mxu0 %v8137_v27 }
 0x65d   :  { %v6884_v16 = vpop.f32.mrb[12].mxu0  ;;  %5760 = vmatpush1.bf16.msra.mxu0 %v8135_v28 }
 0x65e   :  { %v6885_v35 = vpop.f32.mrb[13].mxu0  ;;  %5761 = vmatprep.subr.bf16.mxu0 %v8140_v36 }
 0x65f   :  { %v6886_v38 = vadd.f32 %v6885_v35, %v6884_v16  ;;  %v6887_v5 = vpop.f32.mrb[14].mxu0 }
 0x660   :  { %v6888_v39 = vpop.f32.mrb[15].mxu0 }
 0x661   :  { %v5350_v34 = vadd.f32 %v6886_v38, %v4713_v17  ;;  %v6889_v25 = vadd.f32 %v6888_v39, %v6887_v5  ;;  %5762 = vmatpush1.bf16.msra.mxu0 %v8138_v33 }
 0x662   :  { %5763 = vmatprep.subr.bf16.mxu0 %v8143_v37 }
 0x663   :  { %v5391_v40 = vadd.f32 %v6908_v2, %v5350_v34  ;;  %v5353_v41 = vadd.f32 %v6889_v25, %v4713_v17 }
 0x665   :  { %v5394_v42 = vadd.f32 %v6911_v9, %v5353_v41  ;;  %5764 = vmatpush1.bf16.msra.mxu0 %v8141_v26  ;;  %v5399_v44 = vmax.f32 %v5391_v40, 0.0  ;;  %v8164_v9 = vld [vmem:[#allocation20 + $0x20] sm:$0xff]  }
 0x667   :  { %v5402_v50 = vmax.f32 %v5394_v42, 0.0 }
 0x669   :  { %v5405_v24 = vpack.c.bf16 %v5402_v50, %v5399_v44 }
 0x66b   :  { %5782 = vmatmul.mubr.bf16.vlgmr.msra.gmra.mrb[16].mxu0 %v5405_v24 }
 0x73e   :  { %v5783_v58 = vpop.f32.mrb[16].mxu0 }
 0x73f   :  { %v6987_v59 = vadd.f32 %v5783_v58, %v5459_v56  ;;  %v5785_v60 = vpop.f32.mrb[17].mxu0 }
 0x740   :  { %v6988_v61 = vadd.f32 %v5785_v60, %v5463_v57  ;;  %v5787_v47 = vpop.f32.mrb[18].mxu0 }
 0x741   :  { %v6989_v54 = vadd.f32 %v5787_v47, %v5459_v56  ;;  %v5789_v43 = vpop.f32.mrb[19].mxu0  ;;  %v5792_v1 = vmax.f32 %v6987_v59, 0.0 }
 0x742   :  { %v6990_v62 = vadd.f32 %v5789_v43, %v5463_v57  ;;  %v5793_v3 = vmax.f32 %v6988_v61, 0.0 }
 0x743   :  { %v5794_v2 = vmax.f32 %v6989_v54, 0.0 }
 0x744   :  { %v5795_v4 = vmax.f32 %v6990_v62, 0.0 }
 0x745   :  { %v5796_v6 = vpack.c.bf16 %v5794_v2, %v5792_v1 }
 0x746   :  { %v5797_v7 = vpack.c.bf16 %v5795_v4, %v5793_v3 }
 0x748   :  { %5965 = vmatprep.mubr.bf16.mxu1 %v5797_v7 }
 0x749   :  { %5966 = vmatmul.mubr.bf16.vlgmr.msra.gmra.mrb[16].mxu1 %v5796_v6 }
 0x74a   :  { %6944 = vmatpush3.bf16.msra.mxu1 %v8160_v0  ;;  %6959 = vmatprep.mubr.msk.bf16.mxu1 %vm8519_vm0, %v8518_v29 }
 0x74b   :  { %6945 = vmatprep.subr.bf16.mxu1 %v8518_v29 }
 0x74e   :  { %6946 = vmatpush3.bf16.msra.mxu1 %v8161_v51 }
 0x74f   :  { %6947 = vmatprep.subr.bf16.mxu1 %v8518_v29 }
 0x752   :  { %6948 = vmatpush3.bf16.msra.mxu1 %v8162_v53 }
 0x753   :  { %6949 = vmatprep.subr.bf16.mxu1 %v8518_v29 }
 0x756   :  { %6950 = vmatpush3.bf16.msra.mxu1 %v8163_v8 }
 0x757   :  { %6951 = vmatprep.subr.bf16.mxu1 %v8518_v29 }
 0x75a   :  { %6952 = vmatpush3.bf16.msra.mxu1 %v8164_v9 }
 0x75b   :  { %6953 = vmatprep.subr.bf16.mxu1 %v8518_v29 }
 0x75e   :  { %6954 = vmatpush3.bf16.msra.mxu1 %v8165_v10 }
 0x75f   :  { %6955 = vmatprep.subr.bf16.mxu1 %v8518_v29 }
 0x762   :  { %6956 = vmatpush3.bf16.msra.mxu1 %v8166_v12 }
 0x763   :  { %6957 = vmatprep.subr.bf16.mxu1 %v8518_v29 }
 0x766   :  { %6958 = vmatpush3.bf16.msra.mxu1 %v8167_v31 }
 0x81c   :  { %v6928_v13 = vpop.f32.mrb[16].mxu1 }
 0x81d   :  { %v6929_v14 = vpop.f32.mrb[17].mxu1 }
 0x81e   :  { %v6930_v15 = vadd.f32 %v6929_v14, %v6928_v13  ;;  %v6931_v32 = vpop.f32.mrb[18].mxu1 }
 0x81f   :  { %v6932_v21 = vpop.f32.mrb[19].mxu1 }
 0x820   :  { %v5968_v52 = vadd.f32 %v6930_v15, %v6842_v20  ;;  %v6933_v11 = vadd.f32 %v6932_v21, %v6931_v32 }
 0x822   :  { %v5971_v22 = vadd.f32 %v6933_v11, %v6842_v20  ;;  %v5974_v63 = vmax.f32 %v5968_v52, 0.0 }
 0x824   :  { %v5975_v23 = vmax.f32 %v5971_v22, 0.0 }
 0x826   :  { %v5976_v18 = vpack.c.bf16 %v5975_v23, %v5974_v63 }
 0x828   :  { %6960 = vmatmul.mubr.bf16.vlgmr.msra.gmra.mrb[20].mxu1 %v5976_v18 }
 0x8fb   :  { %v6082_v27 = vpop.f32.mrb[20].mxu1 }
 0x8fc   :  { %v6083_v28 = vadd.f32 %v6859_v30, %v6082_v27  ;;  %v6961_v36 = vpop.f32.mrb[21].mxu1 }
 0x8fd   :  { %v6085_v16 = vpop.f32.mrb[22].mxu1 }
 0x8fe   :  { %6089 = vst [vmem:[#allocation23] sm:$0xff] %v6083_v28  ;;  %v6086_v17 = vadd.f32 %v6859_v30, %v6085_v16  ;;  %v6962_v33 = vpop.f32.mrb[23].mxu1 }
 0x900   :  { %6090 = vst [vmem:[#allocation23 + $0x8] sm:$0xff] %v6086_v17 }
 0x901   :  { %8465 = shalt.err (!%p8462_p10)
}
 0x902   :  { %s8466_s29 = scalar_lea.hbm %s8917_s13, 256 }
 0x903   :  { %p8467_p11 = scmp.ne.s32.totalorder %s8917_s13, %s8466_s29  ;;  %p8470_p12 = scmp.lt.u32.totalorder %s8466_s29, %s8917_s13 }
 0x905   :  { %p8472_p13 = pnand %p8470_p12, %p8467_p11 }
 0x907   :  { %8475 = shalt.err (!%p8472_p13)
}
 0x908   :  { %6102 = dma.vmem_to_hbm [thread:$0]  %s6097_s3, 256, %s8917_s13, [#allocation4], %s8502_s5, %s8502_s5, %s8503_s19  }
 0x909   :  { %8490 = dma.done.wait [#allocation4], 256  }
 0x90a   :  { %8491 = vsyncadd [#allocation4], 4294967040 }
 0x90b   :  { %6106 = vsyncpa [#allocation3], 1 }
 0x90c   :  { %6107 = vsyncpa [#allocation6], 1 }
 0x90d   :  { %6108 = vsyncpa [#allocation9], 1 }
 0x90e   :  { %6109 = vsyncpa [#allocation12], 1 }
 0x90f   :  { %6110 = vsyncpa [#allocation15], 1 }
 0x910   :  { %6111 = vsyncpa [#allocation18], 1 }
 0x911   :  { %6112 = vsyncpa [#allocation21], 1 }
 0x912   :  { %6113 = vsyncpa [#allocation4], 1 }

</bundles_post_ra>
